<compile_context>
chip_gen: v5e
topology: v5e:2x2
jax: 0.10.0
libtpu: 0.0.40
codegen_flags: <defaults>
</compile_context>

<pallas_src>
import functools

import numpy as np
import jax
import jax.numpy as jnp
from jax.experimental import pallas as pl
from jax.experimental.pallas import tpu as pltpu

EPS = 1e-6                      # torch module uses nn.LayerNorm(..., eps=1e-06) throughout
MXU_DTYPE = jnp.bfloat16        # bf16 matmul inputs on ALL generations (v5e MXU is bf16-native)
NEG_INF = -1e9


# --------------------------------------------------------------------------- #
# shared math helpers (the pure-JAX reference applies the identical bf16-input /
# f32-accumulate matmul policy so the correctness check stays tight)
# --------------------------------------------------------------------------- #
def _c(x):
    return x.astype(MXU_DTYPE)


def _mm(a, b):
    """a @ b with MXU-friendly input dtype and f32 accumulation (reference path)."""
    return jnp.dot(_c(a), _c(b), preferred_element_type=jnp.float32)


def _layernorm(x, gamma, beta):
    mu = jnp.mean(x, axis=-1, keepdims=True)
    var = jnp.mean((x - mu) ** 2, axis=-1, keepdims=True)
    return (x - mu) * jax.lax.rsqrt(var + EPS) * gamma + beta


def _softmax_exact(x):
    m = jnp.max(x, axis=-1, keepdims=True)
    e = jnp.exp(x - m)
    return e / jnp.sum(e, axis=-1, keepdims=True)


def _mask_to_bias(mask):
    """0/1 attention mask -> additive bias (0 where attended, -1e9 where masked)."""
    return jnp.where(mask.astype(jnp.float32) > 0.5,
                     jnp.float32(0.0), jnp.float32(NEG_INF))


# --------------------------------------------------------------------------- #
# fused decoder kernel: one grid step == one batch element, whole forward pass
# --------------------------------------------------------------------------- #
def vdecoder_kernel(
        # batched (per grid step)
        trg_ref, enc_ref, sbias_ref, cbias_ref,
        # shared weights (constant block index -> DMA'd once)
        wtrg_ref,                 # (A, D)                bf16
        aLR_ref,                  # (2, D, D)             bf16  [left/right propagation mats]
        wLR_ref,                  # (2, (g+1)*D, D)       bf16  [mixprop output weights]
        vec_ref,                  # (N, D)                f32   packed bias/gamma/beta/pos table
        awq_ref,                  # (nl, 2, D, H*dk)      bf16
        awkv_ref,                 # (nl, 2, D, H*(dk+dv)) bf16  [wk | wv fused]
        awo_ref,                  # (nl, 2, H*dv, D)      bf16
        fw1_ref,                  # (nl, D, d_inner)      bf16
        fb1_ref,                  # (nl, 1, d_inner)      f32
        fw2_ref,                  # (nl, d_inner, D)      bf16
        # output
        out_ref,
        *, n_layers, n_head, d_k, d_v, gdep, alpha):

    Lq = trg_ref.shape[1]
    Lk = enc_ref.shape[1]
    H = n_head
    kq = H * d_k                           # lane offset where V starts in the fused K|V proj
    scale = 1.0 / (d_k ** 0.5)

    # packed vector-table row indices (static)
    BTRG, BL, BR, GGAM, GBET, LGAM, LBET, POS0 = 0, 1, 2, 3, 4, 5, 6, 7
    LBASE = POS0 + Lq                      # per-layer rows start here (7 rows per layer)
    vec = vec_ref[...]                     # (N, D) f32, loaded once

    def vrow(i):                           # (1, D) row, static index
        return vec[i:i + 1, :]

    # ---- target embedding ---------------------------------------------------
    feats = jnp.dot(trg_ref[0].astype(MXU_DTYPE), wtrg_ref[...],
                    preferred_element_type=jnp.float32) + vrow(BTRG)          # (Lq, D) f32
    feats_b = feats.astype(MXU_DTYPE)

    # ---- mixprop GCN: sequential propagation + ONE wide matmul per side -----
    def mixprop(side, brow):
        a_T = aLR_ref[side]                                                   # (D, D) bf16
        h = feats
        outs = [feats_b]
        for _ in range(gdep):                                                 # static, unrolled
            h = alpha * feats + (1.0 - alpha) * jnp.dot(
                h.astype(MXU_DTYPE), a_T, preferred_element_type=jnp.float32)
            outs.append(h.astype(MXU_DTYPE))
        hcat = jnp.concatenate(outs, axis=-1)                                 # (Lq, (g+1)*D) bf16
        return jnp.dot(hcat, wLR_ref[side],
                       preferred_element_type=jnp.float32) + vrow(brow)

    ho = mixprop(0, BL) + mixprop(1, BR)
    x = _layernorm(ho + feats, vrow(GGAM), vrow(GBET)) + vec[POS0:POS0 + Lq, :]

    # ---- hoisted loop invariants --------------------------------------------
    enc_b = enc_ref[0].astype(MXU_DTYPE)                                      # (Lk, D) bf16
    slf_bias = sbias_ref[0]                                                   # (Lq, Lq) f32
    crs_bias = jnp.broadcast_to(cbias_ref[0], (Lq, Lk))                       # hoisted broadcast

    def mha(x_f32, kv_b, bias, l, a):
        """Post-norm residual MHA: fused Q proj (1 push), fused K|V proj (1 push),
        single shared K transpose, per-head softmax, fused output proj (1 push)."""
        x_b = x_f32.astype(MXU_DTYPE)
        if kv_b is None:                       # self-attention: reuse the single cast
            kv_b = x_b
        q_all = jnp.dot(x_b, awq_ref[l, a], preferred_element_type=jnp.float32)
        kv_all = jnp.dot(kv_b, awkv_ref[l, a], preferred_element_type=jnp.float32)
        q_b = q_all.astype(MXU_DTYPE)                                         # (Lq, H*dk)
        kT_b = kv_all[:, :kq].T.astype(MXU_DTYPE)                             # (H*dk, Lkv)
        v_b = kv_all[:, kq:].astype(MXU_DTYPE)                                # (Lkv, H*dv)
        ctx = []
        for h in range(H):                                                    # static, unrolled
            s = jnp.dot(q_b[:, h * d_k:(h + 1) * d_k],
                        kT_b[h * d_k:(h + 1) * d_k, :],
                        preferred_element_type=jnp.float32) * scale + bias
            m = jnp.max(s, axis=-1, keepdims=True)
            e = jnp.exp(s - m)
            p = e * pl.reciprocal(jnp.sum(e, axis=-1, keepdims=True), approx=True)
            ctx.append(jnp.dot(p.astype(MXU_DTYPE),
                               v_b[:, h * d_v:(h + 1) * d_v],
                               preferred_element_type=jnp.float32).astype(MXU_DTYPE))
        ctx_cat = jnp.concatenate(ctx, axis=-1)                               # (Lq, H*dv)
        out = x_f32 + jnp.dot(ctx_cat, awo_ref[l, a],
                              preferred_element_type=jnp.float32)
        gi = LBASE + 7 * l + 2 * a
        return _layernorm(out, vrow(gi), vrow(gi + 1))

    def ffn(x_f32, l):
        h = jax.nn.relu(jnp.dot(x_f32.astype(MXU_DTYPE), fw1_ref[l],
                                preferred_element_type=jnp.float32) + fb1_ref[l])
        y = jnp.dot(h.astype(MXU_DTYPE), fw2_ref[l],
                    preferred_element_type=jnp.float32) + vrow(LBASE + 7 * l + 4)
        return _layernorm(y + x_f32, vrow(LBASE + 7 * l + 5), vrow(LBASE + 7 * l + 6))

    for l in range(n_layers):                                                 # static, unrolled
        x = mha(x, None, slf_bias, l, 0)       # masked self-attention
        x = mha(x, enc_b, crs_bias, l, 1)      # encoder-decoder attention
        x = ffn(x, l)

    out_ref[0] = _layernorm(x, vrow(LGAM), vrow(LBET))


# --------------------------------------------------------------------------- #
# BlockSpec helpers
# --------------------------------------------------------------------------- #
def _const_index(nd):
    return lambda b: (0,) * nd


def _batch_index(nd):
    return lambda b: (b,) + (0,) * (nd - 1)


def _batched_spec(shape):
    nd = len(shape)
    blk = (1,) + tuple(shape[1:])
    if shape[0] == 1:      # identical across batch -> constant block index (no re-DMA)
        return pl.BlockSpec(blk, _const_index(nd))
    return pl.BlockSpec(blk, _batch_index(nd))


def _shared_spec(shape, single_buffer):
    nd = len(shape)
    if single_buffer:      # constant block index, never revisited -> single-buffer it
        return pl.BlockSpec(tuple(shape), _const_index(nd), pipeline_mode=pl.Buffered(1))
    return pl.BlockSpec(tuple(shape), _const_index(nd))


# --------------------------------------------------------------------------- #
# graph constructor + mixprop adjacency (tiny D x D math incl. top_k -> JAX glue)
# --------------------------------------------------------------------------- #
def build_graph(params, cfg):
    D = cfg["d_word_vec"]
    al = cfg["gc_alpha"]
    n1 = jnp.tanh(al * (params["gc_emb1"] @ params["gc_lin1_w"] + params["gc_lin1_b"]))
    n2 = jnp.tanh(al * (params["gc_emb2"] @ params["gc_lin2_w"] + params["gc_lin2_b"]))
    a = n1 @ n2.T - n2 @ n1.T
    adj = jax.nn.relu(jnp.tanh(al * a))
    # TODO(synk): torch graph_constructor adds rand()*0.01 before topk as a tie-break;
    #             the deterministic version here omits that randomness.
    _, idx = jax.lax.top_k(adj, cfg["k"])
    mask = jnp.zeros((D, D), jnp.float32).at[jnp.arange(D)[:, None], idx].set(1.0)
    return adj * mask


def mixprop_prop_mat(adj):
    D = adj.shape[0]
    a = adj + jnp.eye(D, dtype=adj.dtype)
    a = a / jnp.sum(a, axis=1, keepdims=True)
    return a.T                                  # kernel computes h @ a.T


# --------------------------------------------------------------------------- #
# full forward: pack weights once, run one fused pallas_call
# --------------------------------------------------------------------------- #
def vdecoder_forward(params, trg_seq, trg_mask, enc_output, src_mask, *, cfg):
    B, Lq, _ = trg_seq.shape
    D, H = cfg["d_word_vec"], cfg["n_head"]
    dk, dv = cfg["d_k"], cfg["d_v"]
    nl, g = cfg["n_layers"], cfg["gcn_layers"]
    assert cfg["d_model"] == D, "residual / LayerNorm dims require d_model == d_word_vec"

    # graph adjacency (learned, data-dependent top_k) -> plain JAX
    adj = build_graph(params, cfg)
    aLR = jnp.stack([mixprop_prop_mat(adj), mixprop_prop_mat(adj.T)]).astype(MXU_DTYPE)

    gp = params["embed_gcn"]
    wLR = jnp.stack([gp["wL"], gp["wR"]]).astype(MXU_DTYPE)        # (2, (g+1)*D, D)
    w_trg = gp["w_trg"].astype(MXU_DTYPE)

    # additive, un-broadcast attention biases
    slf_bias = _mask_to_bias(trg_mask)          # (1 or B, Lq, Lq)
    crs_bias = _mask_to_bias(src_mask)          # (1 or B, 1,  Lk)

    # ---- packed (N, D) f32 vector table: 7 head rows | Lq pos rows | 7 rows per layer ----
    def r(v):
        return jnp.reshape(v, (D,)).astype(jnp.float32)

    lyr = params["layers"]
    head_rows = jnp.stack([r(gp["b_trg"]), r(gp["bL"]), r(gp["bR"]),
                           r(gp["gcn_gamma"]), r(gp["gcn_beta"]),
                           r(params["ln_gamma"]), r(params["ln_beta"])])
    layer_rows = []
    for l in range(nl):
        lp = lyr[l]
        layer_rows += [r(lp["slf"]["gamma"]), r(lp["slf"]["beta"]),
                       r(lp["enc"]["gamma"]), r(lp["enc"]["beta"]),
                       r(lp["ffn"]["b2"]), r(lp["ffn"]["gamma"]), r(lp["ffn"]["beta"])]
    vec = jnp.concatenate([head_rows,
                           params["pos_table"][:Lq].astype(jnp.float32),
                           jnp.stack(layer_rows)], axis=0)

    # ---- fused attention / FFN weight stacks, pre-cast to bf16 ----
    awq = jnp.stack([jnp.stack([lyr[l][t]["wq"] for t in ("slf", "enc")])
                     for l in range(nl)]).astype(MXU_DTYPE)                     # (nl,2,D,H*dk)
    awkv = jnp.stack([jnp.stack([jnp.concatenate([lyr[l][t]["wk"], lyr[l][t]["wv"]], axis=1)
                                 for t in ("slf", "enc")])
                      for l in range(nl)]).astype(MXU_DTYPE)                    # (nl,2,D,H*(dk+dv))
    awo = jnp.stack([jnp.stack([lyr[l][t]["wo"] for t in ("slf", "enc")])
                     for l in range(nl)]).astype(MXU_DTYPE)                     # (nl,2,H*dv,D)
    fw1 = jnp.stack([lyr[l]["ffn"]["w1"] for l in range(nl)]).astype(MXU_DTYPE)
    fw2 = jnp.stack([lyr[l]["ffn"]["w2"] for l in range(nl)]).astype(MXU_DTYPE)
    fb1 = jnp.stack([lyr[l]["ffn"]["b1"] for l in range(nl)]).astype(jnp.float32)  # (nl,1,d_inner)

    batched = [trg_seq, enc_output, slf_bias, crs_bias]
    shared = [w_trg, aLR, wLR, vec, awq, awkv, awo, fw1, fb1, fw2]

    kern = functools.partial(vdecoder_kernel, n_layers=nl, n_head=H, d_k=dk, d_v=dv,
                             gdep=g, alpha=cfg["gcn_alpha"])

    def call(single_buffer):
        return pl.pallas_call(
            kern,
            out_shape=jax.ShapeDtypeStruct((B, Lq, D), jnp.float32),
            grid=(B,),
            in_specs=[_batched_spec(a.shape) for a in batched]
                     + [_shared_spec(a.shape, single_buffer) for a in shared],
            out_specs=pl.BlockSpec((1, Lq, D), _batch_index(3)),
            compiler_params=pltpu.CompilerParams(dimension_semantics=("parallel",)),
        )(*batched, *shared)

    try:
        return call(True)          # shared weights single-buffered (constant block index)
    except Exception:
        # TODO(synk): pl.Buffered(1) single-buffering unsupported on this jax version;
        # fall back to default double-buffering (only a little extra VMEM at this size).
        return call(False)


# --------------------------------------------------------------------------- #
# pure-JAX reference (same math + same matmul-input casts) for correctness check
# --------------------------------------------------------------------------- #
def reference_forward(params, trg_seq, trg_mask, enc_output, src_mask, *, cfg):
    D, H = cfg["d_word_vec"], cfg["n_head"]
    dk, dv = cfg["d_k"], cfg["d_v"]
    g, alpha = cfg["gcn_layers"], cfg["gcn_alpha"]

    adj = build_graph(params, cfg)
    aL_T, aR_T = mixprop_prop_mat(adj), mixprop_prop_mat(adj.T)
    p = params["embed_gcn"]

    feats = _mm(trg_seq, p["w_trg"]) + p["b_trg"]

    def mix(a_T, w, b):
        h = feats
        outs = [h]
        for _ in range(g):
            h = alpha * feats + (1.0 - alpha) * _mm(h, a_T)
            outs.append(h)
        return _mm(jnp.concatenate(outs, -1), w) + b

    ho = mix(aL_T, p["wL"], p["bL"]) + mix(aR_T, p["wR"], p["bR"])
    x = _layernorm(ho + feats, p["gcn_gamma"], p["gcn_beta"])
    x = x + params["pos_table"][: trg_seq.shape[1]][None]

    B = x.shape[0]
    slf_bias = _mask_to_bias(trg_mask)
    crs_bias = _mask_to_bias(src_mask)
    scale = 1.0 / (dk ** 0.5)

    def mha(q, kv, bias, lp):
        Q = _mm(q, lp["wq"]).reshape(B, -1, H, dk)
        K = _mm(kv, lp["wk"]).reshape(B, -1, H, dk)
        V = _mm(kv, lp["wv"]).reshape(B, -1, H, dv)
        s = jnp.einsum("bqhd,bkhd->bhqk", _c(Q), _c(K),
                       preferred_element_type=jnp.float32) * scale
        s = s + bias[:, None]
        attn = _softmax_exact(s)
        ctx = jnp.einsum("bhqk,bkhd->bqhd", _c(attn), _c(V),
                         preferred_element_type=jnp.float32).reshape(B, -1, H * dv)
        out = _mm(ctx, lp["wo"]) + q
        return _layernorm(out, lp["gamma"], lp["beta"])

    for lp in params["layers"]:
        x = mha(x, x, slf_bias, lp["slf"])
        x = mha(x, enc_output, crs_bias, lp["enc"])
        fp = lp["ffn"]
        h = jax.nn.relu(_mm(x, fp["w1"]) + fp["b1"])
        x = _layernorm(_mm(h, fp["w2"]) + fp["b2"] + x, fp["gamma"], fp["beta"])
    return _layernorm(x, params["ln_gamma"], params["ln_beta"])


# --------------------------------------------------------------------------- #
# parameters
# --------------------------------------------------------------------------- #
def sinusoid_table(n_position, d_hid):
    pos = np.arange(n_position)[:, None].astype(np.float64)
    hid = np.arange(d_hid)[None, :]
    angle = pos / np.power(10000, 2 * (hid // 2) / d_hid)
    table = np.zeros((n_position, d_hid))
    table[:, 0::2] = np.sin(angle[:, 0::2])
    table[:, 1::2] = np.cos(angle[:, 1::2])
    return jnp.asarray(table, dtype=jnp.float32)


def init_params(key, cfg):
    D, A = cfg["d_word_vec"], cfg["ad_size"]
    dk, dv, H = cfg["d_k"], cfg["d_v"], cfg["n_head"]
    dinner, g = cfg["d_inner"], cfg["gcn_layers"]
    keys = iter(jax.random.split(key, 128))

    def w(shape, scale=0.1):
        return (scale * jax.random.normal(next(keys), shape)).astype(jnp.float32)

    params = {
        "gc_emb1": w((D, dk)), "gc_emb2": w((D, dk)),
        "gc_lin1_w": w((dk, dk)), "gc_lin1_b": w((dk,), 0.02),
        "gc_lin2_w": w((dk, dk)), "gc_lin2_b": w((dk,), 0.02),
        "embed_gcn": dict(
            w_trg=w((A, D)), b_trg=w((1, D), 0.02),
            wL=w(((g + 1) * D, D)), bL=w((1, D), 0.02),
            wR=w(((g + 1) * D, D)), bR=w((1, D), 0.02),
            gcn_gamma=jnp.ones((1, D), jnp.float32),
            gcn_beta=jnp.zeros((1, D), jnp.float32),
        ),
        "pos_table": sinusoid_table(cfg["n_position"], D),
        "ln_gamma": jnp.ones((1, D), jnp.float32),
        "ln_beta": jnp.zeros((1, D), jnp.float32),
    }

    def attn_params():
        return dict(wq=w((D, H * dk)), wk=w((D, H * dk)), wv=w((D, H * dv)),
                    wo=w((H * dv, D)),
                    gamma=jnp.ones((1, D), jnp.float32),
                    beta=jnp.zeros((1, D), jnp.float32))

    params["layers"] = [
        dict(slf=attn_params(), enc=attn_params(),
             ffn=dict(w1=w((D, dinner)), b1=w((1, dinner), 0.02),
                      w2=w((dinner, D)), b2=w((1, D), 0.02),
                      gamma=jnp.ones((1, D), jnp.float32),
                      beta=jnp.zeros((1, D), jnp.float32)))
        for _ in range(cfg["n_layers"])
    ]
    return params


# --------------------------------------------------------------------------- #
if __name__ == "__main__":
    cfg = dict(ad_size=10, d_word_vec=32, d_model=32, n_layers=2, n_head=4,
               d_k=8, d_v=8, d_inner=64, n_position=200,
               gcn_layers=2, gcn_alpha=0.2, gc_alpha=3.0, k=2)

    key = jax.random.PRNGKey(0)
    pkey, k1, k2 = jax.random.split(key, 3)
    params = init_params(pkey, cfg)

    B, Lq, Lk = 2, 8, 8
    trg_seq = jax.random.normal(k1, (B, Lq, cfg["ad_size"]), jnp.float32)
    enc_output = jax.random.normal(k2, (B, Lk, cfg["d_model"]), jnp.float32)
    # causal self-attention mask (shared across batch); full-attend source mask
    trg_mask = jnp.tril(jnp.ones((Lq, Lq), jnp.float32))[None]      # (1, Lq, Lq)
    src_mask = jnp.ones((1, 1, Lk), jnp.float32)                    # (1, 1,  Lk)

    out = vdecoder_forward(params, trg_seq, trg_mask, enc_output, src_mask, cfg=cfg)
    out = jax.block_until_ready(out)

    ref = reference_forward(params, trg_seq, trg_mask, enc_output, src_mask, cfg=cfg)
    assert out.shape == (B, Lq, cfg["d_model"])
    # Kernel and reference share the same bf16-input matmul policy; the only unmatched ops
    # are the in-kernel EUP approximate reciprocal in softmax and f32 accumulation order
    # (both <~1e-3 at these magnitudes), so 1e-2 keeps a meaningful but robust check.
    np.testing.assert_allclose(np.asarray(out), np.asarray(ref), rtol=1e-2, atol=1e-2)
    print("KERNEL_OK")
</pallas_src>

<mosaic_0001>
module attributes {stable_mosaic.version = 11 : i64} {
  func.func @vdecoder_kernel(%arg0: i32, %arg1: memref<1x8x10xf32, #tpu.memory_space<vmem>>, %arg2: memref<1x8x32xf32, #tpu.memory_space<vmem>>, %arg3: memref<1x8x8xf32, #tpu.memory_space<vmem>>, %arg4: memref<1x1x8xf32, #tpu.memory_space<vmem>>, %arg5: memref<10x32xbf16, #tpu.memory_space<vmem>>, %arg6: memref<2x32x32xbf16, #tpu.memory_space<vmem>>, %arg7: memref<2x96x32xbf16, #tpu.memory_space<vmem>>, %arg8: memref<29x32xf32, #tpu.memory_space<vmem>>, %arg9: memref<2x2x32x32xbf16, #tpu.memory_space<vmem>>, %arg10: memref<2x2x32x64xbf16, #tpu.memory_space<vmem>>, %arg11: memref<2x2x32x32xbf16, #tpu.memory_space<vmem>>, %arg12: memref<2x32x64xbf16, #tpu.memory_space<vmem>>, %arg13: memref<2x1x64xf32, #tpu.memory_space<vmem>>, %arg14: memref<2x64x32xbf16, #tpu.memory_space<vmem>>, %arg15: memref<1x8x32xf32, #tpu.memory_space<vmem>>) attributes {dimension_semantics = [#tpu.dimension_semantics<parallel>], iteration_bounds = array<i64: 2>, scalar_prefetch = 0 : i64, scratch_operands = 0 : i64, tpu.core_type = #tpu.core_type<tc>, window_params = [{transform_indices = @transform_0, window_bounds = array<i64: 1, 8, 10>}, {transform_indices = @transform_1, window_bounds = array<i64: 1, 8, 32>}, {pipeline_mode = #tpu.pipeline_mode<synchronous>, transform_indices = @transform_2, window_bounds = array<i64: 1, 8, 8>}, {pipeline_mode = #tpu.pipeline_mode<synchronous>, transform_indices = @transform_3, window_bounds = array<i64: 1, 1, 8>}, {pipeline_mode = #tpu.pipeline_mode<synchronous>, transform_indices = @transform_4, window_bounds = array<i64: 10, 32>}, {pipeline_mode = #tpu.pipeline_mode<synchronous>, transform_indices = @transform_5, window_bounds = array<i64: 2, 32, 32>}, {pipeline_mode = #tpu.pipeline_mode<synchronous>, transform_indices = @transform_6, window_bounds = array<i64: 2, 96, 32>}, {pipeline_mode = #tpu.pipeline_mode<synchronous>, transform_indices = @transform_7, window_bounds = array<i64: 29, 32>}, {pipeline_mode = #tpu.pipeline_mode<synchronous>, transform_indices = @transform_8, window_bounds = array<i64: 2, 2, 32, 32>}, {pipeline_mode = #tpu.pipeline_mode<synchronous>, transform_indices = @transform_9, window_bounds = array<i64: 2, 2, 32, 64>}, {pipeline_mode = #tpu.pipeline_mode<synchronous>, transform_indices = @transform_10, window_bounds = array<i64: 2, 2, 32, 32>}, {pipeline_mode = #tpu.pipeline_mode<synchronous>, transform_indices = @transform_11, window_bounds = array<i64: 2, 32, 64>}, {pipeline_mode = #tpu.pipeline_mode<synchronous>, transform_indices = @transform_12, window_bounds = array<i64: 2, 1, 64>}, {pipeline_mode = #tpu.pipeline_mode<synchronous>, transform_indices = @transform_13, window_bounds = array<i64: 2, 64, 32>}, {transform_indices = @transform_14, window_bounds = array<i64: 1, 8, 32>}]} {
    %c0 = arith.constant 0 : index
    %c0_0 = arith.constant 0 : index
    %0 = vector.load %arg8[%c0, %c0_0] : memref<29x32xf32, #tpu.memory_space<vmem>>, vector<29x32xf32>
    %c0_1 = arith.constant 0 : index
    %c0_2 = arith.constant 0 : index
    %c0_3 = arith.constant 0 : index
    %1 = vector.load %arg1[%c0_1, %c0_2, %c0_3] : memref<1x8x10xf32, #tpu.memory_space<vmem>>, vector<1x8x10xf32>
    %2 = vector.shape_cast %1 : vector<1x8x10xf32> to vector<8x10xf32>
    %3 = arith.truncf %2 : vector<8x10xf32> to vector<8x10xbf16>
    %c0_4 = arith.constant 0 : index
    %c0_5 = arith.constant 0 : index
    %4 = vector.load %arg5[%c0_4, %c0_5] : memref<10x32xbf16, #tpu.memory_space<vmem>>, vector<10x32xbf16>
    %cst = arith.constant dense<0.000000e+00> : vector<8x32xf32>
    %5 = tpu.matmul %3, %4, %cst {dimension_numbers = #tpu.dot_dimension_numbers<[1], [0], [0], [1], [0, 0, 1, 1], [], []>} : vector<8x10xbf16>, vector<10x32xbf16>, vector<8x32xf32> -> vector<8x32xf32>
    %6 = vector.extract_strided_slice %0 {offsets = [0, 0], sizes = [1, 32], strides = [1, 1]} : vector<29x32xf32> to vector<1x32xf32>
    %7 = vector.broadcast %6 : vector<1x32xf32> to vector<8x32xf32>
    %8 = arith.addf %5, %7 : vector<8x32xf32>
    %9 = arith.truncf %8 : vector<8x32xf32> to vector<8x32xbf16>
    %c0_6 = arith.constant 0 : index
    %c0_7 = arith.constant 0 : index
    %c0_8 = arith.constant 0 : index
    %10 = vector.load %arg6[%c0_6, %c0_7, %c0_8] : memref<2x32x32xbf16, #tpu.memory_space<vmem>>, vector<1x32x32xbf16>
    %11 = vector.shape_cast %10 : vector<1x32x32xbf16> to vector<32x32xbf16>
    %cst_9 = arith.constant 2.000000e-01 : f32
    %12 = vector.broadcast %cst_9 : f32 to vector<8x32xf32>
    %13 = arith.mulf %12, %8 : vector<8x32xf32>
    %14 = arith.truncf %8 : vector<8x32xf32> to vector<8x32xbf16>
    %cst_10 = arith.constant dense<0.000000e+00> : vector<8x32xf32>
    %15 = tpu.matmul %14, %11, %cst_10 {dimension_numbers = #tpu.dot_dimension_numbers<[1], [0], [0], [1], [0, 0, 1, 1], [], []>} : vector<8x32xbf16>, vector<32x32xbf16>, vector<8x32xf32> -> vector<8x32xf32>
    %cst_11 = arith.constant 8.000000e-01 : f32
    %16 = vector.broadcast %cst_11 : f32 to vector<8x32xf32>
    %17 = arith.mulf %16, %15 : vector<8x32xf32>
    %18 = arith.addf %13, %17 : vector<8x32xf32>
    %19 = arith.truncf %18 : vector<8x32xf32> to vector<8x32xbf16>
    %cst_12 = arith.constant 2.000000e-01 : f32
    %20 = vector.broadcast %cst_12 : f32 to vector<8x32xf32>
    %21 = arith.mulf %20, %8 : vector<8x32xf32>
    %22 = arith.truncf %18 : vector<8x32xf32> to vector<8x32xbf16>
    %cst_13 = arith.constant dense<0.000000e+00> : vector<8x32xf32>
    %23 = tpu.matmul %22, %11, %cst_13 {dimension_numbers = #tpu.dot_dimension_numbers<[1], [0], [0], [1], [0, 0, 1, 1], [], []>} : vector<8x32xbf16>, vector<32x32xbf16>, vector<8x32xf32> -> vector<8x32xf32>
    %cst_14 = arith.constant 8.000000e-01 : f32
    %24 = vector.broadcast %cst_14 : f32 to vector<8x32xf32>
    %25 = arith.mulf %24, %23 : vector<8x32xf32>
    %26 = arith.addf %21, %25 : vector<8x32xf32>
    %27 = arith.truncf %26 : vector<8x32xf32> to vector<8x32xbf16>
    %28 = tpu.concatenate %9, %19, %27 in 1 : vector<8x32xbf16>, vector<8x32xbf16>, vector<8x32xbf16> -> vector<8x96xbf16>
    %c0_15 = arith.constant 0 : index
    %c0_16 = arith.constant 0 : index
    %c0_17 = arith.constant 0 : index
    %29 = vector.load %arg7[%c0_15, %c0_16, %c0_17] : memref<2x96x32xbf16, #tpu.memory_space<vmem>>, vector<1x96x32xbf16>
    %30 = vector.shape_cast %29 : vector<1x96x32xbf16> to vector<96x32xbf16>
    %cst_18 = arith.constant dense<0.000000e+00> : vector<8x32xf32>
    %31 = tpu.matmul %28, %30, %cst_18 {dimension_numbers = #tpu.dot_dimension_numbers<[1], [0], [0], [1], [0, 0, 1, 1], [], []>} : vector<8x96xbf16>, vector<96x32xbf16>, vector<8x32xf32> -> vector<8x32xf32>
    %32 = vector.extract_strided_slice %0 {offsets = [1, 0], sizes = [1, 32], strides = [1, 1]} : vector<29x32xf32> to vector<1x32xf32>
    %33 = vector.broadcast %32 : vector<1x32xf32> to vector<8x32xf32>
    %34 = arith.addf %31, %33 : vector<8x32xf32>
    %c1 = arith.constant 1 : index
    %c0_19 = arith.constant 0 : index
    %c0_20 = arith.constant 0 : index
    %35 = vector.load %arg6[%c1, %c0_19, %c0_20] : memref<2x32x32xbf16, #tpu.memory_space<vmem>>, vector<1x32x32xbf16>
    %36 = vector.shape_cast %35 : vector<1x32x32xbf16> to vector<32x32xbf16>
    %cst_21 = arith.constant 2.000000e-01 : f32
    %37 = vector.broadcast %cst_21 : f32 to vector<8x32xf32>
    %38 = arith.mulf %37, %8 : vector<8x32xf32>
    %39 = arith.truncf %8 : vector<8x32xf32> to vector<8x32xbf16>
    %cst_22 = arith.constant dense<0.000000e+00> : vector<8x32xf32>
    %40 = tpu.matmul %39, %36, %cst_22 {dimension_numbers = #tpu.dot_dimension_numbers<[1], [0], [0], [1], [0, 0, 1, 1], [], []>} : vector<8x32xbf16>, vector<32x32xbf16>, vector<8x32xf32> -> vector<8x32xf32>
    %cst_23 = arith.constant 8.000000e-01 : f32
    %41 = vector.broadcast %cst_23 : f32 to vector<8x32xf32>
    %42 = arith.mulf %41, %40 : vector<8x32xf32>
    %43 = arith.addf %38, %42 : vector<8x32xf32>
    %44 = arith.truncf %43 : vector<8x32xf32> to vector<8x32xbf16>
    %cst_24 = arith.constant 2.000000e-01 : f32
    %45 = vector.broadcast %cst_24 : f32 to vector<8x32xf32>
    %46 = arith.mulf %45, %8 : vector<8x32xf32>
    %47 = arith.truncf %43 : vector<8x32xf32> to vector<8x32xbf16>
    %cst_25 = arith.constant dense<0.000000e+00> : vector<8x32xf32>
    %48 = tpu.matmul %47, %36, %cst_25 {dimension_numbers = #tpu.dot_dimension_numbers<[1], [0], [0], [1], [0, 0, 1, 1], [], []>} : vector<8x32xbf16>, vector<32x32xbf16>, vector<8x32xf32> -> vector<8x32xf32>
    %cst_26 = arith.constant 8.000000e-01 : f32
    %49 = vector.broadcast %cst_26 : f32 to vector<8x32xf32>
    %50 = arith.mulf %49, %48 : vector<8x32xf32>
    %51 = arith.addf %46, %50 : vector<8x32xf32>
    %52 = arith.truncf %51 : vector<8x32xf32> to vector<8x32xbf16>
    %53 = tpu.concatenate %9, %44, %52 in 1 : vector<8x32xbf16>, vector<8x32xbf16>, vector<8x32xbf16> -> vector<8x96xbf16>
    %c1_27 = arith.constant 1 : index
    %c0_28 = arith.constant 0 : index
    %c0_29 = arith.constant 0 : index
    %54 = vector.load %arg7[%c1_27, %c0_28, %c0_29] : memref<2x96x32xbf16, #tpu.memory_space<vmem>>, vector<1x96x32xbf16>
    %55 = vector.shape_cast %54 : vector<1x96x32xbf16> to vector<96x32xbf16>
    %cst_30 = arith.constant dense<0.000000e+00> : vector<8x32xf32>
    %56 = tpu.matmul %53, %55, %cst_30 {dimension_numbers = #tpu.dot_dimension_numbers<[1], [0], [0], [1], [0, 0, 1, 1], [], []>} : vector<8x96xbf16>, vector<96x32xbf16>, vector<8x32xf32> -> vector<8x32xf32>
    %57 = vector.extract_strided_slice %0 {offsets = [2, 0], sizes = [1, 32], strides = [1, 1]} : vector<29x32xf32> to vector<1x32xf32>
    %58 = vector.broadcast %57 : vector<1x32xf32> to vector<8x32xf32>
    %59 = arith.addf %56, %58 : vector<8x32xf32>
    %60 = arith.addf %34, %59 : vector<8x32xf32>
    %61 = arith.addf %60, %8 : vector<8x32xf32>
    %62 = vector.extract_strided_slice %0 {offsets = [3, 0], sizes = [1, 32], strides = [1, 1]} : vector<29x32xf32> to vector<1x32xf32>
    %63 = vector.extract_strided_slice %0 {offsets = [4, 0], sizes = [1, 32], strides = [1, 1]} : vector<29x32xf32> to vector<1x32xf32>
    %cst_31 = arith.constant dense<0.000000e+00> : vector<8xf32>
    %64 = vector.multi_reduction <add>, %61, %cst_31 [1] : vector<8x32xf32> to vector<8xf32>
    %65 = vector.shape_cast %64 : vector<8xf32> to vector<8x1xf32>
    %cst_32 = arith.constant 3.200000e+01 : f32
    %66 = vector.broadcast %cst_32 : f32 to vector<8x1xf32>
    %67 = arith.divf %65, %66 : vector<8x1xf32>
    %68 = vector.broadcast %67 : vector<8x1xf32> to vector<8x32xf32>
    %69 = arith.subf %61, %68 : vector<8x32xf32>
    %70 = arith.mulf %69, %69 : vector<8x32xf32>
    %cst_33 = arith.constant dense<0.000000e+00> : vector<8xf32>
    %71 = vector.multi_reduction <add>, %70, %cst_33 [1] : vector<8x32xf32> to vector<8xf32>
    %72 = vector.shape_cast %71 : vector<8xf32> to vector<8x1xf32>
    %cst_34 = arith.constant 3.200000e+01 : f32
    %73 = vector.broadcast %cst_34 : f32 to vector<8x1xf32>
    %74 = arith.divf %72, %73 : vector<8x1xf32>
    %75 = vector.broadcast %67 : vector<8x1xf32> to vector<8x32xf32>
    %76 = arith.subf %61, %75 : vector<8x32xf32>
    %cst_35 = arith.constant 9.99999997E-7 : f32
    %77 = vector.broadcast %cst_35 : f32 to vector<8x1xf32>
    %78 = arith.addf %74, %77 : vector<8x1xf32>
    %79 = math.rsqrt %78 : vector<8x1xf32>
    %80 = vector.broadcast %79 : vector<8x1xf32> to vector<8x32xf32>
    %81 = arith.mulf %76, %80 : vector<8x32xf32>
    %82 = vector.broadcast %62 : vector<1x32xf32> to vector<8x32xf32>
    %83 = arith.mulf %81, %82 : vector<8x32xf32>
    %84 = vector.broadcast %63 : vector<1x32xf32> to vector<8x32xf32>
    %85 = arith.addf %83, %84 : vector<8x32xf32>
    %86 = vector.extract_strided_slice %0 {offsets = [7, 0], sizes = [8, 32], strides = [1, 1]} : vector<29x32xf32> to vector<8x32xf32>
    %87 = arith.addf %85, %86 : vector<8x32xf32>
    %c0_36 = arith.constant 0 : index
    %c0_37 = arith.constant 0 : index
    %c0_38 = arith.constant 0 : index
    %88 = vector.load %arg2[%c0_36, %c0_37, %c0_38] : memref<1x8x32xf32, #tpu.memory_space<vmem>>, vector<1x8x32xf32>
    %89 = vector.shape_cast %88 : vector<1x8x32xf32> to vector<8x32xf32>
    %90 = arith.truncf %89 : vector<8x32xf32> to vector<8x32xbf16>
    %c0_39 = arith.constant 0 : index
    %c0_40 = arith.constant 0 : index
    %c0_41 = arith.constant 0 : index
    %91 = vector.load %arg3[%c0_39, %c0_40, %c0_41] : memref<1x8x8xf32, #tpu.memory_space<vmem>>, vector<1x8x8xf32>
    %92 = vector.shape_cast %91 : vector<1x8x8xf32> to vector<8x8xf32>
    %c0_42 = arith.constant 0 : index
    %c0_43 = arith.constant 0 : index
    %c0_44 = arith.constant 0 : index
    %93 = vector.load %arg4[%c0_42, %c0_43, %c0_44] : memref<1x1x8xf32, #tpu.memory_space<vmem>>, vector<1x1x8xf32>
    %94 = vector.shape_cast %93 : vector<1x1x8xf32> to vector<1x8xf32>
    %95 = vector.shape_cast %94 : vector<1x8xf32> to vector<1x8xf32>
    %96 = vector.broadcast %95 : vector<1x8xf32> to vector<8x8xf32>
    %97 = arith.truncf %87 : vector<8x32xf32> to vector<8x32xbf16>
    %c0_45 = arith.constant 0 : index
    %c0_46 = arith.constant 0 : index
    %c0_47 = arith.constant 0 : index
    %c0_48 = arith.constant 0 : index
    %98 = vector.load %arg9[%c0_45, %c0_46, %c0_47, %c0_48] : memref<2x2x32x32xbf16, #tpu.memory_space<vmem>>, vector<1x1x32x32xbf16>
    %99 = vector.shape_cast %98 : vector<1x1x32x32xbf16> to vector<32x32xbf16>
    %cst_49 = arith.constant dense<0.000000e+00> : vector<8x32xf32>
    %100 = tpu.matmul %97, %99, %cst_49 {dimension_numbers = #tpu.dot_dimension_numbers<[1], [0], [0], [1], [0, 0, 1, 1], [], []>} : vector<8x32xbf16>, vector<32x32xbf16>, vector<8x32xf32> -> vector<8x32xf32>
    %c0_50 = arith.constant 0 : index
    %c0_51 = arith.constant 0 : index
    %c0_52 = arith.constant 0 : index
    %c0_53 = arith.constant 0 : index
    %101 = vector.load %arg10[%c0_50, %c0_51, %c0_52, %c0_53] : memref<2x2x32x64xbf16, #tpu.memory_space<vmem>>, vector<1x1x32x64xbf16>
    %102 = vector.shape_cast %101 : vector<1x1x32x64xbf16> to vector<32x64xbf16>
    %cst_54 = arith.constant dense<0.000000e+00> : vector<8x64xf32>
    %103 = tpu.matmul %97, %102, %cst_54 {dimension_numbers = #tpu.dot_dimension_numbers<[1], [0], [0], [1], [0, 0, 1, 1], [], []>} : vector<8x32xbf16>, vector<32x64xbf16>, vector<8x64xf32> -> vector<8x64xf32>
    %104 = arith.truncf %100 : vector<8x32xf32> to vector<8x32xbf16>
    %105 = vector.extract_strided_slice %103 {offsets = [0, 0], sizes = [8, 32], strides = [1, 1]} : vector<8x64xf32> to vector<8x32xf32>
    %106 = tpu.transpose %105, [1, 0] : vector<8x32xf32> -> vector<32x8xf32>
    %107 = arith.truncf %106 : vector<32x8xf32> to vector<32x8xbf16>
    %108 = vector.extract_strided_slice %103 {offsets = [0, 32], sizes = [8, 32], strides = [1, 1]} : vector<8x64xf32> to vector<8x32xf32>
    %109 = arith.truncf %108 : vector<8x32xf32> to vector<8x32xbf16>
    %110 = vector.extract_strided_slice %104 {offsets = [0, 0], sizes = [8, 8], strides = [1, 1]} : vector<8x32xbf16> to vector<8x8xbf16>
    %111 = vector.extract_strided_slice %107 {offsets = [0, 0], sizes = [8, 8], strides = [1, 1]} : vector<32x8xbf16> to vector<8x8xbf16>
    %cst_55 = arith.constant dense<0.000000e+00> : vector<8x8xf32>
    %112 = tpu.matmul %110, %111, %cst_55 {dimension_numbers = #tpu.dot_dimension_numbers<[1], [0], [0], [1], [0, 0, 1, 1], [], []>} : vector<8x8xbf16>, vector<8x8xbf16>, vector<8x8xf32> -> vector<8x8xf32>
    %cst_56 = arith.constant 0.353553385 : f32
    %113 = vector.broadcast %cst_56 : f32 to vector<8x8xf32>
    %114 = arith.mulf %112, %113 : vector<8x8xf32>
    %115 = arith.addf %114, %92 : vector<8x8xf32>
    %cst_57 = arith.constant dense<0xFF800000> : vector<8xf32>
    %116 = vector.multi_reduction <maximumf>, %115, %cst_57 [1] : vector<8x8xf32> to vector<8xf32>
    %117 = vector.shape_cast %116 : vector<8xf32> to vector<8x1xf32>
    %118 = vector.broadcast %117 : vector<8x1xf32> to vector<8x8xf32>
    %119 = arith.subf %115, %118 : vector<8x8xf32>
    %120 = math.exp %119 : vector<8x8xf32>
    %cst_58 = arith.constant dense<0.000000e+00> : vector<8xf32>
    %121 = vector.multi_reduction <add>, %120, %cst_58 [1] : vector<8x8xf32> to vector<8xf32>
    %122 = vector.shape_cast %121 : vector<8xf32> to vector<8x1xf32>
    %123 = tpu.reciprocal %122 {approx = true} : vector<8x1xf32> -> vector<8x1xf32>
    %124 = vector.broadcast %123 : vector<8x1xf32> to vector<8x8xf32>
    %125 = arith.mulf %120, %124 : vector<8x8xf32>
    %126 = arith.truncf %125 : vector<8x8xf32> to vector<8x8xbf16>
    %127 = vector.extract_strided_slice %109 {offsets = [0, 0], sizes = [8, 8], strides = [1, 1]} : vector<8x32xbf16> to vector<8x8xbf16>
    %cst_59 = arith.constant dense<0.000000e+00> : vector<8x8xf32>
    %128 = tpu.matmul %126, %127, %cst_59 {dimension_numbers = #tpu.dot_dimension_numbers<[1], [0], [0], [1], [0, 0, 1, 1], [], []>} : vector<8x8xbf16>, vector<8x8xbf16>, vector<8x8xf32> -> vector<8x8xf32>
    %129 = arith.truncf %128 : vector<8x8xf32> to vector<8x8xbf16>
    %130 = vector.extract_strided_slice %104 {offsets = [0, 8], sizes = [8, 8], strides = [1, 1]} : vector<8x32xbf16> to vector<8x8xbf16>
    %131 = vector.extract_strided_slice %107 {offsets = [8, 0], sizes = [8, 8], strides = [1, 1]} : vector<32x8xbf16> to vector<8x8xbf16>
    %cst_60 = arith.constant dense<0.000000e+00> : vector<8x8xf32>
    %132 = tpu.matmul %130, %131, %cst_60 {dimension_numbers = #tpu.dot_dimension_numbers<[1], [0], [0], [1], [0, 0, 1, 1], [], []>} : vector<8x8xbf16>, vector<8x8xbf16>, vector<8x8xf32> -> vector<8x8xf32>
    %cst_61 = arith.constant 0.353553385 : f32
    %133 = vector.broadcast %cst_61 : f32 to vector<8x8xf32>
    %134 = arith.mulf %132, %133 : vector<8x8xf32>
    %135 = arith.addf %134, %92 : vector<8x8xf32>
    %cst_62 = arith.constant dense<0xFF800000> : vector<8xf32>
    %136 = vector.multi_reduction <maximumf>, %135, %cst_62 [1] : vector<8x8xf32> to vector<8xf32>
    %137 = vector.shape_cast %136 : vector<8xf32> to vector<8x1xf32>
    %138 = vector.broadcast %137 : vector<8x1xf32> to vector<8x8xf32>
    %139 = arith.subf %135, %138 : vector<8x8xf32>
    %140 = math.exp %139 : vector<8x8xf32>
    %cst_63 = arith.constant dense<0.000000e+00> : vector<8xf32>
    %141 = vector.multi_reduction <add>, %140, %cst_63 [1] : vector<8x8xf32> to vector<8xf32>
    %142 = vector.shape_cast %141 : vector<8xf32> to vector<8x1xf32>
    %143 = tpu.reciprocal %142 {approx = true} : vector<8x1xf32> -> vector<8x1xf32>
    %144 = vector.broadcast %143 : vector<8x1xf32> to vector<8x8xf32>
    %145 = arith.mulf %140, %144 : vector<8x8xf32>
    %146 = arith.truncf %145 : vector<8x8xf32> to vector<8x8xbf16>
    %147 = vector.extract_strided_slice %109 {offsets = [0, 8], sizes = [8, 8], strides = [1, 1]} : vector<8x32xbf16> to vector<8x8xbf16>
    %cst_64 = arith.constant dense<0.000000e+00> : vector<8x8xf32>
    %148 = tpu.matmul %146, %147, %cst_64 {dimension_numbers = #tpu.dot_dimension_numbers<[1], [0], [0], [1], [0, 0, 1, 1], [], []>} : vector<8x8xbf16>, vector<8x8xbf16>, vector<8x8xf32> -> vector<8x8xf32>
    %149 = arith.truncf %148 : vector<8x8xf32> to vector<8x8xbf16>
    %150 = vector.extract_strided_slice %104 {offsets = [0, 16], sizes = [8, 8], strides = [1, 1]} : vector<8x32xbf16> to vector<8x8xbf16>
    %151 = vector.extract_strided_slice %107 {offsets = [16, 0], sizes = [8, 8], strides = [1, 1]} : vector<32x8xbf16> to vector<8x8xbf16>
    %cst_65 = arith.constant dense<0.000000e+00> : vector<8x8xf32>
    %152 = tpu.matmul %150, %151, %cst_65 {dimension_numbers = #tpu.dot_dimension_numbers<[1], [0], [0], [1], [0, 0, 1, 1], [], []>} : vector<8x8xbf16>, vector<8x8xbf16>, vector<8x8xf32> -> vector<8x8xf32>
    %cst_66 = arith.constant 0.353553385 : f32
    %153 = vector.broadcast %cst_66 : f32 to vector<8x8xf32>
    %154 = arith.mulf %152, %153 : vector<8x8xf32>
    %155 = arith.addf %154, %92 : vector<8x8xf32>
    %cst_67 = arith.constant dense<0xFF800000> : vector<8xf32>
    %156 = vector.multi_reduction <maximumf>, %155, %cst_67 [1] : vector<8x8xf32> to vector<8xf32>
    %157 = vector.shape_cast %156 : vector<8xf32> to vector<8x1xf32>
    %158 = vector.broadcast %157 : vector<8x1xf32> to vector<8x8xf32>
    %159 = arith.subf %155, %158 : vector<8x8xf32>
    %160 = math.exp %159 : vector<8x8xf32>
    %cst_68 = arith.constant dense<0.000000e+00> : vector<8xf32>
    %161 = vector.multi_reduction <add>, %160, %cst_68 [1] : vector<8x8xf32> to vector<8xf32>
    %162 = vector.shape_cast %161 : vector<8xf32> to vector<8x1xf32>
    %163 = tpu.reciprocal %162 {approx = true} : vector<8x1xf32> -> vector<8x1xf32>
    %164 = vector.broadcast %163 : vector<8x1xf32> to vector<8x8xf32>
    %165 = arith.mulf %160, %164 : vector<8x8xf32>
    %166 = arith.truncf %165 : vector<8x8xf32> to vector<8x8xbf16>
    %167 = vector.extract_strided_slice %109 {offsets = [0, 16], sizes = [8, 8], strides = [1, 1]} : vector<8x32xbf16> to vector<8x8xbf16>
    %cst_69 = arith.constant dense<0.000000e+00> : vector<8x8xf32>
    %168 = tpu.matmul %166, %167, %cst_69 {dimension_numbers = #tpu.dot_dimension_numbers<[1], [0], [0], [1], [0, 0, 1, 1], [], []>} : vector<8x8xbf16>, vector<8x8xbf16>, vector<8x8xf32> -> vector<8x8xf32>
    %169 = arith.truncf %168 : vector<8x8xf32> to vector<8x8xbf16>
    %170 = vector.extract_strided_slice %104 {offsets = [0, 24], sizes = [8, 8], strides = [1, 1]} : vector<8x32xbf16> to vector<8x8xbf16>
    %171 = vector.extract_strided_slice %107 {offsets = [24, 0], sizes = [8, 8], strides = [1, 1]} : vector<32x8xbf16> to vector<8x8xbf16>
    %cst_70 = arith.constant dense<0.000000e+00> : vector<8x8xf32>
    %172 = tpu.matmul %170, %171, %cst_70 {dimension_numbers = #tpu.dot_dimension_numbers<[1], [0], [0], [1], [0, 0, 1, 1], [], []>} : vector<8x8xbf16>, vector<8x8xbf16>, vector<8x8xf32> -> vector<8x8xf32>
    %cst_71 = arith.constant 0.353553385 : f32
    %173 = vector.broadcast %cst_71 : f32 to vector<8x8xf32>
    %174 = arith.mulf %172, %173 : vector<8x8xf32>
    %175 = arith.addf %174, %92 : vector<8x8xf32>
    %cst_72 = arith.constant dense<0xFF800000> : vector<8xf32>
    %176 = vector.multi_reduction <maximumf>, %175, %cst_72 [1] : vector<8x8xf32> to vector<8xf32>
    %177 = vector.shape_cast %176 : vector<8xf32> to vector<8x1xf32>
    %178 = vector.broadcast %177 : vector<8x1xf32> to vector<8x8xf32>
    %179 = arith.subf %175, %178 : vector<8x8xf32>
    %180 = math.exp %179 : vector<8x8xf32>
    %cst_73 = arith.constant dense<0.000000e+00> : vector<8xf32>
    %181 = vector.multi_reduction <add>, %180, %cst_73 [1] : vector<8x8xf32> to vector<8xf32>
    %182 = vector.shape_cast %181 : vector<8xf32> to vector<8x1xf32>
    %183 = tpu.reciprocal %182 {approx = true} : vector<8x1xf32> -> vector<8x1xf32>
    %184 = vector.broadcast %183 : vector<8x1xf32> to vector<8x8xf32>
    %185 = arith.mulf %180, %184 : vector<8x8xf32>
    %186 = arith.truncf %185 : vector<8x8xf32> to vector<8x8xbf16>
    %187 = vector.extract_strided_slice %109 {offsets = [0, 24], sizes = [8, 8], strides = [1, 1]} : vector<8x32xbf16> to vector<8x8xbf16>
    %cst_74 = arith.constant dense<0.000000e+00> : vector<8x8xf32>
    %188 = tpu.matmul %186, %187, %cst_74 {dimension_numbers = #tpu.dot_dimension_numbers<[1], [0], [0], [1], [0, 0, 1, 1], [], []>} : vector<8x8xbf16>, vector<8x8xbf16>, vector<8x8xf32> -> vector<8x8xf32>
    %189 = arith.truncf %188 : vector<8x8xf32> to vector<8x8xbf16>
    %190 = tpu.concatenate %129, %149, %169, %189 in 1 : vector<8x8xbf16>, vector<8x8xbf16>, vector<8x8xbf16>, vector<8x8xbf16> -> vector<8x32xbf16>
    %c0_75 = arith.constant 0 : index
    %c0_76 = arith.constant 0 : index
    %c0_77 = arith.constant 0 : index
    %c0_78 = arith.constant 0 : index
    %191 = vector.load %arg11[%c0_75, %c0_76, %c0_77, %c0_78] : memref<2x2x32x32xbf16, #tpu.memory_space<vmem>>, vector<1x1x32x32xbf16>
    %192 = vector.shape_cast %191 : vector<1x1x32x32xbf16> to vector<32x32xbf16>
    %cst_79 = arith.constant dense<0.000000e+00> : vector<8x32xf32>
    %193 = tpu.matmul %190, %192, %cst_79 {dimension_numbers = #tpu.dot_dimension_numbers<[1], [0], [0], [1], [0, 0, 1, 1], [], []>} : vector<8x32xbf16>, vector<32x32xbf16>, vector<8x32xf32> -> vector<8x32xf32>
    %194 = arith.addf %87, %193 : vector<8x32xf32>
    %195 = vector.extract_strided_slice %0 {offsets = [15, 0], sizes = [1, 32], strides = [1, 1]} : vector<29x32xf32> to vector<1x32xf32>
    %196 = vector.extract_strided_slice %0 {offsets = [16, 0], sizes = [1, 32], strides = [1, 1]} : vector<29x32xf32> to vector<1x32xf32>
    %cst_80 = arith.constant dense<0.000000e+00> : vector<8xf32>
    %197 = vector.multi_reduction <add>, %194, %cst_80 [1] : vector<8x32xf32> to vector<8xf32>
    %198 = vector.shape_cast %197 : vector<8xf32> to vector<8x1xf32>
    %cst_81 = arith.constant 3.200000e+01 : f32
    %199 = vector.broadcast %cst_81 : f32 to vector<8x1xf32>
    %200 = arith.divf %198, %199 : vector<8x1xf32>
    %201 = vector.broadcast %200 : vector<8x1xf32> to vector<8x32xf32>
    %202 = arith.subf %194, %201 : vector<8x32xf32>
    %203 = arith.mulf %202, %202 : vector<8x32xf32>
    %cst_82 = arith.constant dense<0.000000e+00> : vector<8xf32>
    %204 = vector.multi_reduction <add>, %203, %cst_82 [1] : vector<8x32xf32> to vector<8xf32>
    %205 = vector.shape_cast %204 : vector<8xf32> to vector<8x1xf32>
    %cst_83 = arith.constant 3.200000e+01 : f32
    %206 = vector.broadcast %cst_83 : f32 to vector<8x1xf32>
    %207 = arith.divf %205, %206 : vector<8x1xf32>
    %208 = vector.broadcast %200 : vector<8x1xf32> to vector<8x32xf32>
    %209 = arith.subf %194, %208 : vector<8x32xf32>
    %cst_84 = arith.constant 9.99999997E-7 : f32
    %210 = vector.broadcast %cst_84 : f32 to vector<8x1xf32>
    %211 = arith.addf %207, %210 : vector<8x1xf32>
    %212 = math.rsqrt %211 : vector<8x1xf32>
    %213 = vector.broadcast %212 : vector<8x1xf32> to vector<8x32xf32>
    %214 = arith.mulf %209, %213 : vector<8x32xf32>
    %215 = vector.broadcast %195 : vector<1x32xf32> to vector<8x32xf32>
    %216 = arith.mulf %214, %215 : vector<8x32xf32>
    %217 = vector.broadcast %196 : vector<1x32xf32> to vector<8x32xf32>
    %218 = arith.addf %216, %217 : vector<8x32xf32>
    %219 = arith.truncf %218 : vector<8x32xf32> to vector<8x32xbf16>
    %c0_85 = arith.constant 0 : index
    %c1_86 = arith.constant 1 : index
    %c0_87 = arith.constant 0 : index
    %c0_88 = arith.constant 0 : index
    %220 = vector.load %arg9[%c0_85, %c1_86, %c0_87, %c0_88] : memref<2x2x32x32xbf16, #tpu.memory_space<vmem>>, vector<1x1x32x32xbf16>
    %221 = vector.shape_cast %220 : vector<1x1x32x32xbf16> to vector<32x32xbf16>
    %cst_89 = arith.constant dense<0.000000e+00> : vector<8x32xf32>
    %222 = tpu.matmul %219, %221, %cst_89 {dimension_numbers = #tpu.dot_dimension_numbers<[1], [0], [0], [1], [0, 0, 1, 1], [], []>} : vector<8x32xbf16>, vector<32x32xbf16>, vector<8x32xf32> -> vector<8x32xf32>
    %c0_90 = arith.constant 0 : index
    %c1_91 = arith.constant 1 : index
    %c0_92 = arith.constant 0 : index
    %c0_93 = arith.constant 0 : index
    %223 = vector.load %arg10[%c0_90, %c1_91, %c0_92, %c0_93] : memref<2x2x32x64xbf16, #tpu.memory_space<vmem>>, vector<1x1x32x64xbf16>
    %224 = vector.shape_cast %223 : vector<1x1x32x64xbf16> to vector<32x64xbf16>
    %cst_94 = arith.constant dense<0.000000e+00> : vector<8x64xf32>
    %225 = tpu.matmul %90, %224, %cst_94 {dimension_numbers = #tpu.dot_dimension_numbers<[1], [0], [0], [1], [0, 0, 1, 1], [], []>} : vector<8x32xbf16>, vector<32x64xbf16>, vector<8x64xf32> -> vector<8x64xf32>
    %226 = arith.truncf %222 : vector<8x32xf32> to vector<8x32xbf16>
    %227 = vector.extract_strided_slice %225 {offsets = [0, 0], sizes = [8, 32], strides = [1, 1]} : vector<8x64xf32> to vector<8x32xf32>
    %228 = tpu.transpose %227, [1, 0] : vector<8x32xf32> -> vector<32x8xf32>
    %229 = arith.truncf %228 : vector<32x8xf32> to vector<32x8xbf16>
    %230 = vector.extract_strided_slice %225 {offsets = [0, 32], sizes = [8, 32], strides = [1, 1]} : vector<8x64xf32> to vector<8x32xf32>
    %231 = arith.truncf %230 : vector<8x32xf32> to vector<8x32xbf16>
    %232 = vector.extract_strided_slice %226 {offsets = [0, 0], sizes = [8, 8], strides = [1, 1]} : vector<8x32xbf16> to vector<8x8xbf16>
    %233 = vector.extract_strided_slice %229 {offsets = [0, 0], sizes = [8, 8], strides = [1, 1]} : vector<32x8xbf16> to vector<8x8xbf16>
    %cst_95 = arith.constant dense<0.000000e+00> : vector<8x8xf32>
    %234 = tpu.matmul %232, %233, %cst_95 {dimension_numbers = #tpu.dot_dimension_numbers<[1], [0], [0], [1], [0, 0, 1, 1], [], []>} : vector<8x8xbf16>, vector<8x8xbf16>, vector<8x8xf32> -> vector<8x8xf32>
    %cst_96 = arith.constant 0.353553385 : f32
    %235 = vector.broadcast %cst_96 : f32 to vector<8x8xf32>
    %236 = arith.mulf %234, %235 : vector<8x8xf32>
    %237 = arith.addf %236, %96 : vector<8x8xf32>
    %cst_97 = arith.constant dense<0xFF800000> : vector<8xf32>
    %238 = vector.multi_reduction <maximumf>, %237, %cst_97 [1] : vector<8x8xf32> to vector<8xf32>
    %239 = vector.shape_cast %238 : vector<8xf32> to vector<8x1xf32>
    %240 = vector.broadcast %239 : vector<8x1xf32> to vector<8x8xf32>
    %241 = arith.subf %237, %240 : vector<8x8xf32>
    %242 = math.exp %241 : vector<8x8xf32>
    %cst_98 = arith.constant dense<0.000000e+00> : vector<8xf32>
    %243 = vector.multi_reduction <add>, %242, %cst_98 [1] : vector<8x8xf32> to vector<8xf32>
    %244 = vector.shape_cast %243 : vector<8xf32> to vector<8x1xf32>
    %245 = tpu.reciprocal %244 {approx = true} : vector<8x1xf32> -> vector<8x1xf32>
    %246 = vector.broadcast %245 : vector<8x1xf32> to vector<8x8xf32>
    %247 = arith.mulf %242, %246 : vector<8x8xf32>
    %248 = arith.truncf %247 : vector<8x8xf32> to vector<8x8xbf16>
    %249 = vector.extract_strided_slice %231 {offsets = [0, 0], sizes = [8, 8], strides = [1, 1]} : vector<8x32xbf16> to vector<8x8xbf16>
    %cst_99 = arith.constant dense<0.000000e+00> : vector<8x8xf32>
    %250 = tpu.matmul %248, %249, %cst_99 {dimension_numbers = #tpu.dot_dimension_numbers<[1], [0], [0], [1], [0, 0, 1, 1], [], []>} : vector<8x8xbf16>, vector<8x8xbf16>, vector<8x8xf32> -> vector<8x8xf32>
    %251 = arith.truncf %250 : vector<8x8xf32> to vector<8x8xbf16>
    %252 = vector.extract_strided_slice %226 {offsets = [0, 8], sizes = [8, 8], strides = [1, 1]} : vector<8x32xbf16> to vector<8x8xbf16>
    %253 = vector.extract_strided_slice %229 {offsets = [8, 0], sizes = [8, 8], strides = [1, 1]} : vector<32x8xbf16> to vector<8x8xbf16>
    %cst_100 = arith.constant dense<0.000000e+00> : vector<8x8xf32>
    %254 = tpu.matmul %252, %253, %cst_100 {dimension_numbers = #tpu.dot_dimension_numbers<[1], [0], [0], [1], [0, 0, 1, 1], [], []>} : vector<8x8xbf16>, vector<8x8xbf16>, vector<8x8xf32> -> vector<8x8xf32>
    %cst_101 = arith.constant 0.353553385 : f32
    %255 = vector.broadcast %cst_101 : f32 to vector<8x8xf32>
    %256 = arith.mulf %254, %255 : vector<8x8xf32>
    %257 = arith.addf %256, %96 : vector<8x8xf32>
    %cst_102 = arith.constant dense<0xFF800000> : vector<8xf32>
    %258 = vector.multi_reduction <maximumf>, %257, %cst_102 [1] : vector<8x8xf32> to vector<8xf32>
    %259 = vector.shape_cast %258 : vector<8xf32> to vector<8x1xf32>
    %260 = vector.broadcast %259 : vector<8x1xf32> to vector<8x8xf32>
    %261 = arith.subf %257, %260 : vector<8x8xf32>
    %262 = math.exp %261 : vector<8x8xf32>
    %cst_103 = arith.constant dense<0.000000e+00> : vector<8xf32>
    %263 = vector.multi_reduction <add>, %262, %cst_103 [1] : vector<8x8xf32> to vector<8xf32>
    %264 = vector.shape_cast %263 : vector<8xf32> to vector<8x1xf32>
    %265 = tpu.reciprocal %264 {approx = true} : vector<8x1xf32> -> vector<8x1xf32>
    %266 = vector.broadcast %265 : vector<8x1xf32> to vector<8x8xf32>
    %267 = arith.mulf %262, %266 : vector<8x8xf32>
    %268 = arith.truncf %267 : vector<8x8xf32> to vector<8x8xbf16>
    %269 = vector.extract_strided_slice %231 {offsets = [0, 8], sizes = [8, 8], strides = [1, 1]} : vector<8x32xbf16> to vector<8x8xbf16>
    %cst_104 = arith.constant dense<0.000000e+00> : vector<8x8xf32>
    %270 = tpu.matmul %268, %269, %cst_104 {dimension_numbers = #tpu.dot_dimension_numbers<[1], [0], [0], [1], [0, 0, 1, 1], [], []>} : vector<8x8xbf16>, vector<8x8xbf16>, vector<8x8xf32> -> vector<8x8xf32>
    %271 = arith.truncf %270 : vector<8x8xf32> to vector<8x8xbf16>
    %272 = vector.extract_strided_slice %226 {offsets = [0, 16], sizes = [8, 8], strides = [1, 1]} : vector<8x32xbf16> to vector<8x8xbf16>
    %273 = vector.extract_strided_slice %229 {offsets = [16, 0], sizes = [8, 8], strides = [1, 1]} : vector<32x8xbf16> to vector<8x8xbf16>
    %cst_105 = arith.constant dense<0.000000e+00> : vector<8x8xf32>
    %274 = tpu.matmul %272, %273, %cst_105 {dimension_numbers = #tpu.dot_dimension_numbers<[1], [0], [0], [1], [0, 0, 1, 1], [], []>} : vector<8x8xbf16>, vector<8x8xbf16>, vector<8x8xf32> -> vector<8x8xf32>
    %cst_106 = arith.constant 0.353553385 : f32
    %275 = vector.broadcast %cst_106 : f32 to vector<8x8xf32>
    %276 = arith.mulf %274, %275 : vector<8x8xf32>
    %277 = arith.addf %276, %96 : vector<8x8xf32>
    %cst_107 = arith.constant dense<0xFF800000> : vector<8xf32>
    %278 = vector.multi_reduction <maximumf>, %277, %cst_107 [1] : vector<8x8xf32> to vector<8xf32>
    %279 = vector.shape_cast %278 : vector<8xf32> to vector<8x1xf32>
    %280 = vector.broadcast %279 : vector<8x1xf32> to vector<8x8xf32>
    %281 = arith.subf %277, %280 : vector<8x8xf32>
    %282 = math.exp %281 : vector<8x8xf32>
    %cst_108 = arith.constant dense<0.000000e+00> : vector<8xf32>
    %283 = vector.multi_reduction <add>, %282, %cst_108 [1] : vector<8x8xf32> to vector<8xf32>
    %284 = vector.shape_cast %283 : vector<8xf32> to vector<8x1xf32>
    %285 = tpu.reciprocal %284 {approx = true} : vector<8x1xf32> -> vector<8x1xf32>
    %286 = vector.broadcast %285 : vector<8x1xf32> to vector<8x8xf32>
    %287 = arith.mulf %282, %286 : vector<8x8xf32>
    %288 = arith.truncf %287 : vector<8x8xf32> to vector<8x8xbf16>
    %289 = vector.extract_strided_slice %231 {offsets = [0, 16], sizes = [8, 8], strides = [1, 1]} : vector<8x32xbf16> to vector<8x8xbf16>
    %cst_109 = arith.constant dense<0.000000e+00> : vector<8x8xf32>
    %290 = tpu.matmul %288, %289, %cst_109 {dimension_numbers = #tpu.dot_dimension_numbers<[1], [0], [0], [1], [0, 0, 1, 1], [], []>} : vector<8x8xbf16>, vector<8x8xbf16>, vector<8x8xf32> -> vector<8x8xf32>
    %291 = arith.truncf %290 : vector<8x8xf32> to vector<8x8xbf16>
    %292 = vector.extract_strided_slice %226 {offsets = [0, 24], sizes = [8, 8], strides = [1, 1]} : vector<8x32xbf16> to vector<8x8xbf16>
    %293 = vector.extract_strided_slice %229 {offsets = [24, 0], sizes = [8, 8], strides = [1, 1]} : vector<32x8xbf16> to vector<8x8xbf16>
    %cst_110 = arith.constant dense<0.000000e+00> : vector<8x8xf32>
    %294 = tpu.matmul %292, %293, %cst_110 {dimension_numbers = #tpu.dot_dimension_numbers<[1], [0], [0], [1], [0, 0, 1, 1], [], []>} : vector<8x8xbf16>, vector<8x8xbf16>, vector<8x8xf32> -> vector<8x8xf32>
    %cst_111 = arith.constant 0.353553385 : f32
    %295 = vector.broadcast %cst_111 : f32 to vector<8x8xf32>
    %296 = arith.mulf %294, %295 : vector<8x8xf32>
    %297 = arith.addf %296, %96 : vector<8x8xf32>
    %cst_112 = arith.constant dense<0xFF800000> : vector<8xf32>
    %298 = vector.multi_reduction <maximumf>, %297, %cst_112 [1] : vector<8x8xf32> to vector<8xf32>
    %299 = vector.shape_cast %298 : vector<8xf32> to vector<8x1xf32>
    %300 = vector.broadcast %299 : vector<8x1xf32> to vector<8x8xf32>
    %301 = arith.subf %297, %300 : vector<8x8xf32>
    %302 = math.exp %301 : vector<8x8xf32>
    %cst_113 = arith.constant dense<0.000000e+00> : vector<8xf32>
    %303 = vector.multi_reduction <add>, %302, %cst_113 [1] : vector<8x8xf32> to vector<8xf32>
    %304 = vector.shape_cast %303 : vector<8xf32> to vector<8x1xf32>
    %305 = tpu.reciprocal %304 {approx = true} : vector<8x1xf32> -> vector<8x1xf32>
    %306 = vector.broadcast %305 : vector<8x1xf32> to vector<8x8xf32>
    %307 = arith.mulf %302, %306 : vector<8x8xf32>
    %308 = arith.truncf %307 : vector<8x8xf32> to vector<8x8xbf16>
    %309 = vector.extract_strided_slice %231 {offsets = [0, 24], sizes = [8, 8], strides = [1, 1]} : vector<8x32xbf16> to vector<8x8xbf16>
    %cst_114 = arith.constant dense<0.000000e+00> : vector<8x8xf32>
    %310 = tpu.matmul %308, %309, %cst_114 {dimension_numbers = #tpu.dot_dimension_numbers<[1], [0], [0], [1], [0, 0, 1, 1], [], []>} : vector<8x8xbf16>, vector<8x8xbf16>, vector<8x8xf32> -> vector<8x8xf32>
    %311 = arith.truncf %310 : vector<8x8xf32> to vector<8x8xbf16>
    %312 = tpu.concatenate %251, %271, %291, %311 in 1 : vector<8x8xbf16>, vector<8x8xbf16>, vector<8x8xbf16>, vector<8x8xbf16> -> vector<8x32xbf16>
    %c0_115 = arith.constant 0 : index
    %c1_116 = arith.constant 1 : index
    %c0_117 = arith.constant 0 : index
    %c0_118 = arith.constant 0 : index
    %313 = vector.load %arg11[%c0_115, %c1_116, %c0_117, %c0_118] : memref<2x2x32x32xbf16, #tpu.memory_space<vmem>>, vector<1x1x32x32xbf16>
    %314 = vector.shape_cast %313 : vector<1x1x32x32xbf16> to vector<32x32xbf16>
    %cst_119 = arith.constant dense<0.000000e+00> : vector<8x32xf32>
    %315 = tpu.matmul %312, %314, %cst_119 {dimension_numbers = #tpu.dot_dimension_numbers<[1], [0], [0], [1], [0, 0, 1, 1], [], []>} : vector<8x32xbf16>, vector<32x32xbf16>, vector<8x32xf32> -> vector<8x32xf32>
    %316 = arith.addf %218, %315 : vector<8x32xf32>
    %317 = vector.extract_strided_slice %0 {offsets = [17, 0], sizes = [1, 32], strides = [1, 1]} : vector<29x32xf32> to vector<1x32xf32>
    %318 = vector.extract_strided_slice %0 {offsets = [18, 0], sizes = [1, 32], strides = [1, 1]} : vector<29x32xf32> to vector<1x32xf32>
    %cst_120 = arith.constant dense<0.000000e+00> : vector<8xf32>
    %319 = vector.multi_reduction <add>, %316, %cst_120 [1] : vector<8x32xf32> to vector<8xf32>
    %320 = vector.shape_cast %319 : vector<8xf32> to vector<8x1xf32>
    %cst_121 = arith.constant 3.200000e+01 : f32
    %321 = vector.broadcast %cst_121 : f32 to vector<8x1xf32>
    %322 = arith.divf %320, %321 : vector<8x1xf32>
    %323 = vector.broadcast %322 : vector<8x1xf32> to vector<8x32xf32>
    %324 = arith.subf %316, %323 : vector<8x32xf32>
    %325 = arith.mulf %324, %324 : vector<8x32xf32>
    %cst_122 = arith.constant dense<0.000000e+00> : vector<8xf32>
    %326 = vector.multi_reduction <add>, %325, %cst_122 [1] : vector<8x32xf32> to vector<8xf32>
    %327 = vector.shape_cast %326 : vector<8xf32> to vector<8x1xf32>
    %cst_123 = arith.constant 3.200000e+01 : f32
    %328 = vector.broadcast %cst_123 : f32 to vector<8x1xf32>
    %329 = arith.divf %327, %328 : vector<8x1xf32>
    %330 = vector.broadcast %322 : vector<8x1xf32> to vector<8x32xf32>
    %331 = arith.subf %316, %330 : vector<8x32xf32>
    %cst_124 = arith.constant 9.99999997E-7 : f32
    %332 = vector.broadcast %cst_124 : f32 to vector<8x1xf32>
    %333 = arith.addf %329, %332 : vector<8x1xf32>
    %334 = math.rsqrt %333 : vector<8x1xf32>
    %335 = vector.broadcast %334 : vector<8x1xf32> to vector<8x32xf32>
    %336 = arith.mulf %331, %335 : vector<8x32xf32>
    %337 = vector.broadcast %317 : vector<1x32xf32> to vector<8x32xf32>
    %338 = arith.mulf %336, %337 : vector<8x32xf32>
    %339 = vector.broadcast %318 : vector<1x32xf32> to vector<8x32xf32>
    %340 = arith.addf %338, %339 : vector<8x32xf32>
    %341 = arith.truncf %340 : vector<8x32xf32> to vector<8x32xbf16>
    %c0_125 = arith.constant 0 : index
    %c0_126 = arith.constant 0 : index
    %c0_127 = arith.constant 0 : index
    %342 = vector.load %arg12[%c0_125, %c0_126, %c0_127] : memref<2x32x64xbf16, #tpu.memory_space<vmem>>, vector<1x32x64xbf16>
    %343 = vector.shape_cast %342 : vector<1x32x64xbf16> to vector<32x64xbf16>
    %cst_128 = arith.constant dense<0.000000e+00> : vector<8x64xf32>
    %344 = tpu.matmul %341, %343, %cst_128 {dimension_numbers = #tpu.dot_dimension_numbers<[1], [0], [0], [1], [0, 0, 1, 1], [], []>} : vector<8x32xbf16>, vector<32x64xbf16>, vector<8x64xf32> -> vector<8x64xf32>
    %c0_129 = arith.constant 0 : index
    %c0_130 = arith.constant 0 : index
    %c0_131 = arith.constant 0 : index
    %345 = vector.load %arg13[%c0_129, %c0_130, %c0_131] : memref<2x1x64xf32, #tpu.memory_space<vmem>>, vector<1x1x64xf32>
    %346 = vector.shape_cast %345 : vector<1x1x64xf32> to vector<1x64xf32>
    %347 = vector.broadcast %346 : vector<1x64xf32> to vector<8x64xf32>
    %348 = arith.addf %344, %347 : vector<8x64xf32>
    %cst_132 = arith.constant 0.000000e+00 : f32
    %349 = vector.broadcast %cst_132 : f32 to vector<8x64xf32>
    %350 = arith.maximumf %348, %349 : vector<8x64xf32>
    %351 = arith.truncf %350 : vector<8x64xf32> to vector<8x64xbf16>
    %c0_133 = arith.constant 0 : index
    %c0_134 = arith.constant 0 : index
    %c0_135 = arith.constant 0 : index
    %352 = vector.load %arg14[%c0_133, %c0_134, %c0_135] : memref<2x64x32xbf16, #tpu.memory_space<vmem>>, vector<1x64x32xbf16>
    %353 = vector.shape_cast %352 : vector<1x64x32xbf16> to vector<64x32xbf16>
    %cst_136 = arith.constant dense<0.000000e+00> : vector<8x32xf32>
    %354 = tpu.matmul %351, %353, %cst_136 {dimension_numbers = #tpu.dot_dimension_numbers<[1], [0], [0], [1], [0, 0, 1, 1], [], []>} : vector<8x64xbf16>, vector<64x32xbf16>, vector<8x32xf32> -> vector<8x32xf32>
    %355 = vector.extract_strided_slice %0 {offsets = [19, 0], sizes = [1, 32], strides = [1, 1]} : vector<29x32xf32> to vector<1x32xf32>
    %356 = vector.broadcast %355 : vector<1x32xf32> to vector<8x32xf32>
    %357 = arith.addf %354, %356 : vector<8x32xf32>
    %358 = arith.addf %357, %340 : vector<8x32xf32>
    %359 = vector.extract_strided_slice %0 {offsets = [20, 0], sizes = [1, 32], strides = [1, 1]} : vector<29x32xf32> to vector<1x32xf32>
    %360 = vector.extract_strided_slice %0 {offsets = [21, 0], sizes = [1, 32], strides = [1, 1]} : vector<29x32xf32> to vector<1x32xf32>
    %cst_137 = arith.constant dense<0.000000e+00> : vector<8xf32>
    %361 = vector.multi_reduction <add>, %358, %cst_137 [1] : vector<8x32xf32> to vector<8xf32>
    %362 = vector.shape_cast %361 : vector<8xf32> to vector<8x1xf32>
    %cst_138 = arith.constant 3.200000e+01 : f32
    %363 = vector.broadcast %cst_138 : f32 to vector<8x1xf32>
    %364 = arith.divf %362, %363 : vector<8x1xf32>
    %365 = vector.broadcast %364 : vector<8x1xf32> to vector<8x32xf32>
    %366 = arith.subf %358, %365 : vector<8x32xf32>
    %367 = arith.mulf %366, %366 : vector<8x32xf32>
    %cst_139 = arith.constant dense<0.000000e+00> : vector<8xf32>
    %368 = vector.multi_reduction <add>, %367, %cst_139 [1] : vector<8x32xf32> to vector<8xf32>
    %369 = vector.shape_cast %368 : vector<8xf32> to vector<8x1xf32>
    %cst_140 = arith.constant 3.200000e+01 : f32
    %370 = vector.broadcast %cst_140 : f32 to vector<8x1xf32>
    %371 = arith.divf %369, %370 : vector<8x1xf32>
    %372 = vector.broadcast %364 : vector<8x1xf32> to vector<8x32xf32>
    %373 = arith.subf %358, %372 : vector<8x32xf32>
    %cst_141 = arith.constant 9.99999997E-7 : f32
    %374 = vector.broadcast %cst_141 : f32 to vector<8x1xf32>
    %375 = arith.addf %371, %374 : vector<8x1xf32>
    %376 = math.rsqrt %375 : vector<8x1xf32>
    %377 = vector.broadcast %376 : vector<8x1xf32> to vector<8x32xf32>
    %378 = arith.mulf %373, %377 : vector<8x32xf32>
    %379 = vector.broadcast %359 : vector<1x32xf32> to vector<8x32xf32>
    %380 = arith.mulf %378, %379 : vector<8x32xf32>
    %381 = vector.broadcast %360 : vector<1x32xf32> to vector<8x32xf32>
    %382 = arith.addf %380, %381 : vector<8x32xf32>
    %383 = arith.truncf %382 : vector<8x32xf32> to vector<8x32xbf16>
    %c1_142 = arith.constant 1 : index
    %c0_143 = arith.constant 0 : index
    %c0_144 = arith.constant 0 : index
    %c0_145 = arith.constant 0 : index
    %384 = vector.load %arg9[%c1_142, %c0_143, %c0_144, %c0_145] : memref<2x2x32x32xbf16, #tpu.memory_space<vmem>>, vector<1x1x32x32xbf16>
    %385 = vector.shape_cast %384 : vector<1x1x32x32xbf16> to vector<32x32xbf16>
    %cst_146 = arith.constant dense<0.000000e+00> : vector<8x32xf32>
    %386 = tpu.matmul %383, %385, %cst_146 {dimension_numbers = #tpu.dot_dimension_numbers<[1], [0], [0], [1], [0, 0, 1, 1], [], []>} : vector<8x32xbf16>, vector<32x32xbf16>, vector<8x32xf32> -> vector<8x32xf32>
    %c1_147 = arith.constant 1 : index
    %c0_148 = arith.constant 0 : index
    %c0_149 = arith.constant 0 : index
    %c0_150 = arith.constant 0 : index
    %387 = vector.load %arg10[%c1_147, %c0_148, %c0_149, %c0_150] : memref<2x2x32x64xbf16, #tpu.memory_space<vmem>>, vector<1x1x32x64xbf16>
    %388 = vector.shape_cast %387 : vector<1x1x32x64xbf16> to vector<32x64xbf16>
    %cst_151 = arith.constant dense<0.000000e+00> : vector<8x64xf32>
    %389 = tpu.matmul %383, %388, %cst_151 {dimension_numbers = #tpu.dot_dimension_numbers<[1], [0], [0], [1], [0, 0, 1, 1], [], []>} : vector<8x32xbf16>, vector<32x64xbf16>, vector<8x64xf32> -> vector<8x64xf32>
    %390 = arith.truncf %386 : vector<8x32xf32> to vector<8x32xbf16>
    %391 = vector.extract_strided_slice %389 {offsets = [0, 0], sizes = [8, 32], strides = [1, 1]} : vector<8x64xf32> to vector<8x32xf32>
    %392 = tpu.transpose %391, [1, 0] : vector<8x32xf32> -> vector<32x8xf32>
    %393 = arith.truncf %392 : vector<32x8xf32> to vector<32x8xbf16>
    %394 = vector.extract_strided_slice %389 {offsets = [0, 32], sizes = [8, 32], strides = [1, 1]} : vector<8x64xf32> to vector<8x32xf32>
    %395 = arith.truncf %394 : vector<8x32xf32> to vector<8x32xbf16>
    %396 = vector.extract_strided_slice %390 {offsets = [0, 0], sizes = [8, 8], strides = [1, 1]} : vector<8x32xbf16> to vector<8x8xbf16>
    %397 = vector.extract_strided_slice %393 {offsets = [0, 0], sizes = [8, 8], strides = [1, 1]} : vector<32x8xbf16> to vector<8x8xbf16>
    %cst_152 = arith.constant dense<0.000000e+00> : vector<8x8xf32>
    %398 = tpu.matmul %396, %397, %cst_152 {dimension_numbers = #tpu.dot_dimension_numbers<[1], [0], [0], [1], [0, 0, 1, 1], [], []>} : vector<8x8xbf16>, vector<8x8xbf16>, vector<8x8xf32> -> vector<8x8xf32>
    %cst_153 = arith.constant 0.353553385 : f32
    %399 = vector.broadcast %cst_153 : f32 to vector<8x8xf32>
    %400 = arith.mulf %398, %399 : vector<8x8xf32>
    %401 = arith.addf %400, %92 : vector<8x8xf32>
    %cst_154 = arith.constant dense<0xFF800000> : vector<8xf32>
    %402 = vector.multi_reduction <maximumf>, %401, %cst_154 [1] : vector<8x8xf32> to vector<8xf32>
    %403 = vector.shape_cast %402 : vector<8xf32> to vector<8x1xf32>
    %404 = vector.broadcast %403 : vector<8x1xf32> to vector<8x8xf32>
    %405 = arith.subf %401, %404 : vector<8x8xf32>
    %406 = math.exp %405 : vector<8x8xf32>
    %cst_155 = arith.constant dense<0.000000e+00> : vector<8xf32>
    %407 = vector.multi_reduction <add>, %406, %cst_155 [1] : vector<8x8xf32> to vector<8xf32>
    %408 = vector.shape_cast %407 : vector<8xf32> to vector<8x1xf32>
    %409 = tpu.reciprocal %408 {approx = true} : vector<8x1xf32> -> vector<8x1xf32>
    %410 = vector.broadcast %409 : vector<8x1xf32> to vector<8x8xf32>
    %411 = arith.mulf %406, %410 : vector<8x8xf32>
    %412 = arith.truncf %411 : vector<8x8xf32> to vector<8x8xbf16>
    %413 = vector.extract_strided_slice %395 {offsets = [0, 0], sizes = [8, 8], strides = [1, 1]} : vector<8x32xbf16> to vector<8x8xbf16>
    %cst_156 = arith.constant dense<0.000000e+00> : vector<8x8xf32>
    %414 = tpu.matmul %412, %413, %cst_156 {dimension_numbers = #tpu.dot_dimension_numbers<[1], [0], [0], [1], [0, 0, 1, 1], [], []>} : vector<8x8xbf16>, vector<8x8xbf16>, vector<8x8xf32> -> vector<8x8xf32>
    %415 = arith.truncf %414 : vector<8x8xf32> to vector<8x8xbf16>
    %416 = vector.extract_strided_slice %390 {offsets = [0, 8], sizes = [8, 8], strides = [1, 1]} : vector<8x32xbf16> to vector<8x8xbf16>
    %417 = vector.extract_strided_slice %393 {offsets = [8, 0], sizes = [8, 8], strides = [1, 1]} : vector<32x8xbf16> to vector<8x8xbf16>
    %cst_157 = arith.constant dense<0.000000e+00> : vector<8x8xf32>
    %418 = tpu.matmul %416, %417, %cst_157 {dimension_numbers = #tpu.dot_dimension_numbers<[1], [0], [0], [1], [0, 0, 1, 1], [], []>} : vector<8x8xbf16>, vector<8x8xbf16>, vector<8x8xf32> -> vector<8x8xf32>
    %cst_158 = arith.constant 0.353553385 : f32
    %419 = vector.broadcast %cst_158 : f32 to vector<8x8xf32>
    %420 = arith.mulf %418, %419 : vector<8x8xf32>
    %421 = arith.addf %420, %92 : vector<8x8xf32>
    %cst_159 = arith.constant dense<0xFF800000> : vector<8xf32>
    %422 = vector.multi_reduction <maximumf>, %421, %cst_159 [1] : vector<8x8xf32> to vector<8xf32>
    %423 = vector.shape_cast %422 : vector<8xf32> to vector<8x1xf32>
    %424 = vector.broadcast %423 : vector<8x1xf32> to vector<8x8xf32>
    %425 = arith.subf %421, %424 : vector<8x8xf32>
    %426 = math.exp %425 : vector<8x8xf32>
    %cst_160 = arith.constant dense<0.000000e+00> : vector<8xf32>
    %427 = vector.multi_reduction <add>, %426, %cst_160 [1] : vector<8x8xf32> to vector<8xf32>
    %428 = vector.shape_cast %427 : vector<8xf32> to vector<8x1xf32>
    %429 = tpu.reciprocal %428 {approx = true} : vector<8x1xf32> -> vector<8x1xf32>
    %430 = vector.broadcast %429 : vector<8x1xf32> to vector<8x8xf32>
    %431 = arith.mulf %426, %430 : vector<8x8xf32>
    %432 = arith.truncf %431 : vector<8x8xf32> to vector<8x8xbf16>
    %433 = vector.extract_strided_slice %395 {offsets = [0, 8], sizes = [8, 8], strides = [1, 1]} : vector<8x32xbf16> to vector<8x8xbf16>
    %cst_161 = arith.constant dense<0.000000e+00> : vector<8x8xf32>
    %434 = tpu.matmul %432, %433, %cst_161 {dimension_numbers = #tpu.dot_dimension_numbers<[1], [0], [0], [1], [0, 0, 1, 1], [], []>} : vector<8x8xbf16>, vector<8x8xbf16>, vector<8x8xf32> -> vector<8x8xf32>
    %435 = arith.truncf %434 : vector<8x8xf32> to vector<8x8xbf16>
    %436 = vector.extract_strided_slice %390 {offsets = [0, 16], sizes = [8, 8], strides = [1, 1]} : vector<8x32xbf16> to vector<8x8xbf16>
    %437 = vector.extract_strided_slice %393 {offsets = [16, 0], sizes = [8, 8], strides = [1, 1]} : vector<32x8xbf16> to vector<8x8xbf16>
    %cst_162 = arith.constant dense<0.000000e+00> : vector<8x8xf32>
    %438 = tpu.matmul %436, %437, %cst_162 {dimension_numbers = #tpu.dot_dimension_numbers<[1], [0], [0], [1], [0, 0, 1, 1], [], []>} : vector<8x8xbf16>, vector<8x8xbf16>, vector<8x8xf32> -> vector<8x8xf32>
    %cst_163 = arith.constant 0.353553385 : f32
    %439 = vector.broadcast %cst_163 : f32 to vector<8x8xf32>
    %440 = arith.mulf %438, %439 : vector<8x8xf32>
    %441 = arith.addf %440, %92 : vector<8x8xf32>
    %cst_164 = arith.constant dense<0xFF800000> : vector<8xf32>
    %442 = vector.multi_reduction <maximumf>, %441, %cst_164 [1] : vector<8x8xf32> to vector<8xf32>
    %443 = vector.shape_cast %442 : vector<8xf32> to vector<8x1xf32>
    %444 = vector.broadcast %443 : vector<8x1xf32> to vector<8x8xf32>
    %445 = arith.subf %441, %444 : vector<8x8xf32>
    %446 = math.exp %445 : vector<8x8xf32>
    %cst_165 = arith.constant dense<0.000000e+00> : vector<8xf32>
    %447 = vector.multi_reduction <add>, %446, %cst_165 [1] : vector<8x8xf32> to vector<8xf32>
    %448 = vector.shape_cast %447 : vector<8xf32> to vector<8x1xf32>
    %449 = tpu.reciprocal %448 {approx = true} : vector<8x1xf32> -> vector<8x1xf32>
    %450 = vector.broadcast %449 : vector<8x1xf32> to vector<8x8xf32>
    %451 = arith.mulf %446, %450 : vector<8x8xf32>
    %452 = arith.truncf %451 : vector<8x8xf32> to vector<8x8xbf16>
    %453 = vector.extract_strided_slice %395 {offsets = [0, 16], sizes = [8, 8], strides = [1, 1]} : vector<8x32xbf16> to vector<8x8xbf16>
    %cst_166 = arith.constant dense<0.000000e+00> : vector<8x8xf32>
    %454 = tpu.matmul %452, %453, %cst_166 {dimension_numbers = #tpu.dot_dimension_numbers<[1], [0], [0], [1], [0, 0, 1, 1], [], []>} : vector<8x8xbf16>, vector<8x8xbf16>, vector<8x8xf32> -> vector<8x8xf32>
    %455 = arith.truncf %454 : vector<8x8xf32> to vector<8x8xbf16>
    %456 = vector.extract_strided_slice %390 {offsets = [0, 24], sizes = [8, 8], strides = [1, 1]} : vector<8x32xbf16> to vector<8x8xbf16>
    %457 = vector.extract_strided_slice %393 {offsets = [24, 0], sizes = [8, 8], strides = [1, 1]} : vector<32x8xbf16> to vector<8x8xbf16>
    %cst_167 = arith.constant dense<0.000000e+00> : vector<8x8xf32>
    %458 = tpu.matmul %456, %457, %cst_167 {dimension_numbers = #tpu.dot_dimension_numbers<[1], [0], [0], [1], [0, 0, 1, 1], [], []>} : vector<8x8xbf16>, vector<8x8xbf16>, vector<8x8xf32> -> vector<8x8xf32>
    %cst_168 = arith.constant 0.353553385 : f32
    %459 = vector.broadcast %cst_168 : f32 to vector<8x8xf32>
    %460 = arith.mulf %458, %459 : vector<8x8xf32>
    %461 = arith.addf %460, %92 : vector<8x8xf32>
    %cst_169 = arith.constant dense<0xFF800000> : vector<8xf32>
    %462 = vector.multi_reduction <maximumf>, %461, %cst_169 [1] : vector<8x8xf32> to vector<8xf32>
    %463 = vector.shape_cast %462 : vector<8xf32> to vector<8x1xf32>
    %464 = vector.broadcast %463 : vector<8x1xf32> to vector<8x8xf32>
    %465 = arith.subf %461, %464 : vector<8x8xf32>
    %466 = math.exp %465 : vector<8x8xf32>
    %cst_170 = arith.constant dense<0.000000e+00> : vector<8xf32>
    %467 = vector.multi_reduction <add>, %466, %cst_170 [1] : vector<8x8xf32> to vector<8xf32>
    %468 = vector.shape_cast %467 : vector<8xf32> to vector<8x1xf32>
    %469 = tpu.reciprocal %468 {approx = true} : vector<8x1xf32> -> vector<8x1xf32>
    %470 = vector.broadcast %469 : vector<8x1xf32> to vector<8x8xf32>
    %471 = arith.mulf %466, %470 : vector<8x8xf32>
    %472 = arith.truncf %471 : vector<8x8xf32> to vector<8x8xbf16>
    %473 = vector.extract_strided_slice %395 {offsets = [0, 24], sizes = [8, 8], strides = [1, 1]} : vector<8x32xbf16> to vector<8x8xbf16>
    %cst_171 = arith.constant dense<0.000000e+00> : vector<8x8xf32>
    %474 = tpu.matmul %472, %473, %cst_171 {dimension_numbers = #tpu.dot_dimension_numbers<[1], [0], [0], [1], [0, 0, 1, 1], [], []>} : vector<8x8xbf16>, vector<8x8xbf16>, vector<8x8xf32> -> vector<8x8xf32>
    %475 = arith.truncf %474 : vector<8x8xf32> to vector<8x8xbf16>
    %476 = tpu.concatenate %415, %435, %455, %475 in 1 : vector<8x8xbf16>, vector<8x8xbf16>, vector<8x8xbf16>, vector<8x8xbf16> -> vector<8x32xbf16>
    %c1_172 = arith.constant 1 : index
    %c0_173 = arith.constant 0 : index
    %c0_174 = arith.constant 0 : index
    %c0_175 = arith.constant 0 : index
    %477 = vector.load %arg11[%c1_172, %c0_173, %c0_174, %c0_175] : memref<2x2x32x32xbf16, #tpu.memory_space<vmem>>, vector<1x1x32x32xbf16>
    %478 = vector.shape_cast %477 : vector<1x1x32x32xbf16> to vector<32x32xbf16>
    %cst_176 = arith.constant dense<0.000000e+00> : vector<8x32xf32>
    %479 = tpu.matmul %476, %478, %cst_176 {dimension_numbers = #tpu.dot_dimension_numbers<[1], [0], [0], [1], [0, 0, 1, 1], [], []>} : vector<8x32xbf16>, vector<32x32xbf16>, vector<8x32xf32> -> vector<8x32xf32>
    %480 = arith.addf %382, %479 : vector<8x32xf32>
    %481 = vector.extract_strided_slice %0 {offsets = [22, 0], sizes = [1, 32], strides = [1, 1]} : vector<29x32xf32> to vector<1x32xf32>
    %482 = vector.extract_strided_slice %0 {offsets = [23, 0], sizes = [1, 32], strides = [1, 1]} : vector<29x32xf32> to vector<1x32xf32>
    %cst_177 = arith.constant dense<0.000000e+00> : vector<8xf32>
    %483 = vector.multi_reduction <add>, %480, %cst_177 [1] : vector<8x32xf32> to vector<8xf32>
    %484 = vector.shape_cast %483 : vector<8xf32> to vector<8x1xf32>
    %cst_178 = arith.constant 3.200000e+01 : f32
    %485 = vector.broadcast %cst_178 : f32 to vector<8x1xf32>
    %486 = arith.divf %484, %485 : vector<8x1xf32>
    %487 = vector.broadcast %486 : vector<8x1xf32> to vector<8x32xf32>
    %488 = arith.subf %480, %487 : vector<8x32xf32>
    %489 = arith.mulf %488, %488 : vector<8x32xf32>
    %cst_179 = arith.constant dense<0.000000e+00> : vector<8xf32>
    %490 = vector.multi_reduction <add>, %489, %cst_179 [1] : vector<8x32xf32> to vector<8xf32>
    %491 = vector.shape_cast %490 : vector<8xf32> to vector<8x1xf32>
    %cst_180 = arith.constant 3.200000e+01 : f32
    %492 = vector.broadcast %cst_180 : f32 to vector<8x1xf32>
    %493 = arith.divf %491, %492 : vector<8x1xf32>
    %494 = vector.broadcast %486 : vector<8x1xf32> to vector<8x32xf32>
    %495 = arith.subf %480, %494 : vector<8x32xf32>
    %cst_181 = arith.constant 9.99999997E-7 : f32
    %496 = vector.broadcast %cst_181 : f32 to vector<8x1xf32>
    %497 = arith.addf %493, %496 : vector<8x1xf32>
    %498 = math.rsqrt %497 : vector<8x1xf32>
    %499 = vector.broadcast %498 : vector<8x1xf32> to vector<8x32xf32>
    %500 = arith.mulf %495, %499 : vector<8x32xf32>
    %501 = vector.broadcast %481 : vector<1x32xf32> to vector<8x32xf32>
    %502 = arith.mulf %500, %501 : vector<8x32xf32>
    %503 = vector.broadcast %482 : vector<1x32xf32> to vector<8x32xf32>
    %504 = arith.addf %502, %503 : vector<8x32xf32>
    %505 = arith.truncf %504 : vector<8x32xf32> to vector<8x32xbf16>
    %c1_182 = arith.constant 1 : index
    %c1_183 = arith.constant 1 : index
    %c0_184 = arith.constant 0 : index
    %c0_185 = arith.constant 0 : index
    %506 = vector.load %arg9[%c1_182, %c1_183, %c0_184, %c0_185] : memref<2x2x32x32xbf16, #tpu.memory_space<vmem>>, vector<1x1x32x32xbf16>
    %507 = vector.shape_cast %506 : vector<1x1x32x32xbf16> to vector<32x32xbf16>
    %cst_186 = arith.constant dense<0.000000e+00> : vector<8x32xf32>
    %508 = tpu.matmul %505, %507, %cst_186 {dimension_numbers = #tpu.dot_dimension_numbers<[1], [0], [0], [1], [0, 0, 1, 1], [], []>} : vector<8x32xbf16>, vector<32x32xbf16>, vector<8x32xf32> -> vector<8x32xf32>
    %c1_187 = arith.constant 1 : index
    %c1_188 = arith.constant 1 : index
    %c0_189 = arith.constant 0 : index
    %c0_190 = arith.constant 0 : index
    %509 = vector.load %arg10[%c1_187, %c1_188, %c0_189, %c0_190] : memref<2x2x32x64xbf16, #tpu.memory_space<vmem>>, vector<1x1x32x64xbf16>
    %510 = vector.shape_cast %509 : vector<1x1x32x64xbf16> to vector<32x64xbf16>
    %cst_191 = arith.constant dense<0.000000e+00> : vector<8x64xf32>
    %511 = tpu.matmul %90, %510, %cst_191 {dimension_numbers = #tpu.dot_dimension_numbers<[1], [0], [0], [1], [0, 0, 1, 1], [], []>} : vector<8x32xbf16>, vector<32x64xbf16>, vector<8x64xf32> -> vector<8x64xf32>
    %512 = arith.truncf %508 : vector<8x32xf32> to vector<8x32xbf16>
    %513 = vector.extract_strided_slice %511 {offsets = [0, 0], sizes = [8, 32], strides = [1, 1]} : vector<8x64xf32> to vector<8x32xf32>
    %514 = tpu.transpose %513, [1, 0] : vector<8x32xf32> -> vector<32x8xf32>
    %515 = arith.truncf %514 : vector<32x8xf32> to vector<32x8xbf16>
    %516 = vector.extract_strided_slice %511 {offsets = [0, 32], sizes = [8, 32], strides = [1, 1]} : vector<8x64xf32> to vector<8x32xf32>
    %517 = arith.truncf %516 : vector<8x32xf32> to vector<8x32xbf16>
    %518 = vector.extract_strided_slice %512 {offsets = [0, 0], sizes = [8, 8], strides = [1, 1]} : vector<8x32xbf16> to vector<8x8xbf16>
    %519 = vector.extract_strided_slice %515 {offsets = [0, 0], sizes = [8, 8], strides = [1, 1]} : vector<32x8xbf16> to vector<8x8xbf16>
    %cst_192 = arith.constant dense<0.000000e+00> : vector<8x8xf32>
    %520 = tpu.matmul %518, %519, %cst_192 {dimension_numbers = #tpu.dot_dimension_numbers<[1], [0], [0], [1], [0, 0, 1, 1], [], []>} : vector<8x8xbf16>, vector<8x8xbf16>, vector<8x8xf32> -> vector<8x8xf32>
    %cst_193 = arith.constant 0.353553385 : f32
    %521 = vector.broadcast %cst_193 : f32 to vector<8x8xf32>
    %522 = arith.mulf %520, %521 : vector<8x8xf32>
    %523 = arith.addf %522, %96 : vector<8x8xf32>
    %cst_194 = arith.constant dense<0xFF800000> : vector<8xf32>
    %524 = vector.multi_reduction <maximumf>, %523, %cst_194 [1] : vector<8x8xf32> to vector<8xf32>
    %525 = vector.shape_cast %524 : vector<8xf32> to vector<8x1xf32>
    %526 = vector.broadcast %525 : vector<8x1xf32> to vector<8x8xf32>
    %527 = arith.subf %523, %526 : vector<8x8xf32>
    %528 = math.exp %527 : vector<8x8xf32>
    %cst_195 = arith.constant dense<0.000000e+00> : vector<8xf32>
    %529 = vector.multi_reduction <add>, %528, %cst_195 [1] : vector<8x8xf32> to vector<8xf32>
    %530 = vector.shape_cast %529 : vector<8xf32> to vector<8x1xf32>
    %531 = tpu.reciprocal %530 {approx = true} : vector<8x1xf32> -> vector<8x1xf32>
    %532 = vector.broadcast %531 : vector<8x1xf32> to vector<8x8xf32>
    %533 = arith.mulf %528, %532 : vector<8x8xf32>
    %534 = arith.truncf %533 : vector<8x8xf32> to vector<8x8xbf16>
    %535 = vector.extract_strided_slice %517 {offsets = [0, 0], sizes = [8, 8], strides = [1, 1]} : vector<8x32xbf16> to vector<8x8xbf16>
    %cst_196 = arith.constant dense<0.000000e+00> : vector<8x8xf32>
    %536 = tpu.matmul %534, %535, %cst_196 {dimension_numbers = #tpu.dot_dimension_numbers<[1], [0], [0], [1], [0, 0, 1, 1], [], []>} : vector<8x8xbf16>, vector<8x8xbf16>, vector<8x8xf32> -> vector<8x8xf32>
    %537 = arith.truncf %536 : vector<8x8xf32> to vector<8x8xbf16>
    %538 = vector.extract_strided_slice %512 {offsets = [0, 8], sizes = [8, 8], strides = [1, 1]} : vector<8x32xbf16> to vector<8x8xbf16>
    %539 = vector.extract_strided_slice %515 {offsets = [8, 0], sizes = [8, 8], strides = [1, 1]} : vector<32x8xbf16> to vector<8x8xbf16>
    %cst_197 = arith.constant dense<0.000000e+00> : vector<8x8xf32>
    %540 = tpu.matmul %538, %539, %cst_197 {dimension_numbers = #tpu.dot_dimension_numbers<[1], [0], [0], [1], [0, 0, 1, 1], [], []>} : vector<8x8xbf16>, vector<8x8xbf16>, vector<8x8xf32> -> vector<8x8xf32>
    %cst_198 = arith.constant 0.353553385 : f32
    %541 = vector.broadcast %cst_198 : f32 to vector<8x8xf32>
    %542 = arith.mulf %540, %541 : vector<8x8xf32>
    %543 = arith.addf %542, %96 : vector<8x8xf32>
    %cst_199 = arith.constant dense<0xFF800000> : vector<8xf32>
    %544 = vector.multi_reduction <maximumf>, %543, %cst_199 [1] : vector<8x8xf32> to vector<8xf32>
    %545 = vector.shape_cast %544 : vector<8xf32> to vector<8x1xf32>
    %546 = vector.broadcast %545 : vector<8x1xf32> to vector<8x8xf32>
    %547 = arith.subf %543, %546 : vector<8x8xf32>
    %548 = math.exp %547 : vector<8x8xf32>
    %cst_200 = arith.constant dense<0.000000e+00> : vector<8xf32>
    %549 = vector.multi_reduction <add>, %548, %cst_200 [1] : vector<8x8xf32> to vector<8xf32>
    %550 = vector.shape_cast %549 : vector<8xf32> to vector<8x1xf32>
    %551 = tpu.reciprocal %550 {approx = true} : vector<8x1xf32> -> vector<8x1xf32>
    %552 = vector.broadcast %551 : vector<8x1xf32> to vector<8x8xf32>
    %553 = arith.mulf %548, %552 : vector<8x8xf32>
    %554 = arith.truncf %553 : vector<8x8xf32> to vector<8x8xbf16>
    %555 = vector.extract_strided_slice %517 {offsets = [0, 8], sizes = [8, 8], strides = [1, 1]} : vector<8x32xbf16> to vector<8x8xbf16>
    %cst_201 = arith.constant dense<0.000000e+00> : vector<8x8xf32>
    %556 = tpu.matmul %554, %555, %cst_201 {dimension_numbers = #tpu.dot_dimension_numbers<[1], [0], [0], [1], [0, 0, 1, 1], [], []>} : vector<8x8xbf16>, vector<8x8xbf16>, vector<8x8xf32> -> vector<8x8xf32>
    %557 = arith.truncf %556 : vector<8x8xf32> to vector<8x8xbf16>
    %558 = vector.extract_strided_slice %512 {offsets = [0, 16], sizes = [8, 8], strides = [1, 1]} : vector<8x32xbf16> to vector<8x8xbf16>
    %559 = vector.extract_strided_slice %515 {offsets = [16, 0], sizes = [8, 8], strides = [1, 1]} : vector<32x8xbf16> to vector<8x8xbf16>
    %cst_202 = arith.constant dense<0.000000e+00> : vector<8x8xf32>
    %560 = tpu.matmul %558, %559, %cst_202 {dimension_numbers = #tpu.dot_dimension_numbers<[1], [0], [0], [1], [0, 0, 1, 1], [], []>} : vector<8x8xbf16>, vector<8x8xbf16>, vector<8x8xf32> -> vector<8x8xf32>
    %cst_203 = arith.constant 0.353553385 : f32
    %561 = vector.broadcast %cst_203 : f32 to vector<8x8xf32>
    %562 = arith.mulf %560, %561 : vector<8x8xf32>
    %563 = arith.addf %562, %96 : vector<8x8xf32>
    %cst_204 = arith.constant dense<0xFF800000> : vector<8xf32>
    %564 = vector.multi_reduction <maximumf>, %563, %cst_204 [1] : vector<8x8xf32> to vector<8xf32>
    %565 = vector.shape_cast %564 : vector<8xf32> to vector<8x1xf32>
    %566 = vector.broadcast %565 : vector<8x1xf32> to vector<8x8xf32>
    %567 = arith.subf %563, %566 : vector<8x8xf32>
    %568 = math.exp %567 : vector<8x8xf32>
    %cst_205 = arith.constant dense<0.000000e+00> : vector<8xf32>
    %569 = vector.multi_reduction <add>, %568, %cst_205 [1] : vector<8x8xf32> to vector<8xf32>
    %570 = vector.shape_cast %569 : vector<8xf32> to vector<8x1xf32>
    %571 = tpu.reciprocal %570 {approx = true} : vector<8x1xf32> -> vector<8x1xf32>
    %572 = vector.broadcast %571 : vector<8x1xf32> to vector<8x8xf32>
    %573 = arith.mulf %568, %572 : vector<8x8xf32>
    %574 = arith.truncf %573 : vector<8x8xf32> to vector<8x8xbf16>
    %575 = vector.extract_strided_slice %517 {offsets = [0, 16], sizes = [8, 8], strides = [1, 1]} : vector<8x32xbf16> to vector<8x8xbf16>
    %cst_206 = arith.constant dense<0.000000e+00> : vector<8x8xf32>
    %576 = tpu.matmul %574, %575, %cst_206 {dimension_numbers = #tpu.dot_dimension_numbers<[1], [0], [0], [1], [0, 0, 1, 1], [], []>} : vector<8x8xbf16>, vector<8x8xbf16>, vector<8x8xf32> -> vector<8x8xf32>
    %577 = arith.truncf %576 : vector<8x8xf32> to vector<8x8xbf16>
    %578 = vector.extract_strided_slice %512 {offsets = [0, 24], sizes = [8, 8], strides = [1, 1]} : vector<8x32xbf16> to vector<8x8xbf16>
    %579 = vector.extract_strided_slice %515 {offsets = [24, 0], sizes = [8, 8], strides = [1, 1]} : vector<32x8xbf16> to vector<8x8xbf16>
    %cst_207 = arith.constant dense<0.000000e+00> : vector<8x8xf32>
    %580 = tpu.matmul %578, %579, %cst_207 {dimension_numbers = #tpu.dot_dimension_numbers<[1], [0], [0], [1], [0, 0, 1, 1], [], []>} : vector<8x8xbf16>, vector<8x8xbf16>, vector<8x8xf32> -> vector<8x8xf32>
    %cst_208 = arith.constant 0.353553385 : f32
    %581 = vector.broadcast %cst_208 : f32 to vector<8x8xf32>
    %582 = arith.mulf %580, %581 : vector<8x8xf32>
    %583 = arith.addf %582, %96 : vector<8x8xf32>
    %cst_209 = arith.constant dense<0xFF800000> : vector<8xf32>
    %584 = vector.multi_reduction <maximumf>, %583, %cst_209 [1] : vector<8x8xf32> to vector<8xf32>
    %585 = vector.shape_cast %584 : vector<8xf32> to vector<8x1xf32>
    %586 = vector.broadcast %585 : vector<8x1xf32> to vector<8x8xf32>
    %587 = arith.subf %583, %586 : vector<8x8xf32>
    %588 = math.exp %587 : vector<8x8xf32>
    %cst_210 = arith.constant dense<0.000000e+00> : vector<8xf32>
    %589 = vector.multi_reduction <add>, %588, %cst_210 [1] : vector<8x8xf32> to vector<8xf32>
    %590 = vector.shape_cast %589 : vector<8xf32> to vector<8x1xf32>
    %591 = tpu.reciprocal %590 {approx = true} : vector<8x1xf32> -> vector<8x1xf32>
    %592 = vector.broadcast %591 : vector<8x1xf32> to vector<8x8xf32>
    %593 = arith.mulf %588, %592 : vector<8x8xf32>
    %594 = arith.truncf %593 : vector<8x8xf32> to vector<8x8xbf16>
    %595 = vector.extract_strided_slice %517 {offsets = [0, 24], sizes = [8, 8], strides = [1, 1]} : vector<8x32xbf16> to vector<8x8xbf16>
    %cst_211 = arith.constant dense<0.000000e+00> : vector<8x8xf32>
    %596 = tpu.matmul %594, %595, %cst_211 {dimension_numbers = #tpu.dot_dimension_numbers<[1], [0], [0], [1], [0, 0, 1, 1], [], []>} : vector<8x8xbf16>, vector<8x8xbf16>, vector<8x8xf32> -> vector<8x8xf32>
    %597 = arith.truncf %596 : vector<8x8xf32> to vector<8x8xbf16>
    %598 = tpu.concatenate %537, %557, %577, %597 in 1 : vector<8x8xbf16>, vector<8x8xbf16>, vector<8x8xbf16>, vector<8x8xbf16> -> vector<8x32xbf16>
    %c1_212 = arith.constant 1 : index
    %c1_213 = arith.constant 1 : index
    %c0_214 = arith.constant 0 : index
    %c0_215 = arith.constant 0 : index
    %599 = vector.load %arg11[%c1_212, %c1_213, %c0_214, %c0_215] : memref<2x2x32x32xbf16, #tpu.memory_space<vmem>>, vector<1x1x32x32xbf16>
    %600 = vector.shape_cast %599 : vector<1x1x32x32xbf16> to vector<32x32xbf16>
    %cst_216 = arith.constant dense<0.000000e+00> : vector<8x32xf32>
    %601 = tpu.matmul %598, %600, %cst_216 {dimension_numbers = #tpu.dot_dimension_numbers<[1], [0], [0], [1], [0, 0, 1, 1], [], []>} : vector<8x32xbf16>, vector<32x32xbf16>, vector<8x32xf32> -> vector<8x32xf32>
    %602 = arith.addf %504, %601 : vector<8x32xf32>
    %603 = vector.extract_strided_slice %0 {offsets = [24, 0], sizes = [1, 32], strides = [1, 1]} : vector<29x32xf32> to vector<1x32xf32>
    %604 = vector.extract_strided_slice %0 {offsets = [25, 0], sizes = [1, 32], strides = [1, 1]} : vector<29x32xf32> to vector<1x32xf32>
    %cst_217 = arith.constant dense<0.000000e+00> : vector<8xf32>
    %605 = vector.multi_reduction <add>, %602, %cst_217 [1] : vector<8x32xf32> to vector<8xf32>
    %606 = vector.shape_cast %605 : vector<8xf32> to vector<8x1xf32>
    %cst_218 = arith.constant 3.200000e+01 : f32
    %607 = vector.broadcast %cst_218 : f32 to vector<8x1xf32>
    %608 = arith.divf %606, %607 : vector<8x1xf32>
    %609 = vector.broadcast %608 : vector<8x1xf32> to vector<8x32xf32>
    %610 = arith.subf %602, %609 : vector<8x32xf32>
    %611 = arith.mulf %610, %610 : vector<8x32xf32>
    %cst_219 = arith.constant dense<0.000000e+00> : vector<8xf32>
    %612 = vector.multi_reduction <add>, %611, %cst_219 [1] : vector<8x32xf32> to vector<8xf32>
    %613 = vector.shape_cast %612 : vector<8xf32> to vector<8x1xf32>
    %cst_220 = arith.constant 3.200000e+01 : f32
    %614 = vector.broadcast %cst_220 : f32 to vector<8x1xf32>
    %615 = arith.divf %613, %614 : vector<8x1xf32>
    %616 = vector.broadcast %608 : vector<8x1xf32> to vector<8x32xf32>
    %617 = arith.subf %602, %616 : vector<8x32xf32>
    %cst_221 = arith.constant 9.99999997E-7 : f32
    %618 = vector.broadcast %cst_221 : f32 to vector<8x1xf32>
    %619 = arith.addf %615, %618 : vector<8x1xf32>
    %620 = math.rsqrt %619 : vector<8x1xf32>
    %621 = vector.broadcast %620 : vector<8x1xf32> to vector<8x32xf32>
    %622 = arith.mulf %617, %621 : vector<8x32xf32>
    %623 = vector.broadcast %603 : vector<1x32xf32> to vector<8x32xf32>
    %624 = arith.mulf %622, %623 : vector<8x32xf32>
    %625 = vector.broadcast %604 : vector<1x32xf32> to vector<8x32xf32>
    %626 = arith.addf %624, %625 : vector<8x32xf32>
    %627 = arith.truncf %626 : vector<8x32xf32> to vector<8x32xbf16>
    %c1_222 = arith.constant 1 : index
    %c0_223 = arith.constant 0 : index
    %c0_224 = arith.constant 0 : index
    %628 = vector.load %arg12[%c1_222, %c0_223, %c0_224] : memref<2x32x64xbf16, #tpu.memory_space<vmem>>, vector<1x32x64xbf16>
    %629 = vector.shape_cast %628 : vector<1x32x64xbf16> to vector<32x64xbf16>
    %cst_225 = arith.constant dense<0.000000e+00> : vector<8x64xf32>
    %630 = tpu.matmul %627, %629, %cst_225 {dimension_numbers = #tpu.dot_dimension_numbers<[1], [0], [0], [1], [0, 0, 1, 1], [], []>} : vector<8x32xbf16>, vector<32x64xbf16>, vector<8x64xf32> -> vector<8x64xf32>
    %c1_226 = arith.constant 1 : index
    %c0_227 = arith.constant 0 : index
    %c0_228 = arith.constant 0 : index
    %631 = vector.load %arg13[%c1_226, %c0_227, %c0_228] : memref<2x1x64xf32, #tpu.memory_space<vmem>>, vector<1x1x64xf32>
    %632 = vector.shape_cast %631 : vector<1x1x64xf32> to vector<1x64xf32>
    %633 = vector.broadcast %632 : vector<1x64xf32> to vector<8x64xf32>
    %634 = arith.addf %630, %633 : vector<8x64xf32>
    %cst_229 = arith.constant 0.000000e+00 : f32
    %635 = vector.broadcast %cst_229 : f32 to vector<8x64xf32>
    %636 = arith.maximumf %634, %635 : vector<8x64xf32>
    %637 = arith.truncf %636 : vector<8x64xf32> to vector<8x64xbf16>
    %c1_230 = arith.constant 1 : index
    %c0_231 = arith.constant 0 : index
    %c0_232 = arith.constant 0 : index
    %638 = vector.load %arg14[%c1_230, %c0_231, %c0_232] : memref<2x64x32xbf16, #tpu.memory_space<vmem>>, vector<1x64x32xbf16>
    %639 = vector.shape_cast %638 : vector<1x64x32xbf16> to vector<64x32xbf16>
    %cst_233 = arith.constant dense<0.000000e+00> : vector<8x32xf32>
    %640 = tpu.matmul %637, %639, %cst_233 {dimension_numbers = #tpu.dot_dimension_numbers<[1], [0], [0], [1], [0, 0, 1, 1], [], []>} : vector<8x64xbf16>, vector<64x32xbf16>, vector<8x32xf32> -> vector<8x32xf32>
    %641 = vector.extract_strided_slice %0 {offsets = [26, 0], sizes = [1, 32], strides = [1, 1]} : vector<29x32xf32> to vector<1x32xf32>
    %642 = vector.broadcast %641 : vector<1x32xf32> to vector<8x32xf32>
    %643 = arith.addf %640, %642 : vector<8x32xf32>
    %644 = arith.addf %643, %626 : vector<8x32xf32>
    %645 = vector.extract_strided_slice %0 {offsets = [27, 0], sizes = [1, 32], strides = [1, 1]} : vector<29x32xf32> to vector<1x32xf32>
    %646 = vector.extract_strided_slice %0 {offsets = [28, 0], sizes = [1, 32], strides = [1, 1]} : vector<29x32xf32> to vector<1x32xf32>
    %cst_234 = arith.constant dense<0.000000e+00> : vector<8xf32>
    %647 = vector.multi_reduction <add>, %644, %cst_234 [1] : vector<8x32xf32> to vector<8xf32>
    %648 = vector.shape_cast %647 : vector<8xf32> to vector<8x1xf32>
    %cst_235 = arith.constant 3.200000e+01 : f32
    %649 = vector.broadcast %cst_235 : f32 to vector<8x1xf32>
    %650 = arith.divf %648, %649 : vector<8x1xf32>
    %651 = vector.broadcast %650 : vector<8x1xf32> to vector<8x32xf32>
    %652 = arith.subf %644, %651 : vector<8x32xf32>
    %653 = arith.mulf %652, %652 : vector<8x32xf32>
    %cst_236 = arith.constant dense<0.000000e+00> : vector<8xf32>
    %654 = vector.multi_reduction <add>, %653, %cst_236 [1] : vector<8x32xf32> to vector<8xf32>
    %655 = vector.shape_cast %654 : vector<8xf32> to vector<8x1xf32>
    %cst_237 = arith.constant 3.200000e+01 : f32
    %656 = vector.broadcast %cst_237 : f32 to vector<8x1xf32>
    %657 = arith.divf %655, %656 : vector<8x1xf32>
    %658 = vector.broadcast %650 : vector<8x1xf32> to vector<8x32xf32>
    %659 = arith.subf %644, %658 : vector<8x32xf32>
    %cst_238 = arith.constant 9.99999997E-7 : f32
    %660 = vector.broadcast %cst_238 : f32 to vector<8x1xf32>
    %661 = arith.addf %657, %660 : vector<8x1xf32>
    %662 = math.rsqrt %661 : vector<8x1xf32>
    %663 = vector.broadcast %662 : vector<8x1xf32> to vector<8x32xf32>
    %664 = arith.mulf %659, %663 : vector<8x32xf32>
    %665 = vector.broadcast %645 : vector<1x32xf32> to vector<8x32xf32>
    %666 = arith.mulf %664, %665 : vector<8x32xf32>
    %667 = vector.broadcast %646 : vector<1x32xf32> to vector<8x32xf32>
    %668 = arith.addf %666, %667 : vector<8x32xf32>
    %669 = vector.extract_strided_slice %0 {offsets = [5, 0], sizes = [1, 32], strides = [1, 1]} : vector<29x32xf32> to vector<1x32xf32>
    %670 = vector.extract_strided_slice %0 {offsets = [6, 0], sizes = [1, 32], strides = [1, 1]} : vector<29x32xf32> to vector<1x32xf32>
    %cst_239 = arith.constant dense<0.000000e+00> : vector<8xf32>
    %671 = vector.multi_reduction <add>, %668, %cst_239 [1] : vector<8x32xf32> to vector<8xf32>
    %672 = vector.shape_cast %671 : vector<8xf32> to vector<8x1xf32>
    %cst_240 = arith.constant 3.200000e+01 : f32
    %673 = vector.broadcast %cst_240 : f32 to vector<8x1xf32>
    %674 = arith.divf %672, %673 : vector<8x1xf32>
    %675 = vector.broadcast %674 : vector<8x1xf32> to vector<8x32xf32>
    %676 = arith.subf %668, %675 : vector<8x32xf32>
    %677 = arith.mulf %676, %676 : vector<8x32xf32>
    %cst_241 = arith.constant dense<0.000000e+00> : vector<8xf32>
    %678 = vector.multi_reduction <add>, %677, %cst_241 [1] : vector<8x32xf32> to vector<8xf32>
    %679 = vector.shape_cast %678 : vector<8xf32> to vector<8x1xf32>
    %cst_242 = arith.constant 3.200000e+01 : f32
    %680 = vector.broadcast %cst_242 : f32 to vector<8x1xf32>
    %681 = arith.divf %679, %680 : vector<8x1xf32>
    %682 = vector.broadcast %674 : vector<8x1xf32> to vector<8x32xf32>
    %683 = arith.subf %668, %682 : vector<8x32xf32>
    %cst_243 = arith.constant 9.99999997E-7 : f32
    %684 = vector.broadcast %cst_243 : f32 to vector<8x1xf32>
    %685 = arith.addf %681, %684 : vector<8x1xf32>
    %686 = math.rsqrt %685 : vector<8x1xf32>
    %687 = vector.broadcast %686 : vector<8x1xf32> to vector<8x32xf32>
    %688 = arith.mulf %683, %687 : vector<8x32xf32>
    %689 = vector.broadcast %669 : vector<1x32xf32> to vector<8x32xf32>
    %690 = arith.mulf %688, %689 : vector<8x32xf32>
    %691 = vector.broadcast %670 : vector<1x32xf32> to vector<8x32xf32>
    %692 = arith.addf %690, %691 : vector<8x32xf32>
    %c0_244 = arith.constant 0 : index
    %c0_245 = arith.constant 0 : index
    %c0_246 = arith.constant 0 : index
    %693 = vector.load %arg15[%c0_244, %c0_245, %c0_246] : memref<1x8x32xf32, #tpu.memory_space<vmem>>, vector<1x8x32xf32>
    %694 = vector.shape_cast %693 : vector<1x8x32xf32> to vector<8x32xf32>
    %695 = vector.shape_cast %692 : vector<8x32xf32> to vector<1x8x32xf32>
    tpu.vector_store %arg15[%c0_244, %c0_245, %c0_246], %695 {strides = array<i32>} : memref<1x8x32xf32, #tpu.memory_space<vmem>>, vector<1x8x32xf32>,
    return
  }
  func.func @transform_0(%arg0: i32) -> (i32, i32, i32) {
    %c0_i32 = arith.constant 0 : i32
    %c0_i32_0 = arith.constant 0 : i32
    %c0_i32_1 = arith.constant 0 : i32
    return %arg0, %c0_i32, %c0_i32_0 : i32, i32, i32
  }
  func.func @transform_1(%arg0: i32) -> (i32, i32, i32) {
    %c0_i32 = arith.constant 0 : i32
    %c0_i32_0 = arith.constant 0 : i32
    %c0_i32_1 = arith.constant 0 : i32
    return %arg0, %c0_i32, %c0_i32_0 : i32, i32, i32
  }
  func.func @transform_2(%arg0: i32) -> (i32, i32, i32) {
    %c0_i32 = arith.constant 0 : i32
    %c0_i32_0 = arith.constant 0 : i32
    %c0_i32_1 = arith.constant 0 : i32
    %c0_i32_2 = arith.constant 0 : i32
    return %c0_i32, %c0_i32_0, %c0_i32_1 : i32, i32, i32
  }
  func.func @transform_3(%arg0: i32) -> (i32, i32, i32) {
    %c0_i32 = arith.constant 0 : i32
    %c0_i32_0 = arith.constant 0 : i32
    %c0_i32_1 = arith.constant 0 : i32
    %c0_i32_2 = arith.constant 0 : i32
    return %c0_i32, %c0_i32_0, %c0_i32_1 : i32, i32, i32
  }
  func.func @transform_4(%arg0: i32) -> (i32, i32) {
    %c0_i32 = arith.constant 0 : i32
    %c0_i32_0 = arith.constant 0 : i32
    %c0_i32_1 = arith.constant 0 : i32
    return %c0_i32, %c0_i32_0 : i32, i32
  }
  func.func @transform_5(%arg0: i32) -> (i32, i32, i32) {
    %c0_i32 = arith.constant 0 : i32
    %c0_i32_0 = arith.constant 0 : i32
    %c0_i32_1 = arith.constant 0 : i32
    %c0_i32_2 = arith.constant 0 : i32
    return %c0_i32, %c0_i32_0, %c0_i32_1 : i32, i32, i32
  }
  func.func @transform_6(%arg0: i32) -> (i32, i32, i32) {
    %c0_i32 = arith.constant 0 : i32
    %c0_i32_0 = arith.constant 0 : i32
    %c0_i32_1 = arith.constant 0 : i32
    %c0_i32_2 = arith.constant 0 : i32
    return %c0_i32, %c0_i32_0, %c0_i32_1 : i32, i32, i32
  }
  func.func @transform_7(%arg0: i32) -> (i32, i32) {
    %c0_i32 = arith.constant 0 : i32
    %c0_i32_0 = arith.constant 0 : i32
    %c0_i32_1 = arith.constant 0 : i32
    return %c0_i32, %c0_i32_0 : i32, i32
  }
  func.func @transform_8(%arg0: i32) -> (i32, i32, i32, i32) {
    %c0_i32 = arith.constant 0 : i32
    %c0_i32_0 = arith.constant 0 : i32
    %c0_i32_1 = arith.constant 0 : i32
    %c0_i32_2 = arith.constant 0 : i32
    %c0_i32_3 = arith.constant 0 : i32
    return %c0_i32, %c0_i32_0, %c0_i32_1, %c0_i32_2 : i32, i32, i32, i32
  }
  func.func @transform_9(%arg0: i32) -> (i32, i32, i32, i32) {
    %c0_i32 = arith.constant 0 : i32
    %c0_i32_0 = arith.constant 0 : i32
    %c0_i32_1 = arith.constant 0 : i32
    %c0_i32_2 = arith.constant 0 : i32
    %c0_i32_3 = arith.constant 0 : i32
    return %c0_i32, %c0_i32_0, %c0_i32_1, %c0_i32_2 : i32, i32, i32, i32
  }
  func.func @transform_10(%arg0: i32) -> (i32, i32, i32, i32) {
    %c0_i32 = arith.constant 0 : i32
    %c0_i32_0 = arith.constant 0 : i32
    %c0_i32_1 = arith.constant 0 : i32
    %c0_i32_2 = arith.constant 0 : i32
    %c0_i32_3 = arith.constant 0 : i32
    return %c0_i32, %c0_i32_0, %c0_i32_1, %c0_i32_2 : i32, i32, i32, i32
  }
  func.func @transform_11(%arg0: i32) -> (i32, i32, i32) {
    %c0_i32 = arith.constant 0 : i32
    %c0_i32_0 = arith.constant 0 : i32
    %c0_i32_1 = arith.constant 0 : i32
    %c0_i32_2 = arith.constant 0 : i32
    return %c0_i32, %c0_i32_0, %c0_i32_1 : i32, i32, i32
  }
  func.func @transform_12(%arg0: i32) -> (i32, i32, i32) {
    %c0_i32 = arith.constant 0 : i32
    %c0_i32_0 = arith.constant 0 : i32
    %c0_i32_1 = arith.constant 0 : i32
    %c0_i32_2 = arith.constant 0 : i32
    return %c0_i32, %c0_i32_0, %c0_i32_1 : i32, i32, i32
  }
  func.func @transform_13(%arg0: i32) -> (i32, i32, i32) {
    %c0_i32 = arith.constant 0 : i32
    %c0_i32_0 = arith.constant 0 : i32
    %c0_i32_1 = arith.constant 0 : i32
    %c0_i32_2 = arith.constant 0 : i32
    return %c0_i32, %c0_i32_0, %c0_i32_1 : i32, i32, i32
  }
  func.func @transform_14(%arg0: i32) -> (i32, i32, i32) {
    %c0_i32 = arith.constant 0 : i32
    %c0_i32_0 = arith.constant 0 : i32
    %c0_i32_1 = arith.constant 0 : i32
    return %arg0, %c0_i32, %c0_i32_0 : i32, i32, i32
  }
}

module attributes {stable_mosaic.version = 11 : i64} {
  func.func @vdecoder_kernel(%arg0: i32, %arg1: memref<1x8x10xf32, #tpu.memory_space<vmem>>, %arg2: memref<1x8x32xf32, #tpu.memory_space<vmem>>, %arg3: memref<1x8x8xf32, #tpu.memory_space<vmem>>, %arg4: memref<1x1x8xf32, #tpu.memory_space<vmem>>, %arg5: memref<10x32xbf16, #tpu.memory_space<vmem>>, %arg6: memref<2x32x32xbf16, #tpu.memory_space<vmem>>, %arg7: memref<2x96x32xbf16, #tpu.memory_space<vmem>>, %arg8: memref<29x32xf32, #tpu.memory_space<vmem>>, %arg9: memref<2x2x32x32xbf16, #tpu.memory_space<vmem>>, %arg10: memref<2x2x32x64xbf16, #tpu.memory_space<vmem>>, %arg11: memref<2x2x32x32xbf16, #tpu.memory_space<vmem>>, %arg12: memref<2x32x64xbf16, #tpu.memory_space<vmem>>, %arg13: memref<2x1x64xf32, #tpu.memory_space<vmem>>, %arg14: memref<2x64x32xbf16, #tpu.memory_space<vmem>>, %arg15: memref<1x8x32xf32, #tpu.memory_space<vmem>>) attributes {dimension_semantics = [#tpu.dimension_semantics<parallel>], iteration_bounds = array<i64: 2>, scalar_prefetch = 0 : i64, scratch_operands = 0 : i64, tpu.core_type = #tpu.core_type<tc>, window_params = [{transform_indices = @transform_0, window_bounds = array<i64: 1, 8, 10>}, {transform_indices = @transform_1, window_bounds = array<i64: 1, 8, 32>}, {pipeline_mode = #tpu.pipeline_mode<synchronous>, transform_indices = @transform_2, window_bounds = array<i64: 1, 8, 8>}, {pipeline_mode = #tpu.pipeline_mode<synchronous>, transform_indices = @transform_3, window_bounds = array<i64: 1, 1, 8>}, {pipeline_mode = #tpu.pipeline_mode<synchronous>, transform_indices = @transform_4, window_bounds = array<i64: 10, 32>}, {pipeline_mode = #tpu.pipeline_mode<synchronous>, transform_indices = @transform_5, window_bounds = array<i64: 2, 32, 32>}, {pipeline_mode = #tpu.pipeline_mode<synchronous>, transform_indices = @transform_6, window_bounds = array<i64: 2, 96, 32>}, {pipeline_mode = #tpu.pipeline_mode<synchronous>, transform_indices = @transform_7, window_bounds = array<i64: 29, 32>}, {pipeline_mode = #tpu.pipeline_mode<synchronous>, transform_indices = @transform_8, window_bounds = array<i64: 2, 2, 32, 32>}, {pipeline_mode = #tpu.pipeline_mode<synchronous>, transform_indices = @transform_9, window_bounds = array<i64: 2, 2, 32, 64>}, {pipeline_mode = #tpu.pipeline_mode<synchronous>, transform_indices = @transform_10, window_bounds = array<i64: 2, 2, 32, 32>}, {pipeline_mode = #tpu.pipeline_mode<synchronous>, transform_indices = @transform_11, window_bounds = array<i64: 2, 32, 64>}, {pipeline_mode = #tpu.pipeline_mode<synchronous>, transform_indices = @transform_12, window_bounds = array<i64: 2, 1, 64>}, {pipeline_mode = #tpu.pipeline_mode<synchronous>, transform_indices = @transform_13, window_bounds = array<i64: 2, 64, 32>}, {transform_indices = @transform_14, window_bounds = array<i64: 1, 8, 32>}]} {
    %c0 = arith.constant 0 : index
    %c0_0 = arith.constant 0 : index
    %0 = vector.load %arg8[%c0, %c0_0] : memref<29x32xf32, #tpu.memory_space<vmem>>, vector<29x32xf32>
    %c0_1 = arith.constant 0 : index
    %c0_2 = arith.constant 0 : index
    %c0_3 = arith.constant 0 : index
    %1 = vector.load %arg1[%c0_1, %c0_2, %c0_3] : memref<1x8x10xf32, #tpu.memory_space<vmem>>, vector<1x8x10xf32>
    %2 = vector.shape_cast %1 : vector<1x8x10xf32> to vector<8x10xf32>
    %3 = arith.truncf %2 : vector<8x10xf32> to vector<8x10xbf16>
    %c0_4 = arith.constant 0 : index
    %c0_5 = arith.constant 0 : index
    %4 = vector.load %arg5[%c0_4, %c0_5] : memref<10x32xbf16, #tpu.memory_space<vmem>>, vector<10x32xbf16>
    %cst = arith.constant dense<0.000000e+00> : vector<8x32xf32>
    %5 = tpu.matmul %3, %4, %cst {dimension_numbers = #tpu.dot_dimension_numbers<[1], [0], [0], [1], [0, 0, 1, 1], [], []>} : vector<8x10xbf16>, vector<10x32xbf16>, vector<8x32xf32> -> vector<8x32xf32>
    %6 = vector.extract_strided_slice %0 {offsets = [0, 0], sizes = [1, 32], strides = [1, 1]} : vector<29x32xf32> to vector<1x32xf32>
    %7 = vector.broadcast %6 : vector<1x32xf32> to vector<8x32xf32>
    %8 = arith.addf %5, %7 : vector<8x32xf32>
    %9 = arith.truncf %8 : vector<8x32xf32> to vector<8x32xbf16>
    %c0_6 = arith.constant 0 : index
    %c0_7 = arith.constant 0 : index
    %c0_8 = arith.constant 0 : index
    %10 = vector.load %arg6[%c0_6, %c0_7, %c0_8] : memref<2x32x32xbf16, #tpu.memory_space<vmem>>, vector<1x32x32xbf16>
    %11 = vector.shape_cast %10 : vector<1x32x32xbf16> to vector<32x32xbf16>
    %cst_9 = arith.constant 2.000000e-01 : f32
    %12 = vector.broadcast %cst_9 : f32 to vector<8x32xf32>
    %13 = arith.mulf %12, %8 : vector<8x32xf32>
    %14 = arith.truncf %8 : vector<8x32xf32> to vector<8x32xbf16>
    %cst_10 = arith.constant dense<0.000000e+00> : vector<8x32xf32>
    %15 = tpu.matmul %14, %11, %cst_10 {dimension_numbers = #tpu.dot_dimension_numbers<[1], [0], [0], [1], [0, 0, 1, 1], [], []>} : vector<8x32xbf16>, vector<32x32xbf16>, vector<8x32xf32> -> vector<8x32xf32>
    %cst_11 = arith.constant 8.000000e-01 : f32
    %16 = vector.broadcast %cst_11 : f32 to vector<8x32xf32>
    %17 = arith.mulf %16, %15 : vector<8x32xf32>
    %18 = arith.addf %13, %17 : vector<8x32xf32>
    %19 = arith.truncf %18 : vector<8x32xf32> to vector<8x32xbf16>
    %cst_12 = arith.constant 2.000000e-01 : f32
    %20 = vector.broadcast %cst_12 : f32 to vector<8x32xf32>
    %21 = arith.mulf %20, %8 : vector<8x32xf32>
    %22 = arith.truncf %18 : vector<8x32xf32> to vector<8x32xbf16>
    %cst_13 = arith.constant dense<0.000000e+00> : vector<8x32xf32>
    %23 = tpu.matmul %22, %11, %cst_13 {dimension_numbers = #tpu.dot_dimension_numbers<[1], [0], [0], [1], [0, 0, 1, 1], [], []>} : vector<8x32xbf16>, vector<32x32xbf16>, vector<8x32xf32> -> vector<8x32xf32>
    %cst_14 = arith.constant 8.000000e-01 : f32
    %24 = vector.broadcast %cst_14 : f32 to vector<8x32xf32>
    %25 = arith.mulf %24, %23 : vector<8x32xf32>
    %26 = arith.addf %21, %25 : vector<8x32xf32>
    %27 = arith.truncf %26 : vector<8x32xf32> to vector<8x32xbf16>
    %28 = tpu.concatenate %9, %19, %27 in 1 : vector<8x32xbf16>, vector<8x32xbf16>, vector<8x32xbf16> -> vector<8x96xbf16>
    %c0_15 = arith.constant 0 : index
    %c0_16 = arith.constant 0 : index
    %c0_17 = arith.constant 0 : index
    %29 = vector.load %arg7[%c0_15, %c0_16, %c0_17] : memref<2x96x32xbf16, #tpu.memory_space<vmem>>, vector<1x96x32xbf16>
    %30 = vector.shape_cast %29 : vector<1x96x32xbf16> to vector<96x32xbf16>
    %cst_18 = arith.constant dense<0.000000e+00> : vector<8x32xf32>
    %31 = tpu.matmul %28, %30, %cst_18 {dimension_numbers = #tpu.dot_dimension_numbers<[1], [0], [0], [1], [0, 0, 1, 1], [], []>} : vector<8x96xbf16>, vector<96x32xbf16>, vector<8x32xf32> -> vector<8x32xf32>
    %32 = vector.extract_strided_slice %0 {offsets = [1, 0], sizes = [1, 32], strides = [1, 1]} : vector<29x32xf32> to vector<1x32xf32>
    %33 = vector.broadcast %32 : vector<1x32xf32> to vector<8x32xf32>
    %34 = arith.addf %31, %33 : vector<8x32xf32>
    %c1 = arith.constant 1 : index
    %c0_19 = arith.constant 0 : index
    %c0_20 = arith.constant 0 : index
    %35 = vector.load %arg6[%c1, %c0_19, %c0_20] : memref<2x32x32xbf16, #tpu.memory_space<vmem>>, vector<1x32x32xbf16>
    %36 = vector.shape_cast %35 : vector<1x32x32xbf16> to vector<32x32xbf16>
    %cst_21 = arith.constant 2.000000e-01 : f32
    %37 = vector.broadcast %cst_21 : f32 to vector<8x32xf32>
    %38 = arith.mulf %37, %8 : vector<8x32xf32>
    %39 = arith.truncf %8 : vector<8x32xf32> to vector<8x32xbf16>
    %cst_22 = arith.constant dense<0.000000e+00> : vector<8x32xf32>
    %40 = tpu.matmul %39, %36, %cst_22 {dimension_numbers = #tpu.dot_dimension_numbers<[1], [0], [0], [1], [0, 0, 1, 1], [], []>} : vector<8x32xbf16>, vector<32x32xbf16>, vector<8x32xf32> -> vector<8x32xf32>
    %cst_23 = arith.constant 8.000000e-01 : f32
    %41 = vector.broadcast %cst_23 : f32 to vector<8x32xf32>
    %42 = arith.mulf %41, %40 : vector<8x32xf32>
    %43 = arith.addf %38, %42 : vector<8x32xf32>
    %44 = arith.truncf %43 : vector<8x32xf32> to vector<8x32xbf16>
    %cst_24 = arith.constant 2.000000e-01 : f32
    %45 = vector.broadcast %cst_24 : f32 to vector<8x32xf32>
    %46 = arith.mulf %45, %8 : vector<8x32xf32>
    %47 = arith.truncf %43 : vector<8x32xf32> to vector<8x32xbf16>
    %cst_25 = arith.constant dense<0.000000e+00> : vector<8x32xf32>
    %48 = tpu.matmul %47, %36, %cst_25 {dimension_numbers = #tpu.dot_dimension_numbers<[1], [0], [0], [1], [0, 0, 1, 1], [], []>} : vector<8x32xbf16>, vector<32x32xbf16>, vector<8x32xf32> -> vector<8x32xf32>
    %cst_26 = arith.constant 8.000000e-01 : f32
    %49 = vector.broadcast %cst_26 : f32 to vector<8x32xf32>
    %50 = arith.mulf %49, %48 : vector<8x32xf32>
    %51 = arith.addf %46, %50 : vector<8x32xf32>
    %52 = arith.truncf %51 : vector<8x32xf32> to vector<8x32xbf16>
    %53 = tpu.concatenate %9, %44, %52 in 1 : vector<8x32xbf16>, vector<8x32xbf16>, vector<8x32xbf16> -> vector<8x96xbf16>
    %c1_27 = arith.constant 1 : index
    %c0_28 = arith.constant 0 : index
    %c0_29 = arith.constant 0 : index
    %54 = vector.load %arg7[%c1_27, %c0_28, %c0_29] : memref<2x96x32xbf16, #tpu.memory_space<vmem>>, vector<1x96x32xbf16>
    %55 = vector.shape_cast %54 : vector<1x96x32xbf16> to vector<96x32xbf16>
    %cst_30 = arith.constant dense<0.000000e+00> : vector<8x32xf32>
    %56 = tpu.matmul %53, %55, %cst_30 {dimension_numbers = #tpu.dot_dimension_numbers<[1], [0], [0], [1], [0, 0, 1, 1], [], []>} : vector<8x96xbf16>, vector<96x32xbf16>, vector<8x32xf32> -> vector<8x32xf32>
    %57 = vector.extract_strided_slice %0 {offsets = [2, 0], sizes = [1, 32], strides = [1, 1]} : vector<29x32xf32> to vector<1x32xf32>
    %58 = vector.broadcast %57 : vector<1x32xf32> to vector<8x32xf32>
    %59 = arith.addf %56, %58 : vector<8x32xf32>
    %60 = arith.addf %34, %59 : vector<8x32xf32>
    %61 = arith.addf %60, %8 : vector<8x32xf32>
    %62 = vector.extract_strided_slice %0 {offsets = [3, 0], sizes = [1, 32], strides = [1, 1]} : vector<29x32xf32> to vector<1x32xf32>
    %63 = vector.extract_strided_slice %0 {offsets = [4, 0], sizes = [1, 32], strides = [1, 1]} : vector<29x32xf32> to vector<1x32xf32>
    %cst_31 = arith.constant dense<0.000000e+00> : vector<8xf32>
    %64 = vector.multi_reduction <add>, %61, %cst_31 [1] : vector<8x32xf32> to vector<8xf32>
    %65 = vector.shape_cast %64 : vector<8xf32> to vector<8x1xf32>
    %cst_32 = arith.constant 3.200000e+01 : f32
    %66 = vector.broadcast %cst_32 : f32 to vector<8x1xf32>
    %67 = arith.divf %65, %66 : vector<8x1xf32>
    %68 = vector.broadcast %67 : vector<8x1xf32> to vector<8x32xf32>
    %69 = arith.subf %61, %68 : vector<8x32xf32>
    %70 = arith.mulf %69, %69 : vector<8x32xf32>
    %cst_33 = arith.constant dense<0.000000e+00> : vector<8xf32>
    %71 = vector.multi_reduction <add>, %70, %cst_33 [1] : vector<8x32xf32> to vector<8xf32>
    %72 = vector.shape_cast %71 : vector<8xf32> to vector<8x1xf32>
    %cst_34 = arith.constant 3.200000e+01 : f32
    %73 = vector.broadcast %cst_34 : f32 to vector<8x1xf32>
    %74 = arith.divf %72, %73 : vector<8x1xf32>
    %75 = vector.broadcast %67 : vector<8x1xf32> to vector<8x32xf32>
    %76 = arith.subf %61, %75 : vector<8x32xf32>
    %cst_35 = arith.constant 9.99999997E-7 : f32
    %77 = vector.broadcast %cst_35 : f32 to vector<8x1xf32>
    %78 = arith.addf %74, %77 : vector<8x1xf32>
    %79 = math.rsqrt %78 : vector<8x1xf32>
    %80 = vector.broadcast %79 : vector<8x1xf32> to vector<8x32xf32>
    %81 = arith.mulf %76, %80 : vector<8x32xf32>
    %82 = vector.broadcast %62 : vector<1x32xf32> to vector<8x32xf32>
    %83 = arith.mulf %81, %82 : vector<8x32xf32>
    %84 = vector.broadcast %63 : vector<1x32xf32> to vector<8x32xf32>
    %85 = arith.addf %83, %84 : vector<8x32xf32>
    %86 = vector.extract_strided_slice %0 {offsets = [7, 0], sizes = [8, 32], strides = [1, 1]} : vector<29x32xf32> to vector<8x32xf32>
    %87 = arith.addf %85, %86 : vector<8x32xf32>
    %c0_36 = arith.constant 0 : index
    %c0_37 = arith.constant 0 : index
    %c0_38 = arith.constant 0 : index
    %88 = vector.load %arg2[%c0_36, %c0_37, %c0_38] : memref<1x8x32xf32, #tpu.memory_space<vmem>>, vector<1x8x32xf32>
    %89 = vector.shape_cast %88 : vector<1x8x32xf32> to vector<8x32xf32>
    %90 = arith.truncf %89 : vector<8x32xf32> to vector<8x32xbf16>
    %c0_39 = arith.constant 0 : index
    %c0_40 = arith.constant 0 : index
    %c0_41 = arith.constant 0 : index
    %91 = vector.load %arg3[%c0_39, %c0_40, %c0_41] : memref<1x8x8xf32, #tpu.memory_space<vmem>>, vector<1x8x8xf32>
    %92 = vector.shape_cast %91 : vector<1x8x8xf32> to vector<8x8xf32>
    %c0_42 = arith.constant 0 : index
    %c0_43 = arith.constant 0 : index
    %c0_44 = arith.constant 0 : index
    %93 = vector.load %arg4[%c0_42, %c0_43, %c0_44] : memref<1x1x8xf32, #tpu.memory_space<vmem>>, vector<1x1x8xf32>
    %94 = vector.shape_cast %93 : vector<1x1x8xf32> to vector<1x8xf32>
    %95 = vector.shape_cast %94 : vector<1x8xf32> to vector<1x8xf32>
    %96 = vector.broadcast %95 : vector<1x8xf32> to vector<8x8xf32>
    %97 = arith.truncf %87 : vector<8x32xf32> to vector<8x32xbf16>
    %c0_45 = arith.constant 0 : index
    %c0_46 = arith.constant 0 : index
    %c0_47 = arith.constant 0 : index
    %c0_48 = arith.constant 0 : index
    %98 = vector.load %arg9[%c0_45, %c0_46, %c0_47, %c0_48] : memref<2x2x32x32xbf16, #tpu.memory_space<vmem>>, vector<1x1x32x32xbf16>
    %99 = vector.shape_cast %98 : vector<1x1x32x32xbf16> to vector<32x32xbf16>
    %cst_49 = arith.constant dense<0.000000e+00> : vector<8x32xf32>
    %100 = tpu.matmul %97, %99, %cst_49 {dimension_numbers = #tpu.dot_dimension_numbers<[1], [0], [0], [1], [0, 0, 1, 1], [], []>} : vector<8x32xbf16>, vector<32x32xbf16>, vector<8x32xf32> -> vector<8x32xf32>
    %c0_50 = arith.constant 0 : index
    %c0_51 = arith.constant 0 : index
    %c0_52 = arith.constant 0 : index
    %c0_53 = arith.constant 0 : index
    %101 = vector.load %arg10[%c0_50, %c0_51, %c0_52, %c0_53] : memref<2x2x32x64xbf16, #tpu.memory_space<vmem>>, vector<1x1x32x64xbf16>
    %102 = vector.shape_cast %101 : vector<1x1x32x64xbf16> to vector<32x64xbf16>
    %cst_54 = arith.constant dense<0.000000e+00> : vector<8x64xf32>
    %103 = tpu.matmul %97, %102, %cst_54 {dimension_numbers = #tpu.dot_dimension_numbers<[1], [0], [0], [1], [0, 0, 1, 1], [], []>} : vector<8x32xbf16>, vector<32x64xbf16>, vector<8x64xf32> -> vector<8x64xf32>
    %104 = arith.truncf %100 : vector<8x32xf32> to vector<8x32xbf16>
    %105 = vector.extract_strided_slice %103 {offsets = [0, 0], sizes = [8, 32], strides = [1, 1]} : vector<8x64xf32> to vector<8x32xf32>
    %106 = tpu.transpose %105, [1, 0] : vector<8x32xf32> -> vector<32x8xf32>
    %107 = arith.truncf %106 : vector<32x8xf32> to vector<32x8xbf16>
    %108 = vector.extract_strided_slice %103 {offsets = [0, 32], sizes = [8, 32], strides = [1, 1]} : vector<8x64xf32> to vector<8x32xf32>
    %109 = arith.truncf %108 : vector<8x32xf32> to vector<8x32xbf16>
    %110 = vector.extract_strided_slice %104 {offsets = [0, 0], sizes = [8, 8], strides = [1, 1]} : vector<8x32xbf16> to vector<8x8xbf16>
    %111 = vector.extract_strided_slice %107 {offsets = [0, 0], sizes = [8, 8], strides = [1, 1]} : vector<32x8xbf16> to vector<8x8xbf16>
    %cst_55 = arith.constant dense<0.000000e+00> : vector<8x8xf32>
    %112 = tpu.matmul %110, %111, %cst_55 {dimension_numbers = #tpu.dot_dimension_numbers<[1], [0], [0], [1], [0, 0, 1, 1], [], []>} : vector<8x8xbf16>, vector<8x8xbf16>, vector<8x8xf32> -> vector<8x8xf32>
    %cst_56 = arith.constant 0.353553385 : f32
    %113 = vector.broadcast %cst_56 : f32 to vector<8x8xf32>
    %114 = arith.mulf %112, %113 : vector<8x8xf32>
    %115 = arith.addf %114, %92 : vector<8x8xf32>
    %cst_57 = arith.constant dense<0xFF800000> : vector<8xf32>
    %116 = vector.multi_reduction <maximumf>, %115, %cst_57 [1] : vector<8x8xf32> to vector<8xf32>
    %117 = vector.shape_cast %116 : vector<8xf32> to vector<8x1xf32>
    %118 = vector.broadcast %117 : vector<8x1xf32> to vector<8x8xf32>
    %119 = arith.subf %115, %118 : vector<8x8xf32>
    %120 = math.exp %119 : vector<8x8xf32>
    %cst_58 = arith.constant dense<0.000000e+00> : vector<8xf32>
    %121 = vector.multi_reduction <add>, %120, %cst_58 [1] : vector<8x8xf32> to vector<8xf32>
    %122 = vector.shape_cast %121 : vector<8xf32> to vector<8x1xf32>
    %123 = tpu.reciprocal %122 {approx = true} : vector<8x1xf32> -> vector<8x1xf32>
    %124 = vector.broadcast %123 : vector<8x1xf32> to vector<8x8xf32>
    %125 = arith.mulf %120, %124 : vector<8x8xf32>
    %126 = arith.truncf %125 : vector<8x8xf32> to vector<8x8xbf16>
    %127 = vector.extract_strided_slice %109 {offsets = [0, 0], sizes = [8, 8], strides = [1, 1]} : vector<8x32xbf16> to vector<8x8xbf16>
    %cst_59 = arith.constant dense<0.000000e+00> : vector<8x8xf32>
    %128 = tpu.matmul %126, %127, %cst_59 {dimension_numbers = #tpu.dot_dimension_numbers<[1], [0], [0], [1], [0, 0, 1, 1], [], []>} : vector<8x8xbf16>, vector<8x8xbf16>, vector<8x8xf32> -> vector<8x8xf32>
    %129 = arith.truncf %128 : vector<8x8xf32> to vector<8x8xbf16>
    %130 = vector.extract_strided_slice %104 {offsets = [0, 8], sizes = [8, 8], strides = [1, 1]} : vector<8x32xbf16> to vector<8x8xbf16>
    %131 = vector.extract_strided_slice %107 {offsets = [8, 0], sizes = [8, 8], strides = [1, 1]} : vector<32x8xbf16> to vector<8x8xbf16>
    %cst_60 = arith.constant dense<0.000000e+00> : vector<8x8xf32>
    %132 = tpu.matmul %130, %131, %cst_60 {dimension_numbers = #tpu.dot_dimension_numbers<[1], [0], [0], [1], [0, 0, 1, 1], [], []>} : vector<8x8xbf16>, vector<8x8xbf16>, vector<8x8xf32> -> vector<8x8xf32>
    %cst_61 = arith.constant 0.353553385 : f32
    %133 = vector.broadcast %cst_61 : f32 to vector<8x8xf32>
    %134 = arith.mulf %132, %133 : vector<8x8xf32>
    %135 = arith.addf %134, %92 : vector<8x8xf32>
    %cst_62 = arith.constant dense<0xFF800000> : vector<8xf32>
    %136 = vector.multi_reduction <maximumf>, %135, %cst_62 [1] : vector<8x8xf32> to vector<8xf32>
    %137 = vector.shape_cast %136 : vector<8xf32> to vector<8x1xf32>
    %138 = vector.broadcast %137 : vector<8x1xf32> to vector<8x8xf32>
    %139 = arith.subf %135, %138 : vector<8x8xf32>
    %140 = math.exp %139 : vector<8x8xf32>
    %cst_63 = arith.constant dense<0.000000e+00> : vector<8xf32>
    %141 = vector.multi_reduction <add>, %140, %cst_63 [1] : vector<8x8xf32> to vector<8xf32>
    %142 = vector.shape_cast %141 : vector<8xf32> to vector<8x1xf32>
    %143 = tpu.reciprocal %142 {approx = true} : vector<8x1xf32> -> vector<8x1xf32>
    %144 = vector.broadcast %143 : vector<8x1xf32> to vector<8x8xf32>
    %145 = arith.mulf %140, %144 : vector<8x8xf32>
    %146 = arith.truncf %145 : vector<8x8xf32> to vector<8x8xbf16>
    %147 = vector.extract_strided_slice %109 {offsets = [0, 8], sizes = [8, 8], strides = [1, 1]} : vector<8x32xbf16> to vector<8x8xbf16>
    %cst_64 = arith.constant dense<0.000000e+00> : vector<8x8xf32>
    %148 = tpu.matmul %146, %147, %cst_64 {dimension_numbers = #tpu.dot_dimension_numbers<[1], [0], [0], [1], [0, 0, 1, 1], [], []>} : vector<8x8xbf16>, vector<8x8xbf16>, vector<8x8xf32> -> vector<8x8xf32>
    %149 = arith.truncf %148 : vector<8x8xf32> to vector<8x8xbf16>
    %150 = vector.extract_strided_slice %104 {offsets = [0, 16], sizes = [8, 8], strides = [1, 1]} : vector<8x32xbf16> to vector<8x8xbf16>
    %151 = vector.extract_strided_slice %107 {offsets = [16, 0], sizes = [8, 8], strides = [1, 1]} : vector<32x8xbf16> to vector<8x8xbf16>
    %cst_65 = arith.constant dense<0.000000e+00> : vector<8x8xf32>
    %152 = tpu.matmul %150, %151, %cst_65 {dimension_numbers = #tpu.dot_dimension_numbers<[1], [0], [0], [1], [0, 0, 1, 1], [], []>} : vector<8x8xbf16>, vector<8x8xbf16>, vector<8x8xf32> -> vector<8x8xf32>
    %cst_66 = arith.constant 0.353553385 : f32
    %153 = vector.broadcast %cst_66 : f32 to vector<8x8xf32>
    %154 = arith.mulf %152, %153 : vector<8x8xf32>
    %155 = arith.addf %154, %92 : vector<8x8xf32>
    %cst_67 = arith.constant dense<0xFF800000> : vector<8xf32>
    %156 = vector.multi_reduction <maximumf>, %155, %cst_67 [1] : vector<8x8xf32> to vector<8xf32>
    %157 = vector.shape_cast %156 : vector<8xf32> to vector<8x1xf32>
    %158 = vector.broadcast %157 : vector<8x1xf32> to vector<8x8xf32>
    %159 = arith.subf %155, %158 : vector<8x8xf32>
    %160 = math.exp %159 : vector<8x8xf32>
    %cst_68 = arith.constant dense<0.000000e+00> : vector<8xf32>
    %161 = vector.multi_reduction <add>, %160, %cst_68 [1] : vector<8x8xf32> to vector<8xf32>
    %162 = vector.shape_cast %161 : vector<8xf32> to vector<8x1xf32>
    %163 = tpu.reciprocal %162 {approx = true} : vector<8x1xf32> -> vector<8x1xf32>
    %164 = vector.broadcast %163 : vector<8x1xf32> to vector<8x8xf32>
    %165 = arith.mulf %160, %164 : vector<8x8xf32>
    %166 = arith.truncf %165 : vector<8x8xf32> to vector<8x8xbf16>
    %167 = vector.extract_strided_slice %109 {offsets = [0, 16], sizes = [8, 8], strides = [1, 1]} : vector<8x32xbf16> to vector<8x8xbf16>
    %cst_69 = arith.constant dense<0.000000e+00> : vector<8x8xf32>
    %168 = tpu.matmul %166, %167, %cst_69 {dimension_numbers = #tpu.dot_dimension_numbers<[1], [0], [0], [1], [0, 0, 1, 1], [], []>} : vector<8x8xbf16>, vector<8x8xbf16>, vector<8x8xf32> -> vector<8x8xf32>
    %169 = arith.truncf %168 : vector<8x8xf32> to vector<8x8xbf16>
    %170 = vector.extract_strided_slice %104 {offsets = [0, 24], sizes = [8, 8], strides = [1, 1]} : vector<8x32xbf16> to vector<8x8xbf16>
    %171 = vector.extract_strided_slice %107 {offsets = [24, 0], sizes = [8, 8], strides = [1, 1]} : vector<32x8xbf16> to vector<8x8xbf16>
    %cst_70 = arith.constant dense<0.000000e+00> : vector<8x8xf32>
    %172 = tpu.matmul %170, %171, %cst_70 {dimension_numbers = #tpu.dot_dimension_numbers<[1], [0], [0], [1], [0, 0, 1, 1], [], []>} : vector<8x8xbf16>, vector<8x8xbf16>, vector<8x8xf32> -> vector<8x8xf32>
    %cst_71 = arith.constant 0.353553385 : f32
    %173 = vector.broadcast %cst_71 : f32 to vector<8x8xf32>
    %174 = arith.mulf %172, %173 : vector<8x8xf32>
    %175 = arith.addf %174, %92 : vector<8x8xf32>
    %cst_72 = arith.constant dense<0xFF800000> : vector<8xf32>
    %176 = vector.multi_reduction <maximumf>, %175, %cst_72 [1] : vector<8x8xf32> to vector<8xf32>
    %177 = vector.shape_cast %176 : vector<8xf32> to vector<8x1xf32>
    %178 = vector.broadcast %177 : vector<8x1xf32> to vector<8x8xf32>
    %179 = arith.subf %175, %178 : vector<8x8xf32>
    %180 = math.exp %179 : vector<8x8xf32>
    %cst_73 = arith.constant dense<0.000000e+00> : vector<8xf32>
    %181 = vector.multi_reduction <add>, %180, %cst_73 [1] : vector<8x8xf32> to vector<8xf32>
    %182 = vector.shape_cast %181 : vector<8xf32> to vector<8x1xf32>
    %183 = tpu.reciprocal %182 {approx = true} : vector<8x1xf32> -> vector<8x1xf32>
    %184 = vector.broadcast %183 : vector<8x1xf32> to vector<8x8xf32>
    %185 = arith.mulf %180, %184 : vector<8x8xf32>
    %186 = arith.truncf %185 : vector<8x8xf32> to vector<8x8xbf16>
    %187 = vector.extract_strided_slice %109 {offsets = [0, 24], sizes = [8, 8], strides = [1, 1]} : vector<8x32xbf16> to vector<8x8xbf16>
    %cst_74 = arith.constant dense<0.000000e+00> : vector<8x8xf32>
    %188 = tpu.matmul %186, %187, %cst_74 {dimension_numbers = #tpu.dot_dimension_numbers<[1], [0], [0], [1], [0, 0, 1, 1], [], []>} : vector<8x8xbf16>, vector<8x8xbf16>, vector<8x8xf32> -> vector<8x8xf32>
    %189 = arith.truncf %188 : vector<8x8xf32> to vector<8x8xbf16>
    %190 = tpu.concatenate %129, %149, %169, %189 in 1 : vector<8x8xbf16>, vector<8x8xbf16>, vector<8x8xbf16>, vector<8x8xbf16> -> vector<8x32xbf16>
    %c0_75 = arith.constant 0 : index
    %c0_76 = arith.constant 0 : index
    %c0_77 = arith.constant 0 : index
    %c0_78 = arith.constant 0 : index
    %191 = vector.load %arg11[%c0_75, %c0_76, %c0_77, %c0_78] : memref<2x2x32x32xbf16, #tpu.memory_space<vmem>>, vector<1x1x32x32xbf16>
    %192 = vector.shape_cast %191 : vector<1x1x32x32xbf16> to vector<32x32xbf16>
    %cst_79 = arith.constant dense<0.000000e+00> : vector<8x32xf32>
    %193 = tpu.matmul %190, %192, %cst_79 {dimension_numbers = #tpu.dot_dimension_numbers<[1], [0], [0], [1], [0, 0, 1, 1], [], []>} : vector<8x32xbf16>, vector<32x32xbf16>, vector<8x32xf32> -> vector<8x32xf32>
    %194 = arith.addf %87, %193 : vector<8x32xf32>
    %195 = vector.extract_strided_slice %0 {offsets = [15, 0], sizes = [1, 32], strides = [1, 1]} : vector<29x32xf32> to vector<1x32xf32>
    %196 = vector.extract_strided_slice %0 {offsets = [16, 0], sizes = [1, 32], strides = [1, 1]} : vector<29x32xf32> to vector<1x32xf32>
    %cst_80 = arith.constant dense<0.000000e+00> : vector<8xf32>
    %197 = vector.multi_reduction <add>, %194, %cst_80 [1] : vector<8x32xf32> to vector<8xf32>
    %198 = vector.shape_cast %197 : vector<8xf32> to vector<8x1xf32>
    %cst_81 = arith.constant 3.200000e+01 : f32
    %199 = vector.broadcast %cst_81 : f32 to vector<8x1xf32>
    %200 = arith.divf %198, %199 : vector<8x1xf32>
    %201 = vector.broadcast %200 : vector<8x1xf32> to vector<8x32xf32>
    %202 = arith.subf %194, %201 : vector<8x32xf32>
    %203 = arith.mulf %202, %202 : vector<8x32xf32>
    %cst_82 = arith.constant dense<0.000000e+00> : vector<8xf32>
    %204 = vector.multi_reduction <add>, %203, %cst_82 [1] : vector<8x32xf32> to vector<8xf32>
    %205 = vector.shape_cast %204 : vector<8xf32> to vector<8x1xf32>
    %cst_83 = arith.constant 3.200000e+01 : f32
    %206 = vector.broadcast %cst_83 : f32 to vector<8x1xf32>
    %207 = arith.divf %205, %206 : vector<8x1xf32>
    %208 = vector.broadcast %200 : vector<8x1xf32> to vector<8x32xf32>
    %209 = arith.subf %194, %208 : vector<8x32xf32>
    %cst_84 = arith.constant 9.99999997E-7 : f32
    %210 = vector.broadcast %cst_84 : f32 to vector<8x1xf32>
    %211 = arith.addf %207, %210 : vector<8x1xf32>
    %212 = math.rsqrt %211 : vector<8x1xf32>
    %213 = vector.broadcast %212 : vector<8x1xf32> to vector<8x32xf32>
    %214 = arith.mulf %209, %213 : vector<8x32xf32>
    %215 = vector.broadcast %195 : vector<1x32xf32> to vector<8x32xf32>
    %216 = arith.mulf %214, %215 : vector<8x32xf32>
    %217 = vector.broadcast %196 : vector<1x32xf32> to vector<8x32xf32>
    %218 = arith.addf %216, %217 : vector<8x32xf32>
    %219 = arith.truncf %218 : vector<8x32xf32> to vector<8x32xbf16>
    %c0_85 = arith.constant 0 : index
    %c1_86 = arith.constant 1 : index
    %c0_87 = arith.constant 0 : index
    %c0_88 = arith.constant 0 : index
    %220 = vector.load %arg9[%c0_85, %c1_86, %c0_87, %c0_88] : memref<2x2x32x32xbf16, #tpu.memory_space<vmem>>, vector<1x1x32x32xbf16>
    %221 = vector.shape_cast %220 : vector<1x1x32x32xbf16> to vector<32x32xbf16>
    %cst_89 = arith.constant dense<0.000000e+00> : vector<8x32xf32>
    %222 = tpu.matmul %219, %221, %cst_89 {dimension_numbers = #tpu.dot_dimension_numbers<[1], [0], [0], [1], [0, 0, 1, 1], [], []>} : vector<8x32xbf16>, vector<32x32xbf16>, vector<8x32xf32> -> vector<8x32xf32>
    %c0_90 = arith.constant 0 : index
    %c1_91 = arith.constant 1 : index
    %c0_92 = arith.constant 0 : index
    %c0_93 = arith.constant 0 : index
    %223 = vector.load %arg10[%c0_90, %c1_91, %c0_92, %c0_93] : memref<2x2x32x64xbf16, #tpu.memory_space<vmem>>, vector<1x1x32x64xbf16>
    %224 = vector.shape_cast %223 : vector<1x1x32x64xbf16> to vector<32x64xbf16>
    %cst_94 = arith.constant dense<0.000000e+00> : vector<8x64xf32>
    %225 = tpu.matmul %90, %224, %cst_94 {dimension_numbers = #tpu.dot_dimension_numbers<[1], [0], [0], [1], [0, 0, 1, 1], [], []>} : vector<8x32xbf16>, vector<32x64xbf16>, vector<8x64xf32> -> vector<8x64xf32>
    %226 = arith.truncf %222 : vector<8x32xf32> to vector<8x32xbf16>
    %227 = vector.extract_strided_slice %225 {offsets = [0, 0], sizes = [8, 32], strides = [1, 1]} : vector<8x64xf32> to vector<8x32xf32>
    %228 = tpu.transpose %227, [1, 0] : vector<8x32xf32> -> vector<32x8xf32>
    %229 = arith.truncf %228 : vector<32x8xf32> to vector<32x8xbf16>
    %230 = vector.extract_strided_slice %225 {offsets = [0, 32], sizes = [8, 32], strides = [1, 1]} : vector<8x64xf32> to vector<8x32xf32>
    %231 = arith.truncf %230 : vector<8x32xf32> to vector<8x32xbf16>
    %232 = vector.extract_strided_slice %226 {offsets = [0, 0], sizes = [8, 8], strides = [1, 1]} : vector<8x32xbf16> to vector<8x8xbf16>
    %233 = vector.extract_strided_slice %229 {offsets = [0, 0], sizes = [8, 8], strides = [1, 1]} : vector<32x8xbf16> to vector<8x8xbf16>
    %cst_95 = arith.constant dense<0.000000e+00> : vector<8x8xf32>
    %234 = tpu.matmul %232, %233, %cst_95 {dimension_numbers = #tpu.dot_dimension_numbers<[1], [0], [0], [1], [0, 0, 1, 1], [], []>} : vector<8x8xbf16>, vector<8x8xbf16>, vector<8x8xf32> -> vector<8x8xf32>
    %cst_96 = arith.constant 0.353553385 : f32
    %235 = vector.broadcast %cst_96 : f32 to vector<8x8xf32>
    %236 = arith.mulf %234, %235 : vector<8x8xf32>
    %237 = arith.addf %236, %96 : vector<8x8xf32>
    %cst_97 = arith.constant dense<0xFF800000> : vector<8xf32>
    %238 = vector.multi_reduction <maximumf>, %237, %cst_97 [1] : vector<8x8xf32> to vector<8xf32>
    %239 = vector.shape_cast %238 : vector<8xf32> to vector<8x1xf32>
    %240 = vector.broadcast %239 : vector<8x1xf32> to vector<8x8xf32>
    %241 = arith.subf %237, %240 : vector<8x8xf32>
    %242 = math.exp %241 : vector<8x8xf32>
    %cst_98 = arith.constant dense<0.000000e+00> : vector<8xf32>
    %243 = vector.multi_reduction <add>, %242, %cst_98 [1] : vector<8x8xf32> to vector<8xf32>
    %244 = vector.shape_cast %243 : vector<8xf32> to vector<8x1xf32>
    %245 = tpu.reciprocal %244 {approx = true} : vector<8x1xf32> -> vector<8x1xf32>
    %246 = vector.broadcast %245 : vector<8x1xf32> to vector<8x8xf32>
    %247 = arith.mulf %242, %246 : vector<8x8xf32>
    %248 = arith.truncf %247 : vector<8x8xf32> to vector<8x8xbf16>
    %249 = vector.extract_strided_slice %231 {offsets = [0, 0], sizes = [8, 8], strides = [1, 1]} : vector<8x32xbf16> to vector<8x8xbf16>
    %cst_99 = arith.constant dense<0.000000e+00> : vector<8x8xf32>
    %250 = tpu.matmul %248, %249, %cst_99 {dimension_numbers = #tpu.dot_dimension_numbers<[1], [0], [0], [1], [0, 0, 1, 1], [], []>} : vector<8x8xbf16>, vector<8x8xbf16>, vector<8x8xf32> -> vector<8x8xf32>
    %251 = arith.truncf %250 : vector<8x8xf32> to vector<8x8xbf16>
    %252 = vector.extract_strided_slice %226 {offsets = [0, 8], sizes = [8, 8], strides = [1, 1]} : vector<8x32xbf16> to vector<8x8xbf16>
    %253 = vector.extract_strided_slice %229 {offsets = [8, 0], sizes = [8, 8], strides = [1, 1]} : vector<32x8xbf16> to vector<8x8xbf16>
    %cst_100 = arith.constant dense<0.000000e+00> : vector<8x8xf32>
    %254 = tpu.matmul %252, %253, %cst_100 {dimension_numbers = #tpu.dot_dimension_numbers<[1], [0], [0], [1], [0, 0, 1, 1], [], []>} : vector<8x8xbf16>, vector<8x8xbf16>, vector<8x8xf32> -> vector<8x8xf32>
    %cst_101 = arith.constant 0.353553385 : f32
    %255 = vector.broadcast %cst_101 : f32 to vector<8x8xf32>
    %256 = arith.mulf %254, %255 : vector<8x8xf32>
    %257 = arith.addf %256, %96 : vector<8x8xf32>
    %cst_102 = arith.constant dense<0xFF800000> : vector<8xf32>
    %258 = vector.multi_reduction <maximumf>, %257, %cst_102 [1] : vector<8x8xf32> to vector<8xf32>
    %259 = vector.shape_cast %258 : vector<8xf32> to vector<8x1xf32>
    %260 = vector.broadcast %259 : vector<8x1xf32> to vector<8x8xf32>
    %261 = arith.subf %257, %260 : vector<8x8xf32>
    %262 = math.exp %261 : vector<8x8xf32>
    %cst_103 = arith.constant dense<0.000000e+00> : vector<8xf32>
    %263 = vector.multi_reduction <add>, %262, %cst_103 [1] : vector<8x8xf32> to vector<8xf32>
    %264 = vector.shape_cast %263 : vector<8xf32> to vector<8x1xf32>
    %265 = tpu.reciprocal %264 {approx = true} : vector<8x1xf32> -> vector<8x1xf32>
    %266 = vector.broadcast %265 : vector<8x1xf32> to vector<8x8xf32>
    %267 = arith.mulf %262, %266 : vector<8x8xf32>
    %268 = arith.truncf %267 : vector<8x8xf32> to vector<8x8xbf16>
    %269 = vector.extract_strided_slice %231 {offsets = [0, 8], sizes = [8, 8], strides = [1, 1]} : vector<8x32xbf16> to vector<8x8xbf16>
    %cst_104 = arith.constant dense<0.000000e+00> : vector<8x8xf32>
    %270 = tpu.matmul %268, %269, %cst_104 {dimension_numbers = #tpu.dot_dimension_numbers<[1], [0], [0], [1], [0, 0, 1, 1], [], []>} : vector<8x8xbf16>, vector<8x8xbf16>, vector<8x8xf32> -> vector<8x8xf32>
    %271 = arith.truncf %270 : vector<8x8xf32> to vector<8x8xbf16>
    %272 = vector.extract_strided_slice %226 {offsets = [0, 16], sizes = [8, 8], strides = [1, 1]} : vector<8x32xbf16> to vector<8x8xbf16>
    %273 = vector.extract_strided_slice %229 {offsets = [16, 0], sizes = [8, 8], strides = [1, 1]} : vector<32x8xbf16> to vector<8x8xbf16>
    %cst_105 = arith.constant dense<0.000000e+00> : vector<8x8xf32>
    %274 = tpu.matmul %272, %273, %cst_105 {dimension_numbers = #tpu.dot_dimension_numbers<[1], [0], [0], [1], [0, 0, 1, 1], [], []>} : vector<8x8xbf16>, vector<8x8xbf16>, vector<8x8xf32> -> vector<8x8xf32>
    %cst_106 = arith.constant 0.353553385 : f32
    %275 = vector.broadcast %cst_106 : f32 to vector<8x8xf32>
    %276 = arith.mulf %274, %275 : vector<8x8xf32>
    %277 = arith.addf %276, %96 : vector<8x8xf32>
    %cst_107 = arith.constant dense<0xFF800000> : vector<8xf32>
    %278 = vector.multi_reduction <maximumf>, %277, %cst_107 [1] : vector<8x8xf32> to vector<8xf32>
    %279 = vector.shape_cast %278 : vector<8xf32> to vector<8x1xf32>
    %280 = vector.broadcast %279 : vector<8x1xf32> to vector<8x8xf32>
    %281 = arith.subf %277, %280 : vector<8x8xf32>
    %282 = math.exp %281 : vector<8x8xf32>
    %cst_108 = arith.constant dense<0.000000e+00> : vector<8xf32>
    %283 = vector.multi_reduction <add>, %282, %cst_108 [1] : vector<8x8xf32> to vector<8xf32>
    %284 = vector.shape_cast %283 : vector<8xf32> to vector<8x1xf32>
    %285 = tpu.reciprocal %284 {approx = true} : vector<8x1xf32> -> vector<8x1xf32>
    %286 = vector.broadcast %285 : vector<8x1xf32> to vector<8x8xf32>
    %287 = arith.mulf %282, %286 : vector<8x8xf32>
    %288 = arith.truncf %287 : vector<8x8xf32> to vector<8x8xbf16>
    %289 = vector.extract_strided_slice %231 {offsets = [0, 16], sizes = [8, 8], strides = [1, 1]} : vector<8x32xbf16> to vector<8x8xbf16>
    %cst_109 = arith.constant dense<0.000000e+00> : vector<8x8xf32>
    %290 = tpu.matmul %288, %289, %cst_109 {dimension_numbers = #tpu.dot_dimension_numbers<[1], [0], [0], [1], [0, 0, 1, 1], [], []>} : vector<8x8xbf16>, vector<8x8xbf16>, vector<8x8xf32> -> vector<8x8xf32>
    %291 = arith.truncf %290 : vector<8x8xf32> to vector<8x8xbf16>
    %292 = vector.extract_strided_slice %226 {offsets = [0, 24], sizes = [8, 8], strides = [1, 1]} : vector<8x32xbf16> to vector<8x8xbf16>
    %293 = vector.extract_strided_slice %229 {offsets = [24, 0], sizes = [8, 8], strides = [1, 1]} : vector<32x8xbf16> to vector<8x8xbf16>
    %cst_110 = arith.constant dense<0.000000e+00> : vector<8x8xf32>
    %294 = tpu.matmul %292, %293, %cst_110 {dimension_numbers = #tpu.dot_dimension_numbers<[1], [0], [0], [1], [0, 0, 1, 1], [], []>} : vector<8x8xbf16>, vector<8x8xbf16>, vector<8x8xf32> -> vector<8x8xf32>
    %cst_111 = arith.constant 0.353553385 : f32
    %295 = vector.broadcast %cst_111 : f32 to vector<8x8xf32>
    %296 = arith.mulf %294, %295 : vector<8x8xf32>
    %297 = arith.addf %296, %96 : vector<8x8xf32>
    %cst_112 = arith.constant dense<0xFF800000> : vector<8xf32>
    %298 = vector.multi_reduction <maximumf>, %297, %cst_112 [1] : vector<8x8xf32> to vector<8xf32>
    %299 = vector.shape_cast %298 : vector<8xf32> to vector<8x1xf32>
    %300 = vector.broadcast %299 : vector<8x1xf32> to vector<8x8xf32>
    %301 = arith.subf %297, %300 : vector<8x8xf32>
    %302 = math.exp %301 : vector<8x8xf32>
    %cst_113 = arith.constant dense<0.000000e+00> : vector<8xf32>
    %303 = vector.multi_reduction <add>, %302, %cst_113 [1] : vector<8x8xf32> to vector<8xf32>
    %304 = vector.shape_cast %303 : vector<8xf32> to vector<8x1xf32>
    %305 = tpu.reciprocal %304 {approx = true} : vector<8x1xf32> -> vector<8x1xf32>
    %306 = vector.broadcast %305 : vector<8x1xf32> to vector<8x8xf32>
    %307 = arith.mulf %302, %306 : vector<8x8xf32>
    %308 = arith.truncf %307 : vector<8x8xf32> to vector<8x8xbf16>
    %309 = vector.extract_strided_slice %231 {offsets = [0, 24], sizes = [8, 8], strides = [1, 1]} : vector<8x32xbf16> to vector<8x8xbf16>
    %cst_114 = arith.constant dense<0.000000e+00> : vector<8x8xf32>
    %310 = tpu.matmul %308, %309, %cst_114 {dimension_numbers = #tpu.dot_dimension_numbers<[1], [0], [0], [1], [0, 0, 1, 1], [], []>} : vector<8x8xbf16>, vector<8x8xbf16>, vector<8x8xf32> -> vector<8x8xf32>
    %311 = arith.truncf %310 : vector<8x8xf32> to vector<8x8xbf16>
    %312 = tpu.concatenate %251, %271, %291, %311 in 1 : vector<8x8xbf16>, vector<8x8xbf16>, vector<8x8xbf16>, vector<8x8xbf16> -> vector<8x32xbf16>
    %c0_115 = arith.constant 0 : index
    %c1_116 = arith.constant 1 : index
    %c0_117 = arith.constant 0 : index
    %c0_118 = arith.constant 0 : index
    %313 = vector.load %arg11[%c0_115, %c1_116, %c0_117, %c0_118] : memref<2x2x32x32xbf16, #tpu.memory_space<vmem>>, vector<1x1x32x32xbf16>
    %314 = vector.shape_cast %313 : vector<1x1x32x32xbf16> to vector<32x32xbf16>
    %cst_119 = arith.constant dense<0.000000e+00> : vector<8x32xf32>
    %315 = tpu.matmul %312, %314, %cst_119 {dimension_numbers = #tpu.dot_dimension_numbers<[1], [0], [0], [1], [0, 0, 1, 1], [], []>} : vector<8x32xbf16>, vector<32x32xbf16>, vector<8x32xf32> -> vector<8x32xf32>
    %316 = arith.addf %218, %315 : vector<8x32xf32>
    %317 = vector.extract_strided_slice %0 {offsets = [17, 0], sizes = [1, 32], strides = [1, 1]} : vector<29x32xf32> to vector<1x32xf32>
    %318 = vector.extract_strided_slice %0 {offsets = [18, 0], sizes = [1, 32], strides = [1, 1]} : vector<29x32xf32> to vector<1x32xf32>
    %cst_120 = arith.constant dense<0.000000e+00> : vector<8xf32>
    %319 = vector.multi_reduction <add>, %316, %cst_120 [1] : vector<8x32xf32> to vector<8xf32>
    %320 = vector.shape_cast %319 : vector<8xf32> to vector<8x1xf32>
    %cst_121 = arith.constant 3.200000e+01 : f32
    %321 = vector.broadcast %cst_121 : f32 to vector<8x1xf32>
    %322 = arith.divf %320, %321 : vector<8x1xf32>
    %323 = vector.broadcast %322 : vector<8x1xf32> to vector<8x32xf32>
    %324 = arith.subf %316, %323 : vector<8x32xf32>
    %325 = arith.mulf %324, %324 : vector<8x32xf32>
    %cst_122 = arith.constant dense<0.000000e+00> : vector<8xf32>
    %326 = vector.multi_reduction <add>, %325, %cst_122 [1] : vector<8x32xf32> to vector<8xf32>
    %327 = vector.shape_cast %326 : vector<8xf32> to vector<8x1xf32>
    %cst_123 = arith.constant 3.200000e+01 : f32
    %328 = vector.broadcast %cst_123 : f32 to vector<8x1xf32>
    %329 = arith.divf %327, %328 : vector<8x1xf32>
    %330 = vector.broadcast %322 : vector<8x1xf32> to vector<8x32xf32>
    %331 = arith.subf %316, %330 : vector<8x32xf32>
    %cst_124 = arith.constant 9.99999997E-7 : f32
    %332 = vector.broadcast %cst_124 : f32 to vector<8x1xf32>
    %333 = arith.addf %329, %332 : vector<8x1xf32>
    %334 = math.rsqrt %333 : vector<8x1xf32>
    %335 = vector.broadcast %334 : vector<8x1xf32> to vector<8x32xf32>
    %336 = arith.mulf %331, %335 : vector<8x32xf32>
    %337 = vector.broadcast %317 : vector<1x32xf32> to vector<8x32xf32>
    %338 = arith.mulf %336, %337 : vector<8x32xf32>
    %339 = vector.broadcast %318 : vector<1x32xf32> to vector<8x32xf32>
    %340 = arith.addf %338, %339 : vector<8x32xf32>
    %341 = arith.truncf %340 : vector<8x32xf32> to vector<8x32xbf16>
    %c0_125 = arith.constant 0 : index
    %c0_126 = arith.constant 0 : index
    %c0_127 = arith.constant 0 : index
    %342 = vector.load %arg12[%c0_125, %c0_126, %c0_127] : memref<2x32x64xbf16, #tpu.memory_space<vmem>>, vector<1x32x64xbf16>
    %343 = vector.shape_cast %342 : vector<1x32x64xbf16> to vector<32x64xbf16>
    %cst_128 = arith.constant dense<0.000000e+00> : vector<8x64xf32>
    %344 = tpu.matmul %341, %343, %cst_128 {dimension_numbers = #tpu.dot_dimension_numbers<[1], [0], [0], [1], [0, 0, 1, 1], [], []>} : vector<8x32xbf16>, vector<32x64xbf16>, vector<8x64xf32> -> vector<8x64xf32>
    %c0_129 = arith.constant 0 : index
    %c0_130 = arith.constant 0 : index
    %c0_131 = arith.constant 0 : index
    %345 = vector.load %arg13[%c0_129, %c0_130, %c0_131] : memref<2x1x64xf32, #tpu.memory_space<vmem>>, vector<1x1x64xf32>
    %346 = vector.shape_cast %345 : vector<1x1x64xf32> to vector<1x64xf32>
    %347 = vector.broadcast %346 : vector<1x64xf32> to vector<8x64xf32>
    %348 = arith.addf %344, %347 : vector<8x64xf32>
    %cst_132 = arith.constant 0.000000e+00 : f32
    %349 = vector.broadcast %cst_132 : f32 to vector<8x64xf32>
    %350 = arith.maximumf %348, %349 : vector<8x64xf32>
    %351 = arith.truncf %350 : vector<8x64xf32> to vector<8x64xbf16>
    %c0_133 = arith.constant 0 : index
    %c0_134 = arith.constant 0 : index
    %c0_135 = arith.constant 0 : index
    %352 = vector.load %arg14[%c0_133, %c0_134, %c0_135] : memref<2x64x32xbf16, #tpu.memory_space<vmem>>, vector<1x64x32xbf16>
    %353 = vector.shape_cast %352 : vector<1x64x32xbf16> to vector<64x32xbf16>
    %cst_136 = arith.constant dense<0.000000e+00> : vector<8x32xf32>
    %354 = tpu.matmul %351, %353, %cst_136 {dimension_numbers = #tpu.dot_dimension_numbers<[1], [0], [0], [1], [0, 0, 1, 1], [], []>} : vector<8x64xbf16>, vector<64x32xbf16>, vector<8x32xf32> -> vector<8x32xf32>
    %355 = vector.extract_strided_slice %0 {offsets = [19, 0], sizes = [1, 32], strides = [1, 1]} : vector<29x32xf32> to vector<1x32xf32>
    %356 = vector.broadcast %355 : vector<1x32xf32> to vector<8x32xf32>
    %357 = arith.addf %354, %356 : vector<8x32xf32>
    %358 = arith.addf %357, %340 : vector<8x32xf32>
    %359 = vector.extract_strided_slice %0 {offsets = [20, 0], sizes = [1, 32], strides = [1, 1]} : vector<29x32xf32> to vector<1x32xf32>
    %360 = vector.extract_strided_slice %0 {offsets = [21, 0], sizes = [1, 32], strides = [1, 1]} : vector<29x32xf32> to vector<1x32xf32>
    %cst_137 = arith.constant dense<0.000000e+00> : vector<8xf32>
    %361 = vector.multi_reduction <add>, %358, %cst_137 [1] : vector<8x32xf32> to vector<8xf32>
    %362 = vector.shape_cast %361 : vector<8xf32> to vector<8x1xf32>
    %cst_138 = arith.constant 3.200000e+01 : f32
    %363 = vector.broadcast %cst_138 : f32 to vector<8x1xf32>
    %364 = arith.divf %362, %363 : vector<8x1xf32>
    %365 = vector.broadcast %364 : vector<8x1xf32> to vector<8x32xf32>
    %366 = arith.subf %358, %365 : vector<8x32xf32>
    %367 = arith.mulf %366, %366 : vector<8x32xf32>
    %cst_139 = arith.constant dense<0.000000e+00> : vector<8xf32>
    %368 = vector.multi_reduction <add>, %367, %cst_139 [1] : vector<8x32xf32> to vector<8xf32>
    %369 = vector.shape_cast %368 : vector<8xf32> to vector<8x1xf32>
    %cst_140 = arith.constant 3.200000e+01 : f32
    %370 = vector.broadcast %cst_140 : f32 to vector<8x1xf32>
    %371 = arith.divf %369, %370 : vector<8x1xf32>
    %372 = vector.broadcast %364 : vector<8x1xf32> to vector<8x32xf32>
    %373 = arith.subf %358, %372 : vector<8x32xf32>
    %cst_141 = arith.constant 9.99999997E-7 : f32
    %374 = vector.broadcast %cst_141 : f32 to vector<8x1xf32>
    %375 = arith.addf %371, %374 : vector<8x1xf32>
    %376 = math.rsqrt %375 : vector<8x1xf32>
    %377 = vector.broadcast %376 : vector<8x1xf32> to vector<8x32xf32>
    %378 = arith.mulf %373, %377 : vector<8x32xf32>
    %379 = vector.broadcast %359 : vector<1x32xf32> to vector<8x32xf32>
    %380 = arith.mulf %378, %379 : vector<8x32xf32>
    %381 = vector.broadcast %360 : vector<1x32xf32> to vector<8x32xf32>
    %382 = arith.addf %380, %381 : vector<8x32xf32>
    %383 = arith.truncf %382 : vector<8x32xf32> to vector<8x32xbf16>
    %c1_142 = arith.constant 1 : index
    %c0_143 = arith.constant 0 : index
    %c0_144 = arith.constant 0 : index
    %c0_145 = arith.constant 0 : index
    %384 = vector.load %arg9[%c1_142, %c0_143, %c0_144, %c0_145] : memref<2x2x32x32xbf16, #tpu.memory_space<vmem>>, vector<1x1x32x32xbf16>
    %385 = vector.shape_cast %384 : vector<1x1x32x32xbf16> to vector<32x32xbf16>
    %cst_146 = arith.constant dense<0.000000e+00> : vector<8x32xf32>
    %386 = tpu.matmul %383, %385, %cst_146 {dimension_numbers = #tpu.dot_dimension_numbers<[1], [0], [0], [1], [0, 0, 1, 1], [], []>} : vector<8x32xbf16>, vector<32x32xbf16>, vector<8x32xf32> -> vector<8x32xf32>
    %c1_147 = arith.constant 1 : index
    %c0_148 = arith.constant 0 : index
    %c0_149 = arith.constant 0 : index
    %c0_150 = arith.constant 0 : index
    %387 = vector.load %arg10[%c1_147, %c0_148, %c0_149, %c0_150] : memref<2x2x32x64xbf16, #tpu.memory_space<vmem>>, vector<1x1x32x64xbf16>
    %388 = vector.shape_cast %387 : vector<1x1x32x64xbf16> to vector<32x64xbf16>
    %cst_151 = arith.constant dense<0.000000e+00> : vector<8x64xf32>
    %389 = tpu.matmul %383, %388, %cst_151 {dimension_numbers = #tpu.dot_dimension_numbers<[1], [0], [0], [1], [0, 0, 1, 1], [], []>} : vector<8x32xbf16>, vector<32x64xbf16>, vector<8x64xf32> -> vector<8x64xf32>
    %390 = arith.truncf %386 : vector<8x32xf32> to vector<8x32xbf16>
    %391 = vector.extract_strided_slice %389 {offsets = [0, 0], sizes = [8, 32], strides = [1, 1]} : vector<8x64xf32> to vector<8x32xf32>
    %392 = tpu.transpose %391, [1, 0] : vector<8x32xf32> -> vector<32x8xf32>
    %393 = arith.truncf %392 : vector<32x8xf32> to vector<32x8xbf16>
    %394 = vector.extract_strided_slice %389 {offsets = [0, 32], sizes = [8, 32], strides = [1, 1]} : vector<8x64xf32> to vector<8x32xf32>
    %395 = arith.truncf %394 : vector<8x32xf32> to vector<8x32xbf16>
    %396 = vector.extract_strided_slice %390 {offsets = [0, 0], sizes = [8, 8], strides = [1, 1]} : vector<8x32xbf16> to vector<8x8xbf16>
    %397 = vector.extract_strided_slice %393 {offsets = [0, 0], sizes = [8, 8], strides = [1, 1]} : vector<32x8xbf16> to vector<8x8xbf16>
    %cst_152 = arith.constant dense<0.000000e+00> : vector<8x8xf32>
    %398 = tpu.matmul %396, %397, %cst_152 {dimension_numbers = #tpu.dot_dimension_numbers<[1], [0], [0], [1], [0, 0, 1, 1], [], []>} : vector<8x8xbf16>, vector<8x8xbf16>, vector<8x8xf32> -> vector<8x8xf32>
    %cst_153 = arith.constant 0.353553385 : f32
    %399 = vector.broadcast %cst_153 : f32 to vector<8x8xf32>
    %400 = arith.mulf %398, %399 : vector<8x8xf32>
    %401 = arith.addf %400, %92 : vector<8x8xf32>
    %cst_154 = arith.constant dense<0xFF800000> : vector<8xf32>
    %402 = vector.multi_reduction <maximumf>, %401, %cst_154 [1] : vector<8x8xf32> to vector<8xf32>
    %403 = vector.shape_cast %402 : vector<8xf32> to vector<8x1xf32>
    %404 = vector.broadcast %403 : vector<8x1xf32> to vector<8x8xf32>
    %405 = arith.subf %401, %404 : vector<8x8xf32>
    %406 = math.exp %405 : vector<8x8xf32>
    %cst_155 = arith.constant dense<0.000000e+00> : vector<8xf32>
    %407 = vector.multi_reduction <add>, %406, %cst_155 [1] : vector<8x8xf32> to vector<8xf32>
    %408 = vector.shape_cast %407 : vector<8xf32> to vector<8x1xf32>
    %409 = tpu.reciprocal %408 {approx = true} : vector<8x1xf32> -> vector<8x1xf32>
    %410 = vector.broadcast %409 : vector<8x1xf32> to vector<8x8xf32>
    %411 = arith.mulf %406, %410 : vector<8x8xf32>
    %412 = arith.truncf %411 : vector<8x8xf32> to vector<8x8xbf16>
    %413 = vector.extract_strided_slice %395 {offsets = [0, 0], sizes = [8, 8], strides = [1, 1]} : vector<8x32xbf16> to vector<8x8xbf16>
    %cst_156 = arith.constant dense<0.000000e+00> : vector<8x8xf32>
    %414 = tpu.matmul %412, %413, %cst_156 {dimension_numbers = #tpu.dot_dimension_numbers<[1], [0], [0], [1], [0, 0, 1, 1], [], []>} : vector<8x8xbf16>, vector<8x8xbf16>, vector<8x8xf32> -> vector<8x8xf32>
    %415 = arith.truncf %414 : vector<8x8xf32> to vector<8x8xbf16>
    %416 = vector.extract_strided_slice %390 {offsets = [0, 8], sizes = [8, 8], strides = [1, 1]} : vector<8x32xbf16> to vector<8x8xbf16>
    %417 = vector.extract_strided_slice %393 {offsets = [8, 0], sizes = [8, 8], strides = [1, 1]} : vector<32x8xbf16> to vector<8x8xbf16>
    %cst_157 = arith.constant dense<0.000000e+00> : vector<8x8xf32>
    %418 = tpu.matmul %416, %417, %cst_157 {dimension_numbers = #tpu.dot_dimension_numbers<[1], [0], [0], [1], [0, 0, 1, 1], [], []>} : vector<8x8xbf16>, vector<8x8xbf16>, vector<8x8xf32> -> vector<8x8xf32>
    %cst_158 = arith.constant 0.353553385 : f32
    %419 = vector.broadcast %cst_158 : f32 to vector<8x8xf32>
    %420 = arith.mulf %418, %419 : vector<8x8xf32>
    %421 = arith.addf %420, %92 : vector<8x8xf32>
    %cst_159 = arith.constant dense<0xFF800000> : vector<8xf32>
    %422 = vector.multi_reduction <maximumf>, %421, %cst_159 [1] : vector<8x8xf32> to vector<8xf32>
    %423 = vector.shape_cast %422 : vector<8xf32> to vector<8x1xf32>
    %424 = vector.broadcast %423 : vector<8x1xf32> to vector<8x8xf32>
    %425 = arith.subf %421, %424 : vector<8x8xf32>
    %426 = math.exp %425 : vector<8x8xf32>
    %cst_160 = arith.constant dense<0.000000e+00> : vector<8xf32>
    %427 = vector.multi_reduction <add>, %426, %cst_160 [1] : vector<8x8xf32> to vector<8xf32>
    %428 = vector.shape_cast %427 : vector<8xf32> to vector<8x1xf32>
    %429 = tpu.reciprocal %428 {approx = true} : vector<8x1xf32> -> vector<8x1xf32>
    %430 = vector.broadcast %429 : vector<8x1xf32> to vector<8x8xf32>
    %431 = arith.mulf %426, %430 : vector<8x8xf32>
    %432 = arith.truncf %431 : vector<8x8xf32> to vector<8x8xbf16>
    %433 = vector.extract_strided_slice %395 {offsets = [0, 8], sizes = [8, 8], strides = [1, 1]} : vector<8x32xbf16> to vector<8x8xbf16>
    %cst_161 = arith.constant dense<0.000000e+00> : vector<8x8xf32>
    %434 = tpu.matmul %432, %433, %cst_161 {dimension_numbers = #tpu.dot_dimension_numbers<[1], [0], [0], [1], [0, 0, 1, 1], [], []>} : vector<8x8xbf16>, vector<8x8xbf16>, vector<8x8xf32> -> vector<8x8xf32>
    %435 = arith.truncf %434 : vector<8x8xf32> to vector<8x8xbf16>
    %436 = vector.extract_strided_slice %390 {offsets = [0, 16], sizes = [8, 8], strides = [1, 1]} : vector<8x32xbf16> to vector<8x8xbf16>
    %437 = vector.extract_strided_slice %393 {offsets = [16, 0], sizes = [8, 8], strides = [1, 1]} : vector<32x8xbf16> to vector<8x8xbf16>
    %cst_162 = arith.constant dense<0.000000e+00> : vector<8x8xf32>
    %438 = tpu.matmul %436, %437, %cst_162 {dimension_numbers = #tpu.dot_dimension_numbers<[1], [0], [0], [1], [0, 0, 1, 1], [], []>} : vector<8x8xbf16>, vector<8x8xbf16>, vector<8x8xf32> -> vector<8x8xf32>
    %cst_163 = arith.constant 0.353553385 : f32
    %439 = vector.broadcast %cst_163 : f32 to vector<8x8xf32>
    %440 = arith.mulf %438, %439 : vector<8x8xf32>
    %441 = arith.addf %440, %92 : vector<8x8xf32>
    %cst_164 = arith.constant dense<0xFF800000> : vector<8xf32>
    %442 = vector.multi_reduction <maximumf>, %441, %cst_164 [1] : vector<8x8xf32> to vector<8xf32>
    %443 = vector.shape_cast %442 : vector<8xf32> to vector<8x1xf32>
    %444 = vector.broadcast %443 : vector<8x1xf32> to vector<8x8xf32>
    %445 = arith.subf %441, %444 : vector<8x8xf32>
    %446 = math.exp %445 : vector<8x8xf32>
    %cst_165 = arith.constant dense<0.000000e+00> : vector<8xf32>
    %447 = vector.multi_reduction <add>, %446, %cst_165 [1] : vector<8x8xf32> to vector<8xf32>
    %448 = vector.shape_cast %447 : vector<8xf32> to vector<8x1xf32>
    %449 = tpu.reciprocal %448 {approx = true} : vector<8x1xf32> -> vector<8x1xf32>
    %450 = vector.broadcast %449 : vector<8x1xf32> to vector<8x8xf32>
    %451 = arith.mulf %446, %450 : vector<8x8xf32>
    %452 = arith.truncf %451 : vector<8x8xf32> to vector<8x8xbf16>
    %453 = vector.extract_strided_slice %395 {offsets = [0, 16], sizes = [8, 8], strides = [1, 1]} : vector<8x32xbf16> to vector<8x8xbf16>
    %cst_166 = arith.constant dense<0.000000e+00> : vector<8x8xf32>
    %454 = tpu.matmul %452, %453, %cst_166 {dimension_numbers = #tpu.dot_dimension_numbers<[1], [0], [0], [1], [0, 0, 1, 1], [], []>} : vector<8x8xbf16>, vector<8x8xbf16>, vector<8x8xf32> -> vector<8x8xf32>
    %455 = arith.truncf %454 : vector<8x8xf32> to vector<8x8xbf16>
    %456 = vector.extract_strided_slice %390 {offsets = [0, 24], sizes = [8, 8], strides = [1, 1]} : vector<8x32xbf16> to vector<8x8xbf16>
    %457 = vector.extract_strided_slice %393 {offsets = [24, 0], sizes = [8, 8], strides = [1, 1]} : vector<32x8xbf16> to vector<8x8xbf16>
    %cst_167 = arith.constant dense<0.000000e+00> : vector<8x8xf32>
    %458 = tpu.matmul %456, %457, %cst_167 {dimension_numbers = #tpu.dot_dimension_numbers<[1], [0], [0], [1], [0, 0, 1, 1], [], []>} : vector<8x8xbf16>, vector<8x8xbf16>, vector<8x8xf32> -> vector<8x8xf32>
    %cst_168 = arith.constant 0.353553385 : f32
    %459 = vector.broadcast %cst_168 : f32 to vector<8x8xf32>
    %460 = arith.mulf %458, %459 : vector<8x8xf32>
    %461 = arith.addf %460, %92 : vector<8x8xf32>
    %cst_169 = arith.constant dense<0xFF800000> : vector<8xf32>
    %462 = vector.multi_reduction <maximumf>, %461, %cst_169 [1] : vector<8x8xf32> to vector<8xf32>
    %463 = vector.shape_cast %462 : vector<8xf32> to vector<8x1xf32>
    %464 = vector.broadcast %463 : vector<8x1xf32> to vector<8x8xf32>
    %465 = arith.subf %461, %464 : vector<8x8xf32>
    %466 = math.exp %465 : vector<8x8xf32>
    %cst_170 = arith.constant dense<0.000000e+00> : vector<8xf32>
    %467 = vector.multi_reduction <add>, %466, %cst_170 [1] : vector<8x8xf32> to vector<8xf32>
    %468 = vector.shape_cast %467 : vector<8xf32> to vector<8x1xf32>
    %469 = tpu.reciprocal %468 {approx = true} : vector<8x1xf32> -> vector<8x1xf32>
    %470 = vector.broadcast %469 : vector<8x1xf32> to vector<8x8xf32>
    %471 = arith.mulf %466, %470 : vector<8x8xf32>
    %472 = arith.truncf %471 : vector<8x8xf32> to vector<8x8xbf16>
    %473 = vector.extract_strided_slice %395 {offsets = [0, 24], sizes = [8, 8], strides = [1, 1]} : vector<8x32xbf16> to vector<8x8xbf16>
    %cst_171 = arith.constant dense<0.000000e+00> : vector<8x8xf32>
    %474 = tpu.matmul %472, %473, %cst_171 {dimension_numbers = #tpu.dot_dimension_numbers<[1], [0], [0], [1], [0, 0, 1, 1], [], []>} : vector<8x8xbf16>, vector<8x8xbf16>, vector<8x8xf32> -> vector<8x8xf32>
    %475 = arith.truncf %474 : vector<8x8xf32> to vector<8x8xbf16>
    %476 = tpu.concatenate %415, %435, %455, %475 in 1 : vector<8x8xbf16>, vector<8x8xbf16>, vector<8x8xbf16>, vector<8x8xbf16> -> vector<8x32xbf16>
    %c1_172 = arith.constant 1 : index
    %c0_173 = arith.constant 0 : index
    %c0_174 = arith.constant 0 : index
    %c0_175 = arith.constant 0 : index
    %477 = vector.load %arg11[%c1_172, %c0_173, %c0_174, %c0_175] : memref<2x2x32x32xbf16, #tpu.memory_space<vmem>>, vector<1x1x32x32xbf16>
    %478 = vector.shape_cast %477 : vector<1x1x32x32xbf16> to vector<32x32xbf16>
    %cst_176 = arith.constant dense<0.000000e+00> : vector<8x32xf32>
    %479 = tpu.matmul %476, %478, %cst_176 {dimension_numbers = #tpu.dot_dimension_numbers<[1], [0], [0], [1], [0, 0, 1, 1], [], []>} : vector<8x32xbf16>, vector<32x32xbf16>, vector<8x32xf32> -> vector<8x32xf32>
    %480 = arith.addf %382, %479 : vector<8x32xf32>
    %481 = vector.extract_strided_slice %0 {offsets = [22, 0], sizes = [1, 32], strides = [1, 1]} : vector<29x32xf32> to vector<1x32xf32>
    %482 = vector.extract_strided_slice %0 {offsets = [23, 0], sizes = [1, 32], strides = [1, 1]} : vector<29x32xf32> to vector<1x32xf32>
    %cst_177 = arith.constant dense<0.000000e+00> : vector<8xf32>
    %483 = vector.multi_reduction <add>, %480, %cst_177 [1] : vector<8x32xf32> to vector<8xf32>
    %484 = vector.shape_cast %483 : vector<8xf32> to vector<8x1xf32>
    %cst_178 = arith.constant 3.200000e+01 : f32
    %485 = vector.broadcast %cst_178 : f32 to vector<8x1xf32>
    %486 = arith.divf %484, %485 : vector<8x1xf32>
    %487 = vector.broadcast %486 : vector<8x1xf32> to vector<8x32xf32>
    %488 = arith.subf %480, %487 : vector<8x32xf32>
    %489 = arith.mulf %488, %488 : vector<8x32xf32>
    %cst_179 = arith.constant dense<0.000000e+00> : vector<8xf32>
    %490 = vector.multi_reduction <add>, %489, %cst_179 [1] : vector<8x32xf32> to vector<8xf32>
    %491 = vector.shape_cast %490 : vector<8xf32> to vector<8x1xf32>
    %cst_180 = arith.constant 3.200000e+01 : f32
    %492 = vector.broadcast %cst_180 : f32 to vector<8x1xf32>
    %493 = arith.divf %491, %492 : vector<8x1xf32>
    %494 = vector.broadcast %486 : vector<8x1xf32> to vector<8x32xf32>
    %495 = arith.subf %480, %494 : vector<8x32xf32>
    %cst_181 = arith.constant 9.99999997E-7 : f32
    %496 = vector.broadcast %cst_181 : f32 to vector<8x1xf32>
    %497 = arith.addf %493, %496 : vector<8x1xf32>
    %498 = math.rsqrt %497 : vector<8x1xf32>
    %499 = vector.broadcast %498 : vector<8x1xf32> to vector<8x32xf32>
    %500 = arith.mulf %495, %499 : vector<8x32xf32>
    %501 = vector.broadcast %481 : vector<1x32xf32> to vector<8x32xf32>
    %502 = arith.mulf %500, %501 : vector<8x32xf32>
    %503 = vector.broadcast %482 : vector<1x32xf32> to vector<8x32xf32>
    %504 = arith.addf %502, %503 : vector<8x32xf32>
    %505 = arith.truncf %504 : vector<8x32xf32> to vector<8x32xbf16>
    %c1_182 = arith.constant 1 : index
    %c1_183 = arith.constant 1 : index
    %c0_184 = arith.constant 0 : index
    %c0_185 = arith.constant 0 : index
    %506 = vector.load %arg9[%c1_182, %c1_183, %c0_184, %c0_185] : memref<2x2x32x32xbf16, #tpu.memory_space<vmem>>, vector<1x1x32x32xbf16>
    %507 = vector.shape_cast %506 : vector<1x1x32x32xbf16> to vector<32x32xbf16>
    %cst_186 = arith.constant dense<0.000000e+00> : vector<8x32xf32>
    %508 = tpu.matmul %505, %507, %cst_186 {dimension_numbers = #tpu.dot_dimension_numbers<[1], [0], [0], [1], [0, 0, 1, 1], [], []>} : vector<8x32xbf16>, vector<32x32xbf16>, vector<8x32xf32> -> vector<8x32xf32>
    %c1_187 = arith.constant 1 : index
    %c1_188 = arith.constant 1 : index
    %c0_189 = arith.constant 0 : index
    %c0_190 = arith.constant 0 : index
    %509 = vector.load %arg10[%c1_187, %c1_188, %c0_189, %c0_190] : memref<2x2x32x64xbf16, #tpu.memory_space<vmem>>, vector<1x1x32x64xbf16>
    %510 = vector.shape_cast %509 : vector<1x1x32x64xbf16> to vector<32x64xbf16>
    %cst_191 = arith.constant dense<0.000000e+00> : vector<8x64xf32>
    %511 = tpu.matmul %90, %510, %cst_191 {dimension_numbers = #tpu.dot_dimension_numbers<[1], [0], [0], [1], [0, 0, 1, 1], [], []>} : vector<8x32xbf16>, vector<32x64xbf16>, vector<8x64xf32> -> vector<8x64xf32>
    %512 = arith.truncf %508 : vector<8x32xf32> to vector<8x32xbf16>
    %513 = vector.extract_strided_slice %511 {offsets = [0, 0], sizes = [8, 32], strides = [1, 1]} : vector<8x64xf32> to vector<8x32xf32>
    %514 = tpu.transpose %513, [1, 0] : vector<8x32xf32> -> vector<32x8xf32>
    %515 = arith.truncf %514 : vector<32x8xf32> to vector<32x8xbf16>
    %516 = vector.extract_strided_slice %511 {offsets = [0, 32], sizes = [8, 32], strides = [1, 1]} : vector<8x64xf32> to vector<8x32xf32>
    %517 = arith.truncf %516 : vector<8x32xf32> to vector<8x32xbf16>
    %518 = vector.extract_strided_slice %512 {offsets = [0, 0], sizes = [8, 8], strides = [1, 1]} : vector<8x32xbf16> to vector<8x8xbf16>
    %519 = vector.extract_strided_slice %515 {offsets = [0, 0], sizes = [8, 8], strides = [1, 1]} : vector<32x8xbf16> to vector<8x8xbf16>
    %cst_192 = arith.constant dense<0.000000e+00> : vector<8x8xf32>
    %520 = tpu.matmul %518, %519, %cst_192 {dimension_numbers = #tpu.dot_dimension_numbers<[1], [0], [0], [1], [0, 0, 1, 1], [], []>} : vector<8x8xbf16>, vector<8x8xbf16>, vector<8x8xf32> -> vector<8x8xf32>
    %cst_193 = arith.constant 0.353553385 : f32
    %521 = vector.broadcast %cst_193 : f32 to vector<8x8xf32>
    %522 = arith.mulf %520, %521 : vector<8x8xf32>
    %523 = arith.addf %522, %96 : vector<8x8xf32>
    %cst_194 = arith.constant dense<0xFF800000> : vector<8xf32>
    %524 = vector.multi_reduction <maximumf>, %523, %cst_194 [1] : vector<8x8xf32> to vector<8xf32>
    %525 = vector.shape_cast %524 : vector<8xf32> to vector<8x1xf32>
    %526 = vector.broadcast %525 : vector<8x1xf32> to vector<8x8xf32>
    %527 = arith.subf %523, %526 : vector<8x8xf32>
    %528 = math.exp %527 : vector<8x8xf32>
    %cst_195 = arith.constant dense<0.000000e+00> : vector<8xf32>
    %529 = vector.multi_reduction <add>, %528, %cst_195 [1] : vector<8x8xf32> to vector<8xf32>
    %530 = vector.shape_cast %529 : vector<8xf32> to vector<8x1xf32>
    %531 = tpu.reciprocal %530 {approx = true} : vector<8x1xf32> -> vector<8x1xf32>
    %532 = vector.broadcast %531 : vector<8x1xf32> to vector<8x8xf32>
    %533 = arith.mulf %528, %532 : vector<8x8xf32>
    %534 = arith.truncf %533 : vector<8x8xf32> to vector<8x8xbf16>
    %535 = vector.extract_strided_slice %517 {offsets = [0, 0], sizes = [8, 8], strides = [1, 1]} : vector<8x32xbf16> to vector<8x8xbf16>
    %cst_196 = arith.constant dense<0.000000e+00> : vector<8x8xf32>
    %536 = tpu.matmul %534, %535, %cst_196 {dimension_numbers = #tpu.dot_dimension_numbers<[1], [0], [0], [1], [0, 0, 1, 1], [], []>} : vector<8x8xbf16>, vector<8x8xbf16>, vector<8x8xf32> -> vector<8x8xf32>
    %537 = arith.truncf %536 : vector<8x8xf32> to vector<8x8xbf16>
    %538 = vector.extract_strided_slice %512 {offsets = [0, 8], sizes = [8, 8], strides = [1, 1]} : vector<8x32xbf16> to vector<8x8xbf16>
    %539 = vector.extract_strided_slice %515 {offsets = [8, 0], sizes = [8, 8], strides = [1, 1]} : vector<32x8xbf16> to vector<8x8xbf16>
    %cst_197 = arith.constant dense<0.000000e+00> : vector<8x8xf32>
    %540 = tpu.matmul %538, %539, %cst_197 {dimension_numbers = #tpu.dot_dimension_numbers<[1], [0], [0], [1], [0, 0, 1, 1], [], []>} : vector<8x8xbf16>, vector<8x8xbf16>, vector<8x8xf32> -> vector<8x8xf32>
    %cst_198 = arith.constant 0.353553385 : f32
    %541 = vector.broadcast %cst_198 : f32 to vector<8x8xf32>
    %542 = arith.mulf %540, %541 : vector<8x8xf32>
    %543 = arith.addf %542, %96 : vector<8x8xf32>
    %cst_199 = arith.constant dense<0xFF800000> : vector<8xf32>
    %544 = vector.multi_reduction <maximumf>, %543, %cst_199 [1] : vector<8x8xf32> to vector<8xf32>
    %545 = vector.shape_cast %544 : vector<8xf32> to vector<8x1xf32>
    %546 = vector.broadcast %545 : vector<8x1xf32> to vector<8x8xf32>
    %547 = arith.subf %543, %546 : vector<8x8xf32>
    %548 = math.exp %547 : vector<8x8xf32>
    %cst_200 = arith.constant dense<0.000000e+00> : vector<8xf32>
    %549 = vector.multi_reduction <add>, %548, %cst_200 [1] : vector<8x8xf32> to vector<8xf32>
    %550 = vector.shape_cast %549 : vector<8xf32> to vector<8x1xf32>
    %551 = tpu.reciprocal %550 {approx = true} : vector<8x1xf32> -> vector<8x1xf32>
    %552 = vector.broadcast %551 : vector<8x1xf32> to vector<8x8xf32>
    %553 = arith.mulf %548, %552 : vector<8x8xf32>
    %554 = arith.truncf %553 : vector<8x8xf32> to vector<8x8xbf16>
    %555 = vector.extract_strided_slice %517 {offsets = [0, 8], sizes = [8, 8], strides = [1, 1]} : vector<8x32xbf16> to vector<8x8xbf16>
    %cst_201 = arith.constant dense<0.000000e+00> : vector<8x8xf32>
    %556 = tpu.matmul %554, %555, %cst_201 {dimension_numbers = #tpu.dot_dimension_numbers<[1], [0], [0], [1], [0, 0, 1, 1], [], []>} : vector<8x8xbf16>, vector<8x8xbf16>, vector<8x8xf32> -> vector<8x8xf32>
    %557 = arith.truncf %556 : vector<8x8xf32> to vector<8x8xbf16>
    %558 = vector.extract_strided_slice %512 {offsets = [0, 16], sizes = [8, 8], strides = [1, 1]} : vector<8x32xbf16> to vector<8x8xbf16>
    %559 = vector.extract_strided_slice %515 {offsets = [16, 0], sizes = [8, 8], strides = [1, 1]} : vector<32x8xbf16> to vector<8x8xbf16>
    %cst_202 = arith.constant dense<0.000000e+00> : vector<8x8xf32>
    %560 = tpu.matmul %558, %559, %cst_202 {dimension_numbers = #tpu.dot_dimension_numbers<[1], [0], [0], [1], [0, 0, 1, 1], [], []>} : vector<8x8xbf16>, vector<8x8xbf16>, vector<8x8xf32> -> vector<8x8xf32>
    %cst_203 = arith.constant 0.353553385 : f32
    %561 = vector.broadcast %cst_203 : f32 to vector<8x8xf32>
    %562 = arith.mulf %560, %561 : vector<8x8xf32>
    %563 = arith.addf %562, %96 : vector<8x8xf32>
    %cst_204 = arith.constant dense<0xFF800000> : vector<8xf32>
    %564 = vector.multi_reduction <maximumf>, %563, %cst_204 [1] : vector<8x8xf32> to vector<8xf32>
    %565 = vector.shape_cast %564 : vector<8xf32> to vector<8x1xf32>
    %566 = vector.broadcast %565 : vector<8x1xf32> to vector<8x8xf32>
    %567 = arith.subf %563, %566 : vector<8x8xf32>
    %568 = math.exp %567 : vector<8x8xf32>
    %cst_205 = arith.constant dense<0.000000e+00> : vector<8xf32>
    %569 = vector.multi_reduction <add>, %568, %cst_205 [1] : vector<8x8xf32> to vector<8xf32>
    %570 = vector.shape_cast %569 : vector<8xf32> to vector<8x1xf32>
    %571 = tpu.reciprocal %570 {approx = true} : vector<8x1xf32> -> vector<8x1xf32>
    %572 = vector.broadcast %571 : vector<8x1xf32> to vector<8x8xf32>
    %573 = arith.mulf %568, %572 : vector<8x8xf32>
    %574 = arith.truncf %573 : vector<8x8xf32> to vector<8x8xbf16>
    %575 = vector.extract_strided_slice %517 {offsets = [0, 16], sizes = [8, 8], strides = [1, 1]} : vector<8x32xbf16> to vector<8x8xbf16>
    %cst_206 = arith.constant dense<0.000000e+00> : vector<8x8xf32>
    %576 = tpu.matmul %574, %575, %cst_206 {dimension_numbers = #tpu.dot_dimension_numbers<[1], [0], [0], [1], [0, 0, 1, 1], [], []>} : vector<8x8xbf16>, vector<8x8xbf16>, vector<8x8xf32> -> vector<8x8xf32>
    %577 = arith.truncf %576 : vector<8x8xf32> to vector<8x8xbf16>
    %578 = vector.extract_strided_slice %512 {offsets = [0, 24], sizes = [8, 8], strides = [1, 1]} : vector<8x32xbf16> to vector<8x8xbf16>
    %579 = vector.extract_strided_slice %515 {offsets = [24, 0], sizes = [8, 8], strides = [1, 1]} : vector<32x8xbf16> to vector<8x8xbf16>
    %cst_207 = arith.constant dense<0.000000e+00> : vector<8x8xf32>
    %580 = tpu.matmul %578, %579, %cst_207 {dimension_numbers = #tpu.dot_dimension_numbers<[1], [0], [0], [1], [0, 0, 1, 1], [], []>} : vector<8x8xbf16>, vector<8x8xbf16>, vector<8x8xf32> -> vector<8x8xf32>
    %cst_208 = arith.constant 0.353553385 : f32
    %581 = vector.broadcast %cst_208 : f32 to vector<8x8xf32>
    %582 = arith.mulf %580, %581 : vector<8x8xf32>
    %583 = arith.addf %582, %96 : vector<8x8xf32>
    %cst_209 = arith.constant dense<0xFF800000> : vector<8xf32>
    %584 = vector.multi_reduction <maximumf>, %583, %cst_209 [1] : vector<8x8xf32> to vector<8xf32>
    %585 = vector.shape_cast %584 : vector<8xf32> to vector<8x1xf32>
    %586 = vector.broadcast %585 : vector<8x1xf32> to vector<8x8xf32>
    %587 = arith.subf %583, %586 : vector<8x8xf32>
    %588 = math.exp %587 : vector<8x8xf32>
    %cst_210 = arith.constant dense<0.000000e+00> : vector<8xf32>
    %589 = vector.multi_reduction <add>, %588, %cst_210 [1] : vector<8x8xf32> to vector<8xf32>
    %590 = vector.shape_cast %589 : vector<8xf32> to vector<8x1xf32>
    %591 = tpu.reciprocal %590 {approx = true} : vector<8x1xf32> -> vector<8x1xf32>
    %592 = vector.broadcast %591 : vector<8x1xf32> to vector<8x8xf32>
    %593 = arith.mulf %588, %592 : vector<8x8xf32>
    %594 = arith.truncf %593 : vector<8x8xf32> to vector<8x8xbf16>
    %595 = vector.extract_strided_slice %517 {offsets = [0, 24], sizes = [8, 8], strides = [1, 1]} : vector<8x32xbf16> to vector<8x8xbf16>
    %cst_211 = arith.constant dense<0.000000e+00> : vector<8x8xf32>
    %596 = tpu.matmul %594, %595, %cst_211 {dimension_numbers = #tpu.dot_dimension_numbers<[1], [0], [0], [1], [0, 0, 1, 1], [], []>} : vector<8x8xbf16>, vector<8x8xbf16>, vector<8x8xf32> -> vector<8x8xf32>
    %597 = arith.truncf %596 : vector<8x8xf32> to vector<8x8xbf16>
    %598 = tpu.concatenate %537, %557, %577, %597 in 1 : vector<8x8xbf16>, vector<8x8xbf16>, vector<8x8xbf16>, vector<8x8xbf16> -> vector<8x32xbf16>
    %c1_212 = arith.constant 1 : index
    %c1_213 = arith.constant 1 : index
    %c0_214 = arith.constant 0 : index
    %c0_215 = arith.constant 0 : index
    %599 = vector.load %arg11[%c1_212, %c1_213, %c0_214, %c0_215] : memref<2x2x32x32xbf16, #tpu.memory_space<vmem>>, vector<1x1x32x32xbf16>
    %600 = vector.shape_cast %599 : vector<1x1x32x32xbf16> to vector<32x32xbf16>
    %cst_216 = arith.constant dense<0.000000e+00> : vector<8x32xf32>
    %601 = tpu.matmul %598, %600, %cst_216 {dimension_numbers = #tpu.dot_dimension_numbers<[1], [0], [0], [1], [0, 0, 1, 1], [], []>} : vector<8x32xbf16>, vector<32x32xbf16>, vector<8x32xf32> -> vector<8x32xf32>
    %602 = arith.addf %504, %601 : vector<8x32xf32>
    %603 = vector.extract_strided_slice %0 {offsets = [24, 0], sizes = [1, 32], strides = [1, 1]} : vector<29x32xf32> to vector<1x32xf32>
    %604 = vector.extract_strided_slice %0 {offsets = [25, 0], sizes = [1, 32], strides = [1, 1]} : vector<29x32xf32> to vector<1x32xf32>
    %cst_217 = arith.constant dense<0.000000e+00> : vector<8xf32>
    %605 = vector.multi_reduction <add>, %602, %cst_217 [1] : vector<8x32xf32> to vector<8xf32>
    %606 = vector.shape_cast %605 : vector<8xf32> to vector<8x1xf32>
    %cst_218 = arith.constant 3.200000e+01 : f32
    %607 = vector.broadcast %cst_218 : f32 to vector<8x1xf32>
    %608 = arith.divf %606, %607 : vector<8x1xf32>
    %609 = vector.broadcast %608 : vector<8x1xf32> to vector<8x32xf32>
    %610 = arith.subf %602, %609 : vector<8x32xf32>
    %611 = arith.mulf %610, %610 : vector<8x32xf32>
    %cst_219 = arith.constant dense<0.000000e+00> : vector<8xf32>
    %612 = vector.multi_reduction <add>, %611, %cst_219 [1] : vector<8x32xf32> to vector<8xf32>
    %613 = vector.shape_cast %612 : vector<8xf32> to vector<8x1xf32>
    %cst_220 = arith.constant 3.200000e+01 : f32
    %614 = vector.broadcast %cst_220 : f32 to vector<8x1xf32>
    %615 = arith.divf %613, %614 : vector<8x1xf32>
    %616 = vector.broadcast %608 : vector<8x1xf32> to vector<8x32xf32>
    %617 = arith.subf %602, %616 : vector<8x32xf32>
    %cst_221 = arith.constant 9.99999997E-7 : f32
    %618 = vector.broadcast %cst_221 : f32 to vector<8x1xf32>
    %619 = arith.addf %615, %618 : vector<8x1xf32>
    %620 = math.rsqrt %619 : vector<8x1xf32>
    %621 = vector.broadcast %620 : vector<8x1xf32> to vector<8x32xf32>
    %622 = arith.mulf %617, %621 : vector<8x32xf32>
    %623 = vector.broadcast %603 : vector<1x32xf32> to vector<8x32xf32>
    %624 = arith.mulf %622, %623 : vector<8x32xf32>
    %625 = vector.broadcast %604 : vector<1x32xf32> to vector<8x32xf32>
    %626 = arith.addf %624, %625 : vector<8x32xf32>
    %627 = arith.truncf %626 : vector<8x32xf32> to vector<8x32xbf16>
    %c1_222 = arith.constant 1 : index
    %c0_223 = arith.constant 0 : index
    %c0_224 = arith.constant 0 : index
    %628 = vector.load %arg12[%c1_222, %c0_223, %c0_224] : memref<2x32x64xbf16, #tpu.memory_space<vmem>>, vector<1x32x64xbf16>
    %629 = vector.shape_cast %628 : vector<1x32x64xbf16> to vector<32x64xbf16>
    %cst_225 = arith.constant dense<0.000000e+00> : vector<8x64xf32>
    %630 = tpu.matmul %627, %629, %cst_225 {dimension_numbers = #tpu.dot_dimension_numbers<[1], [0], [0], [1], [0, 0, 1, 1], [], []>} : vector<8x32xbf16>, vector<32x64xbf16>, vector<8x64xf32> -> vector<8x64xf32>
    %c1_226 = arith.constant 1 : index
    %c0_227 = arith.constant 0 : index
    %c0_228 = arith.constant 0 : index
    %631 = vector.load %arg13[%c1_226, %c0_227, %c0_228] : memref<2x1x64xf32, #tpu.memory_space<vmem>>, vector<1x1x64xf32>
    %632 = vector.shape_cast %631 : vector<1x1x64xf32> to vector<1x64xf32>
    %633 = vector.broadcast %632 : vector<1x64xf32> to vector<8x64xf32>
    %634 = arith.addf %630, %633 : vector<8x64xf32>
    %cst_229 = arith.constant 0.000000e+00 : f32
    %635 = vector.broadcast %cst_229 : f32 to vector<8x64xf32>
    %636 = arith.maximumf %634, %635 : vector<8x64xf32>
    %637 = arith.truncf %636 : vector<8x64xf32> to vector<8x64xbf16>
    %c1_230 = arith.constant 1 : index
    %c0_231 = arith.constant 0 : index
    %c0_232 = arith.constant 0 : index
    %638 = vector.load %arg14[%c1_230, %c0_231, %c0_232] : memref<2x64x32xbf16, #tpu.memory_space<vmem>>, vector<1x64x32xbf16>
    %639 = vector.shape_cast %638 : vector<1x64x32xbf16> to vector<64x32xbf16>
    %cst_233 = arith.constant dense<0.000000e+00> : vector<8x32xf32>
    %640 = tpu.matmul %637, %639, %cst_233 {dimension_numbers = #tpu.dot_dimension_numbers<[1], [0], [0], [1], [0, 0, 1, 1], [], []>} : vector<8x64xbf16>, vector<64x32xbf16>, vector<8x32xf32> -> vector<8x32xf32>
    %641 = vector.extract_strided_slice %0 {offsets = [26, 0], sizes = [1, 32], strides = [1, 1]} : vector<29x32xf32> to vector<1x32xf32>
    %642 = vector.broadcast %641 : vector<1x32xf32> to vector<8x32xf32>
    %643 = arith.addf %640, %642 : vector<8x32xf32>
    %644 = arith.addf %643, %626 : vector<8x32xf32>
    %645 = vector.extract_strided_slice %0 {offsets = [27, 0], sizes = [1, 32], strides = [1, 1]} : vector<29x32xf32> to vector<1x32xf32>
    %646 = vector.extract_strided_slice %0 {offsets = [28, 0], sizes = [1, 32], strides = [1, 1]} : vector<29x32xf32> to vector<1x32xf32>
    %cst_234 = arith.constant dense<0.000000e+00> : vector<8xf32>
    %647 = vector.multi_reduction <add>, %644, %cst_234 [1] : vector<8x32xf32> to vector<8xf32>
    %648 = vector.shape_cast %647 : vector<8xf32> to vector<8x1xf32>
    %cst_235 = arith.constant 3.200000e+01 : f32
    %649 = vector.broadcast %cst_235 : f32 to vector<8x1xf32>
    %650 = arith.divf %648, %649 : vector<8x1xf32>
    %651 = vector.broadcast %650 : vector<8x1xf32> to vector<8x32xf32>
    %652 = arith.subf %644, %651 : vector<8x32xf32>
    %653 = arith.mulf %652, %652 : vector<8x32xf32>
    %cst_236 = arith.constant dense<0.000000e+00> : vector<8xf32>
    %654 = vector.multi_reduction <add>, %653, %cst_236 [1] : vector<8x32xf32> to vector<8xf32>
    %655 = vector.shape_cast %654 : vector<8xf32> to vector<8x1xf32>
    %cst_237 = arith.constant 3.200000e+01 : f32
    %656 = vector.broadcast %cst_237 : f32 to vector<8x1xf32>
    %657 = arith.divf %655, %656 : vector<8x1xf32>
    %658 = vector.broadcast %650 : vector<8x1xf32> to vector<8x32xf32>
    %659 = arith.subf %644, %658 : vector<8x32xf32>
    %cst_238 = arith.constant 9.99999997E-7 : f32
    %660 = vector.broadcast %cst_238 : f32 to vector<8x1xf32>
    %661 = arith.addf %657, %660 : vector<8x1xf32>
    %662 = math.rsqrt %661 : vector<8x1xf32>
    %663 = vector.broadcast %662 : vector<8x1xf32> to vector<8x32xf32>
    %664 = arith.mulf %659, %663 : vector<8x32xf32>
    %665 = vector.broadcast %645 : vector<1x32xf32> to vector<8x32xf32>
    %666 = arith.mulf %664, %665 : vector<8x32xf32>
    %667 = vector.broadcast %646 : vector<1x32xf32> to vector<8x32xf32>
    %668 = arith.addf %666, %667 : vector<8x32xf32>
    %669 = vector.extract_strided_slice %0 {offsets = [5, 0], sizes = [1, 32], strides = [1, 1]} : vector<29x32xf32> to vector<1x32xf32>
    %670 = vector.extract_strided_slice %0 {offsets = [6, 0], sizes = [1, 32], strides = [1, 1]} : vector<29x32xf32> to vector<1x32xf32>
    %cst_239 = arith.constant dense<0.000000e+00> : vector<8xf32>
    %671 = vector.multi_reduction <add>, %668, %cst_239 [1] : vector<8x32xf32> to vector<8xf32>
    %672 = vector.shape_cast %671 : vector<8xf32> to vector<8x1xf32>
    %cst_240 = arith.constant 3.200000e+01 : f32
    %673 = vector.broadcast %cst_240 : f32 to vector<8x1xf32>
    %674 = arith.divf %672, %673 : vector<8x1xf32>
    %675 = vector.broadcast %674 : vector<8x1xf32> to vector<8x32xf32>
    %676 = arith.subf %668, %675 : vector<8x32xf32>
    %677 = arith.mulf %676, %676 : vector<8x32xf32>
    %cst_241 = arith.constant dense<0.000000e+00> : vector<8xf32>
    %678 = vector.multi_reduction <add>, %677, %cst_241 [1] : vector<8x32xf32> to vector<8xf32>
    %679 = vector.shape_cast %678 : vector<8xf32> to vector<8x1xf32>
    %cst_242 = arith.constant 3.200000e+01 : f32
    %680 = vector.broadcast %cst_242 : f32 to vector<8x1xf32>
    %681 = arith.divf %679, %680 : vector<8x1xf32>
    %682 = vector.broadcast %674 : vector<8x1xf32> to vector<8x32xf32>
    %683 = arith.subf %668, %682 : vector<8x32xf32>
    %cst_243 = arith.constant 9.99999997E-7 : f32
    %684 = vector.broadcast %cst_243 : f32 to vector<8x1xf32>
    %685 = arith.addf %681, %684 : vector<8x1xf32>
    %686 = math.rsqrt %685 : vector<8x1xf32>
    %687 = vector.broadcast %686 : vector<8x1xf32> to vector<8x32xf32>
    %688 = arith.mulf %683, %687 : vector<8x32xf32>
    %689 = vector.broadcast %669 : vector<1x32xf32> to vector<8x32xf32>
    %690 = arith.mulf %688, %689 : vector<8x32xf32>
    %691 = vector.broadcast %670 : vector<1x32xf32> to vector<8x32xf32>
    %692 = arith.addf %690, %691 : vector<8x32xf32>
    %c0_244 = arith.constant 0 : index
    %c0_245 = arith.constant 0 : index
    %c0_246 = arith.constant 0 : index
    %693 = vector.load %arg15[%c0_244, %c0_245, %c0_246] : memref<1x8x32xf32, #tpu.memory_space<vmem>>, vector<1x8x32xf32>
    %694 = vector.shape_cast %693 : vector<1x8x32xf32> to vector<8x32xf32>
    %695 = vector.shape_cast %692 : vector<8x32xf32> to vector<1x8x32xf32>
    tpu.vector_store %arg15[%c0_244, %c0_245, %c0_246], %695 {strides = array<i32>} : memref<1x8x32xf32, #tpu.memory_space<vmem>>, vector<1x8x32xf32>,
    return
  }
  func.func @transform_0(%arg0: i32) -> (i32, i32, i32) {
    %c0_i32 = arith.constant 0 : i32
    %c0_i32_0 = arith.constant 0 : i32
    %c0_i32_1 = arith.constant 0 : i32
    return %arg0, %c0_i32, %c0_i32_0 : i32, i32, i32
  }
  func.func @transform_1(%arg0: i32) -> (i32, i32, i32) {
    %c0_i32 = arith.constant 0 : i32
    %c0_i32_0 = arith.constant 0 : i32
    %c0_i32_1 = arith.constant 0 : i32
    return %arg0, %c0_i32, %c0_i32_0 : i32, i32, i32
  }
  func.func @transform_2(%arg0: i32) -> (i32, i32, i32) {
    %c0_i32 = arith.constant 0 : i32
    %c0_i32_0 = arith.constant 0 : i32
    %c0_i32_1 = arith.constant 0 : i32
    %c0_i32_2 = arith.constant 0 : i32
    return %c0_i32, %c0_i32_0, %c0_i32_1 : i32, i32, i32
  }
  func.func @transform_3(%arg0: i32) -> (i32, i32, i32) {
    %c0_i32 = arith.constant 0 : i32
    %c0_i32_0 = arith.constant 0 : i32
    %c0_i32_1 = arith.constant 0 : i32
    %c0_i32_2 = arith.constant 0 : i32
    return %c0_i32, %c0_i32_0, %c0_i32_1 : i32, i32, i32
  }
  func.func @transform_4(%arg0: i32) -> (i32, i32) {
    %c0_i32 = arith.constant 0 : i32
    %c0_i32_0 = arith.constant 0 : i32
    %c0_i32_1 = arith.constant 0 : i32
    return %c0_i32, %c0_i32_0 : i32, i32
  }
  func.func @transform_5(%arg0: i32) -> (i32, i32, i32) {
    %c0_i32 = arith.constant 0 : i32
    %c0_i32_0 = arith.constant 0 : i32
    %c0_i32_1 = arith.constant 0 : i32
    %c0_i32_2 = arith.constant 0 : i32
    return %c0_i32, %c0_i32_0, %c0_i32_1 : i32, i32, i32
  }
  func.func @transform_6(%arg0: i32) -> (i32, i32, i32) {
    %c0_i32 = arith.constant 0 : i32
    %c0_i32_0 = arith.constant 0 : i32
    %c0_i32_1 = arith.constant 0 : i32
    %c0_i32_2 = arith.constant 0 : i32
    return %c0_i32, %c0_i32_0, %c0_i32_1 : i32, i32, i32
  }
  func.func @transform_7(%arg0: i32) -> (i32, i32) {
    %c0_i32 = arith.constant 0 : i32
    %c0_i32_0 = arith.constant 0 : i32
    %c0_i32_1 = arith.constant 0 : i32
    return %c0_i32, %c0_i32_0 : i32, i32
  }
  func.func @transform_8(%arg0: i32) -> (i32, i32, i32, i32) {
    %c0_i32 = arith.constant 0 : i32
    %c0_i32_0 = arith.constant 0 : i32
    %c0_i32_1 = arith.constant 0 : i32
    %c0_i32_2 = arith.constant 0 : i32
    %c0_i32_3 = arith.constant 0 : i32
    return %c0_i32, %c0_i32_0, %c0_i32_1, %c0_i32_2 : i32, i32, i32, i32
  }
  func.func @transform_9(%arg0: i32) -> (i32, i32, i32, i32) {
    %c0_i32 = arith.constant 0 : i32
    %c0_i32_0 = arith.constant 0 : i32
    %c0_i32_1 = arith.constant 0 : i32
    %c0_i32_2 = arith.constant 0 : i32
    %c0_i32_3 = arith.constant 0 : i32
    return %c0_i32, %c0_i32_0, %c0_i32_1, %c0_i32_2 : i32, i32, i32, i32
  }
  func.func @transform_10(%arg0: i32) -> (i32, i32, i32, i32) {
    %c0_i32 = arith.constant 0 : i32
    %c0_i32_0 = arith.constant 0 : i32
    %c0_i32_1 = arith.constant 0 : i32
    %c0_i32_2 = arith.constant 0 : i32
    %c0_i32_3 = arith.constant 0 : i32
    return %c0_i32, %c0_i32_0, %c0_i32_1, %c0_i32_2 : i32, i32, i32, i32
  }
  func.func @transform_11(%arg0: i32) -> (i32, i32, i32) {
    %c0_i32 = arith.constant 0 : i32
    %c0_i32_0 = arith.constant 0 : i32
    %c0_i32_1 = arith.constant 0 : i32
    %c0_i32_2 = arith.constant 0 : i32
    return %c0_i32, %c0_i32_0, %c0_i32_1 : i32, i32, i32
  }
  func.func @transform_12(%arg0: i32) -> (i32, i32, i32) {
    %c0_i32 = arith.constant 0 : i32
    %c0_i32_0 = arith.constant 0 : i32
    %c0_i32_1 = arith.constant 0 : i32
    %c0_i32_2 = arith.constant 0 : i32
    return %c0_i32, %c0_i32_0, %c0_i32_1 : i32, i32, i32
  }
  func.func @transform_13(%arg0: i32) -> (i32, i32, i32) {
    %c0_i32 = arith.constant 0 : i32
    %c0_i32_0 = arith.constant 0 : i32
    %c0_i32_1 = arith.constant 0 : i32
    %c0_i32_2 = arith.constant 0 : i32
    return %c0_i32, %c0_i32_0, %c0_i32_1 : i32, i32, i32
  }
  func.func @transform_14(%arg0: i32) -> (i32, i32, i32) {
    %c0_i32 = arith.constant 0 : i32
    %c0_i32_0 = arith.constant 0 : i32
    %c0_i32_1 = arith.constant 0 : i32
    return %arg0, %c0_i32, %c0_i32_0 : i32, i32, i32
  }
}

</mosaic_0001>

<bundles_post_ra>
// kernel: tpu_custom_call.1
= control target key start
LH: loop header
LB: loop body
LE: loop exit
PB: predicated region body
PF: predicated region fallthrough
CT: control target
= control target key end

     0   :  { %s4751_s0 = inlined_call_operand.hbm [shape: f32[2,8,10], index: 0, kind: input, shape index: {}]   ;;  %s4752_s1 = inlined_call_operand.hbm [shape: f32[2,8,32], index: 1, kind: input, shape index: {}]   ;;  %s4753_s2 = inlined_call_operand.hbm [shape: f32[1,8,8], index: 2, kind: input, shape index: {}]   ;;  %s4754_s3 = inlined_call_operand.hbm [shape: f32[1,1,8], index: 3, kind: input, shape index: {}]   ;;  %s4755_s4 = inlined_call_operand.hbm [shape: bf16[10,32], index: 4, kind: input, shape index: {}]   ;;  %s4756_s5 = inlined_call_operand.hbm [shape: bf16[2,32,32], index: 5, kind: input, shape index: {}]   ;;  %s4757_s6 = inlined_call_operand.vmem [shape: bf16[2,96,32], index: 6, kind: input, shape index: {}]   ;;  %s4758_s7 = inlined_call_operand.hbm [shape: f32[29,32], index: 7, kind: input, shape index: {}]   ;;  %s4759_s8 = inlined_call_operand.vmem [shape: bf16[2,2,32,32], index: 8, kind: input, shape index: {}]   ;;  %s4760_s9 = inlined_call_operand.vmem [shape: bf16[2,2,32,64], index: 9, kind: input, shape index: {}]   ;;  %s4761_s10 = inlined_call_operand.vmem [shape: bf16[2,2,32,32], index: 10, kind: input, shape index: {}]   ;;  %s4762_s11 = inlined_call_operand.hbm [shape: bf16[2,32,64], index: 11, kind: input, shape index: {}]   ;;  %s4763_s12 = inlined_call_operand.vmem [shape: f32[2,1,64], index: 12, kind: input, shape index: {}]   ;;  %s4764_s13 = inlined_call_operand.vmem [shape: bf16[2,64,32], index: 13, kind: input, shape index: {}]   ;;  %s4765_s14 = inlined_call_operand.hbm [shape: f32[2,8,32], index: 14, kind: output, shape index: {}]  }
   0x1   :  { %4781 = sst [smem:[#allocation28_spill]] %s4753_s2 }
   0x2   :  { %4782 = sst [smem:[#allocation29_spill]] %s4754_s3 }
   0x3   :  { %4783 = sst [smem:[#allocation30_spill]] %s4755_s4 }
   0x4   :  { %4784 = sst [smem:[#allocation31_spill]] %s4756_s5 }
   0x5   :  { %4785 = sst [smem:[#allocation32_spill]] %s4758_s7 }
   0x6   :  { %4786 = sst [smem:[#allocation33_spill]] %s4762_s11 }
   0x7   :  { %4787 = sst [smem:[#allocation34_spill]] %s4763_s12 }
   0x8   :  { %4788 = sst [smem:[#allocation35_spill]] %s4764_s13 }
   0x9   :  { %4789 = sst [smem:[#allocation36_spill]] %s4765_s14 }
   0xa   :  { %19 = vsyncpa [#allocation3], 0 }
   0xb   :  { %21 = vsyncpa [#allocation3 + $0x1], 0 }
   0xc   :  { %22 = vsyncpa [#allocation6], 0 }
   0xd   :  { %24 = vsyncpa [#allocation6 + $0x1], 0 }
   0xe   :  { %25 = vsyncpa [#allocation9], 0 }
   0xf   :  { %26 = vsyncpa [#allocation12], 0 }
  0x10   :  { %27 = vsyncpa [#allocation15], 0 }
  0x11   :  { %28 = vsyncpa [#allocation4], 0 }
  0x12   :  { %30 = vsyncpa [#allocation4 + $0x1], 0  ;;  %s4109_s29 = smov 0   ;;  %s4111_s30 = smov 0  }
  0x13   :  { %s4113_s15 = smov 0   ;;  %s4115_s16 = smov 0  }
  0x14 LB: > { %4790 = sst [smem:[#allocation24_spill]] %s4005_s15  ;;  %s4133_s20 = sadd.s32 4294967295, %s4009_s16   ;;  %s4009_s16 = sphi %s4115_s16, %s4819_s16   ;;  %s4005_s15 = sphi %s4113_s15, %s4821_s15   ;;  %s4001_s30 = sphi %s4111_s30, %s4823_s30   ;;  %s3997_s29 = sphi %s4109_s29, %s4822_s29  }
  0x15   : > { %4791 = sst [smem:[#allocation25_spill]] %s4009_s16  ;;  %p3064_p0 = scmp.ge.s32.totalorder %s4009_s16, 1 }
  0x16   : > { %s4792_s2 = sld [smem:[#allocation28_spill]]  ;;  %p57_p1 = scmp.eq.s32.totalorder %s4133_s20, 0 }
  0x17   : > { %p371_p2 = scmp.lt.s32.totalorder %s4009_s16, 3  ;;  %s4011_s22 = smov [#allocation7]  }
  0x18   : > { %s385_s23 = sshll.u32 %s4011_s22, 4  ;;  %s4794_s3 = sld [smem:[#allocation29_spill]]  ;;  %s386_s23 = int_to_ptr.vmem [resolvable:$true] %s385_s23 }
  0x19   : > { %p4138_p3 = pnand %p3064_p0, %p371_p2  ;;  %s4012_s28 = smov [#allocation8]  }
  0x1a   : > { %s397_s17 = sshll.u32 %s4012_s28, 4  ;;  %s4796_s5 = sld [smem:[#allocation31_spill]]  ;;  %s398_s17 = int_to_ptr.vmem [resolvable:$true] %s397_s17 }
  0x1b   : > { %p3497_p5 = pneg %p4138_p3  ;;  %s4013_s25 = smov [#allocation11]  }
  0x1c   : > { %s383_s19 = sshll.u32 %s4792_s2, 4  ;;  %s422_s2 = sshll.u32 %s4013_s25, 4  ;;  %s384_s19 = int_to_ptr.hbm [resolvable:$true] %s383_s19  ;;  %s423_s2 = int_to_ptr.vmem [resolvable:$true] %s422_s2 }
  0x1d   : > { %p4150_p6 = pnand %p3497_p5, %p57_p1  ;;  %s4797_s4 = sld [smem:[#allocation30_spill]] }
  0x1e   : > { %s395_s26 = sshll.u32 %s4794_s3, 4  ;;  %s4014_s13 = smov 64   ;;  %s396_s26 = int_to_ptr.hbm [resolvable:$true] %s395_s26 }
  0x1f   : > { %3500 = dma.hbm_to_vmem [thread:$0]  (!%p4150_p6), %s384_s19, 128, %s386_s23, [#allocation6]  }
  0x20   : > { %3503 = dma.hbm_to_vmem [thread:$0]  (!%p4150_p6), %s396_s26, 16, %s398_s17, [#allocation9]  }
  0x21   : > { %s420_s24 = sshll.u32 %s4796_s5, 4  ;;  %s4015_s28 = smov 4   ;;  %s421_s24 = int_to_ptr.hbm [resolvable:$true] %s420_s24 }
  0x22   : > { %3509 = dma.hbm_to_vmem [thread:$0]  (!%p4150_p6), %s421_s24, 512, %s423_s2, [#allocation12], %s4014_s13, %s4014_s13, %s4015_s28  }
  0x23   : > { %s406_s12 = sshll.u32 %s4797_s4, 4  ;;  %s4016_s19 = smov [#allocation10]   ;;  %s407_s12 = int_to_ptr.hbm [resolvable:$true] %s406_s12 }
  0x24   : > { %s408_s23 = sshll.u32 %s4016_s19, 4  ;;  %s4798_s7 = sld [smem:[#allocation32_spill]]  ;;  %s409_s23 = int_to_ptr.vmem [resolvable:$true] %s408_s23 }
  0x25   : > { %3506 = dma.hbm_to_vmem [thread:$0]  (!%p4150_p6), %s407_s12, 128, %s409_s23, [#allocation9], %s4014_s13, %s4014_s13, %s4015_s28  }
  0x26   : > { %s4017_s3 = smov [#allocation13]   ;;  %s4799_s11 = sld [smem:[#allocation33_spill]] }
  0x27   : > { %s439_s14 = sshll.u32 %s4017_s3, 4  ;;  %s4018_s25 = smov 128   ;;  %s440_s14 = int_to_ptr.vmem [resolvable:$true] %s439_s14 }
  0x28   : > { %s4019_s19 = smov 8   ;;  %s4020_s12 = smov [#allocation14]  }
  0x29   : > { %s462_s23 = sshll.u32 %s4020_s12, 4  ;;  %s3063_s26 = sadd.s32 4294967294, %s4009_s16   ;;  %s463_s23 = int_to_ptr.vmem [resolvable:$true] %s462_s23 }
  0x2a   : > { %s437_s18 = sshll.u32 %s4798_s7, 4  ;;  %s4180_s17 = sadd.s32 1, %s4009_s16   ;;  %s438_s18 = int_to_ptr.hbm [resolvable:$true] %s437_s18 }
  0x2b   : > { %3512 = dma.hbm_to_vmem [thread:$0]  (!%p4150_p6), %s438_s18, 512, %s440_s14, [#allocation12], %s4018_s25, %s4018_s25, %s4019_s19  }
  0x2c   : > { %s460_s24 = sshll.u32 %s4799_s11, 4  ;;  %4800 = sst [smem:[#allocation26_spill]] %s4180_s17  ;;  %s461_s24 = int_to_ptr.hbm [resolvable:$true] %s460_s24 }
  0x2d   : > { %3515 = dma.hbm_to_vmem [thread:$0]  (!%p4150_p6), %s461_s24, 512, %s463_s23, [#allocation15], %s4014_s13, %s4014_s13, %s4015_s28  }
  0x2e   : > { %s40_s3 = ssub.s32 %s4009_s16, %s4180_s17  ;;  %s43_s2 = sadd.s32 1, %s4005_s15 }
  0x2f   : > { %p41_p7 = scmp.eq.s32.totalorder %s40_s3, 0  ;;  %p50_p8 = scmp.ne.s32.totalorder %s4005_s15, %s4001_s30 }
  0x30   : > { %p51_p9 = scmp.eq.s32.totalorder %s4009_s16, 0  ;;  %p56_p10 = scmp.ne.s32.totalorder %s4001_s30, %s3997_s29 }
  0x31   : > { %s4191_s18 = scalar_select %p41_p7, %s4005_s15, %s43_s2  }
  0x32   : > { %p4193_p11 = por %p51_p9, %p50_p8  ;;  %p4199_p12 = por %p57_p1, %p56_p10 }
  0x33   : > { %4801 = sst [smem:[#allocation27_spill]] %s4191_s18  ;;  %p358_p13 = scmp.eq.s32.totalorder %s4133_s20, 1 }
  0x34   : > { %p364_p0 = scmp.eq.s32.totalorder %s3063_s26, 1  ;;  %p3533_p2 = scmp.lt.s32.totalorder %s4009_s16, 2 }
  0x35   : > { %s482_s27 = sand.u32 1, %s4005_s15   ;;  %p4206_p5 = por %p358_p13, %p50_p8 }
  0x36   : > { %p4210_p6 = por %p364_p0, %p56_p10  ;;  %s4214_s24 = sshll.u32 %s482_s27, 3 }
  0x37   : > { %s3073_s25 = sshll.u32 %s4009_s16, 3  ;;  %s486_s3 = scalar_lea.vmem [#allocation2], %s4214_s24 }
  0x38   : > { %s490_s23 = scalar_lea.hbm %s4751_s0, %s3073_s25  ;;  %s494_s26 = sshll.u32 %s486_s3, 4  ;;  %s495_s26 = int_to_ptr.vmem [resolvable:$true] %s494_s26 }
  0x39   : > { %s492_s2 = sshll.u32 %s490_s23, 4  ;;  %p4223_p7 = pnand %p3533_p2, %p4193_p11  ;;  %s493_s2 = int_to_ptr.hbm [resolvable:$true] %s492_s2 }
  0x3a   : > { %s509_s11 = scalar_lea.hbm %s4752_s1, %s3073_s25  ;;  %s501_s18 = sand.u32 1, %s4009_s16  }
  0x3b   : > { %s483_s15 = scalar_lea.sflag [#allocation3], %s482_s27  ;;  %s3863_s19 = sshra.s32 %s493_s2, 4  ;;  %s3864_s19 = int_to_ptr.hbm [resolvable:$true] %s3863_s19 }
  0x3c   : > { %s3865_s12 = scalar_lea.hbm %s3864_s19, 8  ;;  %p3867_p9 = pneg %p4223_p7 }
  0x3d   : > { %p3866_p8 = scmp.ne.s32.totalorder %s3864_s19, %s3865_s12  ;;  %s3870_s3 = scalar_lea.hbm %s4751_s0, 16 }
  0x3e   : > { %p3871_p13 = scmp.lt.s32.totalorder %s3864_s19, %s4751_s0  ;;  %p3872_p0 = scmp.lt.s32.totalorder %s3870_s3, %s3865_s12 }
  0x3f   : > { %p3868_p10 = pnand %p3867_p9, %p3866_p8 }
  0x40   : > { %p3873_p2 = por %p3872_p0, %p3871_p13 }
  0x41   : > { %p3869_p11 = pneg %p3868_p10 }
  0x43   : > { %p3874_p4 = pnand %p3873_p2, %p3869_p11 }
  0x45   : > { %3877 = shalt.err (!%p3874_p4)
}
  0x46   : > { %3519 = dma.hbm_to_vmem [thread:$0]  (!%p4223_p7), %s493_s2, 128, %s495_s26, %s483_s15  }
  0x47   : > { %s511_s27 = sshll.u32 %s509_s11, 4  ;;  %s505_s25 = scalar_lea.vmem [#allocation5], %s4214_s24  ;;  %s512_s27 = int_to_ptr.hbm [resolvable:$true] %s511_s27 }
  0x48   : > { %s513_s17 = sshll.u32 %s505_s25, 4  ;;  %s502_s14 = scalar_lea.sflag [#allocation6], %s501_s18  ;;  %s514_s17 = int_to_ptr.vmem [resolvable:$true] %s513_s17 }
  0x49   : > { %s3893_s23 = sshra.s32 %s512_s27, 4  ;;  %s3900_s3 = scalar_lea.hbm %s4752_s1, 16  ;;  %s3894_s23 = int_to_ptr.hbm [resolvable:$true] %s3893_s23 }
  0x4a   : > { %s3895_s16 = scalar_lea.hbm %s3894_s23, 8  ;;  %p3901_p4 = scmp.lt.s32.totalorder %s3894_s23, %s4752_s1 }
  0x4b   : > { %p3896_p8 = scmp.ne.s32.totalorder %s3894_s23, %s3895_s16  ;;  %p3902_p13 = scmp.lt.s32.totalorder %s3900_s3, %s3895_s16 }
  0x4d   : > { %p3898_p10 = pnand %p3896_p8, %p3867_p9  ;;  %p3903_p0 = por %p3902_p13, %p3901_p4 }
  0x4f   : > { %p3899_p11 = pneg %p3898_p10 }
  0x51   : > { %p3904_p2 = pnand %p3903_p0, %p3899_p11 }
  0x53   : > { %3907 = shalt.err (!%p3904_p2)
}
  0x54   : > { %3522 = dma.hbm_to_vmem [thread:$0]  (!%p4223_p7), %s512_s27, 128, %s514_s17, %s502_s14  }
  0x55   : > { %522 = sbr.rel (%p4138_p3) target bundleno = 8015 (0x1f4f), region = 76  ;;  %s4259_s11 = sand.u32 (!%p4138_p3), 1, %s4001_s30  }
  0x56   : > { %s4262_s18 = sshll.u32 (!%p4138_p3), %s4259_s11, 3  ;;  %s525_s24 = scalar_lea.sflag (!%p4138_p3), [#allocation3], %s4259_s11 }
  0x57   : > { %s528_s16 = scalar_lea.vmem (!%p4138_p3), [#allocation2], %s4262_s18 }
  0x5a   : > { %3968 = dma.done.wait (%p4199_p12), %s525_s24, 128  }
  0x5b   : > { %3970 = vsyncadd (%p4199_p12), %s525_s24, 4294967168  ;;  %s534_s4 = sand.u32 1, %s4133_s20   ;;  %s538_s17 = scalar_lea.vmem [#allocation5], %s4262_s18 }
  0x5c   : > { %s535_s21 = scalar_lea.sflag [#allocation6], %s534_s4 }
  0x5d   : > { %3972 = dma.done.wait (%p4199_p12), %s535_s21, 128  }
  0x5e   : > { %3974 = vsyncadd (%p4199_p12), %s535_s21, 4294967168 }
  0x5f   : > { %3976 = dma.done.wait (%p57_p1), [#allocation6], 128  }
  0x60   : > { %3978 = vsyncadd (%p57_p1), [#allocation6], 4294967168 }
  0x61   : > { %3980 = dma.done.wait (%p57_p1), [#allocation9], 144  }
  0x62   : > { %3982 = vsyncadd (%p57_p1), [#allocation9], 4294967152 }
  0x63   : > { %3984 = dma.done.wait (%p57_p1), [#allocation12], 1024  }
  0x64   : > { %3986 = vsyncadd (%p57_p1), [#allocation12], 4294966272 }
  0x65   : > { %3988 = dma.done.wait (%p57_p1), [#allocation15], 512  }
  0x66   : > { %3990 = vsyncadd (%p57_p1), [#allocation15], 4294966784  ;;  %v3088_v0 = vld [vmem:[#allocation10] sm:$0xf]  ;;  %v3414_v1 = vld [vmem:[#allocation10] sm:$0x10] }
  0x67   : > { %vm638_vm0 = vcmask 1044480   ;;  %v624_v2 = vld [vmem:[%s528_s16] sm:$0xff]  ;;  %v3089_v3 = vor.u32 %v3414_v1, %v3088_v0  ;;  %vm634_vm1 = vcmask 80896   ;;  %v3415_v8 = vld [vmem:[#allocation11] sm:$0xff]  ;;  %vm673_vm2 = vcmask 261120   ;;  %s4021_s13 = smov 32  }
  0x68   : > { %v3416_v4 = vld [vmem:[#allocation11 + $0x8] sm:$0xff]  ;;  %v3424_v5 = vld [vmem:[#allocation11 + $0x18] sm:$0xff]  ;;  %v625_v7 = vpack.c.bf16 %v624_v2, %v624_v2  ;;  %v3423_v9 = vld [vmem:[#allocation11 + $0x10] sm:$0xff]  ;;  %s4022_s27 = smov 64   ;;  %vm724_vm3 = vcmask 523264   ;;  %vm776_vm4 = vcmask 785408  }
  0x69   : > { %v640_v6 = vsel %vm638_vm0, %v3089_v3, 0  ;;  %683 = vmatpush.bf16.msra.mxu1 %v3416_v4  ;;  %702 = vmatpush.bf16.msra.mxu2 %v3416_v4  ;;  %v4292_v10 = vld [vmem:[#allocation13] sm:$0xff]  ;;  %v3422_v31 = vld [vmem:[%s4757_s6 + $0x28] sm:$0xff]  ;;  %v3421_v33 = vld [vmem:[%s4757_s6 + $0x20] sm:$0xff]  ;;  %vm960_vm9 = vcmask 1040384   ;;  %s4025_s26 = smov 120  }
  0x6a   : > { %649 = vmatpush.bf16.msra.mxu0 %v640_v6  ;;  %v628_v11 = vperm.slane %v4292_v10, 0  ;;  %v3430_v32 = vld [vmem:[%s4757_s6 + $0x58] sm:$0xff]  ;;  %781 = vmatpush.bf16.msra.mxu3 %v3422_v31  ;;  %v3429_v34 = vld [vmem:[%s4757_s6 + $0x50] sm:$0xff]  ;;  %v3428_v37 = vld [vmem:[%s4757_s6 + $0x48] sm:$0xff]  ;;  %v739_v2 = vperm.slane %v4292_v10, 1  ;;  %v871_v3 = vperm.slane %v4292_v10, 2 }
  0x6b   : > { %v3420_v35 = vld [vmem:[%s4757_s6 + $0x18] sm:$0xff]  ;;  %v3419_v38 = vld [vmem:[%s4757_s6 + $0x10] sm:$0xff]  ;;  %v3427_v39 = vld [vmem:[%s4757_s6 + $0x40] sm:$0xff]  ;;  %s4026_s2 = smov 104   ;;  %vm1077_vm10 = vcmask 1043456   ;;  %vm1073_vm11 = vcmask 64512  }
  0x6c   : > { %v3418_v43 = vld [vmem:[%s4757_s6 + $0x8] sm:$0xff]  ;;  %v3417_v48 = vld [vmem:[%s4757_s6] sm:$0xff]  ;;  %v3426_v55 = vld [vmem:[%s4757_s6 + $0x38] sm:$0xff]  ;;  %s4027_s7 = smov 96   ;;  %s4780_s25 = smov 80   ;;  %vm1325_vm12 = vcmask 130048  }
  0x6d   : > { %3090 = vmatmul.msk.bf16.vlgmr.msra.gmra.mxu0 %vm634_vm1, %v625_v7  ;;  %684 = vmatpush.bf16.msra.mxu1 %v3415_v8  ;;  %v3425_v56 = vld [vmem:[%s4757_s6 + $0x30] sm:$0xff]  ;;  %s4779_s14 = smov 72   ;;  %s4777_s23 = smov 8   ;;  %vm1328_vm13 = vcmask 195584  }
  0x6e   : > { %815 = vmatpush.bf16.msrb.mxu0 %v3424_v5  ;;  %703 = vmatpush.bf16.msra.mxu2 %v3415_v8  ;;  %s4775_s19 = smov 16   ;;  %s4773_s12 = smov 24  }
  0x6f   : > { %782 = vmatpush.bf16.msra.mxu3 %v3421_v33  ;;  %s4808_s15 = sld [smem:[#allocation35_spill]]  ;;  %s4813_s4 = smov 16  }
  0x70   : > { %s4810_s16 = sld [smem:[#allocation34_spill]] }
  0x71   : > { %834 = vmatpush.bf16.msrb.mxu1 %v3424_v5 }
  0x72   : > { %816 = vmatpush.bf16.msrb.mxu0 %v3423_v9  ;;  %912 = vmatpush.bf16.msrb.mxu2 %v3430_v32 }
  0x73   : > { %783 = vmatpush.bf16.msra.mxu3 %v3420_v35 }
  0x75   : > { %835 = vmatpush.bf16.msrb.mxu1 %v3423_v9  ;;  %s4809_s24 = smov %s4808_s15 }
  0x76   : > { %913 = vmatpush.bf16.msrb.mxu2 %v3429_v34 }
  0x77   : > { %784 = vmatpush.bf16.msra.mxu3 %v3419_v38 }
  0x7a   : > { %914 = vmatpush.bf16.msrb.mxu2 %v3428_v37  ;;  %v4371_v37 = vld [vmem:[#allocation13 + $0x8] sm:$0xff] }
  0x7b   : > { %785 = vmatpush.bf16.msra.mxu3 %v3418_v43  ;;  %v956_v43 = vperm.slane %v4292_v10, 4 }
  0x7e   : > { %915 = vmatpush.bf16.msrb.mxu2 %v3427_v39  ;;  %v954_v39 = vperm.slane %v4292_v10, 3 }
  0x7f   : > { %786 = vmatpush.bf16.msra.mxu3 %v3417_v48 }
  0x82   : > { %916 = vmatpush.bf16.msrb.mxu2 %v3426_v55 }
  0x86   : > { %917 = vmatpush.bf16.msrb.mxu2 %v3425_v56 }
  0xea   : > { %v651_v12 = vpop.f32.mrf.mxu0 }
  0xeb   : > { %v4295_v13 = vadd.f32 %v651_v12, %v628_v11 }
  0xed   : > { %v4299_v14 = vpack.c.bf16 %v4295_v13, %v4295_v13  ;;  %v660_v18 = vmul.f32 0.2, %v4295_v13 }
  0xef   : > { %3099 = vmatmul.msk.bf16.vlgmr.msra.gmra.mxu1 %vm673_vm2, %v4299_v14  ;;  %3134 = vmatmul.msk.bf16.vlgmr.msrb.gmra.mxu0 %vm673_vm2, %v4299_v14 }
  0xf2   : > { %v653_v15 = vpop.f32.mrf.mxu0 }
 0x16c   : > { %v686_v16 = vpop.f32.mrf.mxu1  ;;  %v818_v17 = vpop.f32.mrf.mxu0 }
 0x16d   : > { %v690_v19 = vmul.f32 0.8, %v686_v16  ;;  %v822_v20 = vmul.f32 0.8, %v818_v17 }
 0x16f   : > { %v691_v21 = vadd.f32 %v690_v19, %v660_v18  ;;  %v823_v22 = vadd.f32 %v822_v20, %v660_v18 }
 0x171   : > { %v692_v23 = vpack.c.bf16 %v691_v21, %v691_v21  ;;  %v824_v24 = vpack.c.bf16 %v823_v22, %v823_v22 }
 0x173   : > { %3100 = vmatmul.msk.bf16.vlgmr.msra.gmra.mxu2 %vm673_vm2, %v692_v23  ;;  %3135 = vmatmul.msk.bf16.vlgmr.msrb.gmra.mxu1 %vm673_vm2, %v824_v24  ;;  %v713_v25 = vunpack.c.l.b16 %v692_v23  ;;  %v845_v29 = vunpack.c.l.b16 %v824_v24 }
 0x174   : > { %v688_v26 = vpop.f32.mrf.mxu1  ;;  %v820_v27 = vpop.f32.mrf.mxu0 }
 0x175   : > { %v714_v28 = vpack.c.b16 %v713_v25, %v713_v25  ;;  %v846_v30 = vpack.c.b16 %v845_v29, %v845_v29  ;;  %v3432_v25 = vld [vmem:[%s4759_s8 + $0x8] sm:$0xff]  ;;  %v3431_v27 = vld [vmem:[%s4759_s8] sm:$0xff] }
 0x176   : > { %v3434_v26 = vld [vmem:[%s4760_s9 + $0x8] sm:$0xff]  ;;  %999 = vmatpush.bf16.msra.mxu0 %v3432_v25 }
 0x177   : > { %715 = vrot.lane.b32.xlu0 %v714_v28, %s4021_s13  ;;  %1028 = vmatpush.bf16.msra.mxu1 %v3434_v26  ;;  %v3433_v28 = vld [vmem:[%s4760_s9] sm:$0xff] }
 0x17a   : > { %1000 = vmatpush.bf16.msra.mxu0 %v3431_v27 }
 0x17b   : > { %1029 = vmatpush.bf16.msra.mxu1 %v3433_v28 }
 0x17f   : > { %847 = vrot.lane.b32.xlu0 %v846_v30, %s4021_s13  ;;  %s4024_s13 = smov 112  }
 0x1e9   : > { %v716_v57 = vpop.permute.xlu0 %715 }
 0x1ea   : > { %v723_v58 = vsel %vm673_vm2, %v4299_v14, %v716_v57 }
 0x1f0   : > { %v837_v36 = vpop.f32.mrf.mxu1 }
 0x1f1   : > { %v841_v41 = vmul.f32 0.8, %v837_v36  ;;  %v848_v61 = vpop.permute.xlu0 %847 }
 0x1f2   : > { %v855_v62 = vsel %vm673_vm2, %v4299_v14, %v848_v61  ;;  %v4023_v14 = vmov 32.0  }
 0x1f3   : > { %v842_v46 = vadd.f32 %v841_v41, %v660_v18  ;;  %3600 = vrcp.f32 %v4023_v14  ;;  %v961_v41 = vrot.slane %v4292_v10, 7 }
 0x1f5   : > { %v843_v51 = vpack.c.bf16 %v842_v46, %v842_v46 }
 0x1f6   : > { %v705_v40 = vpop.f32.mrf.mxu2 }
 0x1f7   : > { %v709_v42 = vmul.f32 0.8, %v705_v40  ;;  %v850_v53 = vunpack.c.l.b16 %v843_v51 }
 0x1f8   : > { %v839_v44 = vpop.f32.mrf.mxu1 }
 0x1f9   : > { %v710_v45 = vadd.f32 %v709_v42, %v660_v18  ;;  %v851_v54 = vpack.c.b16 %v850_v53, %v850_v53  ;;  %v3601_v15 = vpop.eup %3600  ;;  %v962_v42 = vrot.slane %v4371_v37, 7 }
 0x1fa   : > { %v929_v16 = vmul.f32 32.0, %v3601_v15  ;;  %vm933_vm5 = vweird.f32 %v3601_v15 }
 0x1fb   : > { %v711_v47 = vpack.c.bf16 %v710_v45, %v710_v45  ;;  %v963_v46 = vsel %vm960_vm9, %v961_v41, %v962_v42 }
 0x1fc   : > { %v930_v17 = vsub.f32 1.0, %v929_v16 }
 0x1fd   : > { %v718_v49 = vunpack.c.l.b16 %v711_v47 }
 0x1fe   : > { %v707_v50 = vpop.f32.mrf.mxu2  ;;  %v931_v18 = vmul.f32 %v3601_v15, %v930_v17 }
 0x1ff   : > { %v719_v52 = vpack.c.b16 %v718_v49, %v718_v49 }
 0x200   : > { %v932_v19 = vadd.f32 %v3601_v15, %v931_v18 }
 0x201   : > { %720 = vrot.lane.b32.xlu1 %v719_v52, %s4022_s27 }
 0x202   : > { %v4354_v20 = vsel %vm933_vm5, %v3601_v15, %v932_v19 }
 0x209   : > { %852 = vrot.lane.b32.xlu1 %v851_v54, %s4022_s27  ;;  %s4028_s27 = smov 88  }
 0x273   : > { %v721_v59 = vpop.permute.xlu1 %720 }
 0x274   : > { %v726_v60 = vsel %vm724_vm3, %v723_v58, %v721_v59 }
 0x275   : > { %3125 = vmatmul.msk.bf16.vlgmr.msra.gmra.mxu3 %vm776_vm4, %v726_v60 }
 0x27b   : > { %v853_v63 = vpop.permute.xlu1 %852 }
 0x27c   : > { %v857_v0 = vsel %vm724_vm3, %v855_v62, %v853_v63 }
 0x27d   : > { %3172 = vmatmul.msk.bf16.vlgmr.msrb.gmra.mxu2 %vm776_vm4, %v857_v0 }
 0x2f8   : > { %v788_v1 = vpop.f32.mrf.mxu3 }
 0x2f9   : > { %v789_v6 = vadd.f32 %v788_v1, %v739_v2 }
 0x300   : > { %v790_v4 = vpop.f32.mrf.mxu3  ;;  %v919_v5 = vpop.f32.mrf.mxu2 }
 0x301   : > { %v920_v7 = vadd.f32 %v919_v5, %v871_v3 }
 0x303   : > { %v923_v8 = vadd.f32 %v920_v7, %v789_v6 }
 0x305   : > { %v924_v9 = vadd.f32 %v923_v8, %v4295_v13  ;;  %v4394_v8 = vld [vmem:[#allocation7] sm:$0xff] }
 0x307   : > { %v925_v11 = vsel %vm673_vm2, %v924_v9, 0.0 }
 0x308   : > { %v921_v12 = vpop.f32.mrf.mxu2  ;;  %926 = vadd.xlane.f32.xlu2 %v925_v11 }
 0x37b   : > { %v927_v21 = vpop.xlane.xlu2 %926 }
 0x37c   : > { %v935_v22 = vmul.f32 %v4354_v20, %v927_v21 }
 0x37e   : > { %v936_v23 = vsub.f32 %v924_v9, %v935_v22 }
 0x380   : > { %v937_v24 = vmul.f32 %v936_v23, %v936_v23 }
 0x382   : > { %v938_v13 = vsel %vm673_vm2, %v937_v24, 0.0 }
 0x383   : > { %939 = vadd.xlane.f32.xlu2 %v938_v13 }
 0x3f6   : > { %v940_v29 = vpop.xlane.xlu2 %939 }
 0x3f7   : > { %v941_v30 = vmul.f32 %v940_v29, %v4354_v20 }
 0x3f9   : > { %v942_v31 = vadd.f32 1e-06, %v941_v30 }
 0x3fb   : > { %3602 = vrsqrt.f32 %v942_v31  ;;  %vm949_vm7 = vweird.f32 %v942_v31 }
 0x401   : > { %v3603_v32 = vpop.eup %3602 }
 0x402   : > { %v944_v33 = vmul.f32 %v3603_v32, %v942_v31  ;;  %vm950_vm6 = vweird.f32 %v3603_v32 }
 0x403   : > { %vm951_vm8 = vmor %vm949_vm7, %vm950_vm6 }
 0x404   : > { %v945_v34 = vmul.f32 %v3603_v32, %v944_v33 }
 0x406   : > { %v946_v35 = vmul.f32 0.5, %v945_v34 }
 0x408   : > { %v947_v36 = vsub.f32 1.5, %v946_v35 }
 0x40a   : > { %v948_v38 = vmul.f32 %v3603_v32, %v947_v36 }
 0x40c   : > { %v952_v40 = vsel %vm951_vm8, %v3603_v32, %v948_v38 }
 0x40d   : > { %v953_v44 = vmul.f32 %v952_v40, %v936_v23 }
 0x40f   : > { %v955_v45 = vmul.f32 %v954_v39, %v953_v44 }
 0x411   : > { %v957_v47 = vadd.f32 %v956_v43, %v955_v45 }
 0x413   : > { %v4377_v48 = vadd.f32 %v963_v46, %v957_v47 }
 0x415   : > { %v973_v49 = vpack.c.bf16 %v4377_v48, %v4377_v48 }
 0x417   : > { %3181 = vmatmul.msk.bf16.vlgmr.msra.gmra.mxu0 %vm673_vm2, %v973_v49  ;;  %3190 = vmatmul.msk.bf16.vlgmr.msra.gmra.mxu1 %vm673_vm2, %v973_v49 }
 0x494   : > { %v1002_v50 = vpop.f32.mrf.mxu0  ;;  %v1031_v51 = vpop.f32.mrf.mxu1 }
 0x495   : > { %v1035_v52 = vpack.c.bf16 %v1002_v50, %v1002_v50  ;;  %1036 = vxpose.xlu2.b32.start.end [1/1] (short) (narrow) %v1031_v51, 32  ;;  %v1072_v23 = vpack.c.bf16 %v1031_v51, %v1031_v51 }
 0x497   : > { %v1134_v53 = vunpack.c.l.b16 %v1035_v52  ;;  %v1109_v28 = vunpack.c.l.b16 %v1072_v23 }
 0x499   : > { %v1135_v10 = vpack.c.b16 %v1134_v53, %v1134_v53  ;;  %v1110_v31 = vpack.c.b16 %v1109_v28, %v1109_v28 }
 0x49b   : > { %1193 = vrot.lane.b32.xlu1 %v1135_v10, %s4024_s13  ;;  %1136 = vrot.lane.b32.xlu0 %v1135_v10, %s4025_s26 }
 0x49c   : > { %v1004_v54 = vpop.f32.mrf.mxu0  ;;  %v1033_v55 = vpop.f32.mrf.mxu1 }
 0x4a3   : > { %1250 = vrot.lane.b32.xlu0 %v1135_v10, %s4026_s2 }
 0x50d   : > { %v1137_v62 = vpop.permute.xlu0 %1136  ;;  %v1194_v2 = vpop.permute.xlu1 %1193 }
 0x515   : > { %v1251_v6 = vpop.permute.xlu0 %1250 }
 0x52e   : > { %v1052_v56 = vpop.trf.xlu2 }
 0x52f   : > { %v1068_v57 = vpack.c.bf16 %v1052_v56, %v1052_v56 }
 0x531   : > { %v1079_v58 = vsel %vm1077_vm10, %v1068_v57, 0 }
 0x532   : > { %1088 = vmatpush.bf16.msrb.mxu3 %v1079_v58 }
 0x535   : > { %3191 = vmatmul.msk.bf16.vlgmr.msrb.gmra.mxu3 %vm1073_vm11, %v1035_v52 }
 0x536   : > { %v1053_v59 = vpop.trf.xlu2 }
 0x537   : > { %v1069_v60 = vpack.c.bf16 %v1053_v59, %v1053_v59 }
 0x539   : > { %v1142_v61 = vsel %vm1077_vm10, %v1069_v60, 0 }
 0x53a   : > { %1151 = vmatpush.bf16.msrb.mxu0 %v1142_v61 }
 0x53d   : > { %3193 = vmatmul.msk.bf16.vlgmr.msrb.gmra.mxu0 %vm1073_vm11, %v1137_v62 }
 0x53e   : > { %v1054_v63 = vpop.trf.xlu2 }
 0x53f   : > { %v1070_v0 = vpack.c.bf16 %v1054_v63, %v1054_v63 }
 0x541   : > { %v1199_v1 = vsel %vm1077_vm10, %v1070_v0, 0 }
 0x542   : > { %1208 = vmatpush.bf16.msra.mxu3 %v1199_v1 }
 0x545   : > { %3195 = vmatmul.msk.bf16.vlgmr.msra.gmra.mxu3 %vm1073_vm11, %v1194_v2 }
 0x546   : > { %v1055_v3 = vpop.trf.xlu2 }
 0x547   : > { %v1071_v4 = vpack.c.bf16 %v1055_v3, %v1055_v3 }
 0x549   : > { %v1256_v5 = vsel %vm1077_vm10, %v1071_v4, 0 }
 0x54a   : > { %1265 = vmatpush.bf16.msra.mxu0 %v1256_v5 }
 0x54d   : > { %3197 = vmatmul.msk.bf16.vlgmr.msra.gmra.mxu0 %vm1073_vm11, %v1251_v6 }
 0x5b8   : > { %v1090_v7 = vpop.f32.mrf.mxu3 }
 0x5b9   : > { %v1094_v9 = vmul.f32 0.35355338, %v1090_v7 }
 0x5ba   : > { %v1153_v11 = vpop.f32.mrf.mxu0 }
 0x5bb   : > { %v1157_v12 = vmul.f32 0.35355338, %v1153_v11  ;;  %v1095_v14 = vadd.f32 %v1094_v9, %v4394_v8 }
 0x5bd   : > { %v1096_v15 = vsel %vm1073_vm11, %v1095_v14, -inf  ;;  %v1158_v16 = vadd.f32 %v1157_v12, %v4394_v8 }
 0x5be   : > { %1097 = vmax.xlane.f32.xlu1 %v1096_v15 }
 0x5bf   : > { %v1159_v17 = vsel %vm1073_vm11, %v1158_v16, -inf }
 0x5c0   : > { %v1092_v18 = vpop.f32.mrf.mxu3  ;;  %1160 = vmax.xlane.f32.xlu0 %v1159_v17 }
 0x5c2   : > { %v1155_v19 = vpop.f32.mrf.mxu0 }
 0x5c8   : > { %v1210_v21 = vpop.f32.mrf.mxu3 }
 0x5c9   : > { %v1214_v22 = vmul.f32 0.35355338, %v1210_v21 }
 0x5ca   : > { %v1267_v24 = vpop.f32.mrf.mxu0 }
 0x5cb   : > { %v1271_v13 = vmul.f32 0.35355338, %v1267_v24  ;;  %v1215_v25 = vadd.f32 %v1214_v22, %v4394_v8 }
 0x5cd   : > { %v1216_v26 = vsel %vm1073_vm11, %v1215_v25, -inf  ;;  %v1272_v27 = vadd.f32 %v1271_v13, %v4394_v8 }
 0x5ce   : > { %1217 = vmax.xlane.f32.xlu2 %v1216_v26 }
 0x5cf   : > { %v1273_v29 = vsel %vm1073_vm11, %v1272_v27, -inf }
 0x5d0   : > { %v1212_v30 = vpop.f32.mrf.mxu3  ;;  %1274 = vmax.xlane.f32.xlu1 %v1273_v29 }
 0x5d2   : > { %v1269_v32 = vpop.f32.mrf.mxu0 }
 0x5d4   : > { %1111 = vrot.lane.b32.xlu0 %v1110_v31, %s4027_s7 }
 0x5e9   : > { %1171 = vrot.lane.b32.xlu1 %v1110_v31, %s4028_s27 }
 0x631   : > { %v1098_v33 = vpop.xlane.xlu1 %1097 }
 0x632   : > { %v1099_v34 = vsub.f32 %v1095_v14, %v1098_v33 }
 0x633   : > { %v1161_v35 = vpop.xlane.xlu0 %1160 }
 0x634   : > { %v1100_v36 = vmul.f32 1.442695, %v1099_v34  ;;  %v1162_v38 = vsub.f32 %v1158_v16, %v1161_v35  ;;  %v3436_v34 = vld [vmem:[%s4761_s10 + $0x8] sm:$0xff]  ;;  %v3435_v35 = vld [vmem:[%s4761_s10] sm:$0xff] }
 0x635   : > { %1355 = vmatpush.bf16.msrb.mxu3 %v3436_v34 }
 0x636   : > { %3604 = vpow2.f32 %v1100_v36  ;;  %v1163_v39 = vmul.f32 1.442695, %v1162_v38 }
 0x638   : > { %3606 = vpow2.f32 %v1163_v39 }
 0x639   : > { %1356 = vmatpush.bf16.msrb.mxu3 %v3435_v35  ;;  %v4476_v35 = vld [vmem:[#allocation8] ss:$0 sm:$0xff] }
 0x63c   : > { %v3605_v40 = vpop.eup %3604 }
 0x63d   : > { %v1102_v41 = vsel %vm1073_vm11, %v3605_v40, 0.0 }
 0x63e   : > { %v3607_v42 = vpop.eup %3606  ;;  %1103 = vadd.xlane.f32.xlu0 %v1102_v41 }
 0x63f   : > { %v1165_v43 = vsel %vm1073_vm11, %v3607_v42, 0.0 }
 0x640   : > { %1166 = vadd.xlane.f32.xlu1 %v1165_v43 }
 0x641   : > { %v1218_v44 = vpop.xlane.xlu2 %1217 }
 0x642   : > { %v1219_v45 = vsub.f32 %v1215_v25, %v1218_v44 }
 0x643   : > { %v1275_v46 = vpop.xlane.xlu1 %1274 }
 0x644   : > { %v1220_v47 = vmul.f32 1.442695, %v1219_v45  ;;  %v1276_v49 = vsub.f32 %v1272_v27, %v1275_v46 }
 0x646   : > { %3608 = vpow2.f32 %v1220_v47  ;;  %v1277_v50 = vmul.f32 1.442695, %v1276_v49  ;;  %v1112_v51 = vpop.permute.xlu0 %1111 }
 0x647   : > { %v1117_v52 = vsel %vm1077_vm10, %v1112_v51, 0 }
 0x648   : > { %3610 = vpow2.f32 %v1277_v50  ;;  %1126 = vmatpush.bf16.msra.mxu2 %v1117_v52 }
 0x64c   : > { %v3609_v53 = vpop.eup %3608 }
 0x64d   : > { %v1222_v10 = vsel %vm1073_vm11, %v3609_v53, 0.0 }
 0x64e   : > { %v3611_v54 = vpop.eup %3610  ;;  %1223 = vadd.xlane.f32.xlu0 %v1222_v10  ;;  %v3438_v10 = vld [vmem:[%s4759_s8 + $0x18] sm:$0xff] }
 0x64f   : > { %v1279_v55 = vsel %vm1073_vm11, %v3611_v54, 0.0 }
 0x650   : > { %1280 = vadd.xlane.f32.xlu1 %v1279_v55 }
 0x65b   : > { %v1172_v56 = vpop.permute.xlu1 %1171 }
 0x65c   : > { %v1177_v57 = vsel %vm1077_vm10, %v1172_v56, 0 }
 0x65d   : > { %1186 = vmatpush.bf16.msrb.mxu1 %v1177_v57  ;;  %v3439_v57 = vld [vmem:[%s4760_s9 + $0x10] sm:$0xff] }
 0x662   : > { %1228 = vrot.lane.b32.xlu0 %v1110_v31, %s4780_s25 }
 0x669   : > { %1285 = vrot.lane.b32.xlu1 %v1110_v31, %s4779_s14 }
 0x6b1   : > { %v1104_v58 = vpop.xlane.xlu0 %1103 }
 0x6b2   : > { %3612 = vrcp.f32 %v1104_v58  ;;  %v966_v58 = vld [vmem:[%s538_s17] sm:$0xff]  ;;  %s4807_s17 = smov 24  }
 0x6b3   : > { %v1167_v59 = vpop.xlane.xlu1 %1166 }
 0x6b4   : > { %3614 = vrcp.f32 %v1167_v59 }
 0x6b8   : > { %v3613_v60 = vpop.eup %3612 }
 0x6b9   : > { %v1106_v61 = vmul.f32 %v3613_v60, %v3605_v40  ;;  %v4452_v60 = vpack.c.bf16 %v966_v58, %v966_v58 }
 0x6ba   : > { %v3615_v62 = vpop.eup %3614 }
 0x6bb   : > { %v1107_v63 = vpack.c.bf16 %v1106_v61, %v1106_v61  ;;  %v1169_v0 = vmul.f32 %v3615_v62, %v3607_v42 }
 0x6bd   : > { %v1170_v1 = vpack.c.bf16 %v1169_v0, %v1169_v0  ;;  %3192 = vmatmul.msk.bf16.vlgmr.msra.gmra.mxu2 %vm1073_vm11, %v1107_v63 }
 0x6bf   : > { %3194 = vmatmul.msk.bf16.vlgmr.msrb.gmra.mxu1 %vm1073_vm11, %v1170_v1 }
 0x6c1   : > { %v1224_v2 = vpop.xlane.xlu0 %1223 }
 0x6c2   : > { %3616 = vrcp.f32 %v1224_v2  ;;  %v4456_v2 = vld [vmem:[#allocation13 + $0x10] sm:$0xff] }
 0x6c3   : > { %v1281_v3 = vpop.xlane.xlu1 %1280 }
 0x6c4   : > { %3618 = vrcp.f32 %v1281_v3 }
 0x6c8   : > { %v3617_v4 = vpop.eup %3616 }
 0x6c9   : > { %v1226_v5 = vmul.f32 %v3617_v4, %v3609_v53  ;;  %v1385_v4 = vperm.slane %v4371_v37, 7 }
 0x6ca   : > { %v3619_v9 = vpop.eup %3618 }
 0x6cb   : > { %v1227_v11 = vpack.c.bf16 %v1226_v5, %v1226_v5  ;;  %v1283_v12 = vmul.f32 %v3619_v9, %v3611_v54  ;;  %v3440_v54 = vld [vmem:[%s4760_s9 + $0x18] sm:$0xff] }
 0x6cc   : > { %1449 = vmatpush.bf16.msrb.mxu0 %v3440_v54 }
 0x6cd   : > { %v1284_v16 = vpack.c.bf16 %v1283_v12, %v1283_v12 }
 0x6d0   : > { %1450 = vmatpush.bf16.msrb.mxu0 %v3439_v57 }
 0x6d3   : > { %3233 = vmatmul.msk.bf16.vlgmr.msrb.gmra.mxu0 %vm673_vm2, %v4452_v60 }
 0x6d4   : > { %v1229_v6 = vpop.permute.xlu0 %1228 }
 0x6d5   : > { %v1234_v7 = vsel %vm1077_vm10, %v1229_v6, 0  ;;  %v1387_v6 = vperm.slane %v4456_v2, 0 }
 0x6d6   : > { %1243 = vmatpush.bf16.msrb.mxu2 %v1234_v7 }
 0x6d9   : > { %3196 = vmatmul.msk.bf16.vlgmr.msrb.gmra.mxu2 %vm1073_vm11, %v1227_v11 }
 0x6da   : > { %1416 = vmatpush.bf16.msra.mxu2 %v3438_v10 }
 0x6db   : > { %v1286_v14 = vpop.permute.xlu1 %1285 }
 0x6dc   : > { %v1291_v15 = vsel %vm1077_vm10, %v1286_v14, 0 }
 0x6dd   : > { %1300 = vmatpush.bf16.msra.mxu1 %v1291_v15 }
 0x6e0   : > { %3198 = vmatmul.msk.bf16.vlgmr.msra.gmra.mxu1 %vm1073_vm11, %v1284_v16 }
 0x73c   : > { %v1188_v17 = vpop.f32.mrf.mxu1 }
 0x73d   : > { %v1192_v18 = vpack.c.bf16 %v1188_v17, %v1188_v17 }
 0x73f   : > { %v1308_v19 = vunpack.c.l.b16 %v1192_v18 }
 0x740   : > { %v1128_v21 = vpop.f32.mrf.mxu2 }
 0x741   : > { %v1309_v22 = vpack.c.b16 %v1308_v19, %v1308_v19  ;;  %v1132_v38 = vpack.c.bf16 %v1128_v21, %v1128_v21 }
 0x743   : > { %1310 = vrot.lane.b32.xlu0 %v1309_v22, %s4777_s23 }
 0x744   : > { %v1190_v23 = vpop.f32.mrf.mxu1 }
 0x748   : > { %v1130_v24 = vpop.f32.mrf.mxu2 }
 0x750   : > { %v1452_v14 = vpop.f32.mrf.mxu0 }
 0x758   : > { %v1454_v15 = vpop.f32.mrf.mxu0 }
 0x75c   : > { %v1245_v13 = vpop.f32.mrf.mxu2 }
 0x75d   : > { %v1249_v25 = vpack.c.bf16 %v1245_v13, %v1245_v13  ;;  %v1302_v26 = vpop.f32.mrf.mxu1 }
 0x75e   : > { %v1306_v27 = vpack.c.bf16 %v1302_v26, %v1302_v26 }
 0x75f   : > { %v1313_v28 = vunpack.c.l.b16 %v1249_v25 }
 0x760   : > { %v1318_v29 = vunpack.c.l.b16 %v1306_v27 }
 0x761   : > { %v1314_v30 = vpack.c.b16 %v1313_v28, %v1313_v28 }
 0x762   : > { %v1319_v31 = vpack.c.b16 %v1318_v29, %v1318_v29 }
 0x763   : > { %1315 = vrot.lane.b32.xlu0 %v1314_v30, %s4775_s19 }
 0x764   : > { %v1247_v32 = vpop.f32.mrf.mxu2  ;;  %1320 = vrot.lane.b32.xlu1 %v1319_v31, %s4773_s12 }
 0x765   : > { %v1304_v33 = vpop.f32.mrf.mxu1 }
 0x7b5   : > { %v1311_v36 = vpop.permute.xlu0 %1310 }
 0x7b6   : > { %v1324_v39 = vsel %vm1073_vm11, %v1132_v38, %v1311_v36 }
 0x7d5   : > { %v1316_v40 = vpop.permute.xlu0 %1315 }
 0x7d6   : > { %v1327_v41 = vsel %vm1325_vm12, %v1324_v39, %v1316_v40  ;;  %v1321_v42 = vpop.permute.xlu1 %1320 }
 0x7d7   : > { %v1330_v43 = vsel %vm1328_vm13, %v1327_v41, %v1321_v42 }
 0x7d8   : > { %3207 = vmatmul.msk.bf16.vlgmr.msrb.gmra.mxu3 %vm673_vm2, %v1330_v43 }
 0x85b   : > { %v1358_v44 = vpop.f32.mrf.mxu3 }
 0x85c   : > { %v1362_v45 = vadd.f32 %v1358_v44, %v4377_v48  ;;  %v3437_v48 = vld [vmem:[%s4759_s8 + $0x10] sm:$0xff]  ;;  %v1493_v44 = vpack.c.bf16 %v1452_v14, %v1452_v14 }
 0x85d   : > { %1417 = vmatpush.bf16.msra.mxu2 %v3437_v48 }
 0x85e   : > { %v1363_v46 = vsel %vm673_vm2, %v1362_v45, 0.0 }
 0x85f   : > { %1364 = vadd.xlane.f32.xlu0 %v1363_v46 }
 0x863   : > { %v1360_v47 = vpop.f32.mrf.mxu3 }
 0x8d2   : > { %v1365_v49 = vpop.xlane.xlu0 %1364 }
 0x8d3   : > { %v1366_v50 = vmul.f32 %v1365_v49, %v4354_v20 }
 0x8d5   : > { %v1367_v51 = vsub.f32 %v1362_v45, %v1366_v50 }
 0x8d7   : > { %v1368_v52 = vmul.f32 %v1367_v51, %v1367_v51 }
 0x8d9   : > { %v1369_v53 = vsel %vm673_vm2, %v1368_v52, 0.0 }
 0x8da   : > { %1370 = vadd.xlane.f32.xlu1 %v1369_v53 }
 0x94d   : > { %v1371_v55 = vpop.xlane.xlu1 %1370 }
 0x94e   : > { %v1372_v56 = vmul.f32 %v1371_v55, %v4354_v20 }
 0x950   : > { %v1373_v59 = vadd.f32 1e-06, %v1372_v56 }
 0x952   : > { %3620 = vrsqrt.f32 %v1373_v59  ;;  %vm1380_vm15 = vweird.f32 %v1373_v59 }
 0x958   : > { %v3621_v61 = vpop.eup %3620 }
 0x959   : > { %v1375_v62 = vmul.f32 %v3621_v61, %v1373_v59  ;;  %vm1381_vm14 = vweird.f32 %v3621_v61 }
 0x95a   : > { %vm1382_vm0 = vmor %vm1380_vm15, %vm1381_vm14 }
 0x95b   : > { %v1376_v63 = vmul.f32 %v3621_v61, %v1375_v62 }
 0x95d   : > { %v1377_v0 = vmul.f32 0.5, %v1376_v63 }
 0x95f   : > { %v1378_v1 = vsub.f32 1.5, %v1377_v0 }
 0x961   : > { %v1379_v3 = vmul.f32 %v3621_v61, %v1378_v1 }
 0x963   : > { %v1383_v5 = vsel %vm1382_vm0, %v3621_v61, %v1379_v3 }
 0x964   : > { %v1384_v7 = vmul.f32 %v1383_v5, %v1367_v51  ;;  %v1528_v51 = vunpack.c.l.b16 %v1493_v44 }
 0x966   : > { %v1386_v9 = vmul.f32 %v1385_v4, %v1384_v7  ;;  %v1529_v10 = vpack.c.b16 %v1528_v51, %v1528_v51 }
 0x968   : > { %v4460_v11 = vadd.f32 %v1387_v6, %v1386_v9 }
 0x96a   : > { %v1389_v12 = vpack.c.bf16 %v4460_v11, %v4460_v11 }
 0x96c   : > { %3220 = vmatmul.msk.bf16.vlgmr.msra.gmra.mxu2 %vm673_vm2, %v1389_v12 }
 0x9ef   : > { %v1419_v16 = vpop.f32.mrf.mxu2 }
 0x9f0   : > { %v1456_v17 = vpack.c.bf16 %v1419_v16, %v1419_v16 }
 0x9f2   : > { %v1553_v18 = vunpack.c.l.b16 %v1456_v17 }
 0x9f4   : > { %v1554_v19 = vpack.c.b16 %v1553_v18, %v1553_v18 }
 0x9f6   : > { %1669 = vrot.lane.b32.xlu1 %v1554_v19, %s4026_s2  ;;  %1612 = vrot.lane.b32.xlu0 %v1554_v19, %s4024_s13 }
 0x9f7   : > { %1555 = vrot.lane.b32.xlu2 %v1554_v19, %s4025_s26  ;;  %v1421_v37 = vpop.f32.mrf.mxu2 }
 0xa1d   : > { %1457 = vxpose.xlu2.b32.start.end [1/1] (short) (narrow) %v1452_v14, 32 }
 0xa51   : > { %v1556_v21 = vpop.permute.xlu2 %1555 }
 0xa68   : > { %v1613_v30 = vpop.permute.xlu0 %1612  ;;  %v1670_v34 = vpop.permute.xlu1 %1669 }
 0xab6   : > { %v1473_v22 = vpop.trf.xlu2 }
 0xab7   : > { %v1489_v23 = vpack.c.bf16 %v1473_v22, %v1473_v22 }
 0xab9   : > { %v1498_v24 = vsel %vm1077_vm10, %v1489_v23, 0 }
 0xaba   : > { %1507 = vmatpush.bf16.msrb.mxu1 %v1498_v24 }
 0xabd   : > { %3234 = vmatmul.msk.bf16.vlgmr.msrb.gmra.mxu1 %vm1073_vm11, %v1456_v17 }
 0xabe   : > { %v1474_v13 = vpop.trf.xlu2 }
 0xabf   : > { %v1490_v25 = vpack.c.bf16 %v1474_v13, %v1474_v13 }
 0xac1   : > { %v1561_v26 = vsel %vm1077_vm10, %v1490_v25, 0 }
 0xac2   : > { %1570 = vmatpush.bf16.msrb.mxu2 %v1561_v26 }
 0xac5   : > { %3236 = vmatmul.msk.bf16.vlgmr.msrb.gmra.mxu2 %vm1073_vm11, %v1556_v21 }
 0xac6   : > { %v1475_v27 = vpop.trf.xlu2 }
 0xac7   : > { %v1491_v28 = vpack.c.bf16 %v1475_v27, %v1475_v27 }
 0xac9   : > { %v1618_v29 = vsel %vm1077_vm10, %v1491_v28, 0 }
 0xaca   : > { %1627 = vmatpush.bf16.msra.mxu1 %v1618_v29 }
 0xacd   : > { %3238 = vmatmul.msk.bf16.vlgmr.msra.gmra.mxu1 %vm1073_vm11, %v1613_v30 }
 0xace   : > { %v1476_v31 = vpop.trf.xlu2 }
 0xacf   : > { %v1492_v32 = vpack.c.bf16 %v1476_v31, %v1476_v31 }
 0xad1   : > { %v1675_v33 = vsel %vm1077_vm10, %v1492_v32, 0 }
 0xad2   : > { %1684 = vmatpush.bf16.msra.mxu2 %v1675_v33 }
 0xad5   : > { %3240 = vmatmul.msk.bf16.vlgmr.msra.gmra.mxu2 %vm1073_vm11, %v1670_v34 }
 0xb3a   : > { %v1509_v36 = vpop.f32.mrf.mxu1 }
 0xb3b   : > { %v1513_v38 = vmul.f32 0.35355338, %v1509_v36 }
 0xb3d   : > { %v1514_v39 = vadd.f32 %v4476_v35, %v1513_v38 }
 0xb3f   : > { %v1515_v40 = vsel %vm1073_vm11, %v1514_v39, -inf }
 0xb40   : > { %1516 = vmax.xlane.f32.xlu0 %v1515_v40 }
 0xb42   : > { %v1511_v41 = vpop.f32.mrf.mxu1 }
 0xb48   : > { %v1572_v42 = vpop.f32.mrf.mxu2 }
 0xb49   : > { %v1576_v43 = vmul.f32 0.35355338, %v1572_v42 }
 0xb4a   : > { %v1629_v45 = vpop.f32.mrf.mxu1 }
 0xb4b   : > { %v1633_v46 = vmul.f32 0.35355338, %v1629_v45  ;;  %v1577_v47 = vadd.f32 %v4476_v35, %v1576_v43 }
 0xb4d   : > { %v1578_v49 = vsel %vm1073_vm11, %v1577_v47, -inf  ;;  %v1634_v50 = vadd.f32 %v4476_v35, %v1633_v46 }
 0xb4e   : > { %1579 = vmax.xlane.f32.xlu1 %v1578_v49 }
 0xb4f   : > { %v1635_v52 = vsel %vm1073_vm11, %v1634_v50, -inf }
 0xb50   : > { %v1574_v53 = vpop.f32.mrf.mxu2  ;;  %1636 = vmax.xlane.f32.xlu2 %v1635_v52 }
 0xb52   : > { %v1631_v48 = vpop.f32.mrf.mxu1 }
 0xb54   : > { %1590 = vrot.lane.b32.xlu0 %v1529_v10, %s4028_s27 }
 0xb58   : > { %v1686_v54 = vpop.f32.mrf.mxu2 }
 0xb59   : > { %v1690_v56 = vmul.f32 0.35355338, %v1686_v54 }
 0xb5b   : > { %v1691_v57 = vadd.f32 %v4476_v35, %v1690_v56 }
 0xb5d   : > { %v1692_v58 = vsel %vm1073_vm11, %v1691_v57, -inf }
 0xb60   : > { %v1688_v55 = vpop.f32.mrf.mxu2 }
 0xb67   : > { %1530 = vrot.lane.b32.xlu1 %v1529_v10, %s4027_s7 }
 0xb7e   : > { %1693 = vmax.xlane.f32.xlu0 %v1692_v58 }
 0xbb3   : > { %v1517_v59 = vpop.xlane.xlu0 %1516 }
 0xbb4   : > { %v1518_v61 = vsub.f32 %v1514_v39, %v1517_v59 }
 0xbb6   : > { %v1519_v62 = vmul.f32 1.442695, %v1518_v61 }
 0xbb8   : > { %3622 = vpow2.f32 %v1519_v62 }
 0xbbe   : > { %v3623_v63 = vpop.eup %3622 }
 0xbbf   : > { %v1521_v0 = vsel %vm1073_vm11, %v3623_v63, 0.0 }
 0xbc0   : > { %1522 = vadd.xlane.f32.xlu1 %v1521_v0  ;;  %v3441_v0 = vld [vmem:[%s4761_s10 + $0x10] sm:$0xff] }
 0xbc1   : > { %v1580_v1 = vpop.xlane.xlu1 %1579 }
 0xbc2   : > { %v1581_v5 = vsub.f32 %v1577_v47, %v1580_v1 }
 0xbc3   : > { %v1637_v3 = vpop.xlane.xlu2 %1636 }
 0xbc4   : > { %v1638_v4 = vsub.f32 %v1634_v50, %v1637_v3  ;;  %v1582_v12 = vmul.f32 1.442695, %v1581_v5 }
 0xbc6   : > { %v1639_v6 = vmul.f32 1.442695, %v1638_v4  ;;  %v1591_v7 = vpop.permute.xlu0 %1590 }
 0xbc7   : > { %v1596_v9 = vsel %vm1077_vm10, %v1591_v7, 0 }
 0xbc8   : > { %3624 = vpow2.f32 %v1639_v6  ;;  %1605 = vmatpush.bf16.msra.mxu0 %v1596_v9 }
 0xbc9   : > { %3626 = vpow2.f32 %v1582_v12 }
 0xbce   : > { %v3625_v14 = vpop.eup %3624 }
 0xbcf   : > { %v1641_v15 = vsel %vm1073_vm11, %v3625_v14, 0.0  ;;  %v3627_v16 = vpop.eup %3626 }
 0xbd0   : > { %1642 = vadd.xlane.f32.xlu0 %v1641_v15  ;;  %v1584_v17 = vsel %vm1073_vm11, %v3627_v16, 0.0 }
 0xbd8   : > { %1585 = vadd.xlane.f32.xlu0 %v1584_v17 }
 0xbd9   : > { %v1531_v18 = vpop.permute.xlu1 %1530 }
 0xbda   : > { %v1536_v19 = vsel %vm1077_vm10, %v1531_v18, 0 }
 0xbdb   : > { %1545 = vmatpush.bf16.msra.mxu3 %v1536_v19 }
 0xbec   : > { %1647 = vrot.lane.b32.xlu0 %v1529_v10, %s4780_s25 }
 0xbf1   : > { %v1694_v37 = vpop.xlane.xlu0 %1693 }
 0xbf2   : > { %v1695_v21 = vsub.f32 %v1691_v57, %v1694_v37 }
 0xbf4   : > { %v1696_v22 = vmul.f32 1.442695, %v1695_v21 }
 0xbf6   : > { %3628 = vpow2.f32 %v1696_v22  ;;  %v3444_v22 = vld [vmem:[#allocation14 + $0x8] sm:$0xff] }
 0xbfc   : > { %v3629_v23 = vpop.eup %3628 }
 0xbfd   : > { %v1698_v24 = vsel %vm1073_vm11, %v3629_v23, 0.0 }
 0xbfe   : > { %1699 = vadd.xlane.f32.xlu1 %v1698_v24 }
 0xc17   : > { %1704 = vrot.lane.b32.xlu1 %v1529_v10, %s4779_s14 }
 0xc33   : > { %v1523_v13 = vpop.xlane.xlu1 %1522 }
 0xc34   : > { %3630 = vrcp.f32 %v1523_v13 }
 0xc3a   : > { %v3631_v25 = vpop.eup %3630 }
 0xc3b   : > { %v1525_v26 = vmul.f32 %v3631_v25, %v3623_v63  ;;  %v3442_v63 = vld [vmem:[%s4761_s10 + $0x18] sm:$0xff]  ;;  %v3447_v25 = vld [vmem:[%s4809_s24 + $0x10] sm:$0xff] }
 0xc3c   : > { %1773 = vmatpush.bf16.msrb.mxu1 %v3442_v63  ;;  %v3449_v63 = vld [vmem:[%s4759_s8 + $0x20] sm:$0xff] }
 0xc3d   : > { %v1526_v27 = vpack.c.bf16 %v1525_v26, %v1525_v26 }
 0xc3f   : > { %3235 = vmatmul.msk.bf16.vlgmr.msra.gmra.mxu3 %vm1073_vm11, %v1526_v27 }
 0xc40   : > { %1774 = vmatpush.bf16.msrb.mxu1 %v3441_v0  ;;  %v3451_v0 = vld [vmem:[%s4760_s9 + $0x20] sm:$0xff] }
 0xc43   : > { %v1643_v28 = vpop.xlane.xlu0 %1642 }
 0xc4b   : > { %v1586_v29 = vpop.xlane.xlu0 %1585 }
 0xc4c   : > { %3632 = vrcp.f32 %v1586_v29 }
 0xc4d   : > { %3634 = vrcp.f32 %v1643_v28 }
 0xc52   : > { %v3633_v30 = vpop.eup %3632 }
 0xc53   : > { %v1588_v31 = vmul.f32 %v3633_v30, %v3627_v16  ;;  %v3635_v33 = vpop.eup %3634 }
 0xc54   : > { %v1645_v34 = vmul.f32 %v3635_v33, %v3625_v14  ;;  %v1803_v33 = vperm.slane %v4456_v2, 1 }
 0xc55   : > { %v1589_v32 = vpack.c.bf16 %v1588_v31, %v1588_v31 }
 0xc56   : > { %v1646_v39 = vpack.c.bf16 %v1645_v34, %v1645_v34 }
 0xc57   : > { %3237 = vmatmul.msk.bf16.vlgmr.msra.gmra.mxu0 %vm1073_vm11, %v1589_v32 }
 0xc5e   : > { %v1648_v36 = vpop.permute.xlu0 %1647 }
 0xc5f   : > { %v1653_v38 = vsel %vm1077_vm10, %v1648_v36, 0  ;;  %v1805_v36 = vperm.slane %v4456_v2, 2 }
 0xc60   : > { %1662 = vmatpush.bf16.msrb.mxu3 %v1653_v38 }
 0xc63   : > { %3239 = vmatmul.msk.bf16.vlgmr.msrb.gmra.mxu3 %vm1073_vm11, %v1646_v39 }
 0xc64   : > { %1837 = vmatpush.bf16.msra.mxu3 %v3444_v22 }
 0xc71   : > { %v1700_v40 = vpop.xlane.xlu1 %1699 }
 0xc72   : > { %3636 = vrcp.f32 %v1700_v40 }
 0xc78   : > { %v3637_v41 = vpop.eup %3636 }
 0xc79   : > { %v1702_v42 = vmul.f32 %v3637_v41, %v3629_v23  ;;  %v3443_v23 = vld [vmem:[#allocation14] sm:$0xff] }
 0xc7a   : > { %1838 = vmatpush.bf16.msra.mxu3 %v3443_v23 }
 0xc7b   : > { %v1703_v45 = vpack.c.bf16 %v1702_v42, %v1702_v42  ;;  %v3446_v42 = vld [vmem:[%s4809_s24 + $0x8] sm:$0xff] }
 0xc89   : > { %v1705_v43 = vpop.permute.xlu1 %1704 }
 0xc8a   : > { %v1710_v44 = vsel %vm1077_vm10, %v1705_v43, 0  ;;  %v3445_v43 = vld [vmem:[%s4809_s24] sm:$0xff] }
 0xc8b   : > { %1719 = vmatpush.bf16.msrb.mxu0 %v1710_v44  ;;  %v3598_v44 = vld [vmem:[%s4810_s16] ss:$0 sm:$0xff] }
 0xc8e   : > { %3241 = vmatmul.msk.bf16.vlgmr.msrb.gmra.mxu0 %vm1073_vm11, %v1703_v45 }
 0xcc2   : > { %v1547_v46 = vpop.f32.mrf.mxu3 }
 0xcc3   : > { %v1551_v3 = vpack.c.bf16 %v1547_v46, %v1547_v46 }
 0xcca   : > { %v1549_v47 = vpop.f32.mrf.mxu3 }
 0xcd4   : > { %v1607_v49 = vpop.f32.mrf.mxu0 }
 0xcd5   : > { %v1611_v50 = vpack.c.bf16 %v1607_v49, %v1607_v49 }
 0xcd7   : > { %v1727_v51 = vunpack.c.l.b16 %v1611_v50 }
 0xcd9   : > { %v1728_v52 = vpack.c.b16 %v1727_v51, %v1727_v51  ;;  %v1854_v51 = vperm.slane %v4456_v2, 3 }
 0xcdb   : > { %1729 = vrot.lane.b32.xlu0 %v1728_v52, %s4777_s23  ;;  %s4812_s23 = smov 8  }
 0xcdc   : > { %v1609_v53 = vpop.f32.mrf.mxu0 }
 0xce6   : > { %v1664_v10 = vpop.f32.mrf.mxu3 }
 0xce7   : > { %v1668_v48 = vpack.c.bf16 %v1664_v10, %v1664_v10 }
 0xce9   : > { %v1732_v54 = vunpack.c.l.b16 %v1668_v48 }
 0xceb   : > { %v1733_v55 = vpack.c.b16 %v1732_v54, %v1732_v54 }
 0xced   : > { %1734 = vrot.lane.b32.xlu0 %v1733_v55, %s4775_s19  ;;  %s4811_s19 = smov %s4810_s16 }
 0xcee   : > { %v1666_v56 = vpop.f32.mrf.mxu3 }
 0xd0b   : > { %v1721_v57 = vpop.f32.mrf.mxu0 }
 0xd0c   : > { %v1725_v58 = vpack.c.bf16 %v1721_v57, %v1721_v57 }
 0xd0e   : > { %v1737_v59 = vunpack.c.l.b16 %v1725_v58 }
 0xd10   : > { %v1738_v61 = vpack.c.b16 %v1737_v59, %v1737_v59 }
 0xd12   : > { %1739 = vrot.lane.b32.xlu1 %v1738_v61, %s4807_s17  ;;  %v3450_v61 = vld [vmem:[%s4759_s8 + $0x28] sm:$0xff] }
 0xd13   : > { %v1723_v62 = vpop.f32.mrf.mxu0  ;;  %1949 = vmatpush.bf16.msra.mxu0 %v3450_v61 }
 0xd14   : > { %v3452_v62 = vld [vmem:[%s4760_s9 + $0x28] sm:$0xff] }
 0xd15   : > { %1979 = vmatpush.bf16.msra.mxu1 %v3452_v62 }
 0xd17   : > { %1950 = vmatpush.bf16.msra.mxu0 %v3449_v63 }
 0xd19   : > { %1980 = vmatpush.bf16.msra.mxu1 %v3451_v0 }
 0xd4d   : > { %v1730_v1 = vpop.permute.xlu0 %1729 }
 0xd4e   : > { %v1743_v5 = vsel %vm1073_vm11, %v1551_v3, %v1730_v1 }
 0xd5f   : > { %v1735_v4 = vpop.permute.xlu0 %1734 }
 0xd60   : > { %v1745_v6 = vsel %vm1325_vm12, %v1743_v5, %v1735_v4 }
 0xd84   : > { %v1740_v7 = vpop.permute.xlu1 %1739 }
 0xd85   : > { %v1747_v9 = vsel %vm1328_vm13, %v1745_v6, %v1740_v7 }
 0xd86   : > { %3254 = vmatmul.msk.bf16.vlgmr.msrb.gmra.mxu1 %vm673_vm2, %v1747_v9 }
 0xe03   : > { %v1776_v12 = vpop.f32.mrf.mxu1 }
 0xe04   : > { %v1780_v14 = vadd.f32 %v1776_v12, %v4460_v11  ;;  %v3448_v11 = vld [vmem:[%s4808_s15 + $0x18] sm:$0xff] }
 0xe05   : > { %1886 = vmatpush.bf16.msrb.mxu2 %v3448_v11 }
 0xe06   : > { %v1781_v15 = vsel %vm673_vm2, %v1780_v14, 0.0 }
 0xe07   : > { %1782 = vadd.xlane.f32.xlu2 %v1781_v15  ;;  %v1918_v15 = vperm.slane %v4456_v2, 4 }
 0xe09   : > { %1887 = vmatpush.bf16.msrb.mxu2 %v3447_v25 }
 0xe0b   : > { %v1778_v16 = vpop.f32.mrf.mxu1 }
 0xe0d   : > { %1888 = vmatpush.bf16.msrb.mxu2 %v3446_v42 }
 0xe11   : > { %1889 = vmatpush.bf16.msrb.mxu2 %v3445_v43 }
 0xe7a   : > { %v1783_v17 = vpop.xlane.xlu2 %1782 }
 0xe7b   : > { %v1784_v18 = vmul.f32 %v1783_v17, %v4354_v20  ;;  %v1920_v17 = vperm.slane %v4456_v2, 5 }
 0xe7d   : > { %v1785_v19 = vsub.f32 %v1780_v14, %v1784_v18 }
 0xe7f   : > { %v1786_v37 = vmul.f32 %v1785_v19, %v1785_v19 }
 0xe81   : > { %v1787_v21 = vsel %vm673_vm2, %v1786_v37, 0.0 }
 0xe82   : > { %1788 = vadd.xlane.f32.xlu0 %v1787_v21 }
 0xef5   : > { %v1789_v24 = vpop.xlane.xlu0 %1788 }
 0xef6   : > { %v1790_v13 = vmul.f32 %v1789_v24, %v4354_v20 }
 0xef8   : > { %v1791_v26 = vadd.f32 1e-06, %v1790_v13 }
 0xefa   : > { %3638 = vrsqrt.f32 %v1791_v26  ;;  %vm1798_vm4 = vweird.f32 %v1791_v26 }
 0xf00   : > { %v3639_v27 = vpop.eup %3638 }
 0xf01   : > { %v1793_v28 = vmul.f32 %v3639_v27, %v1791_v26  ;;  %vm1799_vm1 = vweird.f32 %v3639_v27 }
 0xf02   : > { %vm1800_vm5 = vmor %vm1798_vm4, %vm1799_vm1 }
 0xf03   : > { %v1794_v29 = vmul.f32 %v3639_v27, %v1793_v28 }
 0xf05   : > { %v1795_v30 = vmul.f32 0.5, %v1794_v29 }
 0xf07   : > { %v1796_v31 = vsub.f32 1.5, %v1795_v30 }
 0xf09   : > { %v1797_v32 = vmul.f32 %v3639_v27, %v1796_v31 }
 0xf0b   : > { %v1801_v34 = vsel %vm1800_vm5, %v3639_v27, %v1797_v32 }
 0xf0c   : > { %v1802_v38 = vmul.f32 %v1801_v34, %v1785_v19 }
 0xf0e   : > { %v1804_v39 = vmul.f32 %v1803_v33, %v1802_v38 }
 0xf10   : > { %v1806_v40 = vadd.f32 %v1805_v36, %v1804_v39 }
 0xf12   : > { %v1807_v41 = vpack.c.bf16 %v1806_v40, %v1806_v40 }
 0xf14   : > { %3263 = vmatmul.msk.bf16.vlgmr.msra.gmra.mxu3 %vm673_vm2, %v1807_v41 }
 0xf97   : > { %v1840_v45 = vpop.f32.mrf.mxu3 }
 0xf98   : > { %v1841_v46 = vadd.f32 %v3598_v44, %v1840_v45 }
 0xf9a   : > { %v1844_v47 = vmax.f32 %v1841_v46, 0.0 }
 0xf9c   : > { %v1845_v49 = vpack.c.bf16 %v1844_v47, %v1844_v47 }
 0xf9e   : > { %3280 = vmatmul.msk.bf16.vlgmr.msrb.gmra.mxu2 %vm724_vm3, %v1845_v49 }
 0xf9f   : > { %v1842_v50 = vpop.f32.mrf.mxu3 }
0x1021   : > { %v1891_v52 = vpop.f32.mrf.mxu2 }
0x1022   : > { %v1892_v53 = vadd.f32 %v1891_v52, %v1854_v51 }
0x1024   : > { %v1895_v10 = vadd.f32 %v1892_v53, %v1806_v40 }
0x1026   : > { %v1896_v48 = vsel %vm673_vm2, %v1895_v10, 0.0 }
0x1027   : > { %1897 = vadd.xlane.f32.xlu1 %v1896_v48 }
0x1029   : > { %v1893_v54 = vpop.f32.mrf.mxu2 }
0x109a   : > { %v1898_v55 = vpop.xlane.xlu1 %1897 }
0x109b   : > { %v1899_v56 = vmul.f32 %v1898_v55, %v4354_v20 }
0x109d   : > { %v1900_v57 = vsub.f32 %v1895_v10, %v1899_v56 }
0x109f   : > { %v1901_v58 = vmul.f32 %v1900_v57, %v1900_v57 }
0x10a1   : > { %v1902_v59 = vsel %vm673_vm2, %v1901_v58, 0.0 }
0x10a2   : > { %1903 = vadd.xlane.f32.xlu2 %v1902_v59 }
0x1115   : > { %v1904_v1 = vpop.xlane.xlu2 %1903 }
0x1116   : > { %v1905_v3 = vmul.f32 %v1904_v1, %v4354_v20 }
0x1118   : > { %v1906_v4 = vadd.f32 1e-06, %v1905_v3 }
0x111a   : > { %3640 = vrsqrt.f32 %v1906_v4  ;;  %vm1913_vm7 = vweird.f32 %v1906_v4 }
0x1120   : > { %v3641_v5 = vpop.eup %3640 }
0x1121   : > { %v1908_v6 = vmul.f32 %v3641_v5, %v1906_v4  ;;  %vm1914_vm6 = vweird.f32 %v3641_v5 }
0x1122   : > { %vm1915_vm8 = vmor %vm1913_vm7, %vm1914_vm6 }
0x1123   : > { %v1909_v7 = vmul.f32 %v3641_v5, %v1908_v6 }
0x1125   : > { %v1910_v9 = vmul.f32 0.5, %v1909_v7 }
0x1127   : > { %v1911_v12 = vsub.f32 1.5, %v1910_v9 }
0x1129   : > { %v1912_v14 = vmul.f32 %v3641_v5, %v1911_v12 }
0x112b   : > { %v1916_v16 = vsel %vm1915_vm8, %v3641_v5, %v1912_v14 }
0x112c   : > { %v1917_v18 = vmul.f32 %v1916_v16, %v1900_v57 }
0x112e   : > { %v1919_v19 = vmul.f32 %v1918_v15, %v1917_v18 }
0x1130   : > { %v4558_v37 = vadd.f32 %v1920_v17, %v1919_v19 }
0x1132   : > { %v1922_v21 = vpack.c.bf16 %v4558_v37, %v4558_v37 }
0x1134   : > { %3293 = vmatmul.msk.bf16.vlgmr.msra.gmra.mxu0 %vm673_vm2, %v1922_v21  ;;  %3306 = vmatmul.msk.bf16.vlgmr.msra.gmra.mxu1 %vm673_vm2, %v1922_v21 }
0x11b1   : > { %v1952_v22 = vpop.f32.mrf.mxu0  ;;  %v1982_v23 = vpop.f32.mrf.mxu1 }
0x11b2   : > { %v1986_v11 = vpack.c.bf16 %v1952_v22, %v1952_v22  ;;  %1987 = vxpose.xlu0.b32.start.end [1/1] (short) (narrow) %v1982_v23, 32  ;;  %v2023_v57 = vpack.c.bf16 %v1982_v23, %v1982_v23 }
0x11b4   : > { %v2083_v24 = vunpack.c.l.b16 %v1986_v11  ;;  %v2058_v59 = vunpack.c.l.b16 %v2023_v57 }
0x11b6   : > { %v2084_v13 = vpack.c.b16 %v2083_v24, %v2083_v24  ;;  %v2059_v63 = vpack.c.b16 %v2058_v59, %v2058_v59 }
0x11b8   : > { %2199 = vrot.lane.b32.xlu1 %v2084_v13, %s4026_s2  ;;  %2085 = vrot.lane.b32.xlu2 %v2084_v13, %s4025_s26 }
0x11b9   : > { %v1954_v25 = vpop.f32.mrf.mxu0  ;;  %v1984_v26 = vpop.f32.mrf.mxu1 }
0x11c0   : > { %2142 = vrot.lane.b32.xlu2 %v2084_v13, %s4024_s13 }
0x1212   : > { %v2086_v33 = vpop.permute.xlu2 %2085 }
0x121a   : > { %v2143_v39 = vpop.permute.xlu2 %2142 }
0x122a   : > { %v2200_v43 = vpop.permute.xlu1 %2199 }
0x1256   : > { %v2003_v27 = vpop.trf.xlu0 }
0x1257   : > { %v2019_v28 = vpack.c.bf16 %v2003_v27, %v2003_v27 }
0x1259   : > { %v2028_v29 = vsel %vm1077_vm10, %v2019_v28, 0 }
0x125a   : > { %2037 = vmatpush.bf16.msrb.mxu3 %v2028_v29 }
0x125d   : > { %3307 = vmatmul.msk.bf16.vlgmr.msrb.gmra.mxu3 %vm1073_vm11, %v1986_v11 }
0x125e   : > { %v2004_v30 = vpop.trf.xlu0 }
0x125f   : > { %v2020_v31 = vpack.c.bf16 %v2004_v30, %v2004_v30 }
0x1261   : > { %v2091_v32 = vsel %vm1077_vm10, %v2020_v31, 0 }
0x1262   : > { %2100 = vmatpush.bf16.msrb.mxu0 %v2091_v32 }
0x1265   : > { %3309 = vmatmul.msk.bf16.vlgmr.msrb.gmra.mxu0 %vm1073_vm11, %v2086_v33 }
0x1266   : > { %v2005_v34 = vpop.trf.xlu0 }
0x1267   : > { %v2021_v36 = vpack.c.bf16 %v2005_v34, %v2005_v34 }
0x1269   : > { %v2148_v38 = vsel %vm1077_vm10, %v2021_v36, 0 }
0x126a   : > { %2157 = vmatpush.bf16.msra.mxu3 %v2148_v38 }
0x126d   : > { %3311 = vmatmul.msk.bf16.vlgmr.msra.gmra.mxu3 %vm1073_vm11, %v2143_v39 }
0x126e   : > { %v2006_v40 = vpop.trf.xlu0 }
0x126f   : > { %v2022_v41 = vpack.c.bf16 %v2006_v40, %v2006_v40 }
0x1271   : > { %v2205_v42 = vsel %vm1077_vm10, %v2022_v41, 0 }
0x1272   : > { %2214 = vmatpush.bf16.msra.mxu0 %v2205_v42 }
0x1275   : > { %3313 = vmatmul.msk.bf16.vlgmr.msra.gmra.mxu0 %vm1073_vm11, %v2200_v43 }
0x12e0   : > { %v2039_v44 = vpop.f32.mrf.mxu3 }
0x12e1   : > { %v2043_v45 = vmul.f32 0.35355338, %v2039_v44 }
0x12e2   : > { %v2102_v46 = vpop.f32.mrf.mxu0 }
0x12e3   : > { %v2106_v47 = vmul.f32 0.35355338, %v2102_v46  ;;  %v2044_v49 = vadd.f32 %v2043_v45, %v4394_v8 }
0x12e5   : > { %v2045_v50 = vsel %vm1073_vm11, %v2044_v49, -inf  ;;  %v2107_v51 = vadd.f32 %v2106_v47, %v4394_v8 }
0x12e6   : > { %2046 = vmax.xlane.f32.xlu2 %v2045_v50 }
0x12e7   : > { %v2108_v52 = vsel %vm1073_vm11, %v2107_v51, -inf }
0x12e8   : > { %v2041_v53 = vpop.f32.mrf.mxu3  ;;  %2109 = vmax.xlane.f32.xlu1 %v2108_v52 }
0x12ea   : > { %v2104_v10 = vpop.f32.mrf.mxu0 }
0x12f0   : > { %v2159_v48 = vpop.f32.mrf.mxu3 }
0x12f1   : > { %v2163_v54 = vmul.f32 0.35355338, %v2159_v48 }
0x12f2   : > { %v2216_v55 = vpop.f32.mrf.mxu0 }
0x12f3   : > { %v2164_v56 = vadd.f32 %v2163_v54, %v4394_v8  ;;  %v2220_v0 = vmul.f32 0.35355338, %v2216_v55 }
0x12f5   : > { %v2165_v58 = vsel %vm1073_vm11, %v2164_v56, -inf  ;;  %v2221_v1 = vadd.f32 %v2220_v0, %v4394_v8 }
0x12f6   : > { %2166 = vmax.xlane.f32.xlu0 %v2165_v58 }
0x12f7   : > { %v2222_v3 = vsel %vm1073_vm11, %v2221_v1, -inf }
0x12f8   : > { %v2161_v61 = vpop.f32.mrf.mxu3 }
0x12fa   : > { %v2218_v62 = vpop.f32.mrf.mxu0 }
0x12fe   : > { %2060 = vrot.lane.b32.xlu2 %v2059_v63, %s4027_s7 }
0x1301   : > { %2120 = vrot.lane.b32.xlu1 %v2059_v63, %s4028_s27 }
0x1327   : > { %2223 = vmax.xlane.f32.xlu2 %v2222_v3 }
0x1359   : > { %v2047_v4 = vpop.xlane.xlu2 %2046 }
0x135a   : > { %v2048_v5 = vsub.f32 %v2044_v49, %v2047_v4 }
0x135b   : > { %v2110_v6 = vpop.xlane.xlu1 %2109 }
0x135c   : > { %v2049_v7 = vmul.f32 1.442695, %v2048_v5  ;;  %v2111_v9 = vsub.f32 %v2107_v51, %v2110_v6  ;;  %v3454_v6 = vld [vmem:[%s4761_s10 + $0x28] sm:$0xff] }
0x135d   : > { %2303 = vmatpush.bf16.msrb.mxu3 %v3454_v6 }
0x135e   : > { %3642 = vpow2.f32 %v2049_v7  ;;  %v2112_v12 = vmul.f32 1.442695, %v2111_v9  ;;  %v3453_v7 = vld [vmem:[%s4761_s10 + $0x20] sm:$0xff] }
0x1360   : > { %3644 = vpow2.f32 %v2112_v12 }
0x1361   : > { %v2061_v14 = vpop.permute.xlu2 %2060  ;;  %2304 = vmatpush.bf16.msrb.mxu3 %v3453_v7 }
0x1362   : > { %v2066_v15 = vsel %vm1077_vm10, %v2061_v14, 0 }
0x1363   : > { %2075 = vmatpush.bf16.msra.mxu2 %v2066_v15 }
0x1364   : > { %v3643_v16 = vpop.eup %3642 }
0x1365   : > { %v2051_v17 = vsel %vm1073_vm11, %v3643_v16, 0.0 }
0x1366   : > { %2052 = vadd.xlane.f32.xlu2 %v2051_v17  ;;  %v3645_v18 = vpop.eup %3644 }
0x1367   : > { %v2114_v22 = vsel %vm1073_vm11, %v3645_v18, 0.0 }
0x1369   : > { %v2167_v8 = vpop.xlane.xlu0 %2166 }
0x136a   : > { %v2168_v19 = vsub.f32 %v2164_v56, %v2167_v8 }
0x136c   : > { %v2169_v21 = vmul.f32 1.442695, %v2168_v19 }
0x136e   : > { %3646 = vpow2.f32 %v2169_v21  ;;  %2115 = vadd.xlane.f32.xlu2 %v2114_v22 }
0x1373   : > { %v2121_v23 = vpop.permute.xlu1 %2120 }
0x1374   : > { %v3647_v11 = vpop.eup %3646  ;;  %v2126_v24 = vsel %vm1077_vm10, %v2121_v23, 0 }
0x1375   : > { %2135 = vmatpush.bf16.msrb.mxu1 %v2126_v24  ;;  %v2171_v13 = vsel %vm1073_vm11, %v3647_v11, 0.0 }
0x1376   : > { %2172 = vadd.xlane.f32.xlu2 %v2171_v13 }
0x138e   : > { %2177 = vrot.lane.b32.xlu2 %v2059_v63, %s4780_s25  ;;  %s618_s25 = scalar_lea.vmem [#allocation16], %s4262_s18 }
0x139a   : > { %v2224_v25 = vpop.xlane.xlu2 %2223 }
0x139b   : > { %v2225_v26 = vsub.f32 %v2221_v1, %v2224_v25 }
0x139d   : > { %v2226_v27 = vmul.f32 1.442695, %v2225_v26  ;;  %v3456_v26 = vld [vmem:[%s4759_s8 + $0x38] sm:$0xff] }
0x139f   : > { %3648 = vpow2.f32 %v2226_v27  ;;  %v3458_v27 = vld [vmem:[%s4760_s9 + $0x38] sm:$0xff] }
0x13a0   : > { %2394 = vmatpush.bf16.msrb.mxu0 %v3458_v27 }
0x13a5   : > { %v3649_v28 = vpop.eup %3648 }
0x13a6   : > { %v2228_v29 = vsel %vm1073_vm11, %v3649_v28, 0.0 }
0x13a7   : > { %2229 = vadd.xlane.f32.xlu1 %v2228_v29 }
0x13c0   : > { %2234 = vrot.lane.b32.xlu1 %v2059_v63, %s4779_s14  ;;  %s2910_s14 = sshll.u32 %s618_s25, 4  ;;  %s2911_s14 = int_to_ptr.vmem [resolvable:$true] %s2910_s14 }
0x13d9   : > { %v2053_v30 = vpop.xlane.xlu2 %2052 }
0x13da   : > { %3650 = vrcp.f32 %v2053_v30  ;;  %v3457_v30 = vld [vmem:[%s4760_s9 + $0x30] sm:$0xff] }
0x13db   : > { %2395 = vmatpush.bf16.msrb.mxu0 %v3457_v30 }
0x13de   : > { %3353 = vmatmul.msk.bf16.vlgmr.msrb.gmra.mxu0 %vm673_vm2, %v4452_v60 }
0x13e0   : > { %v3651_v31 = vpop.eup %3650 }
0x13e1   : > { %v2055_v32 = vmul.f32 %v3651_v31, %v3643_v16  ;;  %v2116_v33 = vpop.xlane.xlu2 %2115 }
0x13e2   : > { %3652 = vrcp.f32 %v2116_v33 }
0x13e3   : > { %v2056_v34 = vpack.c.bf16 %v2055_v32, %v2055_v32 }
0x13e5   : > { %3308 = vmatmul.msk.bf16.vlgmr.msra.gmra.mxu2 %vm1073_vm11, %v2056_v34 }
0x13e8   : > { %v3653_v36 = vpop.eup %3652 }
0x13e9   : > { %v2118_v38 = vmul.f32 %v3653_v36, %v3645_v18  ;;  %v2173_v39 = vpop.xlane.xlu2 %2172 }
0x13ea   : > { %3654 = vrcp.f32 %v2173_v39 }
0x13eb   : > { %v2119_v40 = vpack.c.bf16 %v2118_v38, %v2118_v38 }
0x13ed   : > { %3310 = vmatmul.msk.bf16.vlgmr.msrb.gmra.mxu1 %vm1073_vm11, %v2119_v40  ;;  %v2333_v40 = vperm.slane %v4456_v2, 6 }
0x13f0   : > { %v3655_v41 = vpop.eup %3654 }
0x13f1   : > { %v2175_v42 = vmul.f32 %v3655_v41, %v3647_v11  ;;  %v2178_v43 = vpop.permute.xlu2 %2177 }
0x13f2   : > { %v2183_v44 = vsel %vm1077_vm10, %v2178_v43, 0 }
0x13f3   : > { %v2176_v45 = vpack.c.bf16 %v2175_v42, %v2175_v42  ;;  %2192 = vmatpush.bf16.msrb.mxu2 %v2183_v44  ;;  %v2335_v42 = vperm.slane %v4456_v2, 7 }
0x13f6   : > { %3312 = vmatmul.msk.bf16.vlgmr.msrb.gmra.mxu2 %vm1073_vm11, %v2176_v45 }
0x13f7   : > { %2364 = vmatpush.bf16.msra.mxu2 %v3456_v26 }
0x141a   : > { %v2230_v46 = vpop.xlane.xlu1 %2229 }
0x141b   : > { %3656 = vrcp.f32 %v2230_v46 }
0x1421   : > { %v3657_v47 = vpop.eup %3656 }
0x1422   : > { %v2232_v49 = vmul.f32 %v3657_v47, %v3649_v28 }
0x1424   : > { %v2233_v52 = vpack.c.bf16 %v2232_v49, %v2232_v49 }
0x1432   : > { %v2235_v50 = vpop.permute.xlu1 %2234 }
0x1433   : > { %v2240_v51 = vsel %vm1077_vm10, %v2235_v50, 0 }
0x1434   : > { %2249 = vmatpush.bf16.msra.mxu1 %v2240_v51 }
0x1437   : > { %3314 = vmatmul.msk.bf16.vlgmr.msra.gmra.mxu1 %vm1073_vm11, %v2233_v52 }
0x145b   : > { %v2397_v46 = vpop.f32.mrf.mxu0 }
0x1463   : > { %v2399_v47 = vpop.f32.mrf.mxu0 }
0x1468   : > { %v2077_v53 = vpop.f32.mrf.mxu2 }
0x1469   : > { %v2081_v12 = vpack.c.bf16 %v2077_v53, %v2077_v53 }
0x146a   : > { %v2137_v10 = vpop.f32.mrf.mxu1 }
0x146b   : > { %v2141_v48 = vpack.c.bf16 %v2137_v10, %v2137_v10 }
0x146d   : > { %v2257_v54 = vunpack.c.l.b16 %v2141_v48 }
0x146f   : > { %v2258_v55 = vpack.c.b16 %v2257_v54, %v2257_v54 }
0x1470   : > { %v2079_v56 = vpop.f32.mrf.mxu2 }
0x1471   : > { %2259 = vrot.lane.b32.xlu2 %v2258_v55, %s4812_s23 }
0x1472   : > { %v2139_v57 = vpop.f32.mrf.mxu1 }
0x1479   : > { %v2194_v58 = vpop.f32.mrf.mxu2 }
0x147a   : > { %v2198_v59 = vpack.c.bf16 %v2194_v58, %v2194_v58 }
0x147c   : > { %v2262_v61 = vunpack.c.l.b16 %v2198_v59 }
0x147e   : > { %v2263_v62 = vpack.c.b16 %v2262_v61, %v2262_v61 }
0x1480   : > { %2264 = vrot.lane.b32.xlu1 %v2263_v62, %s4813_s4 }
0x1481   : > { %v2196_v63 = vpop.f32.mrf.mxu2 }
0x14b4   : > { %v2251_v0 = vpop.f32.mrf.mxu1 }
0x14b5   : > { %v2255_v1 = vpack.c.bf16 %v2251_v0, %v2251_v0 }
0x14b7   : > { %v2267_v3 = vunpack.c.l.b16 %v2255_v1 }
0x14b9   : > { %v2268_v4 = vpack.c.b16 %v2267_v3, %v2267_v3 }
0x14bb   : > { %2269 = vrot.lane.b32.xlu2 %v2268_v4, %s4807_s17 }
0x14bc   : > { %v2253_v5 = vpop.f32.mrf.mxu1 }
0x14cb   : > { %v2260_v9 = vpop.permute.xlu2 %2259 }
0x14cc   : > { %v2273_v15 = vsel %vm1073_vm11, %v2081_v12, %v2260_v9 }
0x14f2   : > { %v2265_v14 = vpop.permute.xlu1 %2264 }
0x14f3   : > { %v2275_v16 = vsel %vm1325_vm12, %v2273_v15, %v2265_v14 }
0x1515   : > { %v2270_v17 = vpop.permute.xlu2 %2269 }
0x1516   : > { %v2277_v8 = vsel %vm1328_vm13, %v2275_v16, %v2270_v17 }
0x1517   : > { %3327 = vmatmul.msk.bf16.vlgmr.msrb.gmra.mxu3 %vm673_vm2, %v2277_v8 }
0x159a   : > { %v2306_v18 = vpop.f32.mrf.mxu3 }
0x159b   : > { %v2310_v19 = vadd.f32 %v2306_v18, %v4558_v37  ;;  %v3455_v37 = vld [vmem:[%s4759_s8 + $0x30] sm:$0xff] }
0x159c   : > { %2365 = vmatpush.bf16.msra.mxu2 %v3455_v37 }
0x159d   : > { %v2311_v21 = vsel %vm673_vm2, %v2310_v19, 0.0 }
0x159e   : > { %2312 = vadd.xlane.f32.xlu1 %v2311_v21 }
0x15a2   : > { %v2308_v22 = vpop.f32.mrf.mxu3 }
0x1611   : > { %v2313_v23 = vpop.xlane.xlu1 %2312 }
0x1612   : > { %v2314_v11 = vmul.f32 %v2313_v23, %v4354_v20 }
0x1614   : > { %v2315_v24 = vsub.f32 %v2310_v19, %v2314_v11 }
0x1616   : > { %v2316_v13 = vmul.f32 %v2315_v24, %v2315_v24 }
0x1618   : > { %v2317_v25 = vsel %vm673_vm2, %v2316_v13, 0.0 }
0x1619   : > { %2318 = vadd.xlane.f32.xlu2 %v2317_v25  ;;  %v2438_v25 = vpack.c.bf16 %v2397_v46, %v2397_v46 }
0x161b   : > { %v2473_v37 = vunpack.c.l.b16 %v2438_v25 }
0x161d   : > { %v2474_v27 = vpack.c.b16 %v2473_v37, %v2473_v37 }
0x168c   : > { %v2319_v28 = vpop.xlane.xlu2 %2318 }
0x168d   : > { %v2320_v29 = vmul.f32 %v2319_v28, %v4354_v20 }
0x168f   : > { %v2321_v31 = vadd.f32 1e-06, %v2320_v29 }
0x1691   : > { %3658 = vrsqrt.f32 %v2321_v31  ;;  %vm2328_vm14 = vweird.f32 %v2321_v31 }
0x1697   : > { %v3659_v32 = vpop.eup %3658 }
0x1698   : > { %v2323_v33 = vmul.f32 %v3659_v32, %v2321_v31  ;;  %vm2329_vm9 = vweird.f32 %v3659_v32 }
0x1699   : > { %vm2330_vm15 = vmor %vm2328_vm14, %vm2329_vm9 }
0x169a   : > { %v2324_v34 = vmul.f32 %v3659_v32, %v2323_v33 }
0x169c   : > { %v2325_v36 = vmul.f32 0.5, %v2324_v34 }
0x169e   : > { %v2326_v38 = vsub.f32 1.5, %v2325_v36 }
0x16a0   : > { %v2327_v39 = vmul.f32 %v3659_v32, %v2326_v38 }
0x16a2   : > { %v2331_v41 = vsel %vm2330_vm15, %v3659_v32, %v2327_v39 }
0x16a3   : > { %v2332_v43 = vmul.f32 %v2331_v41, %v2315_v24 }
0x16a5   : > { %v2334_v44 = vmul.f32 %v2333_v40, %v2332_v43 }
0x16a7   : > { %v4633_v45 = vadd.f32 %v2335_v42, %v2334_v44 }
0x16a9   : > { %v2337_v60 = vpack.c.bf16 %v4633_v45, %v4633_v45 }
0x16ab   : > { %3340 = vmatmul.msk.bf16.vlgmr.msra.gmra.mxu2 %vm673_vm2, %v2337_v60 }
0x172e   : > { %v2367_v49 = vpop.f32.mrf.mxu2 }
0x172f   : > { %v2401_v50 = vpack.c.bf16 %v2367_v49, %v2367_v49 }
0x1731   : > { %v2498_v51 = vunpack.c.l.b16 %v2401_v50 }
0x1733   : > { %v2499_v52 = vpack.c.b16 %v2498_v51, %v2498_v51 }
0x1735   : > { %2614 = vrot.lane.b32.xlu2 %v2499_v52, %s4026_s2  ;;  %2557 = vrot.lane.b32.xlu1 %v2499_v52, %s4024_s13  ;;  %s4814_s13 = smov 80  }
0x1736   : > { %2500 = vrot.lane.b32.xlu0 %v2499_v52, %s4025_s26  ;;  %v2369_v2 = vpop.f32.mrf.mxu2  ;;  %s4815_s26 = smov 72  }
0x1758   : > { %2402 = vxpose.xlu0.b32.start.end [1/1] (short) (narrow) %v2397_v46, 32 }
0x178f   : > { %v2615_v3 = vpop.permute.xlu2 %2614 }
0x17a7   : > { %v2558_v62 = vpop.permute.xlu1 %2557 }
0x17a8   : > { %v2501_v53 = vpop.permute.xlu0 %2500 }
0x17fc   : > { %v2418_v10 = vpop.trf.xlu0 }
0x17fd   : > { %v2434_v48 = vpack.c.bf16 %v2418_v10, %v2418_v10 }
0x17ff   : > { %v2443_v54 = vsel %vm1077_vm10, %v2434_v48, 0 }
0x1800   : > { %2452 = vmatpush.bf16.msrb.mxu1 %v2443_v54 }
0x1803   : > { %3354 = vmatmul.msk.bf16.vlgmr.msrb.gmra.mxu1 %vm1073_vm11, %v2401_v50 }
0x1804   : > { %v2419_v55 = vpop.trf.xlu0 }
0x1805   : > { %v2435_v56 = vpack.c.bf16 %v2419_v55, %v2419_v55 }
0x1807   : > { %v2506_v57 = vsel %vm1077_vm10, %v2435_v56, 0 }
0x1808   : > { %2515 = vmatpush.bf16.msrb.mxu2 %v2506_v57 }
0x180b   : > { %3356 = vmatmul.msk.bf16.vlgmr.msrb.gmra.mxu2 %vm1073_vm11, %v2501_v53 }
0x180c   : > { %v2420_v58 = vpop.trf.xlu0 }
0x180d   : > { %v2436_v59 = vpack.c.bf16 %v2420_v58, %v2420_v58 }
0x180f   : > { %v2563_v61 = vsel %vm1077_vm10, %v2436_v59, 0 }
0x1810   : > { %2572 = vmatpush.bf16.msra.mxu1 %v2563_v61 }
0x1813   : > { %3358 = vmatmul.msk.bf16.vlgmr.msra.gmra.mxu1 %vm1073_vm11, %v2558_v62 }
0x1814   : > { %v2421_v63 = vpop.trf.xlu0 }
0x1815   : > { %v2437_v0 = vpack.c.bf16 %v2421_v63, %v2421_v63 }
0x1817   : > { %v2620_v1 = vsel %vm1077_vm10, %v2437_v0, 0 }
0x1818   : > { %2629 = vmatpush.bf16.msra.mxu2 %v2620_v1 }
0x181b   : > { %3360 = vmatmul.msk.bf16.vlgmr.msra.gmra.mxu2 %vm1073_vm11, %v2615_v3 }
0x1880   : > { %v2454_v4 = vpop.f32.mrf.mxu1 }
0x1881   : > { %v2458_v5 = vmul.f32 0.35355338, %v2454_v4 }
0x1883   : > { %v2459_v6 = vadd.f32 %v4476_v35, %v2458_v5 }
0x1885   : > { %v2460_v7 = vsel %vm1073_vm11, %v2459_v6, -inf }
0x1886   : > { %2461 = vmax.xlane.f32.xlu0 %v2460_v7 }
0x1888   : > { %v2456_v9 = vpop.f32.mrf.mxu1 }
0x188e   : > { %v2517_v12 = vpop.f32.mrf.mxu2 }
0x188f   : > { %v2521_v14 = vmul.f32 0.35355338, %v2517_v12 }
0x1890   : > { %v2574_v15 = vpop.f32.mrf.mxu1 }
0x1891   : > { %v2578_v16 = vmul.f32 0.35355338, %v2574_v15  ;;  %v2522_v17 = vadd.f32 %v4476_v35, %v2521_v14 }
0x1893   : > { %v2523_v8 = vsel %vm1073_vm11, %v2522_v17, -inf  ;;  %v2579_v18 = vadd.f32 %v4476_v35, %v2578_v16 }
0x1894   : > { %2524 = vmax.xlane.f32.xlu1 %v2523_v8 }
0x1895   : > { %v2580_v19 = vsel %vm1073_vm11, %v2579_v18, -inf }
0x1896   : > { %v2519_v21 = vpop.f32.mrf.mxu2  ;;  %2581 = vmax.xlane.f32.xlu2 %v2580_v19 }
0x1898   : > { %v2576_v22 = vpop.f32.mrf.mxu1 }
0x189e   : > { %v2631_v23 = vpop.f32.mrf.mxu2 }
0x189f   : > { %v2635_v11 = vmul.f32 0.35355338, %v2631_v23 }
0x18a1   : > { %v2636_v24 = vadd.f32 %v4476_v35, %v2635_v11 }
0x18a3   : > { %v2637_v13 = vsel %vm1073_vm11, %v2636_v24, -inf }
0x18a4   : > { %2638 = vmax.xlane.f32.xlu1 %v2637_v13 }
0x18a6   : > { %v2633_v26 = vpop.f32.mrf.mxu2 }
0x18ae   : > { %2475 = vrot.lane.b32.xlu2 %v2474_v27, %s4027_s7  ;;  %s4816_s7 = sld [smem:[#allocation36_spill]] }
0x18b4   : > { %s3943_s18 = scalar_lea.hbm %s4816_s7, 16 }
0x18bd   : > { %2535 = vrot.lane.b32.xlu1 %v2474_v27, %s4028_s27 }
0x18f9   : > { %v2462_v28 = vpop.xlane.xlu0 %2461 }
0x18fa   : > { %v2463_v29 = vsub.f32 %v2459_v6, %v2462_v28  ;;  %v3459_v28 = vld [vmem:[%s4761_s10 + $0x30] sm:$0xff] }
0x18fc   : > { %v2464_v30 = vmul.f32 1.442695, %v2463_v29 }
0x18fe   : > { %3660 = vpow2.f32 %v2464_v30 }
0x1904   : > { %v3661_v31 = vpop.eup %3660 }
0x1905   : > { %v2466_v32 = vsel %vm1073_vm11, %v3661_v31, 0.0 }
0x1906   : > { %2467 = vadd.xlane.f32.xlu2 %v2466_v32 }
0x1907   : > { %v2525_v35 = vpop.xlane.xlu1 %2524 }
0x1908   : > { %v2526_v33 = vsub.f32 %v2522_v17, %v2525_v35 }
0x1909   : > { %v2582_v34 = vpop.xlane.xlu2 %2581 }
0x190a   : > { %v2527_v36 = vmul.f32 1.442695, %v2526_v33  ;;  %v2583_v38 = vsub.f32 %v2579_v18, %v2582_v34 }
0x190c   : > { %3662 = vpow2.f32 %v2527_v36  ;;  %v2584_v39 = vmul.f32 1.442695, %v2583_v38 }
0x190e   : > { %3664 = vpow2.f32 %v2584_v39 }
0x1911   : > { %v2476_v40 = vpop.permute.xlu2 %2475 }
0x1912   : > { %v3663_v41 = vpop.eup %3662  ;;  %v2481_v42 = vsel %vm1077_vm10, %v2476_v40, 0 }
0x1913   : > { %2490 = vmatpush.bf16.msra.mxu3 %v2481_v42  ;;  %v2529_v43 = vsel %vm1073_vm11, %v3663_v41, 0.0 }
0x1914   : > { %v3665_v44 = vpop.eup %3664  ;;  %2530 = vadd.xlane.f32.xlu1 %v2529_v43 }
0x1915   : > { %v2586_v60 = vsel %vm1073_vm11, %v3665_v44, 0.0 }
0x1916   : > { %2587 = vadd.xlane.f32.xlu2 %v2586_v60 }
0x1917   : > { %v2639_v46 = vpop.xlane.xlu1 %2638 }
0x1918   : > { %v2640_v47 = vsub.f32 %v2636_v24, %v2639_v46  ;;  %v3462_v46 = vld [vmem:[#allocation14 + $0x18] sm:$0xff] }
0x191a   : > { %v2641_v49 = vmul.f32 1.442695, %v2640_v47  ;;  %v3461_v47 = vld [vmem:[#allocation14 + $0x10] sm:$0xff] }
0x191c   : > { %3666 = vpow2.f32 %v2641_v49 }
0x1922   : > { %v3667_v50 = vpop.eup %3666 }
0x1923   : > { %v2643_v51 = vsel %vm1073_vm11, %v3667_v50, 0.0 }
0x1924   : > { %2644 = vadd.xlane.f32.xlu1 %v2643_v51  ;;  %v3465_v51 = vld [vmem:[%s4809_s24 + $0x30] sm:$0xff] }
0x192e   : > { %2592 = vrot.lane.b32.xlu2 %v2474_v27, %s4814_s13  ;;  %s3411_s13 = sshll.u32 %s4133_s20, 3  ;;  %s2898_s20 = scalar_lea.sflag [#allocation4], %s4259_s11 }
0x192f   : > { %v2536_v52 = vpop.permute.xlu1 %2535  ;;  %s2908_s27 = scalar_lea.hbm %s4816_s7, %s3411_s13 }
0x1930   : > { %v2541_v2 = vsel %vm1077_vm10, %v2536_v52, 0 }
0x1931   : > { %2550 = vmatpush.bf16.msra.mxu0 %v2541_v2 }
0x193d   : > { %2649 = vrot.lane.b32.xlu1 %v2474_v27, %s4815_s26  ;;  %v3460_v27 = vld [vmem:[%s4761_s10 + $0x38] sm:$0xff] }
0x193e   : > { %2718 = vmatpush.bf16.msrb.mxu1 %v3460_v27 }
0x1942   : > { %2719 = vmatpush.bf16.msrb.mxu1 %v3459_v28 }
0x1979   : > { %v2468_v53 = vpop.xlane.xlu2 %2467 }
0x197a   : > { %3668 = vrcp.f32 %v2468_v53 }
0x1980   : > { %v3669_v10 = vpop.eup %3668 }
0x1981   : > { %v2470_v48 = vmul.f32 %v3669_v10, %v3661_v31 }
0x1983   : > { %v2471_v54 = vpack.c.bf16 %v2470_v48, %v2470_v48 }
0x1985   : > { %3355 = vmatmul.msk.bf16.vlgmr.msra.gmra.mxu3 %vm1073_vm11, %v2471_v54  ;;  %v623_v54 = vld [vmem:[#allocation13 + $0x18] sm:$0x1f] }
0x1987   : > { %v2531_v55 = vpop.xlane.xlu1 %2530 }
0x1988   : > { %3670 = vrcp.f32 %v2531_v55 }
0x1989   : > { %v2588_v56 = vpop.xlane.xlu2 %2587 }
0x198a   : > { %3672 = vrcp.f32 %v2588_v56 }
0x198e   : > { %v3671_v57 = vpop.eup %3670 }
0x198f   : > { %v2533_v58 = vmul.f32 %v3671_v57, %v3663_v41  ;;  %v2748_v57 = vperm.slane %v623_v54, 0 }
0x1990   : > { %v3673_v59 = vpop.eup %3672 }
0x1991   : > { %v2534_v61 = vpack.c.bf16 %v2533_v58, %v2533_v58  ;;  %v2590_v62 = vmul.f32 %v3673_v59, %v3665_v44  ;;  %v2593_v63 = vpop.permute.xlu2 %2592  ;;  %v2750_v59 = vperm.slane %v623_v54, 1 }
0x1992   : > { %v2598_v0 = vsel %vm1077_vm10, %v2593_v63, 0 }
0x1993   : > { %v2591_v1 = vpack.c.bf16 %v2590_v62, %v2590_v62  ;;  %3357 = vmatmul.msk.bf16.vlgmr.msra.gmra.mxu0 %vm1073_vm11, %v2534_v61  ;;  %2607 = vmatpush.bf16.msrb.mxu3 %v2598_v0 }
0x1996   : > { %3359 = vmatmul.msk.bf16.vlgmr.msrb.gmra.mxu3 %vm1073_vm11, %v2591_v1  ;;  %v3464_v1 = vld [vmem:[%s4809_s24 + $0x28] sm:$0xff] }
0x1997   : > { %v2645_v3 = vpop.xlane.xlu1 %2644  ;;  %2784 = vmatpush.bf16.msra.mxu3 %v3462_v46 }
0x1998   : > { %3674 = vrcp.f32 %v2645_v3  ;;  %v3463_v3 = vld [vmem:[%s4809_s24 + $0x20] sm:$0xff] }
0x199b   : > { %2785 = vmatpush.bf16.msra.mxu3 %v3461_v47 }
0x199e   : > { %v3675_v4 = vpop.eup %3674 }
0x199f   : > { %v2647_v5 = vmul.f32 %v3675_v4, %v3667_v50  ;;  %v3599_v4 = vld [vmem:[%s4811_s19 + $0x1] ss:$0 sm:$0xff] }
0x19a1   : > { %v2648_v9 = vpack.c.bf16 %v2647_v5, %v2647_v5 }
0x19af   : > { %v2650_v6 = vpop.permute.xlu1 %2649 }
0x19b0   : > { %v2655_v7 = vsel %vm1077_vm10, %v2650_v6, 0 }
0x19b1   : > { %2664 = vmatpush.bf16.msrb.mxu0 %v2655_v7 }
0x19b4   : > { %3361 = vmatmul.msk.bf16.vlgmr.msrb.gmra.mxu0 %vm1073_vm11, %v2648_v9 }
0x1a08   : > { %v2492_v12 = vpop.f32.mrf.mxu3 }
0x1a09   : > { %v2496_v31 = vpack.c.bf16 %v2492_v12, %v2492_v12 }
0x1a10   : > { %v2494_v14 = vpop.f32.mrf.mxu3  ;;  %v2552_v15 = vpop.f32.mrf.mxu0 }
0x1a11   : > { %v2556_v16 = vpack.c.bf16 %v2552_v15, %v2552_v15  ;;  %v2802_v14 = vperm.slane %v623_v54, 2 }
0x1a13   : > { %v2672_v17 = vunpack.c.l.b16 %v2556_v16 }
0x1a15   : > { %v2673_v8 = vpack.c.b16 %v2672_v17, %v2672_v17 }
0x1a17   : > { %2674 = vrot.lane.b32.xlu0 %v2673_v8, %s4812_s23 }
0x1a18   : > { %v2554_v18 = vpop.f32.mrf.mxu0 }
0x1a19   : > { %v2609_v19 = vpop.f32.mrf.mxu3 }
0x1a1a   : > { %v2613_v21 = vpack.c.bf16 %v2609_v19, %v2609_v19 }
0x1a1c   : > { %v2677_v22 = vunpack.c.l.b16 %v2613_v21 }
0x1a1e   : > { %v2678_v23 = vpack.c.b16 %v2677_v22, %v2677_v22 }
0x1a20   : > { %2679 = vrot.lane.b32.xlu2 %v2678_v23, %s4813_s4 }
0x1a21   : > { %v2611_v11 = vpop.f32.mrf.mxu3 }
0x1a31   : > { %v2666_v24 = vpop.f32.mrf.mxu0 }
0x1a32   : > { %v2670_v13 = vpack.c.bf16 %v2666_v24, %v2666_v24 }
0x1a34   : > { %v2682_v25 = vunpack.c.l.b16 %v2670_v13 }
0x1a36   : > { %v2683_v26 = vpack.c.b16 %v2682_v25, %v2682_v25 }
0x1a38   : > { %2684 = vrot.lane.b32.xlu2 %v2683_v26, %s4807_s17  ;;  %s2912_s17 = sshll.u32 %s2908_s27, 4  ;;  %s2913_s17 = int_to_ptr.hbm [resolvable:$true] %s2912_s17 }
0x1a39   : > { %v2668_v37 = vpop.f32.mrf.mxu0  ;;  %s3937_s23 = sshra.s32 %s2913_s17, 4  ;;  %s3938_s23 = int_to_ptr.hbm [resolvable:$true] %s3937_s23 }
0x1a3a   : > { %s3939_s4 = scalar_lea.hbm %s3938_s23, 8  ;;  %p3944_p7 = scmp.lt.s32.totalorder %s3938_s23, %s4816_s7 }
0x1a3b   : > { %p3940_p1 = scmp.ne.s32.totalorder %s3938_s23, %s3939_s4  ;;  %p3945_p9 = scmp.lt.s32.totalorder %s3943_s18, %s3939_s4 }
0x1a3d   : > { %p3941_p3 = pnand %p3940_p1, %p4206_p5  ;;  %p3946_p8 = por %p3945_p9, %p3944_p7 }
0x1a3f   : > { %p3942_p12 = pneg %p3941_p3 }
0x1a41   : > { %p3947_p10 = pnand %p3946_p8, %p3942_p12 }
0x1a7a   : > { %v2680_v29 = vpop.permute.xlu2 %2679 }
0x1a89   : > { %v2675_v30 = vpop.permute.xlu0 %2674 }
0x1a8a   : > { %v2688_v32 = vsel %vm1073_vm11, %v2496_v31, %v2675_v30  ;;  %v2866_v31 = vperm.slane %v623_v54, 3 }
0x1a8b   : > { %v2690_v35 = vsel %vm1325_vm12, %v2688_v32, %v2680_v29 }
0x1a92   : > { %v2685_v33 = vpop.permute.xlu2 %2684 }
0x1a93   : > { %v2692_v34 = vsel %vm1328_vm13, %v2690_v35, %v2685_v33  ;;  %v2868_v33 = vperm.slane %v623_v54, 4 }
0x1a94   : > { %3374 = vmatmul.msk.bf16.vlgmr.msrb.gmra.mxu1 %vm673_vm2, %v2692_v34 }
0x1b11   : > { %v2721_v36 = vpop.f32.mrf.mxu1 }
0x1b12   : > { %v2725_v38 = vadd.f32 %v2721_v36, %v4633_v45  ;;  %v3466_v45 = vld [vmem:[%s4809_s24 + $0x38] sm:$0xff] }
0x1b13   : > { %2834 = vmatpush.bf16.msrb.mxu2 %v3466_v45 }
0x1b14   : > { %v2726_v39 = vsel %vm673_vm2, %v2725_v38, 0.0 }
0x1b15   : > { %2727 = vadd.xlane.f32.xlu1 %v2726_v39 }
0x1b17   : > { %2835 = vmatpush.bf16.msrb.mxu2 %v3465_v51 }
0x1b19   : > { %v2723_v40 = vpop.f32.mrf.mxu1 }
0x1b1b   : > { %2836 = vmatpush.bf16.msrb.mxu2 %v3464_v1 }
0x1b1f   : > { %2837 = vmatpush.bf16.msrb.mxu2 %v3463_v3 }
0x1b88   : > { %v2728_v41 = vpop.xlane.xlu1 %2727 }
0x1b89   : > { %v2729_v42 = vmul.f32 %v2728_v41, %v4354_v20 }
0x1b8b   : > { %v2730_v43 = vsub.f32 %v2725_v38, %v2729_v42 }
0x1b8d   : > { %v2731_v44 = vmul.f32 %v2730_v43, %v2730_v43 }
0x1b8f   : > { %v2732_v60 = vsel %vm673_vm2, %v2731_v44, 0.0 }
0x1b90   : > { %2733 = vadd.xlane.f32.xlu0 %v2732_v60 }
0x1c03   : > { %v2734_v49 = vpop.xlane.xlu0 %2733 }
0x1c04   : > { %v2735_v50 = vmul.f32 %v2734_v49, %v4354_v20 }
0x1c06   : > { %v2736_v52 = vadd.f32 1e-06, %v2735_v50 }
0x1c08   : > { %3676 = vrsqrt.f32 %v2736_v52  ;;  %vm2743_vm11 = vweird.f32 %v2736_v52 }
0x1c0e   : > { %v3677_v2 = vpop.eup %3676 }
0x1c0f   : > { %v2738_v53 = vmul.f32 %v3677_v2, %v2736_v52  ;;  %vm2744_vm10 = vweird.f32 %v3677_v2 }
0x1c10   : > { %vm2745_vm12 = vmor %vm2743_vm11, %vm2744_vm10 }
0x1c11   : > { %v2739_v10 = vmul.f32 %v3677_v2, %v2738_v53 }
0x1c13   : > { %v2740_v48 = vmul.f32 0.5, %v2739_v10 }
0x1c15   : > { %v2741_v55 = vsub.f32 1.5, %v2740_v48 }
0x1c17   : > { %v2742_v56 = vmul.f32 %v3677_v2, %v2741_v55 }
0x1c19   : > { %v2746_v58 = vsel %vm2745_vm12, %v3677_v2, %v2742_v56  ;;  %v3682_v2 = vld [vmem:[#allocation13] sm:$0xff] }
0x1c1a   : > { %v2747_v61 = vmul.f32 %v2746_v58, %v2730_v43  ;;  %v2892_v53 = vperm.slane %v3682_v2, 5  ;;  %v2894_v48 = vperm.slane %v3682_v2, 6 }
0x1c1c   : > { %v2749_v62 = vmul.f32 %v2748_v57, %v2747_v61 }
0x1c1e   : > { %v2751_v63 = vadd.f32 %v2750_v59, %v2749_v62 }
0x1c20   : > { %v2752_v0 = vpack.c.bf16 %v2751_v63, %v2751_v63 }
0x1c22   : > { %3384 = vmatmul.msk.bf16.vlgmr.msra.gmra.mxu3 %vm673_vm2, %v2752_v0 }
0x1ca5   : > { %v2787_v5 = vpop.f32.mrf.mxu3 }
0x1ca6   : > { %v2788_v6 = vadd.f32 %v3599_v4, %v2787_v5 }
0x1ca8   : > { %v2791_v7 = vmax.f32 %v2788_v6, 0.0 }
0x1caa   : > { %v2792_v9 = vpack.c.bf16 %v2791_v7, %v2791_v7 }
0x1cac   : > { %3409 = vmatmul.msk.bf16.vlgmr.msrb.gmra.mxu2 %vm724_vm3, %v2792_v9 }
0x1cad   : > { %v2789_v12 = vpop.f32.mrf.mxu3 }
0x1d2f   : > { %v2839_v15 = vpop.f32.mrf.mxu2 }
0x1d30   : > { %v2840_v16 = vadd.f32 %v2839_v15, %v2802_v14 }
0x1d32   : > { %v2843_v17 = vadd.f32 %v2840_v16, %v2751_v63 }
0x1d34   : > { %v2844_v8 = vsel %vm673_vm2, %v2843_v17, 0.0 }
0x1d35   : > { %2845 = vadd.xlane.f32.xlu2 %v2844_v8 }
0x1d37   : > { %v2841_v18 = vpop.f32.mrf.mxu2 }
0x1da8   : > { %v2846_v19 = vpop.xlane.xlu2 %2845 }
0x1da9   : > { %v2847_v21 = vmul.f32 %v2846_v19, %v4354_v20 }
0x1dab   : > { %v2848_v22 = vsub.f32 %v2843_v17, %v2847_v21 }
0x1dad   : > { %v2849_v23 = vmul.f32 %v2848_v22, %v2848_v22 }
0x1daf   : > { %v2850_v11 = vsel %vm673_vm2, %v2849_v23, 0.0 }
0x1db0   : > { %2851 = vadd.xlane.f32.xlu1 %v2850_v11 }
0x1e23   : > { %v2852_v24 = vpop.xlane.xlu1 %2851 }
0x1e24   : > { %v2853_v13 = vmul.f32 %v2852_v24, %v4354_v20 }
0x1e26   : > { %v2854_v25 = vadd.f32 1e-06, %v2853_v13 }
0x1e28   : > { %3678 = vrsqrt.f32 %v2854_v25  ;;  %vm2861_vm13 = vweird.f32 %v2854_v25 }
0x1e2e   : > { %v3679_v26 = vpop.eup %3678 }
0x1e2f   : > { %v2856_v37 = vmul.f32 %v3679_v26, %v2854_v25  ;;  %vm2862_vm3 = vweird.f32 %v3679_v26 }
0x1e30   : > { %vm2863_vm0 = vmor %vm2861_vm13, %vm2862_vm3 }
0x1e31   : > { %v2857_v27 = vmul.f32 %v3679_v26, %v2856_v37 }
0x1e33   : > { %v2858_v28 = vmul.f32 0.5, %v2857_v27 }
0x1e35   : > { %v2859_v29 = vsub.f32 1.5, %v2858_v28 }
0x1e37   : > { %v2860_v30 = vmul.f32 %v3679_v26, %v2859_v29 }
0x1e39   : > { %v2864_v32 = vsel %vm2863_vm0, %v3679_v26, %v2860_v30 }
0x1e3a   : > { %v2865_v35 = vmul.f32 %v2864_v32, %v2848_v22 }
0x1e3c   : > { %v2867_v34 = vmul.f32 %v2866_v31, %v2865_v35 }
0x1e3e   : > { %v2869_v36 = vadd.f32 %v2868_v33, %v2867_v34 }
0x1e40   : > { %v2870_v38 = vsel %vm673_vm2, %v2869_v36, 0.0 }
0x1e41   : > { %2871 = vadd.xlane.f32.xlu0 %v2870_v38 }
0x1eb4   : > { %v2872_v39 = vpop.xlane.xlu0 %2871 }
0x1eb5   : > { %v2873_v40 = vmul.f32 %v2872_v39, %v4354_v20 }
0x1eb7   : > { %v2874_v41 = vsub.f32 %v2869_v36, %v2873_v40 }
0x1eb9   : > { %v2875_v42 = vmul.f32 %v2874_v41, %v2874_v41 }
0x1ebb   : > { %v2876_v43 = vsel %vm673_vm2, %v2875_v42, 0.0 }
0x1ebc   : > { %2877 = vadd.xlane.f32.xlu2 %v2876_v43 }
0x1f2f   : > { %v2878_v44 = vpop.xlane.xlu2 %2877 }
0x1f30   : > { %v2879_v60 = vmul.f32 %v2878_v44, %v4354_v20 }
0x1f32   : > { %v2880_v46 = vadd.f32 1e-06, %v2879_v60 }
0x1f34   : > { %3680 = vrsqrt.f32 %v2880_v46  ;;  %vm2887_vm4 = vweird.f32 %v2880_v46 }
0x1f3a   : > { %v3681_v47 = vpop.eup %3680 }
0x1f3b   : > { %v2882_v45 = vmul.f32 %v3681_v47, %v2880_v46  ;;  %vm2888_vm1 = vweird.f32 %v3681_v47 }
0x1f3c   : > { %vm2889_vm5 = vmor %vm2887_vm4, %vm2888_vm1 }
0x1f3d   : > { %v2883_v49 = vmul.f32 %v3681_v47, %v2882_v45 }
0x1f3f   : > { %v2884_v50 = vmul.f32 0.5, %v2883_v49 }
0x1f41   : > { %v2885_v51 = vsub.f32 1.5, %v2884_v50 }
0x1f43   : > { %v2886_v52 = vmul.f32 %v3681_v47, %v2885_v51 }
0x1f45   : > { %v2890_v20 = vsel %vm2889_vm5, %v3681_v47, %v2886_v52 }
0x1f46   : > { %v2891_v10 = vmul.f32 %v2890_v20, %v2874_v41 }
0x1f48   : > { %v2893_v54 = vmul.f32 %v2892_v53, %v2891_v10 }
0x1f4a   : > { %v2895_v55 = vadd.f32 %v2894_v48, %v2893_v54 }
0x1f4c   : > { %2896 = vst.msk [vmem:[%s618_s25] sm:$0xff] %vm673_vm2, %v2895_v55 }
0x1f4d   : > { %3950 = shalt.err (!%p3947_p10)
}
0x1f4e   : > { %3495 = dma.vmem_to_hbm [thread:$0]  (%p4206_p5), %s2911_s14, 128, %s2913_s17, %s2898_s20  }
0x1f4f PF: > { %s4817_s11 = sld [smem:[#allocation25_spill]]  ;;  %s2924_s5 = sand.u32 1, %s3997_s29  }
0x1f50   : > { %s2925_s15 = scalar_lea.sflag [#allocation4], %s2924_s5 }
0x1f55   : > { %p4818_p11 = scmp.ge.s32.totalorder %s4817_s11, 2 }
0x1f57   : > { %p3524_p4 = pnand %p4818_p11, %p4210_p6 }
0x1f59   : > { %p3525_p13 = pneg %p3524_p4 }
0x1f5b   : > { %3992 = dma.done.wait (%p3525_p13), %s2925_s15, 128  }
0x1f5c   : > { %3994 = vsyncadd (%p3525_p13), %s2925_s15, 4294967168  ;;  %s4819_s16 = sld [smem:[#allocation26_spill]]  ;;  %s4822_s29 = smov %s4001_s30 }
0x1f5d   : > { %s4820_s13 = sld [smem:[#allocation24_spill]] }
0x1f5e   : > { %s4821_s15 = sld [smem:[#allocation27_spill]] }
0x1f62   : > { %p33_p0 = scmp.ge.s32.totalorder %s4819_s16, 4  }
0x1f63   : > { %s4823_s30 = smov %s4820_s13 }
0x1f64   :  { %35 = sbr.rel (!%p33_p0) target bundleno = 20 (0x14), region = 172 }
0x1f69   :  { %2931 = vsyncpa [#allocation3], 1 }
0x1f6a   :  { %2933 = vsyncpa [#allocation3 + $0x1], 1 }
0x1f6b   :  { %2934 = vsyncpa [#allocation6], 1 }
0x1f6c   :  { %2936 = vsyncpa [#allocation6 + $0x1], 1 }
0x1f6d   :  { %2937 = vsyncpa [#allocation9], 1 }
0x1f6e   :  { %2938 = vsyncpa [#allocation12], 1 }
0x1f6f   :  { %2939 = vsyncpa [#allocation15], 1 }
0x1f70   :  { %2940 = vsyncpa [#allocation4], 1 }
0x1f71   :  { %2942 = vsyncpa [#allocation4 + $0x1], 1 }

// kernel: tpu_custom_call.1
= control target key start
LH: loop header
LB: loop body
LE: loop exit
PB: predicated region body
PF: predicated region fallthrough
CT: control target
= control target key end

     0   :  { %s4751_s0 = inlined_call_operand.hbm [shape: f32[2,8,10], index: 0, kind: input, shape index: {}]   ;;  %s4752_s1 = inlined_call_operand.hbm [shape: f32[2,8,32], index: 1, kind: input, shape index: {}]   ;;  %s4753_s2 = inlined_call_operand.hbm [shape: f32[1,8,8], index: 2, kind: input, shape index: {}]   ;;  %s4754_s3 = inlined_call_operand.hbm [shape: f32[1,1,8], index: 3, kind: input, shape index: {}]   ;;  %s4755_s4 = inlined_call_operand.hbm [shape: bf16[10,32], index: 4, kind: input, shape index: {}]   ;;  %s4756_s5 = inlined_call_operand.hbm [shape: bf16[2,32,32], index: 5, kind: input, shape index: {}]   ;;  %s4757_s6 = inlined_call_operand.vmem [shape: bf16[2,96,32], index: 6, kind: input, shape index: {}]   ;;  %s4758_s7 = inlined_call_operand.hbm [shape: f32[29,32], index: 7, kind: input, shape index: {}]   ;;  %s4759_s8 = inlined_call_operand.vmem [shape: bf16[2,2,32,32], index: 8, kind: input, shape index: {}]   ;;  %s4760_s9 = inlined_call_operand.vmem [shape: bf16[2,2,32,64], index: 9, kind: input, shape index: {}]   ;;  %s4761_s10 = inlined_call_operand.vmem [shape: bf16[2,2,32,32], index: 10, kind: input, shape index: {}]   ;;  %s4762_s11 = inlined_call_operand.hbm [shape: bf16[2,32,64], index: 11, kind: input, shape index: {}]   ;;  %s4763_s12 = inlined_call_operand.vmem [shape: f32[2,1,64], index: 12, kind: input, shape index: {}]   ;;  %s4764_s13 = inlined_call_operand.vmem [shape: bf16[2,64,32], index: 13, kind: input, shape index: {}]   ;;  %s4765_s14 = inlined_call_operand.hbm [shape: f32[2,8,32], index: 14, kind: output, shape index: {}]  }
   0x1   :  { %4781 = sst [smem:[#allocation28_spill]] %s4753_s2 }
   0x2   :  { %4782 = sst [smem:[#allocation29_spill]] %s4754_s3 }
   0x3   :  { %4783 = sst [smem:[#allocation30_spill]] %s4755_s4 }
   0x4   :  { %4784 = sst [smem:[#allocation31_spill]] %s4756_s5 }
   0x5   :  { %4785 = sst [smem:[#allocation32_spill]] %s4758_s7 }
   0x6   :  { %4786 = sst [smem:[#allocation33_spill]] %s4762_s11 }
   0x7   :  { %4787 = sst [smem:[#allocation34_spill]] %s4763_s12 }
   0x8   :  { %4788 = sst [smem:[#allocation35_spill]] %s4764_s13 }
   0x9   :  { %4789 = sst [smem:[#allocation36_spill]] %s4765_s14 }
   0xa   :  { %19 = vsyncpa [#allocation3], 0 }
   0xb   :  { %21 = vsyncpa [#allocation3 + $0x1], 0 }
   0xc   :  { %22 = vsyncpa [#allocation6], 0 }
   0xd   :  { %24 = vsyncpa [#allocation6 + $0x1], 0 }
   0xe   :  { %25 = vsyncpa [#allocation9], 0 }
   0xf   :  { %26 = vsyncpa [#allocation12], 0 }
  0x10   :  { %27 = vsyncpa [#allocation15], 0 }
  0x11   :  { %28 = vsyncpa [#allocation4], 0 }
  0x12   :  { %30 = vsyncpa [#allocation4 + $0x1], 0  ;;  %s4109_s29 = smov 0   ;;  %s4111_s30 = smov 0  }
  0x13   :  { %s4113_s15 = smov 0   ;;  %s4115_s16 = smov 0  }
  0x14 LB: > { %4790 = sst [smem:[#allocation24_spill]] %s4005_s15  ;;  %s4133_s20 = sadd.s32 4294967295, %s4009_s16   ;;  %s4009_s16 = sphi %s4115_s16, %s4819_s16   ;;  %s4005_s15 = sphi %s4113_s15, %s4821_s15   ;;  %s4001_s30 = sphi %s4111_s30, %s4823_s30   ;;  %s3997_s29 = sphi %s4109_s29, %s4822_s29  }
  0x15   : > { %4791 = sst [smem:[#allocation25_spill]] %s4009_s16  ;;  %p3064_p0 = scmp.ge.s32.totalorder %s4009_s16, 1 }
  0x16   : > { %s4792_s2 = sld [smem:[#allocation28_spill]]  ;;  %p57_p1 = scmp.eq.s32.totalorder %s4133_s20, 0 }
  0x17   : > { %p371_p2 = scmp.lt.s32.totalorder %s4009_s16, 3  ;;  %s4011_s22 = smov [#allocation7]  }
  0x18   : > { %s385_s23 = sshll.u32 %s4011_s22, 4  ;;  %s4794_s3 = sld [smem:[#allocation29_spill]]  ;;  %s386_s23 = int_to_ptr.vmem [resolvable:$true] %s385_s23 }
  0x19   : > { %p4138_p3 = pnand %p3064_p0, %p371_p2  ;;  %s4012_s28 = smov [#allocation8]  }
  0x1a   : > { %s397_s17 = sshll.u32 %s4012_s28, 4  ;;  %s4796_s5 = sld [smem:[#allocation31_spill]]  ;;  %s398_s17 = int_to_ptr.vmem [resolvable:$true] %s397_s17 }
  0x1b   : > { %p3497_p5 = pneg %p4138_p3  ;;  %s4013_s25 = smov [#allocation11]  }
  0x1c   : > { %s383_s19 = sshll.u32 %s4792_s2, 4  ;;  %s422_s2 = sshll.u32 %s4013_s25, 4  ;;  %s384_s19 = int_to_ptr.hbm [resolvable:$true] %s383_s19  ;;  %s423_s2 = int_to_ptr.vmem [resolvable:$true] %s422_s2 }
  0x1d   : > { %p4150_p6 = pnand %p3497_p5, %p57_p1  ;;  %s4797_s4 = sld [smem:[#allocation30_spill]] }
  0x1e   : > { %s395_s26 = sshll.u32 %s4794_s3, 4  ;;  %s4014_s13 = smov 64   ;;  %s396_s26 = int_to_ptr.hbm [resolvable:$true] %s395_s26 }
  0x1f   : > { %3500 = dma.hbm_to_vmem [thread:$0]  (!%p4150_p6), %s384_s19, 128, %s386_s23, [#allocation6]  }
  0x20   : > { %3503 = dma.hbm_to_vmem [thread:$0]  (!%p4150_p6), %s396_s26, 16, %s398_s17, [#allocation9]  }
  0x21   : > { %s420_s24 = sshll.u32 %s4796_s5, 4  ;;  %s4015_s28 = smov 4   ;;  %s421_s24 = int_to_ptr.hbm [resolvable:$true] %s420_s24 }
  0x22   : > { %3509 = dma.hbm_to_vmem [thread:$0]  (!%p4150_p6), %s421_s24, 512, %s423_s2, [#allocation12], %s4014_s13, %s4014_s13, %s4015_s28  }
  0x23   : > { %s406_s12 = sshll.u32 %s4797_s4, 4  ;;  %s4016_s19 = smov [#allocation10]   ;;  %s407_s12 = int_to_ptr.hbm [resolvable:$true] %s406_s12 }
  0x24   : > { %s408_s23 = sshll.u32 %s4016_s19, 4  ;;  %s4798_s7 = sld [smem:[#allocation32_spill]]  ;;  %s409_s23 = int_to_ptr.vmem [resolvable:$true] %s408_s23 }
  0x25   : > { %3506 = dma.hbm_to_vmem [thread:$0]  (!%p4150_p6), %s407_s12, 128, %s409_s23, [#allocation9], %s4014_s13, %s4014_s13, %s4015_s28  }
  0x26   : > { %s4017_s3 = smov [#allocation13]   ;;  %s4799_s11 = sld [smem:[#allocation33_spill]] }
  0x27   : > { %s439_s14 = sshll.u32 %s4017_s3, 4  ;;  %s4018_s25 = smov 128   ;;  %s440_s14 = int_to_ptr.vmem [resolvable:$true] %s439_s14 }
  0x28   : > { %s4019_s19 = smov 8   ;;  %s4020_s12 = smov [#allocation14]  }
  0x29   : > { %s462_s23 = sshll.u32 %s4020_s12, 4  ;;  %s3063_s26 = sadd.s32 4294967294, %s4009_s16   ;;  %s463_s23 = int_to_ptr.vmem [resolvable:$true] %s462_s23 }
  0x2a   : > { %s437_s18 = sshll.u32 %s4798_s7, 4  ;;  %s4180_s17 = sadd.s32 1, %s4009_s16   ;;  %s438_s18 = int_to_ptr.hbm [resolvable:$true] %s437_s18 }
  0x2b   : > { %3512 = dma.hbm_to_vmem [thread:$0]  (!%p4150_p6), %s438_s18, 512, %s440_s14, [#allocation12], %s4018_s25, %s4018_s25, %s4019_s19  }
  0x2c   : > { %s460_s24 = sshll.u32 %s4799_s11, 4  ;;  %4800 = sst [smem:[#allocation26_spill]] %s4180_s17  ;;  %s461_s24 = int_to_ptr.hbm [resolvable:$true] %s460_s24 }
  0x2d   : > { %3515 = dma.hbm_to_vmem [thread:$0]  (!%p4150_p6), %s461_s24, 512, %s463_s23, [#allocation15], %s4014_s13, %s4014_s13, %s4015_s28  }
  0x2e   : > { %s40_s3 = ssub.s32 %s4009_s16, %s4180_s17  ;;  %s43_s2 = sadd.s32 1, %s4005_s15 }
  0x2f   : > { %p41_p7 = scmp.eq.s32.totalorder %s40_s3, 0  ;;  %p50_p8 = scmp.ne.s32.totalorder %s4005_s15, %s4001_s30 }
  0x30   : > { %p51_p9 = scmp.eq.s32.totalorder %s4009_s16, 0  ;;  %p56_p10 = scmp.ne.s32.totalorder %s4001_s30, %s3997_s29 }
  0x31   : > { %s4191_s18 = scalar_select %p41_p7, %s4005_s15, %s43_s2  }
  0x32   : > { %p4193_p11 = por %p51_p9, %p50_p8  ;;  %p4199_p12 = por %p57_p1, %p56_p10 }
  0x33   : > { %4801 = sst [smem:[#allocation27_spill]] %s4191_s18  ;;  %p358_p13 = scmp.eq.s32.totalorder %s4133_s20, 1 }
  0x34   : > { %p364_p0 = scmp.eq.s32.totalorder %s3063_s26, 1  ;;  %p3533_p2 = scmp.lt.s32.totalorder %s4009_s16, 2 }
  0x35   : > { %s482_s27 = sand.u32 1, %s4005_s15   ;;  %p4206_p5 = por %p358_p13, %p50_p8 }
  0x36   : > { %p4210_p6 = por %p364_p0, %p56_p10  ;;  %s4214_s24 = sshll.u32 %s482_s27, 3 }
  0x37   : > { %s3073_s25 = sshll.u32 %s4009_s16, 3  ;;  %s486_s3 = scalar_lea.vmem [#allocation2], %s4214_s24 }
  0x38   : > { %s490_s23 = scalar_lea.hbm %s4751_s0, %s3073_s25  ;;  %s494_s26 = sshll.u32 %s486_s3, 4  ;;  %s495_s26 = int_to_ptr.vmem [resolvable:$true] %s494_s26 }
  0x39   : > { %s492_s2 = sshll.u32 %s490_s23, 4  ;;  %p4223_p7 = pnand %p3533_p2, %p4193_p11  ;;  %s493_s2 = int_to_ptr.hbm [resolvable:$true] %s492_s2 }
  0x3a   : > { %s509_s11 = scalar_lea.hbm %s4752_s1, %s3073_s25  ;;  %s501_s18 = sand.u32 1, %s4009_s16  }
  0x3b   : > { %s483_s15 = scalar_lea.sflag [#allocation3], %s482_s27  ;;  %s3863_s19 = sshra.s32 %s493_s2, 4  ;;  %s3864_s19 = int_to_ptr.hbm [resolvable:$true] %s3863_s19 }
  0x3c   : > { %s3865_s12 = scalar_lea.hbm %s3864_s19, 8  ;;  %p3867_p9 = pneg %p4223_p7 }
  0x3d   : > { %p3866_p8 = scmp.ne.s32.totalorder %s3864_s19, %s3865_s12  ;;  %s3870_s3 = scalar_lea.hbm %s4751_s0, 16 }
  0x3e   : > { %p3871_p13 = scmp.lt.s32.totalorder %s3864_s19, %s4751_s0  ;;  %p3872_p0 = scmp.lt.s32.totalorder %s3870_s3, %s3865_s12 }
  0x3f   : > { %p3868_p10 = pnand %p3867_p9, %p3866_p8 }
  0x40   : > { %p3873_p2 = por %p3872_p0, %p3871_p13 }
  0x41   : > { %p3869_p11 = pneg %p3868_p10 }
  0x43   : > { %p3874_p4 = pnand %p3873_p2, %p3869_p11 }
  0x45   : > { %3877 = shalt.err (!%p3874_p4)
}
  0x46   : > { %3519 = dma.hbm_to_vmem [thread:$0]  (!%p4223_p7), %s493_s2, 128, %s495_s26, %s483_s15  }
  0x47   : > { %s511_s27 = sshll.u32 %s509_s11, 4  ;;  %s505_s25 = scalar_lea.vmem [#allocation5], %s4214_s24  ;;  %s512_s27 = int_to_ptr.hbm [resolvable:$true] %s511_s27 }
  0x48   : > { %s513_s17 = sshll.u32 %s505_s25, 4  ;;  %s502_s14 = scalar_lea.sflag [#allocation6], %s501_s18  ;;  %s514_s17 = int_to_ptr.vmem [resolvable:$true] %s513_s17 }
  0x49   : > { %s3893_s23 = sshra.s32 %s512_s27, 4  ;;  %s3900_s3 = scalar_lea.hbm %s4752_s1, 16  ;;  %s3894_s23 = int_to_ptr.hbm [resolvable:$true] %s3893_s23 }
  0x4a   : > { %s3895_s16 = scalar_lea.hbm %s3894_s23, 8  ;;  %p3901_p4 = scmp.lt.s32.totalorder %s3894_s23, %s4752_s1 }
  0x4b   : > { %p3896_p8 = scmp.ne.s32.totalorder %s3894_s23, %s3895_s16  ;;  %p3902_p13 = scmp.lt.s32.totalorder %s3900_s3, %s3895_s16 }
  0x4d   : > { %p3898_p10 = pnand %p3896_p8, %p3867_p9  ;;  %p3903_p0 = por %p3902_p13, %p3901_p4 }
  0x4f   : > { %p3899_p11 = pneg %p3898_p10 }
  0x51   : > { %p3904_p2 = pnand %p3903_p0, %p3899_p11 }
  0x53   : > { %3907 = shalt.err (!%p3904_p2)
}
  0x54   : > { %3522 = dma.hbm_to_vmem [thread:$0]  (!%p4223_p7), %s512_s27, 128, %s514_s17, %s502_s14  }
  0x55   : > { %522 = sbr.rel (%p4138_p3) target bundleno = 8015 (0x1f4f), region = 76  ;;  %s4259_s11 = sand.u32 (!%p4138_p3), 1, %s4001_s30  }
  0x56   : > { %s4262_s18 = sshll.u32 (!%p4138_p3), %s4259_s11, 3  ;;  %s525_s24 = scalar_lea.sflag (!%p4138_p3), [#allocation3], %s4259_s11 }
  0x57   : > { %s528_s16 = scalar_lea.vmem (!%p4138_p3), [#allocation2], %s4262_s18 }
  0x5a   : > { %3968 = dma.done.wait (%p4199_p12), %s525_s24, 128  }
  0x5b   : > { %3970 = vsyncadd (%p4199_p12), %s525_s24, 4294967168  ;;  %s534_s4 = sand.u32 1, %s4133_s20   ;;  %s538_s17 = scalar_lea.vmem [#allocation5], %s4262_s18 }
  0x5c   : > { %s535_s21 = scalar_lea.sflag [#allocation6], %s534_s4 }
  0x5d   : > { %3972 = dma.done.wait (%p4199_p12), %s535_s21, 128  }
  0x5e   : > { %3974 = vsyncadd (%p4199_p12), %s535_s21, 4294967168 }
  0x5f   : > { %3976 = dma.done.wait (%p57_p1), [#allocation6], 128  }
  0x60   : > { %3978 = vsyncadd (%p57_p1), [#allocation6], 4294967168 }
  0x61   : > { %3980 = dma.done.wait (%p57_p1), [#allocation9], 144  }
  0x62   : > { %3982 = vsyncadd (%p57_p1), [#allocation9], 4294967152 }
  0x63   : > { %3984 = dma.done.wait (%p57_p1), [#allocation12], 1024  }
  0x64   : > { %3986 = vsyncadd (%p57_p1), [#allocation12], 4294966272 }
  0x65   : > { %3988 = dma.done.wait (%p57_p1), [#allocation15], 512  }
  0x66   : > { %3990 = vsyncadd (%p57_p1), [#allocation15], 4294966784  ;;  %v3088_v0 = vld [vmem:[#allocation10] sm:$0xf]  ;;  %v3414_v1 = vld [vmem:[#allocation10] sm:$0x10] }
  0x67   : > { %vm638_vm0 = vcmask 1044480   ;;  %v624_v2 = vld [vmem:[%s528_s16] sm:$0xff]  ;;  %v3089_v3 = vor.u32 %v3414_v1, %v3088_v0  ;;  %vm634_vm1 = vcmask 80896   ;;  %v3415_v8 = vld [vmem:[#allocation11] sm:$0xff]  ;;  %vm673_vm2 = vcmask 261120   ;;  %s4021_s13 = smov 32  }
  0x68   : > { %v3416_v4 = vld [vmem:[#allocation11 + $0x8] sm:$0xff]  ;;  %v3424_v5 = vld [vmem:[#allocation11 + $0x18] sm:$0xff]  ;;  %v625_v7 = vpack.c.bf16 %v624_v2, %v624_v2  ;;  %v3423_v9 = vld [vmem:[#allocation11 + $0x10] sm:$0xff]  ;;  %s4022_s27 = smov 64   ;;  %vm724_vm3 = vcmask 523264   ;;  %vm776_vm4 = vcmask 785408  }
  0x69   : > { %v640_v6 = vsel %vm638_vm0, %v3089_v3, 0  ;;  %683 = vmatpush.bf16.msra.mxu1 %v3416_v4  ;;  %702 = vmatpush.bf16.msra.mxu2 %v3416_v4  ;;  %v4292_v10 = vld [vmem:[#allocation13] sm:$0xff]  ;;  %v3422_v31 = vld [vmem:[%s4757_s6 + $0x28] sm:$0xff]  ;;  %v3421_v33 = vld [vmem:[%s4757_s6 + $0x20] sm:$0xff]  ;;  %vm960_vm9 = vcmask 1040384   ;;  %s4025_s26 = smov 120  }
  0x6a   : > { %649 = vmatpush.bf16.msra.mxu0 %v640_v6  ;;  %v628_v11 = vperm.slane %v4292_v10, 0  ;;  %v3430_v32 = vld [vmem:[%s4757_s6 + $0x58] sm:$0xff]  ;;  %781 = vmatpush.bf16.msra.mxu3 %v3422_v31  ;;  %v3429_v34 = vld [vmem:[%s4757_s6 + $0x50] sm:$0xff]  ;;  %v3428_v37 = vld [vmem:[%s4757_s6 + $0x48] sm:$0xff]  ;;  %v739_v2 = vperm.slane %v4292_v10, 1  ;;  %v871_v3 = vperm.slane %v4292_v10, 2 }
  0x6b   : > { %v3420_v35 = vld [vmem:[%s4757_s6 + $0x18] sm:$0xff]  ;;  %v3419_v38 = vld [vmem:[%s4757_s6 + $0x10] sm:$0xff]  ;;  %v3427_v39 = vld [vmem:[%s4757_s6 + $0x40] sm:$0xff]  ;;  %s4026_s2 = smov 104   ;;  %vm1077_vm10 = vcmask 1043456   ;;  %vm1073_vm11 = vcmask 64512  }
  0x6c   : > { %v3418_v43 = vld [vmem:[%s4757_s6 + $0x8] sm:$0xff]  ;;  %v3417_v48 = vld [vmem:[%s4757_s6] sm:$0xff]  ;;  %v3426_v55 = vld [vmem:[%s4757_s6 + $0x38] sm:$0xff]  ;;  %s4027_s7 = smov 96   ;;  %s4780_s25 = smov 80   ;;  %vm1325_vm12 = vcmask 130048  }
  0x6d   : > { %3090 = vmatmul.msk.bf16.vlgmr.msra.gmra.mxu0 %vm634_vm1, %v625_v7  ;;  %684 = vmatpush.bf16.msra.mxu1 %v3415_v8  ;;  %v3425_v56 = vld [vmem:[%s4757_s6 + $0x30] sm:$0xff]  ;;  %s4779_s14 = smov 72   ;;  %s4777_s23 = smov 8   ;;  %vm1328_vm13 = vcmask 195584  }
  0x6e   : > { %815 = vmatpush.bf16.msrb.mxu0 %v3424_v5  ;;  %703 = vmatpush.bf16.msra.mxu2 %v3415_v8  ;;  %s4775_s19 = smov 16   ;;  %s4773_s12 = smov 24  }
  0x6f   : > { %782 = vmatpush.bf16.msra.mxu3 %v3421_v33  ;;  %s4808_s15 = sld [smem:[#allocation35_spill]]  ;;  %s4813_s4 = smov 16  }
  0x70   : > { %s4810_s16 = sld [smem:[#allocation34_spill]] }
  0x71   : > { %834 = vmatpush.bf16.msrb.mxu1 %v3424_v5 }
  0x72   : > { %816 = vmatpush.bf16.msrb.mxu0 %v3423_v9  ;;  %912 = vmatpush.bf16.msrb.mxu2 %v3430_v32 }
  0x73   : > { %783 = vmatpush.bf16.msra.mxu3 %v3420_v35 }
  0x75   : > { %835 = vmatpush.bf16.msrb.mxu1 %v3423_v9  ;;  %s4809_s24 = smov %s4808_s15 }
  0x76   : > { %913 = vmatpush.bf16.msrb.mxu2 %v3429_v34 }
  0x77   : > { %784 = vmatpush.bf16.msra.mxu3 %v3419_v38 }
  0x7a   : > { %914 = vmatpush.bf16.msrb.mxu2 %v3428_v37  ;;  %v4371_v37 = vld [vmem:[#allocation13 + $0x8] sm:$0xff] }
  0x7b   : > { %785 = vmatpush.bf16.msra.mxu3 %v3418_v43  ;;  %v956_v43 = vperm.slane %v4292_v10, 4 }
  0x7e   : > { %915 = vmatpush.bf16.msrb.mxu2 %v3427_v39  ;;  %v954_v39 = vperm.slane %v4292_v10, 3 }
  0x7f   : > { %786 = vmatpush.bf16.msra.mxu3 %v3417_v48 }
  0x82   : > { %916 = vmatpush.bf16.msrb.mxu2 %v3426_v55 }
  0x86   : > { %917 = vmatpush.bf16.msrb.mxu2 %v3425_v56 }
  0xea   : > { %v651_v12 = vpop.f32.mrf.mxu0 }
  0xeb   : > { %v4295_v13 = vadd.f32 %v651_v12, %v628_v11 }
  0xed   : > { %v4299_v14 = vpack.c.bf16 %v4295_v13, %v4295_v13  ;;  %v660_v18 = vmul.f32 0.2, %v4295_v13 }
  0xef   : > { %3099 = vmatmul.msk.bf16.vlgmr.msra.gmra.mxu1 %vm673_vm2, %v4299_v14  ;;  %3134 = vmatmul.msk.bf16.vlgmr.msrb.gmra.mxu0 %vm673_vm2, %v4299_v14 }
  0xf2   : > { %v653_v15 = vpop.f32.mrf.mxu0 }
 0x16c   : > { %v686_v16 = vpop.f32.mrf.mxu1  ;;  %v818_v17 = vpop.f32.mrf.mxu0 }
 0x16d   : > { %v690_v19 = vmul.f32 0.8, %v686_v16  ;;  %v822_v20 = vmul.f32 0.8, %v818_v17 }
 0x16f   : > { %v691_v21 = vadd.f32 %v690_v19, %v660_v18  ;;  %v823_v22 = vadd.f32 %v822_v20, %v660_v18 }
 0x171   : > { %v692_v23 = vpack.c.bf16 %v691_v21, %v691_v21  ;;  %v824_v24 = vpack.c.bf16 %v823_v22, %v823_v22 }
 0x173   : > { %3100 = vmatmul.msk.bf16.vlgmr.msra.gmra.mxu2 %vm673_vm2, %v692_v23  ;;  %3135 = vmatmul.msk.bf16.vlgmr.msrb.gmra.mxu1 %vm673_vm2, %v824_v24  ;;  %v713_v25 = vunpack.c.l.b16 %v692_v23  ;;  %v845_v29 = vunpack.c.l.b16 %v824_v24 }
 0x174   : > { %v688_v26 = vpop.f32.mrf.mxu1  ;;  %v820_v27 = vpop.f32.mrf.mxu0 }
 0x175   : > { %v714_v28 = vpack.c.b16 %v713_v25, %v713_v25  ;;  %v846_v30 = vpack.c.b16 %v845_v29, %v845_v29  ;;  %v3432_v25 = vld [vmem:[%s4759_s8 + $0x8] sm:$0xff]  ;;  %v3431_v27 = vld [vmem:[%s4759_s8] sm:$0xff] }
 0x176   : > { %v3434_v26 = vld [vmem:[%s4760_s9 + $0x8] sm:$0xff]  ;;  %999 = vmatpush.bf16.msra.mxu0 %v3432_v25 }
 0x177   : > { %715 = vrot.lane.b32.xlu0 %v714_v28, %s4021_s13  ;;  %1028 = vmatpush.bf16.msra.mxu1 %v3434_v26  ;;  %v3433_v28 = vld [vmem:[%s4760_s9] sm:$0xff] }
 0x17a   : > { %1000 = vmatpush.bf16.msra.mxu0 %v3431_v27 }
 0x17b   : > { %1029 = vmatpush.bf16.msra.mxu1 %v3433_v28 }
 0x17f   : > { %847 = vrot.lane.b32.xlu0 %v846_v30, %s4021_s13  ;;  %s4024_s13 = smov 112  }
 0x1e9   : > { %v716_v57 = vpop.permute.xlu0 %715 }
 0x1ea   : > { %v723_v58 = vsel %vm673_vm2, %v4299_v14, %v716_v57 }
 0x1f0   : > { %v837_v36 = vpop.f32.mrf.mxu1 }
 0x1f1   : > { %v841_v41 = vmul.f32 0.8, %v837_v36  ;;  %v848_v61 = vpop.permute.xlu0 %847 }
 0x1f2   : > { %v855_v62 = vsel %vm673_vm2, %v4299_v14, %v848_v61  ;;  %v4023_v14 = vmov 32.0  }
 0x1f3   : > { %v842_v46 = vadd.f32 %v841_v41, %v660_v18  ;;  %3600 = vrcp.f32 %v4023_v14  ;;  %v961_v41 = vrot.slane %v4292_v10, 7 }
 0x1f5   : > { %v843_v51 = vpack.c.bf16 %v842_v46, %v842_v46 }
 0x1f6   : > { %v705_v40 = vpop.f32.mrf.mxu2 }
 0x1f7   : > { %v709_v42 = vmul.f32 0.8, %v705_v40  ;;  %v850_v53 = vunpack.c.l.b16 %v843_v51 }
 0x1f8   : > { %v839_v44 = vpop.f32.mrf.mxu1 }
 0x1f9   : > { %v710_v45 = vadd.f32 %v709_v42, %v660_v18  ;;  %v851_v54 = vpack.c.b16 %v850_v53, %v850_v53  ;;  %v3601_v15 = vpop.eup %3600  ;;  %v962_v42 = vrot.slane %v4371_v37, 7 }
 0x1fa   : > { %v929_v16 = vmul.f32 32.0, %v3601_v15  ;;  %vm933_vm5 = vweird.f32 %v3601_v15 }
 0x1fb   : > { %v711_v47 = vpack.c.bf16 %v710_v45, %v710_v45  ;;  %v963_v46 = vsel %vm960_vm9, %v961_v41, %v962_v42 }
 0x1fc   : > { %v930_v17 = vsub.f32 1.0, %v929_v16 }
 0x1fd   : > { %v718_v49 = vunpack.c.l.b16 %v711_v47 }
 0x1fe   : > { %v707_v50 = vpop.f32.mrf.mxu2  ;;  %v931_v18 = vmul.f32 %v3601_v15, %v930_v17 }
 0x1ff   : > { %v719_v52 = vpack.c.b16 %v718_v49, %v718_v49 }
 0x200   : > { %v932_v19 = vadd.f32 %v3601_v15, %v931_v18 }
 0x201   : > { %720 = vrot.lane.b32.xlu1 %v719_v52, %s4022_s27 }
 0x202   : > { %v4354_v20 = vsel %vm933_vm5, %v3601_v15, %v932_v19 }
 0x209   : > { %852 = vrot.lane.b32.xlu1 %v851_v54, %s4022_s27  ;;  %s4028_s27 = smov 88  }
 0x273   : > { %v721_v59 = vpop.permute.xlu1 %720 }
 0x274   : > { %v726_v60 = vsel %vm724_vm3, %v723_v58, %v721_v59 }
 0x275   : > { %3125 = vmatmul.msk.bf16.vlgmr.msra.gmra.mxu3 %vm776_vm4, %v726_v60 }
 0x27b   : > { %v853_v63 = vpop.permute.xlu1 %852 }
 0x27c   : > { %v857_v0 = vsel %vm724_vm3, %v855_v62, %v853_v63 }
 0x27d   : > { %3172 = vmatmul.msk.bf16.vlgmr.msrb.gmra.mxu2 %vm776_vm4, %v857_v0 }
 0x2f8   : > { %v788_v1 = vpop.f32.mrf.mxu3 }
 0x2f9   : > { %v789_v6 = vadd.f32 %v788_v1, %v739_v2 }
 0x300   : > { %v790_v4 = vpop.f32.mrf.mxu3  ;;  %v919_v5 = vpop.f32.mrf.mxu2 }
 0x301   : > { %v920_v7 = vadd.f32 %v919_v5, %v871_v3 }
 0x303   : > { %v923_v8 = vadd.f32 %v920_v7, %v789_v6 }
 0x305   : > { %v924_v9 = vadd.f32 %v923_v8, %v4295_v13  ;;  %v4394_v8 = vld [vmem:[#allocation7] sm:$0xff] }
 0x307   : > { %v925_v11 = vsel %vm673_vm2, %v924_v9, 0.0 }
 0x308   : > { %v921_v12 = vpop.f32.mrf.mxu2  ;;  %926 = vadd.xlane.f32.xlu2 %v925_v11 }
 0x37b   : > { %v927_v21 = vpop.xlane.xlu2 %926 }
 0x37c   : > { %v935_v22 = vmul.f32 %v4354_v20, %v927_v21 }
 0x37e   : > { %v936_v23 = vsub.f32 %v924_v9, %v935_v22 }
 0x380   : > { %v937_v24 = vmul.f32 %v936_v23, %v936_v23 }
 0x382   : > { %v938_v13 = vsel %vm673_vm2, %v937_v24, 0.0 }
 0x383   : > { %939 = vadd.xlane.f32.xlu2 %v938_v13 }
 0x3f6   : > { %v940_v29 = vpop.xlane.xlu2 %939 }
 0x3f7   : > { %v941_v30 = vmul.f32 %v940_v29, %v4354_v20 }
 0x3f9   : > { %v942_v31 = vadd.f32 1e-06, %v941_v30 }
 0x3fb   : > { %3602 = vrsqrt.f32 %v942_v31  ;;  %vm949_vm7 = vweird.f32 %v942_v31 }
 0x401   : > { %v3603_v32 = vpop.eup %3602 }
 0x402   : > { %v944_v33 = vmul.f32 %v3603_v32, %v942_v31  ;;  %vm950_vm6 = vweird.f32 %v3603_v32 }
 0x403   : > { %vm951_vm8 = vmor %vm949_vm7, %vm950_vm6 }
 0x404   : > { %v945_v34 = vmul.f32 %v3603_v32, %v944_v33 }
 0x406   : > { %v946_v35 = vmul.f32 0.5, %v945_v34 }
 0x408   : > { %v947_v36 = vsub.f32 1.5, %v946_v35 }
 0x40a   : > { %v948_v38 = vmul.f32 %v3603_v32, %v947_v36 }
 0x40c   : > { %v952_v40 = vsel %vm951_vm8, %v3603_v32, %v948_v38 }
 0x40d   : > { %v953_v44 = vmul.f32 %v952_v40, %v936_v23 }
 0x40f   : > { %v955_v45 = vmul.f32 %v954_v39, %v953_v44 }
 0x411   : > { %v957_v47 = vadd.f32 %v956_v43, %v955_v45 }
 0x413   : > { %v4377_v48 = vadd.f32 %v963_v46, %v957_v47 }
 0x415   : > { %v973_v49 = vpack.c.bf16 %v4377_v48, %v4377_v48 }
 0x417   : > { %3181 = vmatmul.msk.bf16.vlgmr.msra.gmra.mxu0 %vm673_vm2, %v973_v49  ;;  %3190 = vmatmul.msk.bf16.vlgmr.msra.gmra.mxu1 %vm673_vm2, %v973_v49 }
 0x494   : > { %v1002_v50 = vpop.f32.mrf.mxu0  ;;  %v1031_v51 = vpop.f32.mrf.mxu1 }
 0x495   : > { %v1035_v52 = vpack.c.bf16 %v1002_v50, %v1002_v50  ;;  %1036 = vxpose.xlu2.b32.start.end [1/1] (short) (narrow) %v1031_v51, 32  ;;  %v1072_v23 = vpack.c.bf16 %v1031_v51, %v1031_v51 }
 0x497   : > { %v1134_v53 = vunpack.c.l.b16 %v1035_v52  ;;  %v1109_v28 = vunpack.c.l.b16 %v1072_v23 }
 0x499   : > { %v1135_v10 = vpack.c.b16 %v1134_v53, %v1134_v53  ;;  %v1110_v31 = vpack.c.b16 %v1109_v28, %v1109_v28 }
 0x49b   : > { %1193 = vrot.lane.b32.xlu1 %v1135_v10, %s4024_s13  ;;  %1136 = vrot.lane.b32.xlu0 %v1135_v10, %s4025_s26 }
 0x49c   : > { %v1004_v54 = vpop.f32.mrf.mxu0  ;;  %v1033_v55 = vpop.f32.mrf.mxu1 }
 0x4a3   : > { %1250 = vrot.lane.b32.xlu0 %v1135_v10, %s4026_s2 }
 0x50d   : > { %v1137_v62 = vpop.permute.xlu0 %1136  ;;  %v1194_v2 = vpop.permute.xlu1 %1193 }
 0x515   : > { %v1251_v6 = vpop.permute.xlu0 %1250 }
 0x52e   : > { %v1052_v56 = vpop.trf.xlu2 }
 0x52f   : > { %v1068_v57 = vpack.c.bf16 %v1052_v56, %v1052_v56 }
 0x531   : > { %v1079_v58 = vsel %vm1077_vm10, %v1068_v57, 0 }
 0x532   : > { %1088 = vmatpush.bf16.msrb.mxu3 %v1079_v58 }
 0x535   : > { %3191 = vmatmul.msk.bf16.vlgmr.msrb.gmra.mxu3 %vm1073_vm11, %v1035_v52 }
 0x536   : > { %v1053_v59 = vpop.trf.xlu2 }
 0x537   : > { %v1069_v60 = vpack.c.bf16 %v1053_v59, %v1053_v59 }
 0x539   : > { %v1142_v61 = vsel %vm1077_vm10, %v1069_v60, 0 }
 0x53a   : > { %1151 = vmatpush.bf16.msrb.mxu0 %v1142_v61 }
 0x53d   : > { %3193 = vmatmul.msk.bf16.vlgmr.msrb.gmra.mxu0 %vm1073_vm11, %v1137_v62 }
 0x53e   : > { %v1054_v63 = vpop.trf.xlu2 }
 0x53f   : > { %v1070_v0 = vpack.c.bf16 %v1054_v63, %v1054_v63 }
 0x541   : > { %v1199_v1 = vsel %vm1077_vm10, %v1070_v0, 0 }
 0x542   : > { %1208 = vmatpush.bf16.msra.mxu3 %v1199_v1 }
 0x545   : > { %3195 = vmatmul.msk.bf16.vlgmr.msra.gmra.mxu3 %vm1073_vm11, %v1194_v2 }
 0x546   : > { %v1055_v3 = vpop.trf.xlu2 }
 0x547   : > { %v1071_v4 = vpack.c.bf16 %v1055_v3, %v1055_v3 }
 0x549   : > { %v1256_v5 = vsel %vm1077_vm10, %v1071_v4, 0 }
 0x54a   : > { %1265 = vmatpush.bf16.msra.mxu0 %v1256_v5 }
 0x54d   : > { %3197 = vmatmul.msk.bf16.vlgmr.msra.gmra.mxu0 %vm1073_vm11, %v1251_v6 }
 0x5b8   : > { %v1090_v7 = vpop.f32.mrf.mxu3 }
 0x5b9   : > { %v1094_v9 = vmul.f32 0.35355338, %v1090_v7 }
 0x5ba   : > { %v1153_v11 = vpop.f32.mrf.mxu0 }
 0x5bb   : > { %v1157_v12 = vmul.f32 0.35355338, %v1153_v11  ;;  %v1095_v14 = vadd.f32 %v1094_v9, %v4394_v8 }
 0x5bd   : > { %v1096_v15 = vsel %vm1073_vm11, %v1095_v14, -inf  ;;  %v1158_v16 = vadd.f32 %v1157_v12, %v4394_v8 }
 0x5be   : > { %1097 = vmax.xlane.f32.xlu1 %v1096_v15 }
 0x5bf   : > { %v1159_v17 = vsel %vm1073_vm11, %v1158_v16, -inf }
 0x5c0   : > { %v1092_v18 = vpop.f32.mrf.mxu3  ;;  %1160 = vmax.xlane.f32.xlu0 %v1159_v17 }
 0x5c2   : > { %v1155_v19 = vpop.f32.mrf.mxu0 }
 0x5c8   : > { %v1210_v21 = vpop.f32.mrf.mxu3 }
 0x5c9   : > { %v1214_v22 = vmul.f32 0.35355338, %v1210_v21 }
 0x5ca   : > { %v1267_v24 = vpop.f32.mrf.mxu0 }
 0x5cb   : > { %v1271_v13 = vmul.f32 0.35355338, %v1267_v24  ;;  %v1215_v25 = vadd.f32 %v1214_v22, %v4394_v8 }
 0x5cd   : > { %v1216_v26 = vsel %vm1073_vm11, %v1215_v25, -inf  ;;  %v1272_v27 = vadd.f32 %v1271_v13, %v4394_v8 }
 0x5ce   : > { %1217 = vmax.xlane.f32.xlu2 %v1216_v26 }
 0x5cf   : > { %v1273_v29 = vsel %vm1073_vm11, %v1272_v27, -inf }
 0x5d0   : > { %v1212_v30 = vpop.f32.mrf.mxu3  ;;  %1274 = vmax.xlane.f32.xlu1 %v1273_v29 }
 0x5d2   : > { %v1269_v32 = vpop.f32.mrf.mxu0 }
 0x5d4   : > { %1111 = vrot.lane.b32.xlu0 %v1110_v31, %s4027_s7 }
 0x5e9   : > { %1171 = vrot.lane.b32.xlu1 %v1110_v31, %s4028_s27 }
 0x631   : > { %v1098_v33 = vpop.xlane.xlu1 %1097 }
 0x632   : > { %v1099_v34 = vsub.f32 %v1095_v14, %v1098_v33 }
 0x633   : > { %v1161_v35 = vpop.xlane.xlu0 %1160 }
 0x634   : > { %v1100_v36 = vmul.f32 1.442695, %v1099_v34  ;;  %v1162_v38 = vsub.f32 %v1158_v16, %v1161_v35  ;;  %v3436_v34 = vld [vmem:[%s4761_s10 + $0x8] sm:$0xff]  ;;  %v3435_v35 = vld [vmem:[%s4761_s10] sm:$0xff] }
 0x635   : > { %1355 = vmatpush.bf16.msrb.mxu3 %v3436_v34 }
 0x636   : > { %3604 = vpow2.f32 %v1100_v36  ;;  %v1163_v39 = vmul.f32 1.442695, %v1162_v38 }
 0x638   : > { %3606 = vpow2.f32 %v1163_v39 }
 0x639   : > { %1356 = vmatpush.bf16.msrb.mxu3 %v3435_v35  ;;  %v4476_v35 = vld [vmem:[#allocation8] ss:$0 sm:$0xff] }
 0x63c   : > { %v3605_v40 = vpop.eup %3604 }
 0x63d   : > { %v1102_v41 = vsel %vm1073_vm11, %v3605_v40, 0.0 }
 0x63e   : > { %v3607_v42 = vpop.eup %3606  ;;  %1103 = vadd.xlane.f32.xlu0 %v1102_v41 }
 0x63f   : > { %v1165_v43 = vsel %vm1073_vm11, %v3607_v42, 0.0 }
 0x640   : > { %1166 = vadd.xlane.f32.xlu1 %v1165_v43 }
 0x641   : > { %v1218_v44 = vpop.xlane.xlu2 %1217 }
 0x642   : > { %v1219_v45 = vsub.f32 %v1215_v25, %v1218_v44 }
 0x643   : > { %v1275_v46 = vpop.xlane.xlu1 %1274 }
 0x644   : > { %v1220_v47 = vmul.f32 1.442695, %v1219_v45  ;;  %v1276_v49 = vsub.f32 %v1272_v27, %v1275_v46 }
 0x646   : > { %3608 = vpow2.f32 %v1220_v47  ;;  %v1277_v50 = vmul.f32 1.442695, %v1276_v49  ;;  %v1112_v51 = vpop.permute.xlu0 %1111 }
 0x647   : > { %v1117_v52 = vsel %vm1077_vm10, %v1112_v51, 0 }
 0x648   : > { %3610 = vpow2.f32 %v1277_v50  ;;  %1126 = vmatpush.bf16.msra.mxu2 %v1117_v52 }
 0x64c   : > { %v3609_v53 = vpop.eup %3608 }
 0x64d   : > { %v1222_v10 = vsel %vm1073_vm11, %v3609_v53, 0.0 }
 0x64e   : > { %v3611_v54 = vpop.eup %3610  ;;  %1223 = vadd.xlane.f32.xlu0 %v1222_v10  ;;  %v3438_v10 = vld [vmem:[%s4759_s8 + $0x18] sm:$0xff] }
 0x64f   : > { %v1279_v55 = vsel %vm1073_vm11, %v3611_v54, 0.0 }
 0x650   : > { %1280 = vadd.xlane.f32.xlu1 %v1279_v55 }
 0x65b   : > { %v1172_v56 = vpop.permute.xlu1 %1171 }
 0x65c   : > { %v1177_v57 = vsel %vm1077_vm10, %v1172_v56, 0 }
 0x65d   : > { %1186 = vmatpush.bf16.msrb.mxu1 %v1177_v57  ;;  %v3439_v57 = vld [vmem:[%s4760_s9 + $0x10] sm:$0xff] }
 0x662   : > { %1228 = vrot.lane.b32.xlu0 %v1110_v31, %s4780_s25 }
 0x669   : > { %1285 = vrot.lane.b32.xlu1 %v1110_v31, %s4779_s14 }
 0x6b1   : > { %v1104_v58 = vpop.xlane.xlu0 %1103 }
 0x6b2   : > { %3612 = vrcp.f32 %v1104_v58  ;;  %v966_v58 = vld [vmem:[%s538_s17] sm:$0xff]  ;;  %s4807_s17 = smov 24  }
 0x6b3   : > { %v1167_v59 = vpop.xlane.xlu1 %1166 }
 0x6b4   : > { %3614 = vrcp.f32 %v1167_v59 }
 0x6b8   : > { %v3613_v60 = vpop.eup %3612 }
 0x6b9   : > { %v1106_v61 = vmul.f32 %v3613_v60, %v3605_v40  ;;  %v4452_v60 = vpack.c.bf16 %v966_v58, %v966_v58 }
 0x6ba   : > { %v3615_v62 = vpop.eup %3614 }
 0x6bb   : > { %v1107_v63 = vpack.c.bf16 %v1106_v61, %v1106_v61  ;;  %v1169_v0 = vmul.f32 %v3615_v62, %v3607_v42 }
 0x6bd   : > { %v1170_v1 = vpack.c.bf16 %v1169_v0, %v1169_v0  ;;  %3192 = vmatmul.msk.bf16.vlgmr.msra.gmra.mxu2 %vm1073_vm11, %v1107_v63 }
 0x6bf   : > { %3194 = vmatmul.msk.bf16.vlgmr.msrb.gmra.mxu1 %vm1073_vm11, %v1170_v1 }
 0x6c1   : > { %v1224_v2 = vpop.xlane.xlu0 %1223 }
 0x6c2   : > { %3616 = vrcp.f32 %v1224_v2  ;;  %v4456_v2 = vld [vmem:[#allocation13 + $0x10] sm:$0xff] }
 0x6c3   : > { %v1281_v3 = vpop.xlane.xlu1 %1280 }
 0x6c4   : > { %3618 = vrcp.f32 %v1281_v3 }
 0x6c8   : > { %v3617_v4 = vpop.eup %3616 }
 0x6c9   : > { %v1226_v5 = vmul.f32 %v3617_v4, %v3609_v53  ;;  %v1385_v4 = vperm.slane %v4371_v37, 7 }
 0x6ca   : > { %v3619_v9 = vpop.eup %3618 }
 0x6cb   : > { %v1227_v11 = vpack.c.bf16 %v1226_v5, %v1226_v5  ;;  %v1283_v12 = vmul.f32 %v3619_v9, %v3611_v54  ;;  %v3440_v54 = vld [vmem:[%s4760_s9 + $0x18] sm:$0xff] }
 0x6cc   : > { %1449 = vmatpush.bf16.msrb.mxu0 %v3440_v54 }
 0x6cd   : > { %v1284_v16 = vpack.c.bf16 %v1283_v12, %v1283_v12 }
 0x6d0   : > { %1450 = vmatpush.bf16.msrb.mxu0 %v3439_v57 }
 0x6d3   : > { %3233 = vmatmul.msk.bf16.vlgmr.msrb.gmra.mxu0 %vm673_vm2, %v4452_v60 }
 0x6d4   : > { %v1229_v6 = vpop.permute.xlu0 %1228 }
 0x6d5   : > { %v1234_v7 = vsel %vm1077_vm10, %v1229_v6, 0  ;;  %v1387_v6 = vperm.slane %v4456_v2, 0 }
 0x6d6   : > { %1243 = vmatpush.bf16.msrb.mxu2 %v1234_v7 }
 0x6d9   : > { %3196 = vmatmul.msk.bf16.vlgmr.msrb.gmra.mxu2 %vm1073_vm11, %v1227_v11 }
 0x6da   : > { %1416 = vmatpush.bf16.msra.mxu2 %v3438_v10 }
 0x6db   : > { %v1286_v14 = vpop.permute.xlu1 %1285 }
 0x6dc   : > { %v1291_v15 = vsel %vm1077_vm10, %v1286_v14, 0 }
 0x6dd   : > { %1300 = vmatpush.bf16.msra.mxu1 %v1291_v15 }
 0x6e0   : > { %3198 = vmatmul.msk.bf16.vlgmr.msra.gmra.mxu1 %vm1073_vm11, %v1284_v16 }
 0x73c   : > { %v1188_v17 = vpop.f32.mrf.mxu1 }
 0x73d   : > { %v1192_v18 = vpack.c.bf16 %v1188_v17, %v1188_v17 }
 0x73f   : > { %v1308_v19 = vunpack.c.l.b16 %v1192_v18 }
 0x740   : > { %v1128_v21 = vpop.f32.mrf.mxu2 }
 0x741   : > { %v1309_v22 = vpack.c.b16 %v1308_v19, %v1308_v19  ;;  %v1132_v38 = vpack.c.bf16 %v1128_v21, %v1128_v21 }
 0x743   : > { %1310 = vrot.lane.b32.xlu0 %v1309_v22, %s4777_s23 }
 0x744   : > { %v1190_v23 = vpop.f32.mrf.mxu1 }
 0x748   : > { %v1130_v24 = vpop.f32.mrf.mxu2 }
 0x750   : > { %v1452_v14 = vpop.f32.mrf.mxu0 }
 0x758   : > { %v1454_v15 = vpop.f32.mrf.mxu0 }
 0x75c   : > { %v1245_v13 = vpop.f32.mrf.mxu2 }
 0x75d   : > { %v1249_v25 = vpack.c.bf16 %v1245_v13, %v1245_v13  ;;  %v1302_v26 = vpop.f32.mrf.mxu1 }
 0x75e   : > { %v1306_v27 = vpack.c.bf16 %v1302_v26, %v1302_v26 }
 0x75f   : > { %v1313_v28 = vunpack.c.l.b16 %v1249_v25 }
 0x760   : > { %v1318_v29 = vunpack.c.l.b16 %v1306_v27 }
 0x761   : > { %v1314_v30 = vpack.c.b16 %v1313_v28, %v1313_v28 }
 0x762   : > { %v1319_v31 = vpack.c.b16 %v1318_v29, %v1318_v29 }
 0x763   : > { %1315 = vrot.lane.b32.xlu0 %v1314_v30, %s4775_s19 }
 0x764   : > { %v1247_v32 = vpop.f32.mrf.mxu2  ;;  %1320 = vrot.lane.b32.xlu1 %v1319_v31, %s4773_s12 }
 0x765   : > { %v1304_v33 = vpop.f32.mrf.mxu1 }
 0x7b5   : > { %v1311_v36 = vpop.permute.xlu0 %1310 }
 0x7b6   : > { %v1324_v39 = vsel %vm1073_vm11, %v1132_v38, %v1311_v36 }
 0x7d5   : > { %v1316_v40 = vpop.permute.xlu0 %1315 }
 0x7d6   : > { %v1327_v41 = vsel %vm1325_vm12, %v1324_v39, %v1316_v40  ;;  %v1321_v42 = vpop.permute.xlu1 %1320 }
 0x7d7   : > { %v1330_v43 = vsel %vm1328_vm13, %v1327_v41, %v1321_v42 }
 0x7d8   : > { %3207 = vmatmul.msk.bf16.vlgmr.msrb.gmra.mxu3 %vm673_vm2, %v1330_v43 }
 0x85b   : > { %v1358_v44 = vpop.f32.mrf.mxu3 }
 0x85c   : > { %v1362_v45 = vadd.f32 %v1358_v44, %v4377_v48  ;;  %v3437_v48 = vld [vmem:[%s4759_s8 + $0x10] sm:$0xff]  ;;  %v1493_v44 = vpack.c.bf16 %v1452_v14, %v1452_v14 }
 0x85d   : > { %1417 = vmatpush.bf16.msra.mxu2 %v3437_v48 }
 0x85e   : > { %v1363_v46 = vsel %vm673_vm2, %v1362_v45, 0.0 }
 0x85f   : > { %1364 = vadd.xlane.f32.xlu0 %v1363_v46 }
 0x863   : > { %v1360_v47 = vpop.f32.mrf.mxu3 }
 0x8d2   : > { %v1365_v49 = vpop.xlane.xlu0 %1364 }
 0x8d3   : > { %v1366_v50 = vmul.f32 %v1365_v49, %v4354_v20 }
 0x8d5   : > { %v1367_v51 = vsub.f32 %v1362_v45, %v1366_v50 }
 0x8d7   : > { %v1368_v52 = vmul.f32 %v1367_v51, %v1367_v51 }
 0x8d9   : > { %v1369_v53 = vsel %vm673_vm2, %v1368_v52, 0.0 }
 0x8da   : > { %1370 = vadd.xlane.f32.xlu1 %v1369_v53 }
 0x94d   : > { %v1371_v55 = vpop.xlane.xlu1 %1370 }
 0x94e   : > { %v1372_v56 = vmul.f32 %v1371_v55, %v4354_v20 }
 0x950   : > { %v1373_v59 = vadd.f32 1e-06, %v1372_v56 }
 0x952   : > { %3620 = vrsqrt.f32 %v1373_v59  ;;  %vm1380_vm15 = vweird.f32 %v1373_v59 }
 0x958   : > { %v3621_v61 = vpop.eup %3620 }
 0x959   : > { %v1375_v62 = vmul.f32 %v3621_v61, %v1373_v59  ;;  %vm1381_vm14 = vweird.f32 %v3621_v61 }
 0x95a   : > { %vm1382_vm0 = vmor %vm1380_vm15, %vm1381_vm14 }
 0x95b   : > { %v1376_v63 = vmul.f32 %v3621_v61, %v1375_v62 }
 0x95d   : > { %v1377_v0 = vmul.f32 0.5, %v1376_v63 }
 0x95f   : > { %v1378_v1 = vsub.f32 1.5, %v1377_v0 }
 0x961   : > { %v1379_v3 = vmul.f32 %v3621_v61, %v1378_v1 }
 0x963   : > { %v1383_v5 = vsel %vm1382_vm0, %v3621_v61, %v1379_v3 }
 0x964   : > { %v1384_v7 = vmul.f32 %v1383_v5, %v1367_v51  ;;  %v1528_v51 = vunpack.c.l.b16 %v1493_v44 }
 0x966   : > { %v1386_v9 = vmul.f32 %v1385_v4, %v1384_v7  ;;  %v1529_v10 = vpack.c.b16 %v1528_v51, %v1528_v51 }
 0x968   : > { %v4460_v11 = vadd.f32 %v1387_v6, %v1386_v9 }
 0x96a   : > { %v1389_v12 = vpack.c.bf16 %v4460_v11, %v4460_v11 }
 0x96c   : > { %3220 = vmatmul.msk.bf16.vlgmr.msra.gmra.mxu2 %vm673_vm2, %v1389_v12 }
 0x9ef   : > { %v1419_v16 = vpop.f32.mrf.mxu2 }
 0x9f0   : > { %v1456_v17 = vpack.c.bf16 %v1419_v16, %v1419_v16 }
 0x9f2   : > { %v1553_v18 = vunpack.c.l.b16 %v1456_v17 }
 0x9f4   : > { %v1554_v19 = vpack.c.b16 %v1553_v18, %v1553_v18 }
 0x9f6   : > { %1669 = vrot.lane.b32.xlu1 %v1554_v19, %s4026_s2  ;;  %1612 = vrot.lane.b32.xlu0 %v1554_v19, %s4024_s13 }
 0x9f7   : > { %1555 = vrot.lane.b32.xlu2 %v1554_v19, %s4025_s26  ;;  %v1421_v37 = vpop.f32.mrf.mxu2 }
 0xa1d   : > { %1457 = vxpose.xlu2.b32.start.end [1/1] (short) (narrow) %v1452_v14, 32 }
 0xa51   : > { %v1556_v21 = vpop.permute.xlu2 %1555 }
 0xa68   : > { %v1613_v30 = vpop.permute.xlu0 %1612  ;;  %v1670_v34 = vpop.permute.xlu1 %1669 }
 0xab6   : > { %v1473_v22 = vpop.trf.xlu2 }
 0xab7   : > { %v1489_v23 = vpack.c.bf16 %v1473_v22, %v1473_v22 }
 0xab9   : > { %v1498_v24 = vsel %vm1077_vm10, %v1489_v23, 0 }
 0xaba   : > { %1507 = vmatpush.bf16.msrb.mxu1 %v1498_v24 }
 0xabd   : > { %3234 = vmatmul.msk.bf16.vlgmr.msrb.gmra.mxu1 %vm1073_vm11, %v1456_v17 }
 0xabe   : > { %v1474_v13 = vpop.trf.xlu2 }
 0xabf   : > { %v1490_v25 = vpack.c.bf16 %v1474_v13, %v1474_v13 }
 0xac1   : > { %v1561_v26 = vsel %vm1077_vm10, %v1490_v25, 0 }
 0xac2   : > { %1570 = vmatpush.bf16.msrb.mxu2 %v1561_v26 }
 0xac5   : > { %3236 = vmatmul.msk.bf16.vlgmr.msrb.gmra.mxu2 %vm1073_vm11, %v1556_v21 }
 0xac6   : > { %v1475_v27 = vpop.trf.xlu2 }
 0xac7   : > { %v1491_v28 = vpack.c.bf16 %v1475_v27, %v1475_v27 }
 0xac9   : > { %v1618_v29 = vsel %vm1077_vm10, %v1491_v28, 0 }
 0xaca   : > { %1627 = vmatpush.bf16.msra.mxu1 %v1618_v29 }
 0xacd   : > { %3238 = vmatmul.msk.bf16.vlgmr.msra.gmra.mxu1 %vm1073_vm11, %v1613_v30 }
 0xace   : > { %v1476_v31 = vpop.trf.xlu2 }
 0xacf   : > { %v1492_v32 = vpack.c.bf16 %v1476_v31, %v1476_v31 }
 0xad1   : > { %v1675_v33 = vsel %vm1077_vm10, %v1492_v32, 0 }
 0xad2   : > { %1684 = vmatpush.bf16.msra.mxu2 %v1675_v33 }
 0xad5   : > { %3240 = vmatmul.msk.bf16.vlgmr.msra.gmra.mxu2 %vm1073_vm11, %v1670_v34 }
 0xb3a   : > { %v1509_v36 = vpop.f32.mrf.mxu1 }
 0xb3b   : > { %v1513_v38 = vmul.f32 0.35355338, %v1509_v36 }
 0xb3d   : > { %v1514_v39 = vadd.f32 %v4476_v35, %v1513_v38 }
 0xb3f   : > { %v1515_v40 = vsel %vm1073_vm11, %v1514_v39, -inf }
 0xb40   : > { %1516 = vmax.xlane.f32.xlu0 %v1515_v40 }
 0xb42   : > { %v1511_v41 = vpop.f32.mrf.mxu1 }
 0xb48   : > { %v1572_v42 = vpop.f32.mrf.mxu2 }
 0xb49   : > { %v1576_v43 = vmul.f32 0.35355338, %v1572_v42 }
 0xb4a   : > { %v1629_v45 = vpop.f32.mrf.mxu1 }
 0xb4b   : > { %v1633_v46 = vmul.f32 0.35355338, %v1629_v45  ;;  %v1577_v47 = vadd.f32 %v4476_v35, %v1576_v43 }
 0xb4d   : > { %v1578_v49 = vsel %vm1073_vm11, %v1577_v47, -inf  ;;  %v1634_v50 = vadd.f32 %v4476_v35, %v1633_v46 }
 0xb4e   : > { %1579 = vmax.xlane.f32.xlu1 %v1578_v49 }
 0xb4f   : > { %v1635_v52 = vsel %vm1073_vm11, %v1634_v50, -inf }
 0xb50   : > { %v1574_v53 = vpop.f32.mrf.mxu2  ;;  %1636 = vmax.xlane.f32.xlu2 %v1635_v52 }
 0xb52   : > { %v1631_v48 = vpop.f32.mrf.mxu1 }
 0xb54   : > { %1590 = vrot.lane.b32.xlu0 %v1529_v10, %s4028_s27 }
 0xb58   : > { %v1686_v54 = vpop.f32.mrf.mxu2 }
 0xb59   : > { %v1690_v56 = vmul.f32 0.35355338, %v1686_v54 }
 0xb5b   : > { %v1691_v57 = vadd.f32 %v4476_v35, %v1690_v56 }
 0xb5d   : > { %v1692_v58 = vsel %vm1073_vm11, %v1691_v57, -inf }
 0xb60   : > { %v1688_v55 = vpop.f32.mrf.mxu2 }
 0xb67   : > { %1530 = vrot.lane.b32.xlu1 %v1529_v10, %s4027_s7 }
 0xb7e   : > { %1693 = vmax.xlane.f32.xlu0 %v1692_v58 }
 0xbb3   : > { %v1517_v59 = vpop.xlane.xlu0 %1516 }
 0xbb4   : > { %v1518_v61 = vsub.f32 %v1514_v39, %v1517_v59 }
 0xbb6   : > { %v1519_v62 = vmul.f32 1.442695, %v1518_v61 }
 0xbb8   : > { %3622 = vpow2.f32 %v1519_v62 }
 0xbbe   : > { %v3623_v63 = vpop.eup %3622 }
 0xbbf   : > { %v1521_v0 = vsel %vm1073_vm11, %v3623_v63, 0.0 }
 0xbc0   : > { %1522 = vadd.xlane.f32.xlu1 %v1521_v0  ;;  %v3441_v0 = vld [vmem:[%s4761_s10 + $0x10] sm:$0xff] }
 0xbc1   : > { %v1580_v1 = vpop.xlane.xlu1 %1579 }
 0xbc2   : > { %v1581_v5 = vsub.f32 %v1577_v47, %v1580_v1 }
 0xbc3   : > { %v1637_v3 = vpop.xlane.xlu2 %1636 }
 0xbc4   : > { %v1638_v4 = vsub.f32 %v1634_v50, %v1637_v3  ;;  %v1582_v12 = vmul.f32 1.442695, %v1581_v5 }
 0xbc6   : > { %v1639_v6 = vmul.f32 1.442695, %v1638_v4  ;;  %v1591_v7 = vpop.permute.xlu0 %1590 }
 0xbc7   : > { %v1596_v9 = vsel %vm1077_vm10, %v1591_v7, 0 }
 0xbc8   : > { %3624 = vpow2.f32 %v1639_v6  ;;  %1605 = vmatpush.bf16.msra.mxu0 %v1596_v9 }
 0xbc9   : > { %3626 = vpow2.f32 %v1582_v12 }
 0xbce   : > { %v3625_v14 = vpop.eup %3624 }
 0xbcf   : > { %v1641_v15 = vsel %vm1073_vm11, %v3625_v14, 0.0  ;;  %v3627_v16 = vpop.eup %3626 }
 0xbd0   : > { %1642 = vadd.xlane.f32.xlu0 %v1641_v15  ;;  %v1584_v17 = vsel %vm1073_vm11, %v3627_v16, 0.0 }
 0xbd8   : > { %1585 = vadd.xlane.f32.xlu0 %v1584_v17 }
 0xbd9   : > { %v1531_v18 = vpop.permute.xlu1 %1530 }
 0xbda   : > { %v1536_v19 = vsel %vm1077_vm10, %v1531_v18, 0 }
 0xbdb   : > { %1545 = vmatpush.bf16.msra.mxu3 %v1536_v19 }
 0xbec   : > { %1647 = vrot.lane.b32.xlu0 %v1529_v10, %s4780_s25 }
 0xbf1   : > { %v1694_v37 = vpop.xlane.xlu0 %1693 }
 0xbf2   : > { %v1695_v21 = vsub.f32 %v1691_v57, %v1694_v37 }
 0xbf4   : > { %v1696_v22 = vmul.f32 1.442695, %v1695_v21 }
 0xbf6   : > { %3628 = vpow2.f32 %v1696_v22  ;;  %v3444_v22 = vld [vmem:[#allocation14 + $0x8] sm:$0xff] }
 0xbfc   : > { %v3629_v23 = vpop.eup %3628 }
 0xbfd   : > { %v1698_v24 = vsel %vm1073_vm11, %v3629_v23, 0.0 }
 0xbfe   : > { %1699 = vadd.xlane.f32.xlu1 %v1698_v24 }
 0xc17   : > { %1704 = vrot.lane.b32.xlu1 %v1529_v10, %s4779_s14 }
 0xc33   : > { %v1523_v13 = vpop.xlane.xlu1 %1522 }
 0xc34   : > { %3630 = vrcp.f32 %v1523_v13 }
 0xc3a   : > { %v3631_v25 = vpop.eup %3630 }
 0xc3b   : > { %v1525_v26 = vmul.f32 %v3631_v25, %v3623_v63  ;;  %v3442_v63 = vld [vmem:[%s4761_s10 + $0x18] sm:$0xff]  ;;  %v3447_v25 = vld [vmem:[%s4809_s24 + $0x10] sm:$0xff] }
 0xc3c   : > { %1773 = vmatpush.bf16.msrb.mxu1 %v3442_v63  ;;  %v3449_v63 = vld [vmem:[%s4759_s8 + $0x20] sm:$0xff] }
 0xc3d   : > { %v1526_v27 = vpack.c.bf16 %v1525_v26, %v1525_v26 }
 0xc3f   : > { %3235 = vmatmul.msk.bf16.vlgmr.msra.gmra.mxu3 %vm1073_vm11, %v1526_v27 }
 0xc40   : > { %1774 = vmatpush.bf16.msrb.mxu1 %v3441_v0  ;;  %v3451_v0 = vld [vmem:[%s4760_s9 + $0x20] sm:$0xff] }
 0xc43   : > { %v1643_v28 = vpop.xlane.xlu0 %1642 }
 0xc4b   : > { %v1586_v29 = vpop.xlane.xlu0 %1585 }
 0xc4c   : > { %3632 = vrcp.f32 %v1586_v29 }
 0xc4d   : > { %3634 = vrcp.f32 %v1643_v28 }
 0xc52   : > { %v3633_v30 = vpop.eup %3632 }
 0xc53   : > { %v1588_v31 = vmul.f32 %v3633_v30, %v3627_v16  ;;  %v3635_v33 = vpop.eup %3634 }
 0xc54   : > { %v1645_v34 = vmul.f32 %v3635_v33, %v3625_v14  ;;  %v1803_v33 = vperm.slane %v4456_v2, 1 }
 0xc55   : > { %v1589_v32 = vpack.c.bf16 %v1588_v31, %v1588_v31 }
 0xc56   : > { %v1646_v39 = vpack.c.bf16 %v1645_v34, %v1645_v34 }
 0xc57   : > { %3237 = vmatmul.msk.bf16.vlgmr.msra.gmra.mxu0 %vm1073_vm11, %v1589_v32 }
 0xc5e   : > { %v1648_v36 = vpop.permute.xlu0 %1647 }
 0xc5f   : > { %v1653_v38 = vsel %vm1077_vm10, %v1648_v36, 0  ;;  %v1805_v36 = vperm.slane %v4456_v2, 2 }
 0xc60   : > { %1662 = vmatpush.bf16.msrb.mxu3 %v1653_v38 }
 0xc63   : > { %3239 = vmatmul.msk.bf16.vlgmr.msrb.gmra.mxu3 %vm1073_vm11, %v1646_v39 }
 0xc64   : > { %1837 = vmatpush.bf16.msra.mxu3 %v3444_v22 }
 0xc71   : > { %v1700_v40 = vpop.xlane.xlu1 %1699 }
 0xc72   : > { %3636 = vrcp.f32 %v1700_v40 }
 0xc78   : > { %v3637_v41 = vpop.eup %3636 }
 0xc79   : > { %v1702_v42 = vmul.f32 %v3637_v41, %v3629_v23  ;;  %v3443_v23 = vld [vmem:[#allocation14] sm:$0xff] }
 0xc7a   : > { %1838 = vmatpush.bf16.msra.mxu3 %v3443_v23 }
 0xc7b   : > { %v1703_v45 = vpack.c.bf16 %v1702_v42, %v1702_v42  ;;  %v3446_v42 = vld [vmem:[%s4809_s24 + $0x8] sm:$0xff] }
 0xc89   : > { %v1705_v43 = vpop.permute.xlu1 %1704 }
 0xc8a   : > { %v1710_v44 = vsel %vm1077_vm10, %v1705_v43, 0  ;;  %v3445_v43 = vld [vmem:[%s4809_s24] sm:$0xff] }
 0xc8b   : > { %1719 = vmatpush.bf16.msrb.mxu0 %v1710_v44  ;;  %v3598_v44 = vld [vmem:[%s4810_s16] ss:$0 sm:$0xff] }
 0xc8e   : > { %3241 = vmatmul.msk.bf16.vlgmr.msrb.gmra.mxu0 %vm1073_vm11, %v1703_v45 }
 0xcc2   : > { %v1547_v46 = vpop.f32.mrf.mxu3 }
 0xcc3   : > { %v1551_v3 = vpack.c.bf16 %v1547_v46, %v1547_v46 }
 0xcca   : > { %v1549_v47 = vpop.f32.mrf.mxu3 }
 0xcd4   : > { %v1607_v49 = vpop.f32.mrf.mxu0 }
 0xcd5   : > { %v1611_v50 = vpack.c.bf16 %v1607_v49, %v1607_v49 }
 0xcd7   : > { %v1727_v51 = vunpack.c.l.b16 %v1611_v50 }
 0xcd9   : > { %v1728_v52 = vpack.c.b16 %v1727_v51, %v1727_v51  ;;  %v1854_v51 = vperm.slane %v4456_v2, 3 }
 0xcdb   : > { %1729 = vrot.lane.b32.xlu0 %v1728_v52, %s4777_s23  ;;  %s4812_s23 = smov 8  }
 0xcdc   : > { %v1609_v53 = vpop.f32.mrf.mxu0 }
 0xce6   : > { %v1664_v10 = vpop.f32.mrf.mxu3 }
 0xce7   : > { %v1668_v48 = vpack.c.bf16 %v1664_v10, %v1664_v10 }
 0xce9   : > { %v1732_v54 = vunpack.c.l.b16 %v1668_v48 }
 0xceb   : > { %v1733_v55 = vpack.c.b16 %v1732_v54, %v1732_v54 }
 0xced   : > { %1734 = vrot.lane.b32.xlu0 %v1733_v55, %s4775_s19  ;;  %s4811_s19 = smov %s4810_s16 }
 0xcee   : > { %v1666_v56 = vpop.f32.mrf.mxu3 }
 0xd0b   : > { %v1721_v57 = vpop.f32.mrf.mxu0 }
 0xd0c   : > { %v1725_v58 = vpack.c.bf16 %v1721_v57, %v1721_v57 }
 0xd0e   : > { %v1737_v59 = vunpack.c.l.b16 %v1725_v58 }
 0xd10   : > { %v1738_v61 = vpack.c.b16 %v1737_v59, %v1737_v59 }
 0xd12   : > { %1739 = vrot.lane.b32.xlu1 %v1738_v61, %s4807_s17  ;;  %v3450_v61 = vld [vmem:[%s4759_s8 + $0x28] sm:$0xff] }
 0xd13   : > { %v1723_v62 = vpop.f32.mrf.mxu0  ;;  %1949 = vmatpush.bf16.msra.mxu0 %v3450_v61 }
 0xd14   : > { %v3452_v62 = vld [vmem:[%s4760_s9 + $0x28] sm:$0xff] }
 0xd15   : > { %1979 = vmatpush.bf16.msra.mxu1 %v3452_v62 }
 0xd17   : > { %1950 = vmatpush.bf16.msra.mxu0 %v3449_v63 }
 0xd19   : > { %1980 = vmatpush.bf16.msra.mxu1 %v3451_v0 }
 0xd4d   : > { %v1730_v1 = vpop.permute.xlu0 %1729 }
 0xd4e   : > { %v1743_v5 = vsel %vm1073_vm11, %v1551_v3, %v1730_v1 }
 0xd5f   : > { %v1735_v4 = vpop.permute.xlu0 %1734 }
 0xd60   : > { %v1745_v6 = vsel %vm1325_vm12, %v1743_v5, %v1735_v4 }
 0xd84   : > { %v1740_v7 = vpop.permute.xlu1 %1739 }
 0xd85   : > { %v1747_v9 = vsel %vm1328_vm13, %v1745_v6, %v1740_v7 }
 0xd86   : > { %3254 = vmatmul.msk.bf16.vlgmr.msrb.gmra.mxu1 %vm673_vm2, %v1747_v9 }
 0xe03   : > { %v1776_v12 = vpop.f32.mrf.mxu1 }
 0xe04   : > { %v1780_v14 = vadd.f32 %v1776_v12, %v4460_v11  ;;  %v3448_v11 = vld [vmem:[%s4808_s15 + $0x18] sm:$0xff] }
 0xe05   : > { %1886 = vmatpush.bf16.msrb.mxu2 %v3448_v11 }
 0xe06   : > { %v1781_v15 = vsel %vm673_vm2, %v1780_v14, 0.0 }
 0xe07   : > { %1782 = vadd.xlane.f32.xlu2 %v1781_v15  ;;  %v1918_v15 = vperm.slane %v4456_v2, 4 }
 0xe09   : > { %1887 = vmatpush.bf16.msrb.mxu2 %v3447_v25 }
 0xe0b   : > { %v1778_v16 = vpop.f32.mrf.mxu1 }
 0xe0d   : > { %1888 = vmatpush.bf16.msrb.mxu2 %v3446_v42 }
 0xe11   : > { %1889 = vmatpush.bf16.msrb.mxu2 %v3445_v43 }
 0xe7a   : > { %v1783_v17 = vpop.xlane.xlu2 %1782 }
 0xe7b   : > { %v1784_v18 = vmul.f32 %v1783_v17, %v4354_v20  ;;  %v1920_v17 = vperm.slane %v4456_v2, 5 }
 0xe7d   : > { %v1785_v19 = vsub.f32 %v1780_v14, %v1784_v18 }
 0xe7f   : > { %v1786_v37 = vmul.f32 %v1785_v19, %v1785_v19 }
 0xe81   : > { %v1787_v21 = vsel %vm673_vm2, %v1786_v37, 0.0 }
 0xe82   : > { %1788 = vadd.xlane.f32.xlu0 %v1787_v21 }
 0xef5   : > { %v1789_v24 = vpop.xlane.xlu0 %1788 }
 0xef6   : > { %v1790_v13 = vmul.f32 %v1789_v24, %v4354_v20 }
 0xef8   : > { %v1791_v26 = vadd.f32 1e-06, %v1790_v13 }
 0xefa   : > { %3638 = vrsqrt.f32 %v1791_v26  ;;  %vm1798_vm4 = vweird.f32 %v1791_v26 }
 0xf00   : > { %v3639_v27 = vpop.eup %3638 }
 0xf01   : > { %v1793_v28 = vmul.f32 %v3639_v27, %v1791_v26  ;;  %vm1799_vm1 = vweird.f32 %v3639_v27 }
 0xf02   : > { %vm1800_vm5 = vmor %vm1798_vm4, %vm1799_vm1 }
 0xf03   : > { %v1794_v29 = vmul.f32 %v3639_v27, %v1793_v28 }
 0xf05   : > { %v1795_v30 = vmul.f32 0.5, %v1794_v29 }
 0xf07   : > { %v1796_v31 = vsub.f32 1.5, %v1795_v30 }
 0xf09   : > { %v1797_v32 = vmul.f32 %v3639_v27, %v1796_v31 }
 0xf0b   : > { %v1801_v34 = vsel %vm1800_vm5, %v3639_v27, %v1797_v32 }
 0xf0c   : > { %v1802_v38 = vmul.f32 %v1801_v34, %v1785_v19 }
 0xf0e   : > { %v1804_v39 = vmul.f32 %v1803_v33, %v1802_v38 }
 0xf10   : > { %v1806_v40 = vadd.f32 %v1805_v36, %v1804_v39 }
 0xf12   : > { %v1807_v41 = vpack.c.bf16 %v1806_v40, %v1806_v40 }
 0xf14   : > { %3263 = vmatmul.msk.bf16.vlgmr.msra.gmra.mxu3 %vm673_vm2, %v1807_v41 }
 0xf97   : > { %v1840_v45 = vpop.f32.mrf.mxu3 }
 0xf98   : > { %v1841_v46 = vadd.f32 %v3598_v44, %v1840_v45 }
 0xf9a   : > { %v1844_v47 = vmax.f32 %v1841_v46, 0.0 }
 0xf9c   : > { %v1845_v49 = vpack.c.bf16 %v1844_v47, %v1844_v47 }
 0xf9e   : > { %3280 = vmatmul.msk.bf16.vlgmr.msrb.gmra.mxu2 %vm724_vm3, %v1845_v49 }
 0xf9f   : > { %v1842_v50 = vpop.f32.mrf.mxu3 }
0x1021   : > { %v1891_v52 = vpop.f32.mrf.mxu2 }
0x1022   : > { %v1892_v53 = vadd.f32 %v1891_v52, %v1854_v51 }
0x1024   : > { %v1895_v10 = vadd.f32 %v1892_v53, %v1806_v40 }
0x1026   : > { %v1896_v48 = vsel %vm673_vm2, %v1895_v10, 0.0 }
0x1027   : > { %1897 = vadd.xlane.f32.xlu1 %v1896_v48 }
0x1029   : > { %v1893_v54 = vpop.f32.mrf.mxu2 }
0x109a   : > { %v1898_v55 = vpop.xlane.xlu1 %1897 }
0x109b   : > { %v1899_v56 = vmul.f32 %v1898_v55, %v4354_v20 }
0x109d   : > { %v1900_v57 = vsub.f32 %v1895_v10, %v1899_v56 }
0x109f   : > { %v1901_v58 = vmul.f32 %v1900_v57, %v1900_v57 }
0x10a1   : > { %v1902_v59 = vsel %vm673_vm2, %v1901_v58, 0.0 }
0x10a2   : > { %1903 = vadd.xlane.f32.xlu2 %v1902_v59 }
0x1115   : > { %v1904_v1 = vpop.xlane.xlu2 %1903 }
0x1116   : > { %v1905_v3 = vmul.f32 %v1904_v1, %v4354_v20 }
0x1118   : > { %v1906_v4 = vadd.f32 1e-06, %v1905_v3 }
0x111a   : > { %3640 = vrsqrt.f32 %v1906_v4  ;;  %vm1913_vm7 = vweird.f32 %v1906_v4 }
0x1120   : > { %v3641_v5 = vpop.eup %3640 }
0x1121   : > { %v1908_v6 = vmul.f32 %v3641_v5, %v1906_v4  ;;  %vm1914_vm6 = vweird.f32 %v3641_v5 }
0x1122   : > { %vm1915_vm8 = vmor %vm1913_vm7, %vm1914_vm6 }
0x1123   : > { %v1909_v7 = vmul.f32 %v3641_v5, %v1908_v6 }
0x1125   : > { %v1910_v9 = vmul.f32 0.5, %v1909_v7 }
0x1127   : > { %v1911_v12 = vsub.f32 1.5, %v1910_v9 }
0x1129   : > { %v1912_v14 = vmul.f32 %v3641_v5, %v1911_v12 }
0x112b   : > { %v1916_v16 = vsel %vm1915_vm8, %v3641_v5, %v1912_v14 }
0x112c   : > { %v1917_v18 = vmul.f32 %v1916_v16, %v1900_v57 }
0x112e   : > { %v1919_v19 = vmul.f32 %v1918_v15, %v1917_v18 }
0x1130   : > { %v4558_v37 = vadd.f32 %v1920_v17, %v1919_v19 }
0x1132   : > { %v1922_v21 = vpack.c.bf16 %v4558_v37, %v4558_v37 }
0x1134   : > { %3293 = vmatmul.msk.bf16.vlgmr.msra.gmra.mxu0 %vm673_vm2, %v1922_v21  ;;  %3306 = vmatmul.msk.bf16.vlgmr.msra.gmra.mxu1 %vm673_vm2, %v1922_v21 }
0x11b1   : > { %v1952_v22 = vpop.f32.mrf.mxu0  ;;  %v1982_v23 = vpop.f32.mrf.mxu1 }
0x11b2   : > { %v1986_v11 = vpack.c.bf16 %v1952_v22, %v1952_v22  ;;  %1987 = vxpose.xlu0.b32.start.end [1/1] (short) (narrow) %v1982_v23, 32  ;;  %v2023_v57 = vpack.c.bf16 %v1982_v23, %v1982_v23 }
0x11b4   : > { %v2083_v24 = vunpack.c.l.b16 %v1986_v11  ;;  %v2058_v59 = vunpack.c.l.b16 %v2023_v57 }
0x11b6   : > { %v2084_v13 = vpack.c.b16 %v2083_v24, %v2083_v24  ;;  %v2059_v63 = vpack.c.b16 %v2058_v59, %v2058_v59 }
0x11b8   : > { %2199 = vrot.lane.b32.xlu1 %v2084_v13, %s4026_s2  ;;  %2085 = vrot.lane.b32.xlu2 %v2084_v13, %s4025_s26 }
0x11b9   : > { %v1954_v25 = vpop.f32.mrf.mxu0  ;;  %v1984_v26 = vpop.f32.mrf.mxu1 }
0x11c0   : > { %2142 = vrot.lane.b32.xlu2 %v2084_v13, %s4024_s13 }
0x1212   : > { %v2086_v33 = vpop.permute.xlu2 %2085 }
0x121a   : > { %v2143_v39 = vpop.permute.xlu2 %2142 }
0x122a   : > { %v2200_v43 = vpop.permute.xlu1 %2199 }
0x1256   : > { %v2003_v27 = vpop.trf.xlu0 }
0x1257   : > { %v2019_v28 = vpack.c.bf16 %v2003_v27, %v2003_v27 }
0x1259   : > { %v2028_v29 = vsel %vm1077_vm10, %v2019_v28, 0 }
0x125a   : > { %2037 = vmatpush.bf16.msrb.mxu3 %v2028_v29 }
0x125d   : > { %3307 = vmatmul.msk.bf16.vlgmr.msrb.gmra.mxu3 %vm1073_vm11, %v1986_v11 }
0x125e   : > { %v2004_v30 = vpop.trf.xlu0 }
0x125f   : > { %v2020_v31 = vpack.c.bf16 %v2004_v30, %v2004_v30 }
0x1261   : > { %v2091_v32 = vsel %vm1077_vm10, %v2020_v31, 0 }
0x1262   : > { %2100 = vmatpush.bf16.msrb.mxu0 %v2091_v32 }
0x1265   : > { %3309 = vmatmul.msk.bf16.vlgmr.msrb.gmra.mxu0 %vm1073_vm11, %v2086_v33 }
0x1266   : > { %v2005_v34 = vpop.trf.xlu0 }
0x1267   : > { %v2021_v36 = vpack.c.bf16 %v2005_v34, %v2005_v34 }
0x1269   : > { %v2148_v38 = vsel %vm1077_vm10, %v2021_v36, 0 }
0x126a   : > { %2157 = vmatpush.bf16.msra.mxu3 %v2148_v38 }
0x126d   : > { %3311 = vmatmul.msk.bf16.vlgmr.msra.gmra.mxu3 %vm1073_vm11, %v2143_v39 }
0x126e   : > { %v2006_v40 = vpop.trf.xlu0 }
0x126f   : > { %v2022_v41 = vpack.c.bf16 %v2006_v40, %v2006_v40 }
0x1271   : > { %v2205_v42 = vsel %vm1077_vm10, %v2022_v41, 0 }
0x1272   : > { %2214 = vmatpush.bf16.msra.mxu0 %v2205_v42 }
0x1275   : > { %3313 = vmatmul.msk.bf16.vlgmr.msra.gmra.mxu0 %vm1073_vm11, %v2200_v43 }
0x12e0   : > { %v2039_v44 = vpop.f32.mrf.mxu3 }
0x12e1   : > { %v2043_v45 = vmul.f32 0.35355338, %v2039_v44 }
0x12e2   : > { %v2102_v46 = vpop.f32.mrf.mxu0 }
0x12e3   : > { %v2106_v47 = vmul.f32 0.35355338, %v2102_v46  ;;  %v2044_v49 = vadd.f32 %v2043_v45, %v4394_v8 }
0x12e5   : > { %v2045_v50 = vsel %vm1073_vm11, %v2044_v49, -inf  ;;  %v2107_v51 = vadd.f32 %v2106_v47, %v4394_v8 }
0x12e6   : > { %2046 = vmax.xlane.f32.xlu2 %v2045_v50 }
0x12e7   : > { %v2108_v52 = vsel %vm1073_vm11, %v2107_v51, -inf }
0x12e8   : > { %v2041_v53 = vpop.f32.mrf.mxu3  ;;  %2109 = vmax.xlane.f32.xlu1 %v2108_v52 }
0x12ea   : > { %v2104_v10 = vpop.f32.mrf.mxu0 }
0x12f0   : > { %v2159_v48 = vpop.f32.mrf.mxu3 }
0x12f1   : > { %v2163_v54 = vmul.f32 0.35355338, %v2159_v48 }
0x12f2   : > { %v2216_v55 = vpop.f32.mrf.mxu0 }
0x12f3   : > { %v2164_v56 = vadd.f32 %v2163_v54, %v4394_v8  ;;  %v2220_v0 = vmul.f32 0.35355338, %v2216_v55 }
0x12f5   : > { %v2165_v58 = vsel %vm1073_vm11, %v2164_v56, -inf  ;;  %v2221_v1 = vadd.f32 %v2220_v0, %v4394_v8 }
0x12f6   : > { %2166 = vmax.xlane.f32.xlu0 %v2165_v58 }
0x12f7   : > { %v2222_v3 = vsel %vm1073_vm11, %v2221_v1, -inf }
0x12f8   : > { %v2161_v61 = vpop.f32.mrf.mxu3 }
0x12fa   : > { %v2218_v62 = vpop.f32.mrf.mxu0 }
0x12fe   : > { %2060 = vrot.lane.b32.xlu2 %v2059_v63, %s4027_s7 }
0x1301   : > { %2120 = vrot.lane.b32.xlu1 %v2059_v63, %s4028_s27 }
0x1327   : > { %2223 = vmax.xlane.f32.xlu2 %v2222_v3 }
0x1359   : > { %v2047_v4 = vpop.xlane.xlu2 %2046 }
0x135a   : > { %v2048_v5 = vsub.f32 %v2044_v49, %v2047_v4 }
0x135b   : > { %v2110_v6 = vpop.xlane.xlu1 %2109 }
0x135c   : > { %v2049_v7 = vmul.f32 1.442695, %v2048_v5  ;;  %v2111_v9 = vsub.f32 %v2107_v51, %v2110_v6  ;;  %v3454_v6 = vld [vmem:[%s4761_s10 + $0x28] sm:$0xff] }
0x135d   : > { %2303 = vmatpush.bf16.msrb.mxu3 %v3454_v6 }
0x135e   : > { %3642 = vpow2.f32 %v2049_v7  ;;  %v2112_v12 = vmul.f32 1.442695, %v2111_v9  ;;  %v3453_v7 = vld [vmem:[%s4761_s10 + $0x20] sm:$0xff] }
0x1360   : > { %3644 = vpow2.f32 %v2112_v12 }
0x1361   : > { %v2061_v14 = vpop.permute.xlu2 %2060  ;;  %2304 = vmatpush.bf16.msrb.mxu3 %v3453_v7 }
0x1362   : > { %v2066_v15 = vsel %vm1077_vm10, %v2061_v14, 0 }
0x1363   : > { %2075 = vmatpush.bf16.msra.mxu2 %v2066_v15 }
0x1364   : > { %v3643_v16 = vpop.eup %3642 }
0x1365   : > { %v2051_v17 = vsel %vm1073_vm11, %v3643_v16, 0.0 }
0x1366   : > { %2052 = vadd.xlane.f32.xlu2 %v2051_v17  ;;  %v3645_v18 = vpop.eup %3644 }
0x1367   : > { %v2114_v22 = vsel %vm1073_vm11, %v3645_v18, 0.0 }
0x1369   : > { %v2167_v8 = vpop.xlane.xlu0 %2166 }
0x136a   : > { %v2168_v19 = vsub.f32 %v2164_v56, %v2167_v8 }
0x136c   : > { %v2169_v21 = vmul.f32 1.442695, %v2168_v19 }
0x136e   : > { %3646 = vpow2.f32 %v2169_v21  ;;  %2115 = vadd.xlane.f32.xlu2 %v2114_v22 }
0x1373   : > { %v2121_v23 = vpop.permute.xlu1 %2120 }
0x1374   : > { %v3647_v11 = vpop.eup %3646  ;;  %v2126_v24 = vsel %vm1077_vm10, %v2121_v23, 0 }
0x1375   : > { %2135 = vmatpush.bf16.msrb.mxu1 %v2126_v24  ;;  %v2171_v13 = vsel %vm1073_vm11, %v3647_v11, 0.0 }
0x1376   : > { %2172 = vadd.xlane.f32.xlu2 %v2171_v13 }
0x138e   : > { %2177 = vrot.lane.b32.xlu2 %v2059_v63, %s4780_s25  ;;  %s618_s25 = scalar_lea.vmem [#allocation16], %s4262_s18 }
0x139a   : > { %v2224_v25 = vpop.xlane.xlu2 %2223 }
0x139b   : > { %v2225_v26 = vsub.f32 %v2221_v1, %v2224_v25 }
0x139d   : > { %v2226_v27 = vmul.f32 1.442695, %v2225_v26  ;;  %v3456_v26 = vld [vmem:[%s4759_s8 + $0x38] sm:$0xff] }
0x139f   : > { %3648 = vpow2.f32 %v2226_v27  ;;  %v3458_v27 = vld [vmem:[%s4760_s9 + $0x38] sm:$0xff] }
0x13a0   : > { %2394 = vmatpush.bf16.msrb.mxu0 %v3458_v27 }
0x13a5   : > { %v3649_v28 = vpop.eup %3648 }
0x13a6   : > { %v2228_v29 = vsel %vm1073_vm11, %v3649_v28, 0.0 }
0x13a7   : > { %2229 = vadd.xlane.f32.xlu1 %v2228_v29 }
0x13c0   : > { %2234 = vrot.lane.b32.xlu1 %v2059_v63, %s4779_s14  ;;  %s2910_s14 = sshll.u32 %s618_s25, 4  ;;  %s2911_s14 = int_to_ptr.vmem [resolvable:$true] %s2910_s14 }
0x13d9   : > { %v2053_v30 = vpop.xlane.xlu2 %2052 }
0x13da   : > { %3650 = vrcp.f32 %v2053_v30  ;;  %v3457_v30 = vld [vmem:[%s4760_s9 + $0x30] sm:$0xff] }
0x13db   : > { %2395 = vmatpush.bf16.msrb.mxu0 %v3457_v30 }
0x13de   : > { %3353 = vmatmul.msk.bf16.vlgmr.msrb.gmra.mxu0 %vm673_vm2, %v4452_v60 }
0x13e0   : > { %v3651_v31 = vpop.eup %3650 }
0x13e1   : > { %v2055_v32 = vmul.f32 %v3651_v31, %v3643_v16  ;;  %v2116_v33 = vpop.xlane.xlu2 %2115 }
0x13e2   : > { %3652 = vrcp.f32 %v2116_v33 }
0x13e3   : > { %v2056_v34 = vpack.c.bf16 %v2055_v32, %v2055_v32 }
0x13e5   : > { %3308 = vmatmul.msk.bf16.vlgmr.msra.gmra.mxu2 %vm1073_vm11, %v2056_v34 }
0x13e8   : > { %v3653_v36 = vpop.eup %3652 }
0x13e9   : > { %v2118_v38 = vmul.f32 %v3653_v36, %v3645_v18  ;;  %v2173_v39 = vpop.xlane.xlu2 %2172 }
0x13ea   : > { %3654 = vrcp.f32 %v2173_v39 }
0x13eb   : > { %v2119_v40 = vpack.c.bf16 %v2118_v38, %v2118_v38 }
0x13ed   : > { %3310 = vmatmul.msk.bf16.vlgmr.msrb.gmra.mxu1 %vm1073_vm11, %v2119_v40  ;;  %v2333_v40 = vperm.slane %v4456_v2, 6 }
0x13f0   : > { %v3655_v41 = vpop.eup %3654 }
0x13f1   : > { %v2175_v42 = vmul.f32 %v3655_v41, %v3647_v11  ;;  %v2178_v43 = vpop.permute.xlu2 %2177 }
0x13f2   : > { %v2183_v44 = vsel %vm1077_vm10, %v2178_v43, 0 }
0x13f3   : > { %v2176_v45 = vpack.c.bf16 %v2175_v42, %v2175_v42  ;;  %2192 = vmatpush.bf16.msrb.mxu2 %v2183_v44  ;;  %v2335_v42 = vperm.slane %v4456_v2, 7 }
0x13f6   : > { %3312 = vmatmul.msk.bf16.vlgmr.msrb.gmra.mxu2 %vm1073_vm11, %v2176_v45 }
0x13f7   : > { %2364 = vmatpush.bf16.msra.mxu2 %v3456_v26 }
0x141a   : > { %v2230_v46 = vpop.xlane.xlu1 %2229 }
0x141b   : > { %3656 = vrcp.f32 %v2230_v46 }
0x1421   : > { %v3657_v47 = vpop.eup %3656 }
0x1422   : > { %v2232_v49 = vmul.f32 %v3657_v47, %v3649_v28 }
0x1424   : > { %v2233_v52 = vpack.c.bf16 %v2232_v49, %v2232_v49 }
0x1432   : > { %v2235_v50 = vpop.permute.xlu1 %2234 }
0x1433   : > { %v2240_v51 = vsel %vm1077_vm10, %v2235_v50, 0 }
0x1434   : > { %2249 = vmatpush.bf16.msra.mxu1 %v2240_v51 }
0x1437   : > { %3314 = vmatmul.msk.bf16.vlgmr.msra.gmra.mxu1 %vm1073_vm11, %v2233_v52 }
0x145b   : > { %v2397_v46 = vpop.f32.mrf.mxu0 }
0x1463   : > { %v2399_v47 = vpop.f32.mrf.mxu0 }
0x1468   : > { %v2077_v53 = vpop.f32.mrf.mxu2 }
0x1469   : > { %v2081_v12 = vpack.c.bf16 %v2077_v53, %v2077_v53 }
0x146a   : > { %v2137_v10 = vpop.f32.mrf.mxu1 }
0x146b   : > { %v2141_v48 = vpack.c.bf16 %v2137_v10, %v2137_v10 }
0x146d   : > { %v2257_v54 = vunpack.c.l.b16 %v2141_v48 }
0x146f   : > { %v2258_v55 = vpack.c.b16 %v2257_v54, %v2257_v54 }
0x1470   : > { %v2079_v56 = vpop.f32.mrf.mxu2 }
0x1471   : > { %2259 = vrot.lane.b32.xlu2 %v2258_v55, %s4812_s23 }
0x1472   : > { %v2139_v57 = vpop.f32.mrf.mxu1 }
0x1479   : > { %v2194_v58 = vpop.f32.mrf.mxu2 }
0x147a   : > { %v2198_v59 = vpack.c.bf16 %v2194_v58, %v2194_v58 }
0x147c   : > { %v2262_v61 = vunpack.c.l.b16 %v2198_v59 }
0x147e   : > { %v2263_v62 = vpack.c.b16 %v2262_v61, %v2262_v61 }
0x1480   : > { %2264 = vrot.lane.b32.xlu1 %v2263_v62, %s4813_s4 }
0x1481   : > { %v2196_v63 = vpop.f32.mrf.mxu2 }
0x14b4   : > { %v2251_v0 = vpop.f32.mrf.mxu1 }
0x14b5   : > { %v2255_v1 = vpack.c.bf16 %v2251_v0, %v2251_v0 }
0x14b7   : > { %v2267_v3 = vunpack.c.l.b16 %v2255_v1 }
0x14b9   : > { %v2268_v4 = vpack.c.b16 %v2267_v3, %v2267_v3 }
0x14bb   : > { %2269 = vrot.lane.b32.xlu2 %v2268_v4, %s4807_s17 }
0x14bc   : > { %v2253_v5 = vpop.f32.mrf.mxu1 }
0x14cb   : > { %v2260_v9 = vpop.permute.xlu2 %2259 }
0x14cc   : > { %v2273_v15 = vsel %vm1073_vm11, %v2081_v12, %v2260_v9 }
0x14f2   : > { %v2265_v14 = vpop.permute.xlu1 %2264 }
0x14f3   : > { %v2275_v16 = vsel %vm1325_vm12, %v2273_v15, %v2265_v14 }
0x1515   : > { %v2270_v17 = vpop.permute.xlu2 %2269 }
0x1516   : > { %v2277_v8 = vsel %vm1328_vm13, %v2275_v16, %v2270_v17 }
0x1517   : > { %3327 = vmatmul.msk.bf16.vlgmr.msrb.gmra.mxu3 %vm673_vm2, %v2277_v8 }
0x159a   : > { %v2306_v18 = vpop.f32.mrf.mxu3 }
0x159b   : > { %v2310_v19 = vadd.f32 %v2306_v18, %v4558_v37  ;;  %v3455_v37 = vld [vmem:[%s4759_s8 + $0x30] sm:$0xff] }
0x159c   : > { %2365 = vmatpush.bf16.msra.mxu2 %v3455_v37 }
0x159d   : > { %v2311_v21 = vsel %vm673_vm2, %v2310_v19, 0.0 }
0x159e   : > { %2312 = vadd.xlane.f32.xlu1 %v2311_v21 }
0x15a2   : > { %v2308_v22 = vpop.f32.mrf.mxu3 }
0x1611   : > { %v2313_v23 = vpop.xlane.xlu1 %2312 }
0x1612   : > { %v2314_v11 = vmul.f32 %v2313_v23, %v4354_v20 }
0x1614   : > { %v2315_v24 = vsub.f32 %v2310_v19, %v2314_v11 }
0x1616   : > { %v2316_v13 = vmul.f32 %v2315_v24, %v2315_v24 }
0x1618   : > { %v2317_v25 = vsel %vm673_vm2, %v2316_v13, 0.0 }
0x1619   : > { %2318 = vadd.xlane.f32.xlu2 %v2317_v25  ;;  %v2438_v25 = vpack.c.bf16 %v2397_v46, %v2397_v46 }
0x161b   : > { %v2473_v37 = vunpack.c.l.b16 %v2438_v25 }
0x161d   : > { %v2474_v27 = vpack.c.b16 %v2473_v37, %v2473_v37 }
0x168c   : > { %v2319_v28 = vpop.xlane.xlu2 %2318 }
0x168d   : > { %v2320_v29 = vmul.f32 %v2319_v28, %v4354_v20 }
0x168f   : > { %v2321_v31 = vadd.f32 1e-06, %v2320_v29 }
0x1691   : > { %3658 = vrsqrt.f32 %v2321_v31  ;;  %vm2328_vm14 = vweird.f32 %v2321_v31 }
0x1697   : > { %v3659_v32 = vpop.eup %3658 }
0x1698   : > { %v2323_v33 = vmul.f32 %v3659_v32, %v2321_v31  ;;  %vm2329_vm9 = vweird.f32 %v3659_v32 }
0x1699   : > { %vm2330_vm15 = vmor %vm2328_vm14, %vm2329_vm9 }
0x169a   : > { %v2324_v34 = vmul.f32 %v3659_v32, %v2323_v33 }
0x169c   : > { %v2325_v36 = vmul.f32 0.5, %v2324_v34 }
0x169e   : > { %v2326_v38 = vsub.f32 1.5, %v2325_v36 }
0x16a0   : > { %v2327_v39 = vmul.f32 %v3659_v32, %v2326_v38 }
0x16a2   : > { %v2331_v41 = vsel %vm2330_vm15, %v3659_v32, %v2327_v39 }
0x16a3   : > { %v2332_v43 = vmul.f32 %v2331_v41, %v2315_v24 }
0x16a5   : > { %v2334_v44 = vmul.f32 %v2333_v40, %v2332_v43 }
0x16a7   : > { %v4633_v45 = vadd.f32 %v2335_v42, %v2334_v44 }
0x16a9   : > { %v2337_v60 = vpack.c.bf16 %v4633_v45, %v4633_v45 }
0x16ab   : > { %3340 = vmatmul.msk.bf16.vlgmr.msra.gmra.mxu2 %vm673_vm2, %v2337_v60 }
0x172e   : > { %v2367_v49 = vpop.f32.mrf.mxu2 }
0x172f   : > { %v2401_v50 = vpack.c.bf16 %v2367_v49, %v2367_v49 }
0x1731   : > { %v2498_v51 = vunpack.c.l.b16 %v2401_v50 }
0x1733   : > { %v2499_v52 = vpack.c.b16 %v2498_v51, %v2498_v51 }
0x1735   : > { %2614 = vrot.lane.b32.xlu2 %v2499_v52, %s4026_s2  ;;  %2557 = vrot.lane.b32.xlu1 %v2499_v52, %s4024_s13  ;;  %s4814_s13 = smov 80  }
0x1736   : > { %2500 = vrot.lane.b32.xlu0 %v2499_v52, %s4025_s26  ;;  %v2369_v2 = vpop.f32.mrf.mxu2  ;;  %s4815_s26 = smov 72  }
0x1758   : > { %2402 = vxpose.xlu0.b32.start.end [1/1] (short) (narrow) %v2397_v46, 32 }
0x178f   : > { %v2615_v3 = vpop.permute.xlu2 %2614 }
0x17a7   : > { %v2558_v62 = vpop.permute.xlu1 %2557 }
0x17a8   : > { %v2501_v53 = vpop.permute.xlu0 %2500 }
0x17fc   : > { %v2418_v10 = vpop.trf.xlu0 }
0x17fd   : > { %v2434_v48 = vpack.c.bf16 %v2418_v10, %v2418_v10 }
0x17ff   : > { %v2443_v54 = vsel %vm1077_vm10, %v2434_v48, 0 }
0x1800   : > { %2452 = vmatpush.bf16.msrb.mxu1 %v2443_v54 }
0x1803   : > { %3354 = vmatmul.msk.bf16.vlgmr.msrb.gmra.mxu1 %vm1073_vm11, %v2401_v50 }
0x1804   : > { %v2419_v55 = vpop.trf.xlu0 }
0x1805   : > { %v2435_v56 = vpack.c.bf16 %v2419_v55, %v2419_v55 }
0x1807   : > { %v2506_v57 = vsel %vm1077_vm10, %v2435_v56, 0 }
0x1808   : > { %2515 = vmatpush.bf16.msrb.mxu2 %v2506_v57 }
0x180b   : > { %3356 = vmatmul.msk.bf16.vlgmr.msrb.gmra.mxu2 %vm1073_vm11, %v2501_v53 }
0x180c   : > { %v2420_v58 = vpop.trf.xlu0 }
0x180d   : > { %v2436_v59 = vpack.c.bf16 %v2420_v58, %v2420_v58 }
0x180f   : > { %v2563_v61 = vsel %vm1077_vm10, %v2436_v59, 0 }
0x1810   : > { %2572 = vmatpush.bf16.msra.mxu1 %v2563_v61 }
0x1813   : > { %3358 = vmatmul.msk.bf16.vlgmr.msra.gmra.mxu1 %vm1073_vm11, %v2558_v62 }
0x1814   : > { %v2421_v63 = vpop.trf.xlu0 }
0x1815   : > { %v2437_v0 = vpack.c.bf16 %v2421_v63, %v2421_v63 }
0x1817   : > { %v2620_v1 = vsel %vm1077_vm10, %v2437_v0, 0 }
0x1818   : > { %2629 = vmatpush.bf16.msra.mxu2 %v2620_v1 }
0x181b   : > { %3360 = vmatmul.msk.bf16.vlgmr.msra.gmra.mxu2 %vm1073_vm11, %v2615_v3 }
0x1880   : > { %v2454_v4 = vpop.f32.mrf.mxu1 }
0x1881   : > { %v2458_v5 = vmul.f32 0.35355338, %v2454_v4 }
0x1883   : > { %v2459_v6 = vadd.f32 %v4476_v35, %v2458_v5 }
0x1885   : > { %v2460_v7 = vsel %vm1073_vm11, %v2459_v6, -inf }
0x1886   : > { %2461 = vmax.xlane.f32.xlu0 %v2460_v7 }
0x1888   : > { %v2456_v9 = vpop.f32.mrf.mxu1 }
0x188e   : > { %v2517_v12 = vpop.f32.mrf.mxu2 }
0x188f   : > { %v2521_v14 = vmul.f32 0.35355338, %v2517_v12 }
0x1890   : > { %v2574_v15 = vpop.f32.mrf.mxu1 }
0x1891   : > { %v2578_v16 = vmul.f32 0.35355338, %v2574_v15  ;;  %v2522_v17 = vadd.f32 %v4476_v35, %v2521_v14 }
0x1893   : > { %v2523_v8 = vsel %vm1073_vm11, %v2522_v17, -inf  ;;  %v2579_v18 = vadd.f32 %v4476_v35, %v2578_v16 }
0x1894   : > { %2524 = vmax.xlane.f32.xlu1 %v2523_v8 }
0x1895   : > { %v2580_v19 = vsel %vm1073_vm11, %v2579_v18, -inf }
0x1896   : > { %v2519_v21 = vpop.f32.mrf.mxu2  ;;  %2581 = vmax.xlane.f32.xlu2 %v2580_v19 }
0x1898   : > { %v2576_v22 = vpop.f32.mrf.mxu1 }
0x189e   : > { %v2631_v23 = vpop.f32.mrf.mxu2 }
0x189f   : > { %v2635_v11 = vmul.f32 0.35355338, %v2631_v23 }
0x18a1   : > { %v2636_v24 = vadd.f32 %v4476_v35, %v2635_v11 }
0x18a3   : > { %v2637_v13 = vsel %vm1073_vm11, %v2636_v24, -inf }
0x18a4   : > { %2638 = vmax.xlane.f32.xlu1 %v2637_v13 }
0x18a6   : > { %v2633_v26 = vpop.f32.mrf.mxu2 }
0x18ae   : > { %2475 = vrot.lane.b32.xlu2 %v2474_v27, %s4027_s7  ;;  %s4816_s7 = sld [smem:[#allocation36_spill]] }
0x18b4   : > { %s3943_s18 = scalar_lea.hbm %s4816_s7, 16 }
0x18bd   : > { %2535 = vrot.lane.b32.xlu1 %v2474_v27, %s4028_s27 }
0x18f9   : > { %v2462_v28 = vpop.xlane.xlu0 %2461 }
0x18fa   : > { %v2463_v29 = vsub.f32 %v2459_v6, %v2462_v28  ;;  %v3459_v28 = vld [vmem:[%s4761_s10 + $0x30] sm:$0xff] }
0x18fc   : > { %v2464_v30 = vmul.f32 1.442695, %v2463_v29 }
0x18fe   : > { %3660 = vpow2.f32 %v2464_v30 }
0x1904   : > { %v3661_v31 = vpop.eup %3660 }
0x1905   : > { %v2466_v32 = vsel %vm1073_vm11, %v3661_v31, 0.0 }
0x1906   : > { %2467 = vadd.xlane.f32.xlu2 %v2466_v32 }
0x1907   : > { %v2525_v35 = vpop.xlane.xlu1 %2524 }
0x1908   : > { %v2526_v33 = vsub.f32 %v2522_v17, %v2525_v35 }
0x1909   : > { %v2582_v34 = vpop.xlane.xlu2 %2581 }
0x190a   : > { %v2527_v36 = vmul.f32 1.442695, %v2526_v33  ;;  %v2583_v38 = vsub.f32 %v2579_v18, %v2582_v34 }
0x190c   : > { %3662 = vpow2.f32 %v2527_v36  ;;  %v2584_v39 = vmul.f32 1.442695, %v2583_v38 }
0x190e   : > { %3664 = vpow2.f32 %v2584_v39 }
0x1911   : > { %v2476_v40 = vpop.permute.xlu2 %2475 }
0x1912   : > { %v3663_v41 = vpop.eup %3662  ;;  %v2481_v42 = vsel %vm1077_vm10, %v2476_v40, 0 }
0x1913   : > { %2490 = vmatpush.bf16.msra.mxu3 %v2481_v42  ;;  %v2529_v43 = vsel %vm1073_vm11, %v3663_v41, 0.0 }
0x1914   : > { %v3665_v44 = vpop.eup %3664  ;;  %2530 = vadd.xlane.f32.xlu1 %v2529_v43 }
0x1915   : > { %v2586_v60 = vsel %vm1073_vm11, %v3665_v44, 0.0 }
0x1916   : > { %2587 = vadd.xlane.f32.xlu2 %v2586_v60 }
0x1917   : > { %v2639_v46 = vpop.xlane.xlu1 %2638 }
0x1918   : > { %v2640_v47 = vsub.f32 %v2636_v24, %v2639_v46  ;;  %v3462_v46 = vld [vmem:[#allocation14 + $0x18] sm:$0xff] }
0x191a   : > { %v2641_v49 = vmul.f32 1.442695, %v2640_v47  ;;  %v3461_v47 = vld [vmem:[#allocation14 + $0x10] sm:$0xff] }
0x191c   : > { %3666 = vpow2.f32 %v2641_v49 }
0x1922   : > { %v3667_v50 = vpop.eup %3666 }
0x1923   : > { %v2643_v51 = vsel %vm1073_vm11, %v3667_v50, 0.0 }
0x1924   : > { %2644 = vadd.xlane.f32.xlu1 %v2643_v51  ;;  %v3465_v51 = vld [vmem:[%s4809_s24 + $0x30] sm:$0xff] }
0x192e   : > { %2592 = vrot.lane.b32.xlu2 %v2474_v27, %s4814_s13  ;;  %s3411_s13 = sshll.u32 %s4133_s20, 3  ;;  %s2898_s20 = scalar_lea.sflag [#allocation4], %s4259_s11 }
0x192f   : > { %v2536_v52 = vpop.permute.xlu1 %2535  ;;  %s2908_s27 = scalar_lea.hbm %s4816_s7, %s3411_s13 }
0x1930   : > { %v2541_v2 = vsel %vm1077_vm10, %v2536_v52, 0 }
0x1931   : > { %2550 = vmatpush.bf16.msra.mxu0 %v2541_v2 }
0x193d   : > { %2649 = vrot.lane.b32.xlu1 %v2474_v27, %s4815_s26  ;;  %v3460_v27 = vld [vmem:[%s4761_s10 + $0x38] sm:$0xff] }
0x193e   : > { %2718 = vmatpush.bf16.msrb.mxu1 %v3460_v27 }
0x1942   : > { %2719 = vmatpush.bf16.msrb.mxu1 %v3459_v28 }
0x1979   : > { %v2468_v53 = vpop.xlane.xlu2 %2467 }
0x197a   : > { %3668 = vrcp.f32 %v2468_v53 }
0x1980   : > { %v3669_v10 = vpop.eup %3668 }
0x1981   : > { %v2470_v48 = vmul.f32 %v3669_v10, %v3661_v31 }
0x1983   : > { %v2471_v54 = vpack.c.bf16 %v2470_v48, %v2470_v48 }
0x1985   : > { %3355 = vmatmul.msk.bf16.vlgmr.msra.gmra.mxu3 %vm1073_vm11, %v2471_v54  ;;  %v623_v54 = vld [vmem:[#allocation13 + $0x18] sm:$0x1f] }
0x1987   : > { %v2531_v55 = vpop.xlane.xlu1 %2530 }
0x1988   : > { %3670 = vrcp.f32 %v2531_v55 }
0x1989   : > { %v2588_v56 = vpop.xlane.xlu2 %2587 }
0x198a   : > { %3672 = vrcp.f32 %v2588_v56 }
0x198e   : > { %v3671_v57 = vpop.eup %3670 }
0x198f   : > { %v2533_v58 = vmul.f32 %v3671_v57, %v3663_v41  ;;  %v2748_v57 = vperm.slane %v623_v54, 0 }
0x1990   : > { %v3673_v59 = vpop.eup %3672 }
0x1991   : > { %v2534_v61 = vpack.c.bf16 %v2533_v58, %v2533_v58  ;;  %v2590_v62 = vmul.f32 %v3673_v59, %v3665_v44  ;;  %v2593_v63 = vpop.permute.xlu2 %2592  ;;  %v2750_v59 = vperm.slane %v623_v54, 1 }
0x1992   : > { %v2598_v0 = vsel %vm1077_vm10, %v2593_v63, 0 }
0x1993   : > { %v2591_v1 = vpack.c.bf16 %v2590_v62, %v2590_v62  ;;  %3357 = vmatmul.msk.bf16.vlgmr.msra.gmra.mxu0 %vm1073_vm11, %v2534_v61  ;;  %2607 = vmatpush.bf16.msrb.mxu3 %v2598_v0 }
0x1996   : > { %3359 = vmatmul.msk.bf16.vlgmr.msrb.gmra.mxu3 %vm1073_vm11, %v2591_v1  ;;  %v3464_v1 = vld [vmem:[%s4809_s24 + $0x28] sm:$0xff] }
0x1997   : > { %v2645_v3 = vpop.xlane.xlu1 %2644  ;;  %2784 = vmatpush.bf16.msra.mxu3 %v3462_v46 }
0x1998   : > { %3674 = vrcp.f32 %v2645_v3  ;;  %v3463_v3 = vld [vmem:[%s4809_s24 + $0x20] sm:$0xff] }
0x199b   : > { %2785 = vmatpush.bf16.msra.mxu3 %v3461_v47 }
0x199e   : > { %v3675_v4 = vpop.eup %3674 }
0x199f   : > { %v2647_v5 = vmul.f32 %v3675_v4, %v3667_v50  ;;  %v3599_v4 = vld [vmem:[%s4811_s19 + $0x1] ss:$0 sm:$0xff] }
0x19a1   : > { %v2648_v9 = vpack.c.bf16 %v2647_v5, %v2647_v5 }
0x19af   : > { %v2650_v6 = vpop.permute.xlu1 %2649 }
0x19b0   : > { %v2655_v7 = vsel %vm1077_vm10, %v2650_v6, 0 }
0x19b1   : > { %2664 = vmatpush.bf16.msrb.mxu0 %v2655_v7 }
0x19b4   : > { %3361 = vmatmul.msk.bf16.vlgmr.msrb.gmra.mxu0 %vm1073_vm11, %v2648_v9 }
0x1a08   : > { %v2492_v12 = vpop.f32.mrf.mxu3 }
0x1a09   : > { %v2496_v31 = vpack.c.bf16 %v2492_v12, %v2492_v12 }
0x1a10   : > { %v2494_v14 = vpop.f32.mrf.mxu3  ;;  %v2552_v15 = vpop.f32.mrf.mxu0 }
0x1a11   : > { %v2556_v16 = vpack.c.bf16 %v2552_v15, %v2552_v15  ;;  %v2802_v14 = vperm.slane %v623_v54, 2 }
0x1a13   : > { %v2672_v17 = vunpack.c.l.b16 %v2556_v16 }
0x1a15   : > { %v2673_v8 = vpack.c.b16 %v2672_v17, %v2672_v17 }
0x1a17   : > { %2674 = vrot.lane.b32.xlu0 %v2673_v8, %s4812_s23 }
0x1a18   : > { %v2554_v18 = vpop.f32.mrf.mxu0 }
0x1a19   : > { %v2609_v19 = vpop.f32.mrf.mxu3 }
0x1a1a   : > { %v2613_v21 = vpack.c.bf16 %v2609_v19, %v2609_v19 }
0x1a1c   : > { %v2677_v22 = vunpack.c.l.b16 %v2613_v21 }
0x1a1e   : > { %v2678_v23 = vpack.c.b16 %v2677_v22, %v2677_v22 }
0x1a20   : > { %2679 = vrot.lane.b32.xlu2 %v2678_v23, %s4813_s4 }
0x1a21   : > { %v2611_v11 = vpop.f32.mrf.mxu3 }
0x1a31   : > { %v2666_v24 = vpop.f32.mrf.mxu0 }
0x1a32   : > { %v2670_v13 = vpack.c.bf16 %v2666_v24, %v2666_v24 }
0x1a34   : > { %v2682_v25 = vunpack.c.l.b16 %v2670_v13 }
0x1a36   : > { %v2683_v26 = vpack.c.b16 %v2682_v25, %v2682_v25 }
0x1a38   : > { %2684 = vrot.lane.b32.xlu2 %v2683_v26, %s4807_s17  ;;  %s2912_s17 = sshll.u32 %s2908_s27, 4  ;;  %s2913_s17 = int_to_ptr.hbm [resolvable:$true] %s2912_s17 }
0x1a39   : > { %v2668_v37 = vpop.f32.mrf.mxu0  ;;  %s3937_s23 = sshra.s32 %s2913_s17, 4  ;;  %s3938_s23 = int_to_ptr.hbm [resolvable:$true] %s3937_s23 }
0x1a3a   : > { %s3939_s4 = scalar_lea.hbm %s3938_s23, 8  ;;  %p3944_p7 = scmp.lt.s32.totalorder %s3938_s23, %s4816_s7 }
0x1a3b   : > { %p3940_p1 = scmp.ne.s32.totalorder %s3938_s23, %s3939_s4  ;;  %p3945_p9 = scmp.lt.s32.totalorder %s3943_s18, %s3939_s4 }
0x1a3d   : > { %p3941_p3 = pnand %p3940_p1, %p4206_p5  ;;  %p3946_p8 = por %p3945_p9, %p3944_p7 }
0x1a3f   : > { %p3942_p12 = pneg %p3941_p3 }
0x1a41   : > { %p3947_p10 = pnand %p3946_p8, %p3942_p12 }
0x1a7a   : > { %v2680_v29 = vpop.permute.xlu2 %2679 }
0x1a89   : > { %v2675_v30 = vpop.permute.xlu0 %2674 }
0x1a8a   : > { %v2688_v32 = vsel %vm1073_vm11, %v2496_v31, %v2675_v30  ;;  %v2866_v31 = vperm.slane %v623_v54, 3 }
0x1a8b   : > { %v2690_v35 = vsel %vm1325_vm12, %v2688_v32, %v2680_v29 }
0x1a92   : > { %v2685_v33 = vpop.permute.xlu2 %2684 }
0x1a93   : > { %v2692_v34 = vsel %vm1328_vm13, %v2690_v35, %v2685_v33  ;;  %v2868_v33 = vperm.slane %v623_v54, 4 }
0x1a94   : > { %3374 = vmatmul.msk.bf16.vlgmr.msrb.gmra.mxu1 %vm673_vm2, %v2692_v34 }
0x1b11   : > { %v2721_v36 = vpop.f32.mrf.mxu1 }
0x1b12   : > { %v2725_v38 = vadd.f32 %v2721_v36, %v4633_v45  ;;  %v3466_v45 = vld [vmem:[%s4809_s24 + $0x38] sm:$0xff] }
0x1b13   : > { %2834 = vmatpush.bf16.msrb.mxu2 %v3466_v45 }
0x1b14   : > { %v2726_v39 = vsel %vm673_vm2, %v2725_v38, 0.0 }
0x1b15   : > { %2727 = vadd.xlane.f32.xlu1 %v2726_v39 }
0x1b17   : > { %2835 = vmatpush.bf16.msrb.mxu2 %v3465_v51 }
0x1b19   : > { %v2723_v40 = vpop.f32.mrf.mxu1 }
0x1b1b   : > { %2836 = vmatpush.bf16.msrb.mxu2 %v3464_v1 }
0x1b1f   : > { %2837 = vmatpush.bf16.msrb.mxu2 %v3463_v3 }
0x1b88   : > { %v2728_v41 = vpop.xlane.xlu1 %2727 }
0x1b89   : > { %v2729_v42 = vmul.f32 %v2728_v41, %v4354_v20 }
0x1b8b   : > { %v2730_v43 = vsub.f32 %v2725_v38, %v2729_v42 }
0x1b8d   : > { %v2731_v44 = vmul.f32 %v2730_v43, %v2730_v43 }
0x1b8f   : > { %v2732_v60 = vsel %vm673_vm2, %v2731_v44, 0.0 }
0x1b90   : > { %2733 = vadd.xlane.f32.xlu0 %v2732_v60 }
0x1c03   : > { %v2734_v49 = vpop.xlane.xlu0 %2733 }
0x1c04   : > { %v2735_v50 = vmul.f32 %v2734_v49, %v4354_v20 }
0x1c06   : > { %v2736_v52 = vadd.f32 1e-06, %v2735_v50 }
0x1c08   : > { %3676 = vrsqrt.f32 %v2736_v52  ;;  %vm2743_vm11 = vweird.f32 %v2736_v52 }
0x1c0e   : > { %v3677_v2 = vpop.eup %3676 }
0x1c0f   : > { %v2738_v53 = vmul.f32 %v3677_v2, %v2736_v52  ;;  %vm2744_vm10 = vweird.f32 %v3677_v2 }
0x1c10   : > { %vm2745_vm12 = vmor %vm2743_vm11, %vm2744_vm10 }
0x1c11   : > { %v2739_v10 = vmul.f32 %v3677_v2, %v2738_v53 }
0x1c13   : > { %v2740_v48 = vmul.f32 0.5, %v2739_v10 }
0x1c15   : > { %v2741_v55 = vsub.f32 1.5, %v2740_v48 }
0x1c17   : > { %v2742_v56 = vmul.f32 %v3677_v2, %v2741_v55 }
0x1c19   : > { %v2746_v58 = vsel %vm2745_vm12, %v3677_v2, %v2742_v56  ;;  %v3682_v2 = vld [vmem:[#allocation13] sm:$0xff] }
0x1c1a   : > { %v2747_v61 = vmul.f32 %v2746_v58, %v2730_v43  ;;  %v2892_v53 = vperm.slane %v3682_v2, 5  ;;  %v2894_v48 = vperm.slane %v3682_v2, 6 }
0x1c1c   : > { %v2749_v62 = vmul.f32 %v2748_v57, %v2747_v61 }
0x1c1e   : > { %v2751_v63 = vadd.f32 %v2750_v59, %v2749_v62 }
0x1c20   : > { %v2752_v0 = vpack.c.bf16 %v2751_v63, %v2751_v63 }
0x1c22   : > { %3384 = vmatmul.msk.bf16.vlgmr.msra.gmra.mxu3 %vm673_vm2, %v2752_v0 }
0x1ca5   : > { %v2787_v5 = vpop.f32.mrf.mxu3 }
0x1ca6   : > { %v2788_v6 = vadd.f32 %v3599_v4, %v2787_v5 }
0x1ca8   : > { %v2791_v7 = vmax.f32 %v2788_v6, 0.0 }
0x1caa   : > { %v2792_v9 = vpack.c.bf16 %v2791_v7, %v2791_v7 }
0x1cac   : > { %3409 = vmatmul.msk.bf16.vlgmr.msrb.gmra.mxu2 %vm724_vm3, %v2792_v9 }
0x1cad   : > { %v2789_v12 = vpop.f32.mrf.mxu3 }
0x1d2f   : > { %v2839_v15 = vpop.f32.mrf.mxu2 }
0x1d30   : > { %v2840_v16 = vadd.f32 %v2839_v15, %v2802_v14 }
0x1d32   : > { %v2843_v17 = vadd.f32 %v2840_v16, %v2751_v63 }
0x1d34   : > { %v2844_v8 = vsel %vm673_vm2, %v2843_v17, 0.0 }
0x1d35   : > { %2845 = vadd.xlane.f32.xlu2 %v2844_v8 }
0x1d37   : > { %v2841_v18 = vpop.f32.mrf.mxu2 }
0x1da8   : > { %v2846_v19 = vpop.xlane.xlu2 %2845 }
0x1da9   : > { %v2847_v21 = vmul.f32 %v2846_v19, %v4354_v20 }
0x1dab   : > { %v2848_v22 = vsub.f32 %v2843_v17, %v2847_v21 }
0x1dad   : > { %v2849_v23 = vmul.f32 %v2848_v22, %v2848_v22 }
0x1daf   : > { %v2850_v11 = vsel %vm673_vm2, %v2849_v23, 0.0 }
0x1db0   : > { %2851 = vadd.xlane.f32.xlu1 %v2850_v11 }
0x1e23   : > { %v2852_v24 = vpop.xlane.xlu1 %2851 }
0x1e24   : > { %v2853_v13 = vmul.f32 %v2852_v24, %v4354_v20 }
0x1e26   : > { %v2854_v25 = vadd.f32 1e-06, %v2853_v13 }
0x1e28   : > { %3678 = vrsqrt.f32 %v2854_v25  ;;  %vm2861_vm13 = vweird.f32 %v2854_v25 }
0x1e2e   : > { %v3679_v26 = vpop.eup %3678 }
0x1e2f   : > { %v2856_v37 = vmul.f32 %v3679_v26, %v2854_v25  ;;  %vm2862_vm3 = vweird.f32 %v3679_v26 }
0x1e30   : > { %vm2863_vm0 = vmor %vm2861_vm13, %vm2862_vm3 }
0x1e31   : > { %v2857_v27 = vmul.f32 %v3679_v26, %v2856_v37 }
0x1e33   : > { %v2858_v28 = vmul.f32 0.5, %v2857_v27 }
0x1e35   : > { %v2859_v29 = vsub.f32 1.5, %v2858_v28 }
0x1e37   : > { %v2860_v30 = vmul.f32 %v3679_v26, %v2859_v29 }
0x1e39   : > { %v2864_v32 = vsel %vm2863_vm0, %v3679_v26, %v2860_v30 }
0x1e3a   : > { %v2865_v35 = vmul.f32 %v2864_v32, %v2848_v22 }
0x1e3c   : > { %v2867_v34 = vmul.f32 %v2866_v31, %v2865_v35 }
0x1e3e   : > { %v2869_v36 = vadd.f32 %v2868_v33, %v2867_v34 }
0x1e40   : > { %v2870_v38 = vsel %vm673_vm2, %v2869_v36, 0.0 }
0x1e41   : > { %2871 = vadd.xlane.f32.xlu0 %v2870_v38 }
0x1eb4   : > { %v2872_v39 = vpop.xlane.xlu0 %2871 }
0x1eb5   : > { %v2873_v40 = vmul.f32 %v2872_v39, %v4354_v20 }
0x1eb7   : > { %v2874_v41 = vsub.f32 %v2869_v36, %v2873_v40 }
0x1eb9   : > { %v2875_v42 = vmul.f32 %v2874_v41, %v2874_v41 }
0x1ebb   : > { %v2876_v43 = vsel %vm673_vm2, %v2875_v42, 0.0 }
0x1ebc   : > { %2877 = vadd.xlane.f32.xlu2 %v2876_v43 }
0x1f2f   : > { %v2878_v44 = vpop.xlane.xlu2 %2877 }
0x1f30   : > { %v2879_v60 = vmul.f32 %v2878_v44, %v4354_v20 }
0x1f32   : > { %v2880_v46 = vadd.f32 1e-06, %v2879_v60 }
0x1f34   : > { %3680 = vrsqrt.f32 %v2880_v46  ;;  %vm2887_vm4 = vweird.f32 %v2880_v46 }
0x1f3a   : > { %v3681_v47 = vpop.eup %3680 }
0x1f3b   : > { %v2882_v45 = vmul.f32 %v3681_v47, %v2880_v46  ;;  %vm2888_vm1 = vweird.f32 %v3681_v47 }
0x1f3c   : > { %vm2889_vm5 = vmor %vm2887_vm4, %vm2888_vm1 }
0x1f3d   : > { %v2883_v49 = vmul.f32 %v3681_v47, %v2882_v45 }
0x1f3f   : > { %v2884_v50 = vmul.f32 0.5, %v2883_v49 }
0x1f41   : > { %v2885_v51 = vsub.f32 1.5, %v2884_v50 }
0x1f43   : > { %v2886_v52 = vmul.f32 %v3681_v47, %v2885_v51 }
0x1f45   : > { %v2890_v20 = vsel %vm2889_vm5, %v3681_v47, %v2886_v52 }
0x1f46   : > { %v2891_v10 = vmul.f32 %v2890_v20, %v2874_v41 }
0x1f48   : > { %v2893_v54 = vmul.f32 %v2892_v53, %v2891_v10 }
0x1f4a   : > { %v2895_v55 = vadd.f32 %v2894_v48, %v2893_v54 }
0x1f4c   : > { %2896 = vst.msk [vmem:[%s618_s25] sm:$0xff] %vm673_vm2, %v2895_v55 }
0x1f4d   : > { %3950 = shalt.err (!%p3947_p10)
}
0x1f4e   : > { %3495 = dma.vmem_to_hbm [thread:$0]  (%p4206_p5), %s2911_s14, 128, %s2913_s17, %s2898_s20  }
0x1f4f PF: > { %s4817_s11 = sld [smem:[#allocation25_spill]]  ;;  %s2924_s5 = sand.u32 1, %s3997_s29  }
0x1f50   : > { %s2925_s15 = scalar_lea.sflag [#allocation4], %s2924_s5 }
0x1f55   : > { %p4818_p11 = scmp.ge.s32.totalorder %s4817_s11, 2 }
0x1f57   : > { %p3524_p4 = pnand %p4818_p11, %p4210_p6 }
0x1f59   : > { %p3525_p13 = pneg %p3524_p4 }
0x1f5b   : > { %3992 = dma.done.wait (%p3525_p13), %s2925_s15, 128  }
0x1f5c   : > { %3994 = vsyncadd (%p3525_p13), %s2925_s15, 4294967168  ;;  %s4819_s16 = sld [smem:[#allocation26_spill]]  ;;  %s4822_s29 = smov %s4001_s30 }
0x1f5d   : > { %s4820_s13 = sld [smem:[#allocation24_spill]] }
0x1f5e   : > { %s4821_s15 = sld [smem:[#allocation27_spill]] }
0x1f62   : > { %p33_p0 = scmp.ge.s32.totalorder %s4819_s16, 4  }
0x1f63   : > { %s4823_s30 = smov %s4820_s13 }
0x1f64   :  { %35 = sbr.rel (!%p33_p0) target bundleno = 20 (0x14), region = 172 }
0x1f69   :  { %2931 = vsyncpa [#allocation3], 1 }
0x1f6a   :  { %2933 = vsyncpa [#allocation3 + $0x1], 1 }
0x1f6b   :  { %2934 = vsyncpa [#allocation6], 1 }
0x1f6c   :  { %2936 = vsyncpa [#allocation6 + $0x1], 1 }
0x1f6d   :  { %2937 = vsyncpa [#allocation9], 1 }
0x1f6e   :  { %2938 = vsyncpa [#allocation12], 1 }
0x1f6f   :  { %2939 = vsyncpa [#allocation15], 1 }
0x1f70   :  { %2940 = vsyncpa [#allocation4], 1 }
0x1f71   :  { %2942 = vsyncpa [#allocation4 + $0x1], 1 }

</bundles_post_ra>
